<compile_context>
chip_gen: v7x
topology: tpu7x:2x2x1
jax: 0.10.0
libtpu: 0.0.40
codegen_flags: <defaults>
</compile_context>

<pallas_src>
import jax
import jax.numpy as jnp
from jax.experimental import pallas as pl
from jax.experimental.pallas import tpu as pltpu

D_IN, D_H1, D_H2, D_OUT = 336, 768, 2048, 784
D_IN_PAD = 384    # 3 * 128 : lane-aligned K for fc1 (padded w1 rows are zero)


def _round_up(x, m):
    return (x + m - 1) // m * m


def _generator_kernel(x_ref, w1_ref, b1_ref, w2_ref, b2_ref, w3_ref, b3_ref, o_ref):
    # fc1 (no activation, matching the original forward). bf16 inputs, f32 acc.
    h1 = jnp.dot(x_ref[...], w1_ref[...], preferred_element_type=jnp.float32)
    h1 = (h1 + b1_ref[...]).astype(jnp.bfloat16)

    # fc2 + activation (assumed ReLU; see TODO at top of file)
    h2 = jnp.dot(h1, w2_ref[...], preferred_element_type=jnp.float32)
    h2 = jnp.maximum(h2 + b2_ref[...], 0.0).astype(jnp.bfloat16)

    # fc3 + Tanh (the NCHW reshape is pure glue, done in the JAX wrapper)
    h3 = jnp.dot(h2, w3_ref[...], preferred_element_type=jnp.float32)
    o_ref[...] = jnp.tanh(h3 + b3_ref[...])


def prepare_params(params):
    """One-time prep: pad fc1's K dim to 384 and cast weights to bf16."""
    w1, b1, w2, b2, w3, b3 = params
    w1p = jnp.zeros((D_IN_PAD, D_H1), jnp.bfloat16).at[:D_IN, :].set(
        w1.astype(jnp.bfloat16))
    return (w1p, b1.astype(jnp.float32),
            w2.astype(jnp.bfloat16), b2.astype(jnp.float32),
            w3.astype(jnp.bfloat16), b3.astype(jnp.float32))


@jax.jit
def generator_forward(x, prepared_params):
    """x: (B, 336) float32  ->  (B, 1, 28, 28) float32."""
    w1, b1, w2, b2, w3, b3 = prepared_params
    B = x.shape[0]

    # Batch tile: big MXU M-tiles once the batch allows it, otherwise one
    # bf16-sublane-aligned (multiple of 16) tile covering the padded batch.
    if B >= 1024:
        tile_b = 512          # enabled by single-buffered weights; sweep on v7x
    elif B >= 256:
        tile_b = 256
    else:
        tile_b = _round_up(B, 16)
    b_pad = _round_up(B, tile_b)

    # Lane/sublane-aligned bf16 input slab (zero-padded rows/cols are inert:
    # the padded w1 rows are zero too).
    xp = jnp.zeros((b_pad, D_IN_PAD), jnp.bfloat16)
    xp = xp.at[:B, :D_IN].set(x.astype(jnp.bfloat16))

    # Weights / biases are VMEM-resident across batch tiles: constant index_map
    # and a single pipeline buffer (no point double-buffering a block whose
    # index never changes).
    def resident(shape):
        return pl.BlockSpec(shape, lambda i: (0, 0), pipeline_mode=pl.Buffered(1))

    out = pl.pallas_call(
        _generator_kernel,
        out_shape=jax.ShapeDtypeStruct((b_pad, D_OUT), jnp.float32),
        grid=(b_pad // tile_b,),
        in_specs=[
            pl.BlockSpec((tile_b, D_IN_PAD), lambda i: (i, 0)),   # x tile
            resident((D_IN_PAD, D_H1)),                           # w1
            resident((1, D_H1)),                                  # b1
            resident((D_H1, D_H2)),                               # w2
            resident((1, D_H2)),                                  # b2
            resident((D_H2, D_OUT)),                              # w3 (784 = full dim)
            resident((1, D_OUT)),                                 # b3
        ],
        out_specs=pl.BlockSpec((tile_b, D_OUT), lambda i: (i, 0)),
        compiler_params=pltpu.CompilerParams(
            dimension_semantics=("parallel",),
            vmem_limit_bytes=(48 << 20) if tile_b >= 512 else (32 << 20),
        ),
    )(xp, w1, b1, w2, b2, w3, b3)

    # Drop batch padding (no-op when B is already a tile multiple), then mimic
    # x.view(-1, 1, 28, 28).
    return out[:B].reshape(-1, 1, 28, 28)


def init_params(key):
    """PyTorch nn.Linear default init (U(-1/sqrt(fan_in), +1/sqrt(fan_in))).

    Weights are stored as (in_features, out_features), i.e. already transposed
    relative to PyTorch's (out, in) layout, so the kernel computes x @ W."""
    ks = jax.random.split(key, 6)

    def linear(kw, kb, fan_in, fan_out):
        bound = 1.0 / jnp.sqrt(jnp.float32(fan_in))
        w = jax.random.uniform(kw, (fan_in, fan_out), jnp.float32, -bound, bound)
        b = jax.random.uniform(kb, (1, fan_out), jnp.float32, -bound, bound)
        return w, b

    w1, b1 = linear(ks[0], ks[1], D_IN, D_H1)
    w2, b2 = linear(ks[2], ks[3], D_H1, D_H2)
    w3, b3 = linear(ks[4], ks[5], D_H2, D_OUT)
    return (w1, b1, w2, b2, w3, b3)


def _reference_forward(x, params):
    """Pure-JAX f32 reference for a sanity check."""
    w1, b1, w2, b2, w3, b3 = params
    h = x @ w1 + b1
    h = jnp.maximum(h @ w2 + b2, 0.0)
    h = h @ w3 + b3
    return jnp.tanh(h).reshape(-1, 1, 28, 28)


if __name__ == "__main__":
    key = jax.random.PRNGKey(0)
    k_params, k_x = jax.random.split(key)

    params = init_params(k_params)
    prepared = prepare_params(params)

    B = 8  # small batch
    x = jax.random.normal(k_x, (B, D_IN), dtype=jnp.float32)

    y = generator_forward(x, prepared)
    y = jax.block_until_ready(y)

    assert y.shape == (B, 1, 28, 28), y.shape

    # bf16 weights/activations -> relaxed tolerance vs the f32 reference
    # (tanh output is bounded; observed error is a few 1e-3).
    y_ref = _reference_forward(x, params)
    max_err = float(jnp.max(jnp.abs(y - y_ref)))
    assert max_err < 2.5e-2, max_err

    print("KERNEL_OK")
</pallas_src>

<mosaic_0001>
module attributes {stable_mosaic.version = 11 : i64} {
  func.func @_generator_kernel(%arg0: i32, %arg1: memref<16x384xbf16, #tpu.memory_space<vmem>>, %arg2: memref<384x768xbf16, #tpu.memory_space<vmem>>, %arg3: memref<1x768xf32, #tpu.memory_space<vmem>>, %arg4: memref<768x2048xbf16, #tpu.memory_space<vmem>>, %arg5: memref<1x2048xf32, #tpu.memory_space<vmem>>, %arg6: memref<2048x784xbf16, #tpu.memory_space<vmem>>, %arg7: memref<1x784xf32, #tpu.memory_space<vmem>>, %arg8: memref<16x784xf32, #tpu.memory_space<vmem>>) attributes {dimension_semantics = [#tpu.dimension_semantics<parallel>], iteration_bounds = array<i64: 1>, scalar_prefetch = 0 : i64, scratch_operands = 0 : i64, tpu.core_type = #tpu.core_type<tc>, window_params = [{transform_indices = @transform_0, window_bounds = array<i64: 16, 384>}, {pipeline_mode = #tpu.pipeline_mode<synchronous>, transform_indices = @transform_1, window_bounds = array<i64: 384, 768>}, {pipeline_mode = #tpu.pipeline_mode<synchronous>, transform_indices = @transform_2, window_bounds = array<i64: 1, 768>}, {pipeline_mode = #tpu.pipeline_mode<synchronous>, transform_indices = @transform_3, window_bounds = array<i64: 768, 2048>}, {pipeline_mode = #tpu.pipeline_mode<synchronous>, transform_indices = @transform_4, window_bounds = array<i64: 1, 2048>}, {pipeline_mode = #tpu.pipeline_mode<synchronous>, transform_indices = @transform_5, window_bounds = array<i64: 2048, 784>}, {pipeline_mode = #tpu.pipeline_mode<synchronous>, transform_indices = @transform_6, window_bounds = array<i64: 1, 784>}, {transform_indices = @transform_7, window_bounds = array<i64: 16, 784>}]} {
    %c0 = arith.constant 0 : index
    %c0_0 = arith.constant 0 : index
    %0 = vector.load %arg1[%c0, %c0_0] : memref<16x384xbf16, #tpu.memory_space<vmem>>, vector<16x384xbf16>
    %c0_1 = arith.constant 0 : index
    %c0_2 = arith.constant 0 : index
    %1 = vector.load %arg2[%c0_1, %c0_2] : memref<384x768xbf16, #tpu.memory_space<vmem>>, vector<384x768xbf16>
    %cst = arith.constant dense<0.000000e+00> : vector<16x768xf32>
    %2 = tpu.matmul %0, %1, %cst {dimension_numbers = #tpu.dot_dimension_numbers<[1], [0], [0], [1], [0, 0, 1, 1], [], []>} : vector<16x384xbf16>, vector<384x768xbf16>, vector<16x768xf32> -> vector<16x768xf32>
    %c0_3 = arith.constant 0 : index
    %c0_4 = arith.constant 0 : index
    %3 = vector.load %arg3[%c0_3, %c0_4] : memref<1x768xf32, #tpu.memory_space<vmem>>, vector<1x768xf32>
    %4 = vector.broadcast %3 : vector<1x768xf32> to vector<16x768xf32>
    %5 = arith.addf %2, %4 : vector<16x768xf32>
    %6 = arith.truncf %5 : vector<16x768xf32> to vector<16x768xbf16>
    %c0_5 = arith.constant 0 : index
    %c0_6 = arith.constant 0 : index
    %7 = vector.load %arg4[%c0_5, %c0_6] : memref<768x2048xbf16, #tpu.memory_space<vmem>>, vector<768x2048xbf16>
    %cst_7 = arith.constant dense<0.000000e+00> : vector<16x2048xf32>
    %8 = tpu.matmul %6, %7, %cst_7 {dimension_numbers = #tpu.dot_dimension_numbers<[1], [0], [0], [1], [0, 0, 1, 1], [], []>} : vector<16x768xbf16>, vector<768x2048xbf16>, vector<16x2048xf32> -> vector<16x2048xf32>
    %c0_8 = arith.constant 0 : index
    %c0_9 = arith.constant 0 : index
    %9 = vector.load %arg5[%c0_8, %c0_9] : memref<1x2048xf32, #tpu.memory_space<vmem>>, vector<1x2048xf32>
    %10 = vector.broadcast %9 : vector<1x2048xf32> to vector<16x2048xf32>
    %11 = arith.addf %8, %10 : vector<16x2048xf32>
    %cst_10 = arith.constant 0.000000e+00 : f32
    %12 = vector.broadcast %cst_10 : f32 to vector<16x2048xf32>
    %13 = arith.maximumf %11, %12 : vector<16x2048xf32>
    %14 = arith.truncf %13 : vector<16x2048xf32> to vector<16x2048xbf16>
    %c0_11 = arith.constant 0 : index
    %c0_12 = arith.constant 0 : index
    %15 = vector.load %arg6[%c0_11, %c0_12] : memref<2048x784xbf16, #tpu.memory_space<vmem>>, vector<2048x784xbf16>
    %cst_13 = arith.constant dense<0.000000e+00> : vector<16x784xf32>
    %16 = tpu.matmul %14, %15, %cst_13 {dimension_numbers = #tpu.dot_dimension_numbers<[1], [0], [0], [1], [0, 0, 1, 1], [], []>} : vector<16x2048xbf16>, vector<2048x784xbf16>, vector<16x784xf32> -> vector<16x784xf32>
    %c0_14 = arith.constant 0 : index
    %c0_15 = arith.constant 0 : index
    %17 = vector.load %arg7[%c0_14, %c0_15] : memref<1x784xf32, #tpu.memory_space<vmem>>, vector<1x784xf32>
    %18 = vector.broadcast %17 : vector<1x784xf32> to vector<16x784xf32>
    %19 = arith.addf %16, %18 : vector<16x784xf32>
    %20 = math.tanh %19 : vector<16x784xf32>
    %c0_16 = arith.constant 0 : index
    %c0_17 = arith.constant 0 : index
    %21 = vector.load %arg8[%c0_16, %c0_17] : memref<16x784xf32, #tpu.memory_space<vmem>>, vector<16x784xf32>
    tpu.vector_store %arg8[%c0_16, %c0_17], %20 {strides = array<i32>} : memref<16x784xf32, #tpu.memory_space<vmem>>, vector<16x784xf32>,
    return
  }
  func.func @transform_0(%arg0: i32) -> (i32, i32) {
    %c0_i32 = arith.constant 0 : i32
    %c0_i32_0 = arith.constant 0 : i32
    return %arg0, %c0_i32 : i32, i32
  }
  func.func @transform_1(%arg0: i32) -> (i32, i32) {
    %c0_i32 = arith.constant 0 : i32
    %c0_i32_0 = arith.constant 0 : i32
    %c0_i32_1 = arith.constant 0 : i32
    return %c0_i32, %c0_i32_0 : i32, i32
  }
  func.func @transform_2(%arg0: i32) -> (i32, i32) {
    %c0_i32 = arith.constant 0 : i32
    %c0_i32_0 = arith.constant 0 : i32
    %c0_i32_1 = arith.constant 0 : i32
    return %c0_i32, %c0_i32_0 : i32, i32
  }
  func.func @transform_3(%arg0: i32) -> (i32, i32) {
    %c0_i32 = arith.constant 0 : i32
    %c0_i32_0 = arith.constant 0 : i32
    %c0_i32_1 = arith.constant 0 : i32
    return %c0_i32, %c0_i32_0 : i32, i32
  }
  func.func @transform_4(%arg0: i32) -> (i32, i32) {
    %c0_i32 = arith.constant 0 : i32
    %c0_i32_0 = arith.constant 0 : i32
    %c0_i32_1 = arith.constant 0 : i32
    return %c0_i32, %c0_i32_0 : i32, i32
  }
  func.func @transform_5(%arg0: i32) -> (i32, i32) {
    %c0_i32 = arith.constant 0 : i32
    %c0_i32_0 = arith.constant 0 : i32
    %c0_i32_1 = arith.constant 0 : i32
    return %c0_i32, %c0_i32_0 : i32, i32
  }
  func.func @transform_6(%arg0: i32) -> (i32, i32) {
    %c0_i32 = arith.constant 0 : i32
    %c0_i32_0 = arith.constant 0 : i32
    %c0_i32_1 = arith.constant 0 : i32
    return %c0_i32, %c0_i32_0 : i32, i32
  }
  func.func @transform_7(%arg0: i32) -> (i32, i32) {
    %c0_i32 = arith.constant 0 : i32
    %c0_i32_0 = arith.constant 0 : i32
    return %arg0, %c0_i32 : i32, i32
  }
}

</mosaic_0001>

<bundles_post_ra>
// kernel: generator_forward.1
= control target key start
LH: loop header
LB: loop body
LE: loop exit
PB: predicated region body
PF: predicated region fallthrough
CT: control target
= control target key end

     0   :  { %v17775_v1 = vmov 0   ;;  %vm14028_vm0 = vcmask 130048   ;;  %s23578_s1 = inlined_call_operand.vmem [shape: bf16[384,768], index: 1, kind: input, shape index: {}]   ;;  %s23579_s0 = inlined_call_operand.vmem [shape: bf16[16,384], index: 0, kind: input, shape index: {}]   ;;  %s23580_s3 = inlined_call_operand.vmem [shape: bf16[768,2048], index: 3, kind: input, shape index: {}]   ;;  %s23581_s2 = inlined_call_operand.vmem [shape: f32[1,768], index: 2, kind: input, shape index: {}]   ;;  %s23582_s4 = inlined_call_operand.vmem [shape: f32[1,2048], index: 4, kind: input, shape index: {}]   ;;  %s23583_s5 = inlined_call_operand.vmem [shape: bf16[2048,784], index: 5, kind: input, shape index: {}]   ;;  %s23584_s6 = inlined_call_operand.vmem [shape: f32[1,784], index: 6, kind: input, shape index: {}]   ;;  %s23585_s7 = inlined_call_operand.vmem [shape: f32[16,784], index: 7, kind: output, shape index: {}]  }
   0x1   :  { %v16245_v0 = vld [vmem:[%s23578_s1 + $0x4] ss:$24 sps:$4 sm:$0xff]   ;;  %1104 = vmatprep.mubr.bf16.mxu1 %v17775_v1  ;;  %v16247_v2 = vld [vmem:[%s23578_s1] ss:$24 sps:$4 sm:$0xff]   ;;  %v16248_v3 = vld [vmem:[%s23578_s1 + $0x34] ss:$24 sps:$4 sm:$0xff]  }
   0x2   :  { %943 = vmatprep.subr.bf16.mxu0 %v16245_v0  ;;  %v16250_v4 = vld [vmem:[%s23578_s1 + $0x30] ss:$24 sps:$4 sm:$0xff]   ;;  %v16251_v5 = vld [vmem:[%s23578_s1 + $0x64] ss:$24 sps:$4 sm:$0xff]   ;;  %v16253_v6 = vld [vmem:[%s23578_s1 + $0x60] ss:$24 sps:$4 sm:$0xff]  }
   0x3   :  { %944 = vmatpush1.bf16.msra.mxu0 %v16247_v2  ;;  %v16254_v7 = vld [vmem:[%s23578_s1 + $0x94] ss:$24 sps:$4 sm:$0xff]   ;;  %v16256_v8 = vld [vmem:[%s23578_s1 + $0x90] ss:$24 sps:$4 sm:$0xff]   ;;  %v16257_v9 = vld [vmem:[%s23578_s1 + $0xc4] ss:$24 sps:$4 sm:$0xff]  }
   0x4   :  { %945 = vmatprep.subr.bf16.mxu0 %v16248_v3  ;;  %v16259_v10 = vld [vmem:[%s23578_s1 + $0xc0] ss:$24 sps:$4 sm:$0xff]   ;;  %v16260_v11 = vld [vmem:[%s23578_s1 + $0xf4] ss:$24 sps:$4 sm:$0xff]   ;;  %v16262_v12 = vld [vmem:[%s23578_s1 + $0xf0] ss:$24 sps:$4 sm:$0xff]  }
   0x5   :  { %v16263_v13 = vld [vmem:[%s23578_s1 + $0x124] ss:$24 sps:$4 sm:$0xff]   ;;  %v16265_v15 = vld [vmem:[%s23578_s1 + $0x120] ss:$24 sps:$4 sm:$0xff]   ;;  %v16266_v16 = vld [vmem:[%s23578_s1 + $0x154] ss:$24 sps:$4 sm:$0xff]  }
   0x6   :  { %v17859_v14 = vld [vmem:[%s23579_s0 + $0x4] ss:$12 sps:$4 sm:$0xff]   ;;  %v16271_v19 = vld [vmem:[%s23578_s1 + $0x180] ss:$24 sps:$4 sm:$0xff]   ;;  %v16272_v20 = vld [vmem:[%s23578_s1 + $0x1b4] ss:$24 sps:$4 sm:$0xff]  }
   0x7   :  { %946 = vmatpush1.bf16.msra.mxu0 %v16250_v4  ;;  %975 = vmatprep.mubr.bf16.mxu0 %v17859_v14  ;;  %v16268_v17 = vld [vmem:[%s23578_s1 + $0x150] ss:$24 sps:$4 sm:$0xff]   ;;  %v16269_v18 = vld [vmem:[%s23578_s1 + $0x184] ss:$24 sps:$4 sm:$0xff]   ;;  %v16277_v23 = vld [vmem:[%s23578_s1 + $0x1e0] ss:$24 sps:$4 sm:$0xff]  }
   0x8   :  { %947 = vmatprep.subr.bf16.mxu0 %v16251_v5  ;;  %v16274_v21 = vld [vmem:[%s23578_s1 + $0x1b0] ss:$24 sps:$4 sm:$0xff]   ;;  %v16275_v22 = vld [vmem:[%s23578_s1 + $0x1e4] ss:$24 sps:$4 sm:$0xff]   ;;  %v16278_v24 = vld [vmem:[%s23578_s1 + $0x214] ss:$24 sps:$4 sm:$0xff]  }
   0x9   :  { %v16280_v25 = vld [vmem:[%s23578_s1 + $0x210] ss:$24 sps:$4 sm:$0xff]   ;;  %v16281_v26 = vld [vmem:[%s23578_s1 + $0x244] ss:$24 sps:$4 sm:$0xff]   ;;  %v16283_v27 = vld [vmem:[%s23578_s1 + $0x240] ss:$24 sps:$4 sm:$0xff]  }
   0xa   :  { %v16348_v28 = vld [vmem:[%s23578_s1 + $0x30c] ss:$24 sps:$4 sm:$0xff]   ;;  %v16350_v29 = vld [vmem:[%s23578_s1 + $0x308] ss:$24 sps:$4 sm:$0xff]   ;;  %v16354_v31 = vld [vmem:[%s23578_s1 + $0x33c] ss:$24 sps:$4 sm:$0xff]  }
   0xb   :  { %948 = vmatpush1.bf16.msra.mxu0 %v16253_v6  ;;  %v16284_v30 = vld [vmem:[%s23578_s1 + $0x274] ss:$24 sps:$4 sm:$0xff]   ;;  %1072 = vmatprep.subr.bf16.mxu1 %v16348_v28  ;;  %v16356_v32 = vld [vmem:[%s23578_s1 + $0x338] ss:$24 sps:$4 sm:$0xff]   ;;  %v16287_v34 = vld [vmem:[%s23578_s1 + $0x2a4] ss:$24 sps:$4 sm:$0xff]  }
   0xc   :  { %949 = vmatprep.subr.bf16.mxu0 %v16254_v7  ;;  %1073 = vmatpush1.bf16.msra.mxu1 %v16350_v29  ;;  %v16286_v33 = vld [vmem:[%s23578_s1 + $0x270] ss:$24 sps:$4 sm:$0xff]   ;;  %v16360_v35 = vld [vmem:[%s23578_s1 + $0x36c] ss:$24 sps:$4 sm:$0xff]   ;;  %v16289_v37 = vld [vmem:[%s23578_s1 + $0x2a0] ss:$24 sps:$4 sm:$0xff]  }
   0xd   :  { %1074 = vmatprep.subr.bf16.mxu1 %v16354_v31  ;;  %v16362_v36 = vld [vmem:[%s23578_s1 + $0x368] ss:$24 sps:$4 sm:$0xff]   ;;  %v16366_v38 = vld [vmem:[%s23578_s1 + $0x39c] ss:$24 sps:$4 sm:$0xff]   ;;  %v16368_v40 = vld [vmem:[%s23578_s1 + $0x398] ss:$24 sps:$4 sm:$0xff]  }
   0xe   :  { %v16290_v39 = vld [vmem:[%s23578_s1 + $0x2d4] ss:$24 sps:$4 sm:$0xff]   ;;  %v16292_v41 = vld [vmem:[%s23578_s1 + $0x2d0] ss:$24 sps:$4 sm:$0xff]   ;;  %v16297_v43 = vld [vmem:[%s23578_s1 + $0x304] ss:$24 sps:$4 sm:$0xff]  }
   0xf   :  { %950 = vmatpush1.bf16.msra.mxu0 %v16256_v8  ;;  %v16372_v42 = vld [vmem:[%s23578_s1 + $0x3cc] ss:$24 sps:$4 sm:$0xff]   ;;  %v16374_v45 = vld [vmem:[%s23578_s1 + $0x3c8] ss:$24 sps:$4 sm:$0xff]   ;;  %v16378_v48 = vld [vmem:[%s23578_s1 + $0x3fc] ss:$24 sps:$4 sm:$0xff]  }
  0x10   :  { %951 = vmatprep.subr.bf16.mxu0 %v16257_v9  ;;  %1075 = vmatpush1.bf16.msra.mxu1 %v16356_v32  ;;  %v17952_v44 = vld [vmem:[%s23579_s0] ss:$12 sps:$4 sm:$0xff]   ;;  %v16380_v49 = vld [vmem:[%s23578_s1 + $0x3f8] ss:$24 sps:$4 sm:$0xff]   ;;  %v16304_v52 = vld [vmem:[%s23578_s1 + $0x364] ss:$24 sps:$4 sm:$0xff]  }
  0x11   :  { %1076 = vmatprep.subr.bf16.mxu1 %v16360_v35  ;;  %v16295_v46 = vld [vmem:[%s23578_s1 + $0x300] ss:$24 sps:$4 sm:$0xff]   ;;  %v16301_v47 = vld [vmem:[%s23578_s1 + $0x334] ss:$24 sps:$4 sm:$0xff]   ;;  %v16299_v50 = vld [vmem:[%s23578_s1 + $0x330] ss:$24 sps:$4 sm:$0xff]  }
  0x12   :  { %v16384_v51 = vld [vmem:[%s23578_s1 + $0x42c] ss:$24 sps:$4 sm:$0xff]   ;;  %v16386_v53 = vld [vmem:[%s23578_s1 + $0x428] ss:$24 sps:$4 sm:$0xff]   ;;  %v16390_v55 = vld [vmem:[%s23578_s1 + $0x45c] ss:$24 sps:$4 sm:$0xff]  }
  0x13   :  { %952 = vmatpush1.bf16.msra.mxu0 %v16259_v10  ;;  %v16302_v54 = vld [vmem:[%s23578_s1 + $0x360] ss:$24 sps:$4 sm:$0xff]   ;;  %v16307_v56 = vld [vmem:[%s23578_s1 + $0x394] ss:$24 sps:$4 sm:$0xff]   ;;  %v16305_v58 = vld [vmem:[%s23578_s1 + $0x390] ss:$24 sps:$4 sm:$0xff]  }
  0x14   :  { %953 = vmatprep.subr.bf16.mxu0 %v16260_v11  ;;  %1077 = vmatpush1.bf16.msra.mxu1 %v16362_v36  ;;  %v16392_v57 = vld [vmem:[%s23578_s1 + $0x458] ss:$24 sps:$4 sm:$0xff]   ;;  %v16310_v59 = vld [vmem:[%s23578_s1 + $0x3c4] ss:$24 sps:$4 sm:$0xff]   ;;  %v18007_v61 = vld [vmem:[%s23579_s0 + $0x8] ss:$12 sps:$4 sm:$0xff]  }
  0x15   :  { %1078 = vmatprep.subr.bf16.mxu1 %v16366_v38  ;;  %v16308_v60 = vld [vmem:[%s23578_s1 + $0x3c0] ss:$24 sps:$4 sm:$0xff]   ;;  %v16313_v62 = vld [vmem:[%s23578_s1 + $0x3f4] ss:$24 sps:$4 sm:$0xff]   ;;  %v16311_v63 = vld [vmem:[%s23578_s1 + $0x3f0] ss:$24 sps:$4 sm:$0xff]  }
  0x16   :  { %v16316_v0 = vld [vmem:[%s23578_s1 + $0x424] ss:$24 sps:$4 sm:$0xff]   ;;  %v16314_v2 = vld [vmem:[%s23578_s1 + $0x420] ss:$24 sps:$4 sm:$0xff]   ;;  %v16319_v3 = vld [vmem:[%s23578_s1 + $0x454] ss:$24 sps:$4 sm:$0xff]  }
  0x17   :  { %954 = vmatpush1.bf16.msra.mxu0 %v16262_v12  ;;  %v16317_v4 = vld [vmem:[%s23578_s1 + $0x450] ss:$24 sps:$4 sm:$0xff]   ;;  %v16323_v5 = vld [vmem:[%s23578_s1 + $0xc] ss:$24 sps:$4 sm:$0xff]   ;;  %v16326_v7 = vld [vmem:[%s23578_s1 + $0x3c] ss:$24 sps:$4 sm:$0xff]  }
  0x18   :  { %955 = vmatprep.subr.bf16.mxu0 %v16263_v13  ;;  %1079 = vmatpush1.bf16.msra.mxu1 %v16368_v40  ;;  %v16321_v6 = vld [vmem:[%s23578_s1 + $0x8] ss:$24 sps:$4 sm:$0xff]   ;;  %v16324_v8 = vld [vmem:[%s23578_s1 + $0x38] ss:$24 sps:$4 sm:$0xff]   ;;  %v16329_v9 = vld [vmem:[%s23578_s1 + $0x6c] ss:$24 sps:$4 sm:$0xff]  }
  0x19   :  { %1080 = vmatprep.subr.bf16.mxu1 %v16372_v42  ;;  %v16327_v10 = vld [vmem:[%s23578_s1 + $0x68] ss:$24 sps:$4 sm:$0xff]   ;;  %v16332_v11 = vld [vmem:[%s23578_s1 + $0x9c] ss:$24 sps:$4 sm:$0xff]   ;;  %v16330_v12 = vld [vmem:[%s23578_s1 + $0x98] ss:$24 sps:$4 sm:$0xff]  }
  0x1a   :  { %v16335_v13 = vld [vmem:[%s23578_s1 + $0xcc] ss:$24 sps:$4 sm:$0xff]   ;;  %v16365_v42 = vld [vmem:[%s23578_s1 + $0x21c] ss:$24 sps:$4 sm:$0xff]  }
  0x1b   :  { %956 = vmatpush1.bf16.msra.mxu0 %v16265_v15  ;;  %v16333_v15 = vld [vmem:[%s23578_s1 + $0xc8] ss:$24 sps:$4 sm:$0xff]   ;;  %v16359_v36 = vld [vmem:[%s23578_s1 + $0x1ec] ss:$24 sps:$4 sm:$0xff]  }
  0x1c   :  { %957 = vmatprep.subr.bf16.mxu0 %v16266_v16  ;;  %1081 = vmatpush1.bf16.msra.mxu1 %v16374_v45  ;;  %v16338_v16 = vld [vmem:[%s23578_s1 + $0xfc] ss:$24 sps:$4 sm:$0xff]   ;;  %v1223_v28 = vld [vmem:[%s23580_s3 + $0x80] sm:$0xff] }
  0x1d   :  { %1082 = vmatprep.subr.bf16.mxu1 %v16378_v48  ;;  %v1231_v29 = vld [vmem:[%s23580_s3 + $0xc0] sm:$0xff] }
  0x1e   :  { %v14205_v31 = vcombine.high %v1223_v28, %v1231_v29  ;;  %v14204_v32 = vcombine.low %v1223_v28, %v1231_v29  ;;  %v1247_v35 = vld [vmem:[%s23580_s3 + $0x140] sm:$0xff] }
  0x1f   :  { %958 = vmatpush1.bf16.msra.mxu0 %v16268_v17  ;;  %v16336_v17 = vld [vmem:[%s23578_s1 + $0xf8] ss:$24 sps:$4 sm:$0xff]   ;;  %v1255_v40 = vld [vmem:[%s23580_s3 + $0x180] sm:$0xff] }
  0x20   :  { %959 = vmatprep.subr.bf16.mxu0 %v16269_v18  ;;  %1083 = vmatpush1.bf16.msra.mxu1 %v16380_v49  ;;  %v16341_v18 = vld [vmem:[%s23578_s1 + $0x12c] ss:$24 sps:$4 sm:$0xff]  }
  0x21   :  { %1084 = vmatprep.subr.bf16.mxu1 %v16384_v51  ;;  %v1279_v48 = vld [vmem:[%s23580_s3 + $0x240] sm:$0xff] }
  0x22   :  { %v16371_v49 = vld [vmem:[%s23578_s1 + $0x24c] ss:$24 sps:$4 sm:$0xff]  }
  0x23   :  { %960 = vmatpush1.bf16.msra.mxu0 %v16271_v19  ;;  %v16339_v19 = vld [vmem:[%s23578_s1 + $0x128] ss:$24 sps:$4 sm:$0xff]   ;;  %v16404_v29 = vld [vmem:[%s23578_s1 + $0xa4] ss:$24 sps:$4 sm:$0xff]  }
  0x24   :  { %961 = vmatprep.subr.bf16.mxu0 %v16272_v20  ;;  %1085 = vmatpush1.bf16.msra.mxu1 %v16386_v53  ;;  %v16344_v20 = vld [vmem:[%s23578_s1 + $0x15c] ss:$24 sps:$4 sm:$0xff]   ;;  %v1287_v53 = vld [vmem:[%s23580_s3 + $0x280] sm:$0xff] }
  0x25   :  { %1086 = vmatprep.subr.bf16.mxu1 %v16390_v55  ;;  %v16377_v55 = vld [vmem:[%s23578_s1 + $0x27c] ss:$24 sps:$4 sm:$0xff]   ;;  %v1391_v28 = vld [vmem:[%s23580_s3 + $0x5c0] sm:$0xff] }
  0x27   :  { %962 = vmatpush1.bf16.msra.mxu0 %v16274_v21  ;;  %v16342_v21 = vld [vmem:[%s23578_s1 + $0x158] ss:$24 sps:$4 sm:$0xff]  }
  0x28   :  { %963 = vmatprep.subr.bf16.mxu0 %v16275_v22  ;;  %1087 = vmatpush1.bf16.msra.mxu1 %v16392_v57  ;;  %v1207_v22 = vld [vmem:[%s23580_s3] sm:$0xff] }
  0x2b   :  { %964 = vmatpush1.bf16.msra.mxu0 %v16277_v23  ;;  %1105 = vmatmul.mubr.bf16.vlgmr.msra.gmra.mrb[0].mxu1 %v18007_v61  ;;  %v16347_v23 = vld [vmem:[%s23578_s1 + $0x18c] ss:$24 sps:$4 sm:$0xff]  }
  0x2c   :  { %965 = vmatprep.subr.bf16.mxu0 %v16278_v24  ;;  %v1215_v24 = vld [vmem:[%s23580_s3 + $0x40] sm:$0xff] }
  0x2f   :  { %966 = vmatpush1.bf16.msra.mxu0 %v16280_v25  ;;  %v14188_v25 = vcombine.low %v1207_v22, %v1215_v24 }
  0x30   :  { %967 = vmatprep.subr.bf16.mxu0 %v16281_v26  ;;  %v14189_v26 = vcombine.high %v1207_v22, %v1215_v24  ;;  %v1367_v22 = vld [vmem:[%s23580_s3 + $0x500] sm:$0xff]  ;;  %v16401_v24 = vld [vmem:[%s23578_s1 + $0x74] ss:$24 sps:$4 sm:$0xff]  }
  0x32   :  { %5899 = vmatprep.subr.bf16.mxu1 %v14189_v26 }
  0x33   :  { %968 = vmatpush1.bf16.msra.mxu0 %v16283_v27  ;;  %v16345_v27 = vld [vmem:[%s23578_s1 + $0x188] ss:$24 sps:$4 sm:$0xff]   ;;  %5900 = vmatpush1.bf16.msra.mxu1 %v14188_v25 }
  0x34   :  { %969 = vmatprep.subr.bf16.mxu0 %v16284_v30  ;;  %v16353_v30 = vld [vmem:[%s23578_s1 + $0x1bc] ss:$24 sps:$4 sm:$0xff]   ;;  %5901 = vmatprep.subr.bf16.mxu1 %v14205_v31 }
  0x37   :  { %970 = vmatpush1.bf16.msra.mxu0 %v16286_v33  ;;  %v16351_v33 = vld [vmem:[%s23578_s1 + $0x1b8] ss:$24 sps:$4 sm:$0xff]   ;;  %5902 = vmatpush1.bf16.msra.mxu1 %v14204_v32 }
  0x38   :  { %971 = vmatprep.subr.bf16.mxu0 %v16287_v34  ;;  %v1239_v34 = vld [vmem:[%s23580_s3 + $0x100] sm:$0xff] }
  0x39   :  { %v14221_v38 = vcombine.high %v1239_v34, %v1247_v35  ;;  %v16402_v32 = vld [vmem:[%s23578_s1 + $0xa0] ss:$24 sps:$4 sm:$0xff]  }
  0x3b   :  { %972 = vmatpush1.bf16.msra.mxu0 %v16289_v37  ;;  %v14220_v37 = vcombine.low %v1239_v34, %v1247_v35  ;;  %5903 = vmatprep.subr.bf16.mxu1 %v14221_v38  ;;  %v1407_v34 = vld [vmem:[%s23580_s3 + $0x640] sm:$0xff]  ;;  %v16407_v35 = vld [vmem:[%s23578_s1 + $0xd4] ss:$24 sps:$4 sm:$0xff]   ;;  %v16405_v38 = vld [vmem:[%s23578_s1 + $0xd0] ss:$24 sps:$4 sm:$0xff]  }
  0x3c   :  { %973 = vmatprep.subr.bf16.mxu0 %v16290_v39  ;;  %v16357_v39 = vld [vmem:[%s23578_s1 + $0x1e8] ss:$24 sps:$4 sm:$0xff]  }
  0x3d   :  { %5904 = vmatpush1.bf16.msra.mxu1 %v14220_v37 }
  0x3f   :  { %974 = vmatpush1.bf16.msra.mxu0 %v16292_v41  ;;  %v1263_v41 = vld [vmem:[%s23580_s3 + $0x1c0] sm:$0xff] }
  0x40   :  { %986 = vmatprep.subr.bf16.mxu0 %v16297_v43  ;;  %v14236_v43 = vcombine.low %v1255_v40, %v1263_v41  ;;  %v14237_v45 = vcombine.high %v1255_v40, %v1263_v41  ;;  %v1423_v40 = vld [vmem:[%s23580_s3 + $0x6c0] sm:$0xff] }
  0x41   :  { %v16410_v41 = vld [vmem:[%s23578_s1 + $0x104] ss:$24 sps:$4 sm:$0xff]  }
  0x42   :  { %976 = vmatmul.mubr.bf16.vlgmr.msra.gmra.mrb[0].mxu0 %v17952_v44  ;;  %5905 = vmatprep.subr.bf16.mxu1 %v14237_v45  ;;  %v16408_v45 = vld [vmem:[%s23578_s1 + $0x100] ss:$24 sps:$4 sm:$0xff]  }
  0x43   :  { %987 = vmatpush1.bf16.msra.mxu0 %v16295_v46  ;;  %1018 = vmatprep.mubr.bf16.mxu0 %v17775_v1  ;;  %v16363_v46 = vld [vmem:[%s23578_s1 + $0x218] ss:$24 sps:$4 sm:$0xff]  }
  0x44   :  { %988 = vmatprep.subr.bf16.mxu0 %v16301_v47  ;;  %v1271_v47 = vld [vmem:[%s23580_s3 + $0x200] sm:$0xff]  ;;  %5906 = vmatpush1.bf16.msra.mxu1 %v14236_v43 }
  0x45   :  { %v14253_v51 = vcombine.high %v1271_v47, %v1279_v48 }
  0x47   :  { %989 = vmatpush1.bf16.msra.mxu0 %v16299_v50  ;;  %v14252_v50 = vcombine.low %v1271_v47, %v1279_v48  ;;  %5907 = vmatprep.subr.bf16.mxu1 %v14253_v51  ;;  %v1439_v47 = vld [vmem:[%s23580_s3 + $0x740] sm:$0xff]  ;;  %v16413_v48 = vld [vmem:[%s23578_s1 + $0x134] ss:$24 sps:$4 sm:$0xff]   ;;  %v16411_v51 = vld [vmem:[%s23578_s1 + $0x130] ss:$24 sps:$4 sm:$0xff]  }
  0x48   :  { %990 = vmatprep.subr.bf16.mxu0 %v16304_v52  ;;  %v16369_v52 = vld [vmem:[%s23578_s1 + $0x248] ss:$24 sps:$4 sm:$0xff]  }
  0x49   :  { %5908 = vmatpush1.bf16.msra.mxu1 %v14252_v50 }
  0x4b   :  { %991 = vmatpush1.bf16.msra.mxu0 %v16302_v54  ;;  %v1295_v54 = vld [vmem:[%s23580_s3 + $0x2c0] sm:$0xff] }
  0x4c   :  { %992 = vmatprep.subr.bf16.mxu0 %v16307_v56  ;;  %v14268_v56 = vcombine.low %v1287_v53, %v1295_v54  ;;  %v14269_v57 = vcombine.high %v1287_v53, %v1295_v54  ;;  %v1455_v53 = vld [vmem:[%s23580_s3 + $0x7c0] sm:$0xff] }
  0x4d   :  { %v16416_v54 = vld [vmem:[%s23578_s1 + $0x164] ss:$24 sps:$4 sm:$0xff]  }
  0x4e   :  { %5909 = vmatprep.subr.bf16.mxu1 %v14269_v57  ;;  %v16414_v57 = vld [vmem:[%s23578_s1 + $0x160] ss:$24 sps:$4 sm:$0xff]  }
  0x4f   :  { %993 = vmatpush1.bf16.msra.mxu0 %v16305_v58  ;;  %v16375_v58 = vld [vmem:[%s23578_s1 + $0x278] ss:$24 sps:$4 sm:$0xff]   ;;  %5910 = vmatpush1.bf16.msra.mxu1 %v14268_v56 }
  0x50   :  { %994 = vmatprep.subr.bf16.mxu0 %v16310_v59  ;;  %v1303_v59 = vld [vmem:[%s23580_s3 + $0x300] sm:$0xff] }
  0x53   :  { %995 = vmatpush1.bf16.msra.mxu0 %v16308_v60  ;;  %v1311_v60 = vld [vmem:[%s23580_s3 + $0x340] sm:$0xff] }
  0x54   :  { %996 = vmatprep.subr.bf16.mxu0 %v16313_v62  ;;  %v16383_v62 = vld [vmem:[%s23578_s1 + $0x2ac] ss:$24 sps:$4 sm:$0xff]  }
  0x57   :  { %997 = vmatpush1.bf16.msra.mxu0 %v16311_v63  ;;  %v14284_v63 = vcombine.low %v1303_v59, %v1311_v60 }
  0x58   :  { %998 = vmatprep.subr.bf16.mxu0 %v16316_v0  ;;  %v14285_v0 = vcombine.high %v1303_v59, %v1311_v60  ;;  %v18278_v59 = vld [vmem:[%s23580_s3 + $0x800] sm:$0xff] }
  0x59   :  { %v18283_v60 = vld [vmem:[%s23580_s3 + $0x840] sm:$0xff] }
  0x5a   :  { %5911 = vmatprep.subr.bf16.mxu1 %v14285_v0  ;;  %v14444_v0 = vcombine.low %v18278_v59, %v18283_v60 }
  0x5b   :  { %999 = vmatpush1.bf16.msra.mxu0 %v16314_v2  ;;  %v16381_v2 = vld [vmem:[%s23578_s1 + $0x2a8] ss:$24 sps:$4 sm:$0xff]   ;;  %5912 = vmatpush1.bf16.msra.mxu1 %v14284_v63 }
  0x5c   :  { %1000 = vmatprep.subr.bf16.mxu0 %v16319_v3  ;;  %v1319_v3 = vld [vmem:[%s23580_s3 + $0x380] sm:$0xff]  ;;  %v16417_v63 = vld [vmem:[%s23578_s1 + $0x190] ss:$24 sps:$4 sm:$0xff]  }
  0x5f   :  { %1001 = vmatpush1.bf16.msra.mxu0 %v16317_v4  ;;  %v1327_v4 = vld [vmem:[%s23580_s3 + $0x3c0] sm:$0xff] }
  0x60   :  { %1029 = vmatprep.subr.bf16.mxu0 %v16323_v5  ;;  %v16389_v5 = vld [vmem:[%s23578_s1 + $0x2dc] ss:$24 sps:$4 sm:$0xff]  }
  0x62   :  { %1019 = vmatmul.mubr.bf16.vlgmr.msra.gmra.mrb[0].mxu0 %v18007_v61 }
  0x63   :  { %1030 = vmatpush1.bf16.msra.mxu0 %v16321_v6  ;;  %1061 = vmatprep.mubr.bf16.mxu0 %v17859_v14  ;;  %v14300_v6 = vcombine.low %v1319_v3, %v1327_v4 }
  0x64   :  { %1031 = vmatprep.subr.bf16.mxu0 %v16326_v7  ;;  %v14301_v7 = vcombine.high %v1319_v3, %v1327_v4  ;;  %v16420_v3 = vld [vmem:[%s23578_s1 + $0x1c0] ss:$24 sps:$4 sm:$0xff]   ;;  %v16425_v4 = vld [vmem:[%s23578_s1 + $0x1f4] ss:$24 sps:$4 sm:$0xff]  }
  0x66   :  { %5913 = vmatprep.subr.bf16.mxu1 %v14301_v7  ;;  %v16426_v7 = vld [vmem:[%s23578_s1 + $0x220] ss:$24 sps:$4 sm:$0xff]  }
  0x67   :  { %1032 = vmatpush1.bf16.msra.mxu0 %v16324_v8  ;;  %v16387_v8 = vld [vmem:[%s23578_s1 + $0x2d8] ss:$24 sps:$4 sm:$0xff]   ;;  %5914 = vmatpush1.bf16.msra.mxu1 %v14300_v6  ;;  %v16428_v6 = vld [vmem:[%s23578_s1 + $0x224] ss:$24 sps:$4 sm:$0xff]  }
  0x68   :  { %1033 = vmatprep.subr.bf16.mxu0 %v16329_v9  ;;  %v1335_v9 = vld [vmem:[%s23580_s3 + $0x400] sm:$0xff] }
  0x6b   :  { %1034 = vmatpush1.bf16.msra.mxu0 %v16327_v10  ;;  %v1343_v10 = vld [vmem:[%s23580_s3 + $0x440] sm:$0xff] }
  0x6c   :  { %1035 = vmatprep.subr.bf16.mxu0 %v16332_v11  ;;  %v16395_v11 = vld [vmem:[%s23578_s1 + $0x14] ss:$24 sps:$4 sm:$0xff]  }
  0x6f   :  { %1036 = vmatpush1.bf16.msra.mxu0 %v16330_v12  ;;  %v14316_v12 = vcombine.low %v1335_v9, %v1343_v10 }
  0x70   :  { %1037 = vmatprep.subr.bf16.mxu0 %v16335_v13  ;;  %v14317_v13 = vcombine.high %v1335_v9, %v1343_v10  ;;  %v16429_v9 = vld [vmem:[%s23578_s1 + $0x250] ss:$24 sps:$4 sm:$0xff]   ;;  %v16434_v10 = vld [vmem:[%s23578_s1 + $0x284] ss:$24 sps:$4 sm:$0xff]  }
  0x72   :  { %5915 = vmatprep.subr.bf16.mxu1 %v14317_v13  ;;  %v16435_v13 = vld [vmem:[%s23578_s1 + $0x2b0] ss:$24 sps:$4 sm:$0xff]  }
  0x73   :  { %1038 = vmatpush1.bf16.msra.mxu0 %v16333_v15  ;;  %v16393_v15 = vld [vmem:[%s23578_s1 + $0x10] ss:$24 sps:$4 sm:$0xff]   ;;  %5916 = vmatpush1.bf16.msra.mxu1 %v14316_v12  ;;  %v16437_v12 = vld [vmem:[%s23578_s1 + $0x2b4] ss:$24 sps:$4 sm:$0xff]  }
  0x74   :  { %1039 = vmatprep.subr.bf16.mxu0 %v16338_v16  ;;  %v1351_v16 = vld [vmem:[%s23580_s3 + $0x480] sm:$0xff] }
  0x77   :  { %1040 = vmatpush1.bf16.msra.mxu0 %v16336_v17  ;;  %v1359_v17 = vld [vmem:[%s23580_s3 + $0x4c0] sm:$0xff] }
  0x78   :  { %1041 = vmatprep.subr.bf16.mxu0 %v16341_v18  ;;  %v16398_v18 = vld [vmem:[%s23578_s1 + $0x44] ss:$24 sps:$4 sm:$0xff]  }
  0x7b   :  { %1042 = vmatpush1.bf16.msra.mxu0 %v16339_v19  ;;  %v14332_v19 = vcombine.low %v1351_v16, %v1359_v17 }
  0x7c   :  { %1043 = vmatprep.subr.bf16.mxu0 %v16344_v20  ;;  %v14333_v20 = vcombine.high %v1351_v16, %v1359_v17  ;;  %v16438_v16 = vld [vmem:[%s23578_s1 + $0x2e0] ss:$24 sps:$4 sm:$0xff]   ;;  %v16443_v17 = vld [vmem:[%s23578_s1 + $0x314] ss:$24 sps:$4 sm:$0xff]  }
  0x7e   :  { %5917 = vmatprep.subr.bf16.mxu1 %v14333_v20  ;;  %v16444_v20 = vld [vmem:[%s23578_s1 + $0x340] ss:$24 sps:$4 sm:$0xff]  }
  0x7f   :  { %1044 = vmatpush1.bf16.msra.mxu0 %v16342_v21  ;;  %v16396_v21 = vld [vmem:[%s23578_s1 + $0x40] ss:$24 sps:$4 sm:$0xff]   ;;  %5918 = vmatpush1.bf16.msra.mxu1 %v14332_v19  ;;  %v16446_v19 = vld [vmem:[%s23578_s1 + $0x344] ss:$24 sps:$4 sm:$0xff]  }
  0x80   :  { %1045 = vmatprep.subr.bf16.mxu0 %v16347_v23  ;;  %v1375_v23 = vld [vmem:[%s23580_s3 + $0x540] sm:$0xff] }
  0x81   :  { %v14348_v25 = vcombine.low %v1367_v22, %v1375_v23  ;;  %v14349_v26 = vcombine.high %v1367_v22, %v1375_v23  ;;  %v16447_v22 = vld [vmem:[%s23578_s1 + $0x370] ss:$24 sps:$4 sm:$0xff]   ;;  %v16455_v23 = vld [vmem:[%s23578_s1 + $0x3d4] ss:$24 sps:$4 sm:$0xff]  }
  0x83   :  { %1046 = vmatpush1.bf16.msra.mxu0 %v16345_v27  ;;  %5919 = vmatprep.subr.bf16.mxu1 %v14349_v26  ;;  %v1383_v27 = vld [vmem:[%s23580_s3 + $0x580] sm:$0xff] }
  0x84   :  { %1047 = vmatprep.subr.bf16.mxu0 %v16353_v30  ;;  %5920 = vmatpush1.bf16.msra.mxu1 %v14348_v25  ;;  %v14364_v30 = vcombine.low %v1383_v27, %v1391_v28  ;;  %v14365_v31 = vcombine.high %v1383_v27, %v1391_v28  ;;  %v16458_v25 = vld [vmem:[%s23578_s1 + $0x404] ss:$24 sps:$4 sm:$0xff]   ;;  %v16456_v26 = vld [vmem:[%s23578_s1 + $0x400] ss:$24 sps:$4 sm:$0xff]   ;;  %v16459_v27 = vld [vmem:[%s23578_s1 + $0x430] ss:$24 sps:$4 sm:$0xff]  }
  0x85   :  { %v16464_v28 = vld [vmem:[%s23578_s1 + $0x464] ss:$24 sps:$4 sm:$0xff]  }
  0x86   :  { %5921 = vmatprep.subr.bf16.mxu1 %v14365_v31  ;;  %v16462_v31 = vld [vmem:[%s23578_s1 + $0x460] ss:$24 sps:$4 sm:$0xff]  }
  0x87   :  { %1048 = vmatpush1.bf16.msra.mxu0 %v16351_v33  ;;  %v1399_v33 = vld [vmem:[%s23580_s3 + $0x600] sm:$0xff] }
  0x88   :  { %1049 = vmatprep.subr.bf16.mxu0 %v16359_v36  ;;  %5922 = vmatpush1.bf16.msra.mxu1 %v14364_v30  ;;  %v14380_v36 = vcombine.low %v1399_v33, %v1407_v34  ;;  %v14381_v37 = vcombine.high %v1399_v33, %v1407_v34  ;;  %v1216_v30 = vld [vmem:[%s23580_s3 + $0x48] sm:$0xff] }
  0x89   :  { %v1224_v33 = vld [vmem:[%s23580_s3 + $0x88] sm:$0xff] }
  0x8a   :  { %5923 = vmatprep.subr.bf16.mxu1 %v14381_v37  ;;  %v1232_v34 = vld [vmem:[%s23580_s3 + $0xc8] sm:$0xff] }
  0x8b   :  { %1050 = vmatpush1.bf16.msra.mxu0 %v16357_v39  ;;  %v1415_v39 = vld [vmem:[%s23580_s3 + $0x680] sm:$0xff]  ;;  %v1240_v37 = vld [vmem:[%s23580_s3 + $0x108] sm:$0xff] }
  0x8c   :  { %1051 = vmatprep.subr.bf16.mxu0 %v16365_v42  ;;  %5924 = vmatpush1.bf16.msra.mxu1 %v14380_v36  ;;  %v14396_v42 = vcombine.low %v1415_v39, %v1423_v40  ;;  %v14397_v43 = vcombine.high %v1415_v39, %v1423_v40  ;;  %v14207_v36 = vcombine.high %v1224_v33, %v1232_v34 }
  0x8d   :  { %v14206_v39 = vcombine.low %v1224_v33, %v1232_v34  ;;  %v1432_v33 = vld [vmem:[%s23580_s3 + $0x708] sm:$0xff] }
  0x8e   :  { %5925 = vmatprep.subr.bf16.mxu1 %v14397_v43  ;;  %v1440_v34 = vld [vmem:[%s23580_s3 + $0x748] sm:$0xff] }
  0x8f   :  { %1052 = vmatpush1.bf16.msra.mxu0 %v16363_v46  ;;  %v1431_v46 = vld [vmem:[%s23580_s3 + $0x700] sm:$0xff] }
  0x90   :  { %1053 = vmatprep.subr.bf16.mxu0 %v16371_v49  ;;  %5926 = vmatpush1.bf16.msra.mxu1 %v14396_v42  ;;  %v14413_v49 = vcombine.high %v1431_v46, %v1439_v47  ;;  %v14412_v50 = vcombine.low %v1431_v46, %v1439_v47  ;;  %v1264_v42 = vld [vmem:[%s23580_s3 + $0x1c8] sm:$0xff] }
  0x91   :  { %v1280_v46 = vld [vmem:[%s23580_s3 + $0x248] sm:$0xff] }
  0x92   :  { %5927 = vmatprep.subr.bf16.mxu1 %v14413_v49  ;;  %v1288_v49 = vld [vmem:[%s23580_s3 + $0x288] sm:$0xff] }
  0x93   :  { %1054 = vmatpush1.bf16.msra.mxu0 %v16369_v52  ;;  %v1447_v52 = vld [vmem:[%s23580_s3 + $0x780] sm:$0xff] }
  0x94   :  { %1055 = vmatprep.subr.bf16.mxu0 %v16377_v55  ;;  %5928 = vmatpush1.bf16.msra.mxu1 %v14412_v50  ;;  %v14429_v55 = vcombine.high %v1447_v52, %v1455_v53  ;;  %v14428_v56 = vcombine.low %v1447_v52, %v1455_v53  ;;  %v1296_v50 = vld [vmem:[%s23580_s3 + $0x2c8] sm:$0xff] }
  0x95   :  { %v14271_v52 = vcombine.high %v1288_v49, %v1296_v50  ;;  %v1304_v53 = vld [vmem:[%s23580_s3 + $0x308] sm:$0xff] }
  0x96   :  { %5929 = vmatprep.subr.bf16.mxu1 %v14429_v55  ;;  %v14270_v55 = vcombine.low %v1288_v49, %v1296_v50  ;;  %v1464_v49 = vld [vmem:[%s23580_s3 + $0x808] sm:$0xff] }
  0x97   :  { %1056 = vmatpush1.bf16.msra.mxu0 %v16375_v58  ;;  %v16419_v58 = vld [vmem:[%s23578_s1 + $0x194] ss:$24 sps:$4 sm:$0xff]  }
  0x98   :  { %1057 = vmatprep.subr.bf16.mxu0 %v16383_v62  ;;  %5930 = vmatpush1.bf16.msra.mxu1 %v14428_v56  ;;  %v14445_v62 = vcombine.high %v18278_v59, %v18283_v60  ;;  %v1519_v59 = vld [vmem:[%s23580_s3 + $0x9c0] sm:$0xff] }
  0x9a   :  { %5942 = vmatprep.subr.bf16.mxu1 %v14445_v62 }
  0x9b   :  { %1058 = vmatpush1.bf16.msra.mxu0 %v16381_v2  ;;  %v16422_v2 = vld [vmem:[%s23578_s1 + $0x1c4] ss:$24 sps:$4 sm:$0xff]  }
  0x9c   :  { %1059 = vmatprep.subr.bf16.mxu0 %v16389_v5  ;;  %v16423_v5 = vld [vmem:[%s23578_s1 + $0x1f0] ss:$24 sps:$4 sm:$0xff]  }
  0x9f   :  { %1060 = vmatpush1.bf16.msra.mxu0 %v16387_v8  ;;  %v16431_v8 = vld [vmem:[%s23578_s1 + $0x254] ss:$24 sps:$4 sm:$0xff]  }
  0xa0   :  { %1115 = vmatprep.subr.bf16.mxu0 %v16395_v11  ;;  %v16432_v11 = vld [vmem:[%s23578_s1 + $0x280] ss:$24 sps:$4 sm:$0xff]  }
  0xa2   :  { %1062 = vmatmul.mubr.bf16.vlgmr.msra.gmra.mrb[4].mxu0 %v17952_v44 }
  0xa3   :  { %1116 = vmatpush1.bf16.msra.mxu0 %v16393_v15  ;;  %1147 = vmatprep.mubr.bf16.mxu0 %v17859_v14  ;;  %v16399_v14 = vld [vmem:[%s23578_s1 + $0x70] ss:$24 sps:$4 sm:$0xff]   ;;  %v16440_v15 = vld [vmem:[%s23578_s1 + $0x2e4] ss:$24 sps:$4 sm:$0xff]  }
  0xa4   :  { %1117 = vmatprep.subr.bf16.mxu0 %v16398_v18  ;;  %v16441_v18 = vld [vmem:[%s23578_s1 + $0x310] ss:$24 sps:$4 sm:$0xff]  }
  0xa7   :  { %1118 = vmatpush1.bf16.msra.mxu0 %v16396_v21  ;;  %v16449_v21 = vld [vmem:[%s23578_s1 + $0x374] ss:$24 sps:$4 sm:$0xff]  }
  0xa8   :  { %1119 = vmatprep.subr.bf16.mxu0 %v16401_v24  ;;  %v16453_v24 = vld [vmem:[%s23578_s1 + $0x3d0] ss:$24 sps:$4 sm:$0xff]  }
  0xab   :  { %1120 = vmatpush1.bf16.msra.mxu0 %v16399_v14  ;;  %v16461_v14 = vld [vmem:[%s23578_s1 + $0x434] ss:$24 sps:$4 sm:$0xff]  }
  0xac   :  { %1121 = vmatprep.subr.bf16.mxu0 %v16404_v29  ;;  %v1208_v29 = vld [vmem:[%s23580_s3 + $0x8] sm:$0xff] }
  0xaf   :  { %1122 = vmatpush1.bf16.msra.mxu0 %v16402_v32  ;;  %v14191_v32 = vcombine.high %v1208_v29, %v1216_v30 }
  0xb0   :  { %1123 = vmatprep.subr.bf16.mxu0 %v16407_v35  ;;  %v14190_v35 = vcombine.low %v1208_v29, %v1216_v30 }
  0xb3   :  { %1124 = vmatpush1.bf16.msra.mxu0 %v16405_v38  ;;  %v1248_v38 = vld [vmem:[%s23580_s3 + $0x148] sm:$0xff] }
  0xb4   :  { %1125 = vmatprep.subr.bf16.mxu0 %v16410_v41  ;;  %v14223_v40 = vcombine.high %v1240_v37, %v1248_v38  ;;  %v1256_v41 = vld [vmem:[%s23580_s3 + $0x188] sm:$0xff]  ;;  %v14222_v43 = vcombine.low %v1240_v37, %v1248_v38  ;;  %v14415_v37 = vcombine.high %v1432_v33, %v1440_v34 }
  0xb5   :  { %v14238_v47 = vcombine.low %v1256_v41, %v1264_v42 }
  0xb7   :  { %1126 = vmatpush1.bf16.msra.mxu0 %v16408_v45  ;;  %v14239_v45 = vcombine.high %v1256_v41, %v1264_v42  ;;  %v1456_v41 = vld [vmem:[%s23580_s3 + $0x7c8] sm:$0xff] }
  0xb8   :  { %1127 = vmatprep.subr.bf16.mxu0 %v16413_v48 }
  0xbb   :  { %1128 = vmatpush1.bf16.msra.mxu0 %v16411_v51 }
  0xbc   :  { %1129 = vmatprep.subr.bf16.mxu0 %v16416_v54  ;;  %v1312_v54 = vld [vmem:[%s23580_s3 + $0x348] sm:$0xff] }
  0xbd   :  { %v14287_v56 = vcombine.high %v1304_v53, %v1312_v54  ;;  %v14286_v62 = vcombine.low %v1304_v53, %v1312_v54  ;;  %v1479_v53 = vld [vmem:[%s23580_s3 + $0x880] sm:$0xff] }
  0xbe   :  { %v1487_v54 = vld [vmem:[%s23580_s3 + $0x8c0] sm:$0xff] }
  0xbf   :  { %1130 = vmatpush1.bf16.msra.mxu0 %v16414_v57  ;;  %v1320_v57 = vld [vmem:[%s23580_s3 + $0x388] sm:$0xff] }
  0xc0   :  { %1131 = vmatprep.subr.bf16.mxu0 %v16419_v58  ;;  %v1328_v58 = vld [vmem:[%s23580_s3 + $0x3c8] sm:$0xff] }
  0xc3   :  { %1132 = vmatpush1.bf16.msra.mxu0 %v16417_v63  ;;  %v14303_v63 = vcombine.high %v1320_v57, %v1328_v58 }
  0xc4   :  { %1133 = vmatprep.subr.bf16.mxu0 %v16422_v2  ;;  %v1336_v2 = vld [vmem:[%s23580_s3 + $0x408] sm:$0xff] }
  0xc7   :  { %1134 = vmatpush1.bf16.msra.mxu0 %v16420_v3  ;;  %v1344_v3 = vld [vmem:[%s23580_s3 + $0x448] sm:$0xff] }
  0xc8   :  { %1135 = vmatprep.subr.bf16.mxu0 %v16425_v4  ;;  %v14302_v4 = vcombine.low %v1320_v57, %v1328_v58 }
  0xcb   :  { %1136 = vmatpush1.bf16.msra.mxu0 %v16423_v5  ;;  %v14319_v5 = vcombine.high %v1336_v2, %v1344_v3 }
  0xcc   :  { %1137 = vmatprep.subr.bf16.mxu0 %v16428_v6  ;;  %v1352_v6 = vld [vmem:[%s23580_s3 + $0x488] sm:$0xff] }
  0xcf   :  { %1138 = vmatpush1.bf16.msra.mxu0 %v16426_v7  ;;  %v1360_v7 = vld [vmem:[%s23580_s3 + $0x4c8] sm:$0xff] }
  0xd0   :  { %1139 = vmatprep.subr.bf16.mxu0 %v16431_v8  ;;  %v14318_v8 = vcombine.low %v1336_v2, %v1344_v3  ;;  %v1488_v2 = vld [vmem:[%s23580_s3 + $0x8c8] sm:$0xff]  ;;  %v1495_v3 = vld [vmem:[%s23580_s3 + $0x900] sm:$0xff] }
  0xd3   :  { %1140 = vmatpush1.bf16.msra.mxu0 %v16429_v9  ;;  %v14335_v9 = vcombine.high %v1352_v6, %v1360_v7 }
  0xd4   :  { %1141 = vmatprep.subr.bf16.mxu0 %v16434_v10  ;;  %v1368_v10 = vld [vmem:[%s23580_s3 + $0x508] sm:$0xff] }
  0xd7   :  { %1142 = vmatpush1.bf16.msra.mxu0 %v16432_v11  ;;  %v1376_v11 = vld [vmem:[%s23580_s3 + $0x548] sm:$0xff] }
  0xd8   :  { %1143 = vmatprep.subr.bf16.mxu0 %v16437_v12  ;;  %v14334_v12 = vcombine.low %v1352_v6, %v1360_v7  ;;  %v14460_v6 = vcombine.low %v1479_v53, %v1487_v54 }
  0xdb   :  { %1144 = vmatpush1.bf16.msra.mxu0 %v16435_v13  ;;  %v14351_v13 = vcombine.high %v1368_v10, %v1376_v11 }
  0xdc   :  { %1145 = vmatprep.subr.bf16.mxu0 %v16440_v15 }
  0xdf   :  { %1146 = vmatpush1.bf16.msra.mxu0 %v16438_v16  ;;  %v1384_v16 = vld [vmem:[%s23580_s3 + $0x588] sm:$0xff] }
  0xe0   :  { %1158 = vmatprep.subr.bf16.mxu0 %v16443_v17  ;;  %v1392_v17 = vld [vmem:[%s23580_s3 + $0x5c8] sm:$0xff] }
  0xe2   :  { %1148 = vmatmul.mubr.bf16.vlgmr.msra.gmra.mrb[8].mxu0 %v17952_v44  ;;  %v16452_v44 = vld [vmem:[%s23578_s1 + $0x3a4] ss:$24 sps:$4 sm:$0xff]  }
  0xe3   :  { %1159 = vmatpush1.bf16.msra.mxu0 %v16441_v18  ;;  %1190 = vmatprep.mubr.bf16.mxu0 %v17775_v1  ;;  %v16450_v1 = vld [vmem:[%s23578_s1 + $0x3a0] ss:$24 sps:$4 sm:$0xff]  }
  0xe4   :  { %1160 = vmatprep.subr.bf16.mxu0 %v16446_v19 }
  0xe7   :  { %1161 = vmatpush1.bf16.msra.mxu0 %v16444_v20  ;;  %v14350_v20 = vcombine.low %v1368_v10, %v1376_v11  ;;  %v1504_v10 = vld [vmem:[%s23580_s3 + $0x948] sm:$0xff]  ;;  %v1511_v11 = vld [vmem:[%s23580_s3 + $0x980] sm:$0xff] }
  0xe8   :  { %1162 = vmatprep.subr.bf16.mxu0 %v16449_v21 }
  0xeb   :  { %1163 = vmatpush1.bf16.msra.mxu0 %v16447_v22  ;;  %v14367_v22 = vcombine.high %v1384_v16, %v1392_v17 }
  0xec   :  { %1164 = vmatprep.subr.bf16.mxu0 %v16452_v44  ;;  %v177_v44 = vlaneseq }
  0xef   :  { %1165 = vmatpush1.bf16.msra.mxu0 %v16450_v1  ;;  %v1400_v1 = vld [vmem:[%s23580_s3 + $0x608] sm:$0xff] }
  0xf0   :  { %1166 = vmatprep.subr.bf16.mxu0 %v16455_v23  ;;  %v1408_v23 = vld [vmem:[%s23580_s3 + $0x648] sm:$0xff] }
  0xf3   :  { %1167 = vmatpush1.bf16.msra.mxu0 %v16453_v24  ;;  %v14366_v24 = vcombine.low %v1384_v16, %v1392_v17  ;;  %v1512_v16 = vld [vmem:[%s23580_s3 + $0x988] sm:$0xff] }
  0xf4   :  { %1168 = vmatprep.subr.bf16.mxu0 %v16458_v25  ;;  %v14383_v25 = vcombine.high %v1400_v1, %v1408_v23  ;;  %v1520_v17 = vld [vmem:[%s23580_s3 + $0x9c8] sm:$0xff] }
  0xf7   :  { %1169 = vmatpush1.bf16.msra.mxu0 %v16456_v26  ;;  %v18471_v26 = vshrl.u32 %v177_v44, 7 }
  0xf8   :  { %1170 = vmatprep.subr.bf16.mxu0 %v16461_v14  ;;  %v1416_v14 = vld [vmem:[%s23580_s3 + $0x688] sm:$0xff] }
  0xf9   :  { %v18480_v29 = vsub.s32 0, %v18471_v26 }
  0xfb   :  { %1171 = vmatpush1.bf16.msra.mxu0 %v16459_v27  ;;  %v1424_v27 = vld [vmem:[%s23580_s3 + $0x6c8] sm:$0xff] }
  0xfc   :  { %1172 = vmatprep.subr.bf16.mxu0 %v16464_v28  ;;  %v14382_v28 = vcombine.low %v1400_v1, %v1408_v23  ;;  %v14399_v30 = vcombine.high %v1416_v14, %v1424_v27  ;;  %v14492_v1 = vcombine.low %v1511_v11, %v1519_v59  ;;  %v14495_v23 = vcombine.high %v1512_v16, %v1520_v17 }
  0xfe   :  { %v18451_v15 = vpop.f32.mrb[0].mxu1 }
  0xff   :  { %1173 = vmatpush1.bf16.msra.mxu0 %v16462_v31  ;;  %v18459_v18 = vpop.f32.mrb[1].mxu1  ;;  %v18485_v31 = vld [vmem:[%s23581_s2] sm:$0x3f] }
 0x100   :  { %6028 = vmatprep.subr.bf16.mxu0 %v14191_v32  ;;  %v18461_v19 = vpop.f32.mrb[2].mxu1  ;;  %v18488_v32 = vsub.s32 1, %v18471_v26 }
 0x101   :  { %v18463_v21 = vpop.f32.mrb[3].mxu1 }
 0x102   :  { %1191 = vmatmul.mubr.bf16.vlgmr.msra.gmra.mrb[8].mxu0 %v18007_v61  ;;  %v1272_v61 = vld [vmem:[%s23580_s3 + $0x208] sm:$0xff] }
 0x103   :  { %6029 = vmatpush1.bf16.msra.mxu0 %v14190_v35  ;;  %v14255_v48 = vcombine.high %v1272_v61, %v1280_v46  ;;  %v14254_v51 = vcombine.low %v1272_v61, %v1280_v46  ;;  %v14398_v35 = vcombine.low %v1416_v14, %v1424_v27  ;;  %v1536_v14 = vld [vmem:[%s23580_s3 + $0xa48] sm:$0xff]  ;;  %v1543_v27 = vld [vmem:[%s23580_s3 + $0xa80] sm:$0xff] }
 0x104   :  { %6030 = vmatprep.subr.bf16.mxu0 %v14207_v36  ;;  %v180_v36 = vrot.slane %v18485_v31, %v18480_v29 }
 0x107   :  { %6031 = vmatpush1.bf16.msra.mxu0 %v14206_v39  ;;  %v184_v39 = vrot.slane %v18485_v31, %v18488_v32 }
 0x108   :  { %6032 = vmatprep.subr.bf16.mxu0 %v14223_v40  ;;  %v1448_v40 = vld [vmem:[%s23580_s3 + $0x788] sm:$0xff] }
 0x109   :  { %v14430_v57 = vcombine.low %v1448_v40, %v1456_v41 }
 0x10b   :  { %6033 = vmatpush1.bf16.msra.mxu0 %v14222_v43 }
 0x10c   :  { %6034 = vmatprep.subr.bf16.mxu0 %v14239_v45  ;;  %v14414_v45 = vcombine.low %v1432_v33, %v1440_v34 }
 0x10f   :  { %6035 = vmatpush1.bf16.msra.mxu0 %v14238_v47 }
 0x110   :  { %6036 = vmatprep.subr.bf16.mxu0 %v14255_v48  ;;  %v14431_v48 = vcombine.high %v1448_v40, %v1456_v41 }
 0x113   :  { %6037 = vmatpush1.bf16.msra.mxu0 %v14254_v51 }
 0x114   :  { %6038 = vmatprep.subr.bf16.mxu0 %v14271_v52  ;;  %v1472_v52 = vld [vmem:[%s23580_s3 + $0x848] sm:$0xff] }
 0x115   :  { %v14447_v58 = vcombine.high %v1464_v49, %v1472_v52 }
 0x117   :  { %6039 = vmatpush1.bf16.msra.mxu0 %v14270_v55 }
 0x118   :  { %6040 = vmatprep.subr.bf16.mxu0 %v14287_v56 }
 0x11b   :  { %6041 = vmatpush1.bf16.msra.mxu0 %v14286_v62  ;;  %v14461_v62 = vcombine.high %v1479_v53, %v1487_v54  ;;  %v1584_v53 = vld [vmem:[%s23580_s3 + $0xbc8] sm:$0xff]  ;;  %v1591_v54 = vld [vmem:[%s23580_s3 + $0xc00] sm:$0xff] }
 0x11c   :  { %6042 = vmatprep.subr.bf16.mxu0 %v14303_v63  ;;  %v1480_v63 = vld [vmem:[%s23580_s3 + $0x888] sm:$0xff] }
 0x11d   :  { %v14463_v7 = vcombine.high %v1480_v63, %v1488_v2  ;;  %v14462_v60 = vcombine.low %v1480_v63, %v1488_v2 }
 0x11f   :  { %6043 = vmatpush1.bf16.msra.mxu0 %v14302_v4  ;;  %v1503_v4 = vld [vmem:[%s23580_s3 + $0x940] sm:$0xff] }
 0x120   :  { %6044 = vmatprep.subr.bf16.mxu0 %v14319_v5  ;;  %v14446_v5 = vcombine.low %v1464_v49, %v1472_v52  ;;  %v1576_v52 = vld [vmem:[%s23580_s3 + $0xb88] sm:$0xff] }
 0x121   :  { %v14559_v63 = vcombine.high %v1576_v52, %v1584_v53 }
 0x123   :  { %6045 = vmatpush1.bf16.msra.mxu0 %v14318_v8  ;;  %v14477_v8 = vcombine.high %v1495_v3, %v1503_v4 }
 0x124   :  { %6046 = vmatprep.subr.bf16.mxu0 %v14335_v9  ;;  %v1496_v9 = vld [vmem:[%s23580_s3 + $0x908] sm:$0xff] }
 0x125   :  { %v14478_v44 = vcombine.low %v1496_v9, %v1504_v10 }
 0x127   :  { %6047 = vmatpush1.bf16.msra.mxu0 %v14334_v12  ;;  %v14479_v12 = vcombine.high %v1496_v9, %v1504_v10 }
 0x128   :  { %6048 = vmatprep.subr.bf16.mxu0 %v14351_v13  ;;  %v14493_v13 = vcombine.high %v1511_v11, %v1519_v59  ;;  %v1608_v11 = vld [vmem:[%s23580_s3 + $0xc88] sm:$0xff] }
 0x129   :  { %v1616_v59 = vld [vmem:[%s23580_s3 + $0xcc8] sm:$0xff] }
 0x12b   :  { %6049 = vmatpush1.bf16.msra.mxu0 %v14350_v20  ;;  %v1527_v20 = vld [vmem:[%s23580_s3 + $0xa00] sm:$0xff] }
 0x12c   :  { %6050 = vmatprep.subr.bf16.mxu0 %v14367_v22  ;;  %v1535_v22 = vld [vmem:[%s23580_s3 + $0xa40] sm:$0xff] }
 0x12d   :  { %v14508_v33 = vcombine.low %v1527_v20, %v1535_v22 }
 0x12f   :  { %6051 = vmatpush1.bf16.msra.mxu0 %v14366_v24  ;;  %v14509_v24 = vcombine.high %v1527_v20, %v1535_v22  ;;  %v1624_v20 = vld [vmem:[%s23580_s3 + $0xd08] sm:$0xff] }
 0x130   :  { %6052 = vmatprep.subr.bf16.mxu0 %v14383_v25  ;;  %v1528_v25 = vld [vmem:[%s23580_s3 + $0xa08] sm:$0xff] }
 0x131   :  { %v14511_v34 = vcombine.high %v1528_v25, %v1536_v14  ;;  %v14510_v40 = vcombine.low %v1528_v25, %v1536_v14  ;;  %v1632_v22 = vld [vmem:[%s23580_s3 + $0xd48] sm:$0xff] }
 0x132   :  { %v14607_v25 = vcombine.high %v1624_v20, %v1632_v22 }
 0x133   :  { %6053 = vmatpush1.bf16.msra.mxu0 %v14382_v28  ;;  %v1551_v28 = vld [vmem:[%s23580_s3 + $0xac0] sm:$0xff] }
 0x134   :  { %6054 = vmatprep.subr.bf16.mxu0 %v14399_v30  ;;  %v14494_v30 = vcombine.low %v1512_v16, %v1520_v17  ;;  %v14524_v41 = vcombine.low %v1543_v27, %v1551_v28  ;;  %v14591_v16 = vcombine.high %v1608_v11, %v1616_v59 }
 0x135   :  { %v1020_v38 = vpop.f32.mrb[0].mxu0 }
 0x136   :  { %v1022_v42 = vpop.f32.mrb[1].mxu0  ;;  %v16028_v61 = vadd.f32 %v1020_v38, %v180_v36  ;;  %v1559_v38 = vld [vmem:[%s23580_s3 + $0xb00] sm:$0xff] }
 0x137   :  { %v1024_v43 = vpop.f32.mrb[2].mxu0  ;;  %6055 = vmatpush1.bf16.msra.mxu0 %v14398_v35  ;;  %v16029_v50 = vadd.f32 %v1022_v42, %v184_v39  ;;  %v14525_v35 = vcombine.high %v1543_v27, %v1551_v28  ;;  %v1640_v27 = vld [vmem:[%s23580_s3 + $0xd88] sm:$0xff] }
 0x138   :  { %v16030_v46 = vadd.f32 %v1024_v43, %v180_v36  ;;  %v1026_v47 = vpop.f32.mrb[3].mxu0  ;;  %6056 = vmatprep.subr.bf16.mxu0 %v14415_v37  ;;  %v1544_v36 = vld [vmem:[%s23580_s3 + $0xa88] sm:$0xff] }
 0x139   :  { %v16031_v51 = vadd.f32 %v1026_v47, %v184_v39  ;;  %v1552_v37 = vld [vmem:[%s23580_s3 + $0xac8] sm:$0xff]  ;;  %v1567_v39 = vld [vmem:[%s23580_s3 + $0xb40] sm:$0xff] }
 0x13a   :  { %v18518_v55 = vpack.c.bf16 %v16030_v46, %v16028_v61  ;;  %v14527_v42 = vcombine.high %v1544_v36, %v1552_v37  ;;  %v14541_v43 = vcombine.high %v1559_v38, %v1567_v39  ;;  %v1568_v61 = vld [vmem:[%s23580_s3 + $0xb48] sm:$0xff]  ;;  %v1575_v46 = vld [vmem:[%s23580_s3 + $0xb80] sm:$0xff]  ;;  %v14540_v49 = vcombine.low %v1559_v38, %v1567_v39 }
 0x13b   :  { %v18520_v56 = vpack.c.bf16 %v16031_v51, %v16029_v50  ;;  %6057 = vmatpush1.bf16.msra.mxu0 %v14414_v45  ;;  %v1560_v45 = vld [vmem:[%s23580_s3 + $0xb08] sm:$0xff]  ;;  %v1583_v47 = vld [vmem:[%s23580_s3 + $0xbc0] sm:$0xff] }
 0x13c   :  { %6058 = vmatprep.subr.bf16.mxu0 %v14431_v48  ;;  %v14526_v48 = vcombine.low %v1544_v36, %v1552_v37  ;;  %v14543_v50 = vcombine.high %v1560_v45, %v1568_v61  ;;  %v14557_v51 = vcombine.high %v1575_v46, %v1583_v47  ;;  %v1648_v28 = vld [vmem:[%s23580_s3 + $0xdc8] sm:$0xff] }
 0x13d   :  { %5931 = vmatprep.mubr.bf16.mxu1 %v18520_v56  ;;  %6060 = vmatprep.mubr.bf16.mxu0 %v18520_v56  ;;  %v14623_v36 = vcombine.high %v1640_v27, %v1648_v28  ;;  %v1656_v38 = vld [vmem:[%s23580_s3 + $0xe08] sm:$0xff] }
 0x13e   :  { %5932 = vmatmul.mubr.bf16.vlgmr.msra.gmra.mrb[4].mxu1 %v18518_v55  ;;  %v1664_v39 = vld [vmem:[%s23580_s3 + $0xe48] sm:$0xff] }
 0x13f   :  { %6059 = vmatpush1.bf16.msra.mxu0 %v14430_v57  ;;  %5943 = vmatpush1.bf16.msra.mxu1 %v14444_v0  ;;  %v14476_v0 = vcombine.low %v1495_v3, %v1503_v4  ;;  %v1599_v57 = vld [vmem:[%s23580_s3 + $0xc40] sm:$0xff]  ;;  %v1592_v3 = vld [vmem:[%s23580_s3 + $0xc08] sm:$0xff] }
 0x140   :  { %6071 = vmatprep.subr.bf16.mxu0 %v14447_v58  ;;  %5944 = vmatprep.subr.bf16.mxu1 %v14461_v62  ;;  %v14542_v58 = vcombine.low %v1560_v45, %v1568_v61  ;;  %v14556_v62 = vcombine.low %v1575_v46, %v1583_v47  ;;  %v14573_v2 = vcombine.high %v1591_v54, %v1599_v57  ;;  %v1600_v4 = vld [vmem:[%s23580_s3 + $0xc48] sm:$0xff] }
 0x141   :  { %v14575_v9 = vcombine.high %v1592_v3, %v1600_v4  ;;  %v14639_v45 = vcombine.high %v1656_v38, %v1664_v39  ;;  %v1672_v46 = vld [vmem:[%s23580_s3 + $0xe88] sm:$0xff] }
 0x142   :  { %6061 = vmatmul.mubr.bf16.vlgmr.msra.gmra.mrb[12].mxu0 %v18518_v55  ;;  %v1680_v47 = vld [vmem:[%s23580_s3 + $0xec8] sm:$0xff] }
 0x143   :  { %6072 = vmatpush1.bf16.msra.mxu0 %v14446_v5  ;;  %5945 = vmatpush1.bf16.msra.mxu1 %v14460_v6  ;;  %v1607_v5 = vld [vmem:[%s23580_s3 + $0xc80] sm:$0xff] }
 0x144   :  { %6073 = vmatprep.subr.bf16.mxu0 %v14463_v7  ;;  %5946 = vmatprep.subr.bf16.mxu1 %v14477_v8  ;;  %v1615_v6 = vld [vmem:[%s23580_s3 + $0xcc0] sm:$0xff]  ;;  %v14558_v7 = vcombine.low %v1576_v52, %v1584_v53  ;;  %v14572_v8 = vcombine.low %v1591_v54, %v1599_v57  ;;  %v18689_v53 = vsub.s32 3, %v18471_v26  ;;  %v14655_v54 = vcombine.high %v1672_v46, %v1680_v47 }
 0x145   :  { %v14589_v10 = vcombine.high %v1607_v5, %v1615_v6 }
 0x147   :  { %6074 = vmatpush1.bf16.msra.mxu0 %v14462_v60  ;;  %5947 = vmatpush1.bf16.msra.mxu1 %v14476_v0  ;;  %v1623_v60 = vld [vmem:[%s23580_s3 + $0xd00] sm:$0xff] }
 0x148   :  { %6075 = vmatprep.subr.bf16.mxu0 %v14479_v12  ;;  %5948 = vmatprep.subr.bf16.mxu1 %v14493_v13  ;;  %v1631_v0 = vld [vmem:[%s23580_s3 + $0xd40] sm:$0xff]  ;;  %v14574_v12 = vcombine.low %v1592_v3, %v1600_v4  ;;  %v14588_v13 = vcombine.low %v1607_v5, %v1615_v6  ;;  %v192_v4 = vrot.slane %v18485_v31, %v18689_v53 }
 0x149   :  { %v14605_v17 = vcombine.high %v1623_v60, %v1631_v0  ;;  %v14654_v5 = vcombine.low %v1672_v46, %v1680_v47  ;;  %v1760_v46 = vld [vmem:[%s23580_s3 + $0x1148] sm:$0xff] }
 0x14b   :  { %6076 = vmatpush1.bf16.msra.mxu0 %v14478_v44  ;;  %5949 = vmatpush1.bf16.msra.mxu1 %v14492_v1  ;;  %v1639_v44 = vld [vmem:[%s23580_s3 + $0xd80] sm:$0xff] }
 0x14c   :  { %6077 = vmatprep.subr.bf16.mxu0 %v14495_v23  ;;  %5950 = vmatprep.subr.bf16.mxu1 %v14509_v24  ;;  %v1647_v1 = vld [vmem:[%s23580_s3 + $0xdc0] sm:$0xff]  ;;  %v14590_v23 = vcombine.low %v1608_v11, %v1616_v59  ;;  %v14604_v24 = vcombine.low %v1623_v60, %v1631_v0 }
 0x14d   :  { %v14621_v14 = vcombine.high %v1639_v44, %v1647_v1  ;;  %v1719_v59 = vld [vmem:[%s23580_s3 + $0x1000] sm:$0xff] }
 0x14e   :  { %v1727_v60 = vld [vmem:[%s23580_s3 + $0x1040] sm:$0xff] }
 0x14f   :  { %6078 = vmatpush1.bf16.msra.mxu0 %v14494_v30  ;;  %5951 = vmatpush1.bf16.msra.mxu1 %v14508_v33  ;;  %v1655_v30 = vld [vmem:[%s23580_s3 + $0xe00] sm:$0xff] }
 0x150   :  { %6079 = vmatprep.subr.bf16.mxu0 %v14511_v34  ;;  %5952 = vmatprep.subr.bf16.mxu1 %v14525_v35  ;;  %v1663_v33 = vld [vmem:[%s23580_s3 + $0xe40] sm:$0xff]  ;;  %v14606_v34 = vcombine.low %v1624_v20, %v1632_v22  ;;  %v14620_v35 = vcombine.low %v1639_v44, %v1647_v1 }
 0x151   :  { %v14637_v37 = vcombine.high %v1655_v30, %v1663_v33 }
 0x153   :  { %6080 = vmatpush1.bf16.msra.mxu0 %v14510_v40  ;;  %5953 = vmatpush1.bf16.msra.mxu1 %v14524_v41  ;;  %v1671_v40 = vld [vmem:[%s23580_s3 + $0xe80] sm:$0xff] }
 0x154   :  { %6081 = vmatprep.subr.bf16.mxu0 %v14527_v42  ;;  %5954 = vmatprep.subr.bf16.mxu1 %v14541_v43  ;;  %v1679_v41 = vld [vmem:[%s23580_s3 + $0xec0] sm:$0xff]  ;;  %v14622_v42 = vcombine.low %v1640_v27, %v1648_v28  ;;  %v14636_v43 = vcombine.low %v1655_v30, %v1663_v33  ;;  %v1720_v28 = vld [vmem:[%s23580_s3 + $0x1008] sm:$0xff] }
 0x155   :  { %v14653_v61 = vcombine.high %v1671_v40, %v1679_v41  ;;  %v14652_v52 = vcombine.low %v1671_v40, %v1679_v41  ;;  %v1728_v30 = vld [vmem:[%s23580_s3 + $0x1048] sm:$0xff]  ;;  %v1751_v41 = vld [vmem:[%s23580_s3 + $0x1100] sm:$0xff] }
 0x156   :  { %v14702_v40 = vcombine.low %v1720_v28, %v1728_v30 }
 0x157   :  { %6082 = vmatpush1.bf16.msra.mxu0 %v14526_v48  ;;  %5955 = vmatpush1.bf16.msra.mxu1 %v14540_v49  ;;  %v1687_v48 = vld [vmem:[%s23580_s3 + $0xf00] sm:$0xff] }
 0x158   :  { %6083 = vmatprep.subr.bf16.mxu0 %v14543_v50  ;;  %5956 = vmatprep.subr.bf16.mxu1 %v14557_v51  ;;  %v1695_v49 = vld [vmem:[%s23580_s3 + $0xf40] sm:$0xff]  ;;  %v18686_v50 = vsub.s32 2, %v18471_v26  ;;  %v14638_v51 = vcombine.low %v1656_v38, %v1664_v39  ;;  %v1744_v38 = vld [vmem:[%s23580_s3 + $0x10c8] sm:$0xff] }
 0x159   :  { %v14669_v57 = vcombine.high %v1687_v48, %v1695_v49  ;;  %v14668_v6 = vcombine.low %v1687_v48, %v1695_v49  ;;  %v1767_v49 = vld [vmem:[%s23580_s3 + $0x1180] sm:$0xff] }
 0x15a   :  { %v188_v3 = vrot.slane %v18485_v31, %v18686_v50 }
 0x15b   :  { %6084 = vmatpush1.bf16.msra.mxu0 %v14542_v58  ;;  %5957 = vmatpush1.bf16.msra.mxu1 %v14556_v62  ;;  %v1688_v58 = vld [vmem:[%s23580_s3 + $0xf08] sm:$0xff] }
 0x15c   :  { %6085 = vmatprep.subr.bf16.mxu0 %v14559_v63  ;;  %5958 = vmatprep.subr.bf16.mxu1 %v14573_v2  ;;  %v1696_v62 = vld [vmem:[%s23580_s3 + $0xf48] sm:$0xff]  ;;  %v1703_v63 = vld [vmem:[%s23580_s3 + $0xf80] sm:$0xff] }
 0x15d   :  { %v1711_v2 = vld [vmem:[%s23580_s3 + $0xfc0] sm:$0xff] }
 0x15e   :  { %v14684_v20 = vcombine.low %v1703_v63, %v1711_v2 }
 0x15f   :  { %6086 = vmatpush1.bf16.msra.mxu0 %v14558_v7  ;;  %5959 = vmatpush1.bf16.msra.mxu1 %v14572_v8  ;;  %v14671_v7 = vcombine.high %v1688_v58, %v1696_v62  ;;  %v14685_v8 = vcombine.high %v1703_v63, %v1711_v2  ;;  %v1783_v2 = vld [vmem:[%s23580_s3 + $0x1200] sm:$0xff] }
 0x160   :  { %6087 = vmatprep.subr.bf16.mxu0 %v14575_v9  ;;  %5960 = vmatprep.subr.bf16.mxu1 %v14589_v10  ;;  %v1704_v9 = vld [vmem:[%s23580_s3 + $0xf88] sm:$0xff] }
 0x161   :  { %v1712_v10 = vld [vmem:[%s23580_s3 + $0xfc8] sm:$0xff] }
 0x162   :  { %v14687_v22 = vcombine.high %v1704_v9, %v1712_v10 }
 0x163   :  { %6088 = vmatpush1.bf16.msra.mxu0 %v14574_v12  ;;  %5961 = vmatpush1.bf16.msra.mxu1 %v14588_v13  ;;  %v14670_v13 = vcombine.low %v1688_v58, %v1696_v62  ;;  %v1776_v58 = vld [vmem:[%s23580_s3 + $0x11c8] sm:$0xff] }
 0x164   :  { %6089 = vmatprep.subr.bf16.mxu0 %v14591_v16  ;;  %5962 = vmatprep.subr.bf16.mxu1 %v14605_v17 }
 0x167   :  { %6090 = vmatpush1.bf16.msra.mxu0 %v14590_v23  ;;  %5963 = vmatpush1.bf16.msra.mxu1 %v14604_v24  ;;  %v14701_v24 = vcombine.high %v1719_v59, %v1727_v60 }
 0x168   :  { %6091 = vmatprep.subr.bf16.mxu0 %v14607_v25  ;;  %5964 = vmatprep.subr.bf16.mxu1 %v14621_v14 }
 0x16b   :  { %6092 = vmatpush1.bf16.msra.mxu0 %v14606_v34  ;;  %5965 = vmatpush1.bf16.msra.mxu1 %v14620_v35  ;;  %v1735_v34 = vld [vmem:[%s23580_s3 + $0x1080] sm:$0xff] }
 0x16c   :  { %6093 = vmatprep.subr.bf16.mxu0 %v14623_v36  ;;  %5966 = vmatprep.subr.bf16.mxu1 %v14637_v37  ;;  %v14700_v36 = vcombine.low %v1719_v59, %v1727_v60  ;;  %v14703_v37 = vcombine.high %v1720_v28, %v1728_v30 }
 0x16f   :  { %6094 = vmatpush1.bf16.msra.mxu0 %v14622_v42  ;;  %5967 = vmatpush1.bf16.msra.mxu1 %v14636_v43  ;;  %v1759_v42 = vld [vmem:[%s23580_s3 + $0x1140] sm:$0xff] }
 0x170   :  { %6095 = vmatprep.subr.bf16.mxu0 %v14639_v45  ;;  %5968 = vmatprep.subr.bf16.mxu1 %v14653_v61  ;;  %v1752_v61 = vld [vmem:[%s23580_s3 + $0x1108] sm:$0xff]  ;;  %v14733_v47 = vcombine.high %v1751_v41, %v1759_v42 }
 0x171   :  { %v14734_v63 = vcombine.low %v1752_v61, %v1760_v46 }
 0x173   :  { %6096 = vmatpush1.bf16.msra.mxu0 %v14638_v51  ;;  %5969 = vmatpush1.bf16.msra.mxu1 %v14652_v52  ;;  %v1775_v51 = vld [vmem:[%s23580_s3 + $0x11c0] sm:$0xff]  ;;  %v14735_v52 = vcombine.high %v1752_v61, %v1760_v46 }
 0x174   :  { %6097 = vmatprep.subr.bf16.mxu0 %v14655_v54  ;;  %5970 = vmatprep.subr.bf16.mxu1 %v14669_v57  ;;  %v14732_v54 = vcombine.low %v1751_v41, %v1759_v42  ;;  %v1768_v57 = vld [vmem:[%s23580_s3 + $0x1188] sm:$0xff]  ;;  %v14749_v62 = vcombine.high %v1767_v49, %v1775_v51 }
 0x175   :  { %v1063_v11 = vpop.f32.mrb[4].mxu0 }
 0x176   :  { %v1064_v0 = vadd.f32 %v1063_v11, %v188_v3  ;;  %v1065_v12 = vpop.f32.mrb[5].mxu0  ;;  %v1807_v11 = vld [vmem:[%s23580_s3 + $0x12c0] sm:$0xff] }
 0x177   :  { %v1066_v16 = vadd.f32 %v1065_v12, %v192_v4  ;;  %v1067_v17 = vpop.f32.mrb[6].mxu0  ;;  %6098 = vmatpush1.bf16.msra.mxu0 %v14654_v5  ;;  %5971 = vmatpush1.bf16.msra.mxu1 %v14668_v6  ;;  %v14748_v5 = vcombine.low %v1767_v49, %v1775_v51  ;;  %v1784_v6 = vld [vmem:[%s23580_s3 + $0x1208] sm:$0xff] }
 0x178   :  { %v1068_v44 = vadd.f32 %v1067_v17, %v188_v3  ;;  %v1107_v1 = vadd.f32 %v18451_v15, %v1064_v0  ;;  %v1069_v23 = vpop.f32.mrb[7].mxu0  ;;  %6099 = vmatprep.subr.bf16.mxu0 %v14671_v7  ;;  %5972 = vmatprep.subr.bf16.mxu1 %v14685_v8  ;;  %v14686_v15 = vcombine.low %v1704_v9, %v1712_v10  ;;  %v1791_v3 = vld [vmem:[%s23580_s3 + $0x1240] sm:$0xff]  ;;  %v1792_v7 = vld [vmem:[%s23580_s3 + $0x1248] sm:$0xff] }
 0x179   :  { %v1070_v25 = vadd.f32 %v1069_v23, %v192_v4  ;;  %v1109_v14 = vadd.f32 %v18459_v18, %v1066_v16  ;;  %v1743_v18 = vld [vmem:[%s23580_s3 + $0x10c0] sm:$0xff]  ;;  %v14751_v4 = vcombine.high %v1768_v57, %v1776_v58  ;;  %v14765_v8 = vcombine.high %v1783_v2, %v1791_v3  ;;  %v1800_v0 = vld [vmem:[%s23580_s3 + $0x1288] sm:$0xff] }
 0x17a   :  { %v1111_v27 = vadd.f32 %v18461_v19, %v1068_v44  ;;  %v14717_v39 = vcombine.high %v1735_v34, %v1743_v18  ;;  %v14716_v45 = vcombine.low %v1735_v34, %v1743_v18  ;;  %v14750_v9 = vcombine.low %v1768_v57, %v1776_v58  ;;  %v1799_v10 = vld [vmem:[%s23580_s3 + $0x1280] sm:$0xff]  ;;  %v1808_v12 = vld [vmem:[%s23580_s3 + $0x12c8] sm:$0xff] }
 0x17b   :  { %v1113_v33 = vadd.f32 %v18463_v21, %v1070_v25  ;;  %6100 = vmatpush1.bf16.msra.mxu0 %v14670_v13  ;;  %5973 = vmatpush1.bf16.msra.mxu1 %v14684_v20  ;;  %v1736_v21 = vld [vmem:[%s23580_s3 + $0x1088] sm:$0xff]  ;;  %v14767_v59 = vcombine.high %v1784_v6, %v1792_v7  ;;  %v14764_v60 = vcombine.low %v1783_v2, %v1791_v3  ;;  %v1815_v17 = vld [vmem:[%s23580_s3 + $0x1300] sm:$0xff] }
 0x17c   :  { %v18735_v19 = vpack.c.bf16 %v1111_v27, %v1107_v1  ;;  %6101 = vmatprep.subr.bf16.mxu0 %v14687_v22  ;;  %5985 = vmatprep.subr.bf16.mxu1 %v14701_v24  ;;  %v14719_v43 = vcombine.high %v1736_v21, %v1744_v38  ;;  %v14718_v48 = vcombine.low %v1736_v21, %v1744_v38  ;;  %v1823_v20 = vld [vmem:[%s23580_s3 + $0x1340] sm:$0xff]  ;;  %v1816_v1 = vld [vmem:[%s23580_s3 + $0x1308] sm:$0xff] }
 0x17d   :  { %v18737_v35 = vpack.c.bf16 %v1113_v33, %v1109_v14  ;;  %v14781_v13 = vcombine.high %v1799_v10, %v1807_v11  ;;  %v14766_v16 = vcombine.low %v1784_v6, %v1792_v7  ;;  %v14783_v22 = vcombine.high %v1800_v0, %v1808_v12  ;;  %v1824_v23 = vld [vmem:[%s23580_s3 + $0x1348] sm:$0xff]  ;;  %v1831_v14 = vld [vmem:[%s23580_s3 + $0x1380] sm:$0xff] }
 0x17e   :  { %v14780_v44 = vcombine.low %v1799_v10, %v1807_v11  ;;  %v14797_v24 = vcombine.high %v1815_v17, %v1823_v20  ;;  %v14782_v25 = vcombine.low %v1800_v0, %v1808_v12  ;;  %v1839_v27 = vld [vmem:[%s23580_s3 + $0x13c0] sm:$0xff]  ;;  %v14799_v28 = vcombine.high %v1816_v1, %v1824_v23  ;;  %v1832_v33 = vld [vmem:[%s23580_s3 + $0x1388] sm:$0xff] }
 0x17f   :  { %5974 = vmatprep.mubr.bf16.mxu1 %v18737_v35  ;;  %6102 = vmatpush1.bf16.msra.mxu0 %v14686_v15  ;;  %v14796_v30 = vcombine.low %v1815_v17, %v1823_v20  ;;  %v1840_v15 = vld [vmem:[%s23580_s3 + $0x13c8] sm:$0xff]  ;;  %v14813_v34 = vcombine.high %v1831_v14, %v1839_v27  ;;  %v14798_v18 = vcombine.low %v1816_v1, %v1824_v23 }
 0x180   :  { %6103 = vmatprep.mubr.bf16.mxu0 %v18737_v35  ;;  %5975 = vmatmul.mubr.bf16.vlgmr.msra.gmra.mrb[4].mxu1 %v18735_v19  ;;  %v14815_v21 = vcombine.high %v1832_v33, %v1840_v15  ;;  %v14812_v38 = vcombine.low %v1831_v14, %v1839_v27  ;;  %v14814_v42 = vcombine.low %v1832_v33, %v1840_v15 }
 0x181   :  { %6114 = vmatprep.subr.bf16.mxu0 %v14703_v37  ;;  %5986 = vmatpush1.bf16.msra.mxu1 %v14700_v36  ;;  %v1847_v36 = vld [vmem:[%s23580_s3 + $0x1400] sm:$0xff] }
 0x182   :  { %6104 = vmatmul.mubr.bf16.vlgmr.msra.gmra.mrb[12].mxu0 %v18735_v19  ;;  %5987 = vmatprep.subr.bf16.mxu1 %v14717_v39  ;;  %v1855_v37 = vld [vmem:[%s23580_s3 + $0x1440] sm:$0xff]  ;;  %v1848_v39 = vld [vmem:[%s23580_s3 + $0x1408] sm:$0xff] }
 0x183   :  { %6115 = vmatpush1.bf16.msra.mxu0 %v14702_v40  ;;  %v1856_v40 = vld [vmem:[%s23580_s3 + $0x1448] sm:$0xff]  ;;  %v14829_v41 = vcombine.high %v1847_v36, %v1855_v37  ;;  %v14828_v46 = vcombine.low %v1847_v36, %v1855_v37 }
 0x184   :  { %6116 = vmatprep.subr.bf16.mxu0 %v14719_v43  ;;  %v1863_v43 = vld [vmem:[%s23580_s3 + $0x1480] sm:$0xff]  ;;  %v14831_v61 = vcombine.high %v1848_v39, %v1856_v40  ;;  %v14830_v51 = vcombine.low %v1848_v39, %v1856_v40 }
 0x185   :  { %5988 = vmatpush1.bf16.msra.mxu1 %v14716_v45  ;;  %v1871_v45 = vld [vmem:[%s23580_s3 + $0x14c0] sm:$0xff] }
 0x186   :  { %5989 = vmatprep.subr.bf16.mxu1 %v14733_v47  ;;  %v1864_v47 = vld [vmem:[%s23580_s3 + $0x1488] sm:$0xff]  ;;  %v14845_v49 = vcombine.high %v1863_v43, %v1871_v45  ;;  %v14844_v58 = vcombine.low %v1863_v43, %v1871_v45 }
 0x187   :  { %6117 = vmatpush1.bf16.msra.mxu0 %v14718_v48  ;;  %v1872_v48 = vld [vmem:[%s23580_s3 + $0x14c8] sm:$0xff] }
 0x188   :  { %6118 = vmatprep.subr.bf16.mxu0 %v14735_v52  ;;  %v1879_v52 = vld [vmem:[%s23580_s3 + $0x1500] sm:$0xff]  ;;  %v14847_v57 = vcombine.high %v1864_v47, %v1872_v48  ;;  %v14846_v3 = vcombine.low %v1864_v47, %v1872_v48 }
 0x189   :  { %5990 = vmatpush1.bf16.msra.mxu1 %v14732_v54  ;;  %v1887_v54 = vld [vmem:[%s23580_s3 + $0x1540] sm:$0xff] }
 0x18a   :  { %5991 = vmatprep.subr.bf16.mxu1 %v14749_v62  ;;  %v1880_v62 = vld [vmem:[%s23580_s3 + $0x1508] sm:$0xff]  ;;  %v14861_v2 = vcombine.high %v1879_v52, %v1887_v54  ;;  %v14860_v7 = vcombine.low %v1879_v52, %v1887_v54 }
 0x18b   :  { %6119 = vmatpush1.bf16.msra.mxu0 %v14734_v63  ;;  %v1888_v63 = vld [vmem:[%s23580_s3 + $0x1548] sm:$0xff] }
 0x18c   :  { %6120 = vmatprep.subr.bf16.mxu0 %v14751_v4  ;;  %v1895_v4 = vld [vmem:[%s23580_s3 + $0x1580] sm:$0xff]  ;;  %v14863_v6 = vcombine.high %v1880_v62, %v1888_v63  ;;  %v14862_v11 = vcombine.low %v1880_v62, %v1888_v63  ;;  %v18933_v62 = vsub.s32 5, %v18471_v26 }
 0x18d   :  { %5992 = vmatpush1.bf16.msra.mxu1 %v14748_v5  ;;  %v1903_v5 = vld [vmem:[%s23580_s3 + $0x15c0] sm:$0xff] }
 0x18e   :  { %5993 = vmatprep.subr.bf16.mxu1 %v14765_v8  ;;  %v1896_v8 = vld [vmem:[%s23580_s3 + $0x1588] sm:$0xff]  ;;  %v14877_v10 = vcombine.high %v1895_v4, %v1903_v5  ;;  %v14876_v12 = vcombine.low %v1895_v4, %v1903_v5 }
 0x18f   :  { %6121 = vmatpush1.bf16.msra.mxu0 %v14750_v9  ;;  %v1904_v9 = vld [vmem:[%s23580_s3 + $0x15c8] sm:$0xff] }
 0x190   :  { %6122 = vmatprep.subr.bf16.mxu0 %v14767_v59  ;;  %v1911_v59 = vld [vmem:[%s23580_s3 + $0x1600] sm:$0xff]  ;;  %v14879_v0 = vcombine.high %v1896_v8, %v1904_v9  ;;  %v14878_v20 = vcombine.low %v1896_v8, %v1904_v9 }
 0x191   :  { %5994 = vmatpush1.bf16.msra.mxu1 %v14764_v60  ;;  %v1919_v60 = vld [vmem:[%s23580_s3 + $0x1640] sm:$0xff] }
 0x192   :  { %5995 = vmatprep.subr.bf16.mxu1 %v14781_v13  ;;  %v1912_v13 = vld [vmem:[%s23580_s3 + $0x1608] sm:$0xff]  ;;  %v14893_v17 = vcombine.high %v1911_v59, %v1919_v60  ;;  %v14892_v23 = vcombine.low %v1911_v59, %v1919_v60  ;;  %v1233_v60 = vld [vmem:[%s23580_s3 + $0xd0] sm:$0xff] }
 0x193   :  { %6123 = vmatpush1.bf16.msra.mxu0 %v14766_v16  ;;  %v1920_v16 = vld [vmem:[%s23580_s3 + $0x1648] sm:$0xff] }
 0x194   :  { %6124 = vmatprep.subr.bf16.mxu0 %v14783_v22  ;;  %v1927_v22 = vld [vmem:[%s23580_s3 + $0x1680] sm:$0xff]  ;;  %v14895_v1 = vcombine.high %v1912_v13, %v1920_v16  ;;  %v14894_v27 = vcombine.low %v1912_v13, %v1920_v16 }
 0x195   :  { %5996 = vmatpush1.bf16.msra.mxu1 %v14780_v44  ;;  %v1935_v44 = vld [vmem:[%s23580_s3 + $0x16c0] sm:$0xff] }
 0x196   :  { %5997 = vmatprep.subr.bf16.mxu1 %v14797_v24  ;;  %v1928_v24 = vld [vmem:[%s23580_s3 + $0x1688] sm:$0xff]  ;;  %v14909_v14 = vcombine.high %v1927_v22, %v1935_v44  ;;  %v14908_v15 = vcombine.low %v1927_v22, %v1935_v44  ;;  %v1249_v44 = vld [vmem:[%s23580_s3 + $0x150] sm:$0xff] }
 0x197   :  { %6125 = vmatpush1.bf16.msra.mxu0 %v14782_v25  ;;  %v1936_v25 = vld [vmem:[%s23580_s3 + $0x16c8] sm:$0xff] }
 0x198   :  { %6126 = vmatprep.subr.bf16.mxu0 %v14799_v28  ;;  %v1943_v28 = vld [vmem:[%s23580_s3 + $0x1700] sm:$0xff]  ;;  %v14911_v33 = vcombine.high %v1928_v24, %v1936_v25  ;;  %v14910_v37 = vcombine.low %v1928_v24, %v1936_v25 }
 0x199   :  { %5998 = vmatpush1.bf16.msra.mxu1 %v14796_v30  ;;  %v1951_v30 = vld [vmem:[%s23580_s3 + $0x1740] sm:$0xff] }
 0x19a   :  { %5999 = vmatprep.subr.bf16.mxu1 %v14813_v34  ;;  %v1944_v34 = vld [vmem:[%s23580_s3 + $0x1708] sm:$0xff]  ;;  %v14925_v36 = vcombine.high %v1943_v28, %v1951_v30  ;;  %v14924_v40 = vcombine.low %v1943_v28, %v1951_v30  ;;  %v1257_v28 = vld [vmem:[%s23580_s3 + $0x190] sm:$0xff] }
 0x19b   :  { %6127 = vmatpush1.bf16.msra.mxu0 %v14798_v18  ;;  %v1952_v18 = vld [vmem:[%s23580_s3 + $0x1748] sm:$0xff]  ;;  %v1265_v30 = vld [vmem:[%s23580_s3 + $0x1d0] sm:$0xff] }
 0x19c   :  { %6128 = vmatprep.subr.bf16.mxu0 %v14815_v21  ;;  %v1959_v21 = vld [vmem:[%s23580_s3 + $0x1780] sm:$0xff]  ;;  %v14927_v39 = vcombine.high %v1944_v34, %v1952_v18  ;;  %v14926_v45 = vcombine.low %v1944_v34, %v1952_v18 }
 0x19d   :  { %6000 = vmatpush1.bf16.msra.mxu1 %v14812_v38  ;;  %v1967_v38 = vld [vmem:[%s23580_s3 + $0x17c0] sm:$0xff] }
 0x19e   :  { %6001 = vmatprep.subr.bf16.mxu1 %v14829_v41  ;;  %v1960_v41 = vld [vmem:[%s23580_s3 + $0x1788] sm:$0xff]  ;;  %v14941_v43 = vcombine.high %v1959_v21, %v1967_v38  ;;  %v14940_v48 = vcombine.low %v1959_v21, %v1967_v38  ;;  %v1273_v21 = vld [vmem:[%s23580_s3 + $0x210] sm:$0xff] }
 0x19f   :  { %6129 = vmatpush1.bf16.msra.mxu0 %v14814_v42  ;;  %v1968_v42 = vld [vmem:[%s23580_s3 + $0x17c8] sm:$0xff]  ;;  %v1281_v38 = vld [vmem:[%s23580_s3 + $0x250] sm:$0xff] }
 0x1a0   :  { %6130 = vmatprep.subr.bf16.mxu0 %v14831_v61  ;;  %v1209_v61 = vld [vmem:[%s23580_s3 + $0x10] sm:$0xff]  ;;  %v14943_v47 = vcombine.high %v1960_v41, %v1968_v42  ;;  %v14942_v54 = vcombine.low %v1960_v41, %v1968_v42  ;;  %v14240_v41 = vcombine.low %v1257_v28, %v1265_v30 }
 0x1a1   :  { %6002 = vmatpush1.bf16.msra.mxu1 %v14828_v46  ;;  %v1217_v46 = vld [vmem:[%s23580_s3 + $0x50] sm:$0xff] }
 0x1a2   :  { %6003 = vmatprep.subr.bf16.mxu1 %v14845_v49  ;;  %v1210_v49 = vld [vmem:[%s23580_s3 + $0x18] sm:$0xff]  ;;  %v14193_v52 = vcombine.high %v1209_v61, %v1217_v46  ;;  %v14192_v13 = vcombine.low %v1209_v61, %v1217_v46  ;;  %v1289_v61 = vld [vmem:[%s23580_s3 + $0x290] sm:$0xff] }
 0x1a3   :  { %6131 = vmatpush1.bf16.msra.mxu0 %v14830_v51  ;;  %v1218_v51 = vld [vmem:[%s23580_s3 + $0x58] sm:$0xff]  ;;  %v1297_v46 = vld [vmem:[%s23580_s3 + $0x2d0] sm:$0xff] }
 0x1a4   :  { %6132 = vmatprep.subr.bf16.mxu0 %v14847_v57  ;;  %v14195_v57 = vcombine.high %v1210_v49, %v1218_v51  ;;  %v14194_v16 = vcombine.low %v1210_v49, %v1218_v51  ;;  %v14256_v49 = vcombine.low %v1273_v21, %v1281_v38 }
 0x1a5   :  { %6004 = vmatpush1.bf16.msra.mxu1 %v14844_v58  ;;  %v18930_v58 = vsub.s32 4, %v18471_v26 }
 0x1a6   :  { %6005 = vmatprep.subr.bf16.mxu1 %v14861_v2 }
 0x1a7   :  { %6133 = vmatpush1.bf16.msra.mxu0 %v14846_v3  ;;  %v196_v63 = vrot.slane %v18485_v31, %v18930_v58  ;;  %v200_v3 = vrot.slane %v18485_v31, %v18933_v62  ;;  %v1226_v31 = vld [vmem:[%s23580_s3 + $0x98] sm:$0xff] }
 0x1a8   :  { %6134 = vmatprep.subr.bf16.mxu0 %v14863_v6 }
 0x1a9   :  { %6006 = vmatpush1.bf16.msra.mxu1 %v14860_v7 }
 0x1aa   :  { %6007 = vmatprep.subr.bf16.mxu1 %v14877_v10 }
 0x1ab   :  { %6135 = vmatpush1.bf16.msra.mxu0 %v14862_v11  ;;  %v1225_v11 = vld [vmem:[%s23580_s3 + $0x90] sm:$0xff] }
 0x1ac   :  { %6136 = vmatprep.subr.bf16.mxu0 %v14879_v0  ;;  %v1234_v0 = vld [vmem:[%s23580_s3 + $0xd8] sm:$0xff]  ;;  %v14208_v24 = vcombine.low %v1225_v11, %v1233_v60 }
 0x1ad   :  { %6008 = vmatpush1.bf16.msra.mxu1 %v14876_v12  ;;  %v14211_v22 = vcombine.high %v1226_v31, %v1234_v0  ;;  %v14210_v25 = vcombine.low %v1226_v31, %v1234_v0 }
 0x1ae   :  { %6009 = vmatprep.subr.bf16.mxu1 %v14893_v17  ;;  %v1241_v17 = vld [vmem:[%s23580_s3 + $0x110] sm:$0xff] }
 0x1af   :  { %6137 = vmatpush1.bf16.msra.mxu0 %v14878_v20  ;;  %v14209_v20 = vcombine.high %v1225_v11, %v1233_v60  ;;  %v14224_v34 = vcombine.low %v1241_v17, %v1249_v44  ;;  %v1330_v11 = vld [vmem:[%s23580_s3 + $0x3d8] sm:$0xff] }
 0x1b0   :  { %6138 = vmatprep.subr.bf16.mxu0 %v14895_v1  ;;  %v1242_v1 = vld [vmem:[%s23580_s3 + $0x118] sm:$0xff] }
 0x1b1   :  { %6010 = vmatpush1.bf16.msra.mxu1 %v14892_v23  ;;  %v1250_v23 = vld [vmem:[%s23580_s3 + $0x158] sm:$0xff] }
 0x1b2   :  { %6011 = vmatprep.subr.bf16.mxu1 %v14909_v14  ;;  %v14225_v14 = vcombine.high %v1241_v17, %v1249_v44  ;;  %v14226_v18 = vcombine.low %v1242_v1, %v1250_v23  ;;  %v1345_v17 = vld [vmem:[%s23580_s3 + $0x450] sm:$0xff] }
 0x1b3   :  { %6139 = vmatpush1.bf16.msra.mxu0 %v14894_v27  ;;  %v14227_v27 = vcombine.high %v1242_v1, %v1250_v23 }
 0x1b4   :  { %6140 = vmatprep.subr.bf16.mxu0 %v14911_v33  ;;  %v1258_v33 = vld [vmem:[%s23580_s3 + $0x198] sm:$0xff] }
 0x1b5   :  { %6012 = vmatpush1.bf16.msra.mxu1 %v14908_v15  ;;  %v1266_v15 = vld [vmem:[%s23580_s3 + $0x1d8] sm:$0xff] }
 0x1b6   :  { %6013 = vmatprep.subr.bf16.mxu1 %v14925_v36  ;;  %v14241_v36 = vcombine.high %v1257_v28, %v1265_v30  ;;  %v14242_v42 = vcombine.low %v1258_v33, %v1266_v15  ;;  %v1362_v28 = vld [vmem:[%s23580_s3 + $0x4d8] sm:$0xff] }
 0x1b7   :  { %6141 = vmatpush1.bf16.msra.mxu0 %v14910_v37  ;;  %v14243_v37 = vcombine.high %v1258_v33, %v1266_v15 }
 0x1b8   :  { %6142 = vmatprep.subr.bf16.mxu0 %v14927_v39  ;;  %v1274_v39 = vld [vmem:[%s23580_s3 + $0x218] sm:$0xff] }
 0x1b9   :  { %6014 = vmatpush1.bf16.msra.mxu1 %v14924_v40  ;;  %v1282_v40 = vld [vmem:[%s23580_s3 + $0x258] sm:$0xff] }
 0x1ba   :  { %6015 = vmatprep.subr.bf16.mxu1 %v14941_v43  ;;  %v14257_v43 = vcombine.high %v1273_v21, %v1281_v38  ;;  %v14258_v51 = vcombine.low %v1274_v39, %v1282_v40  ;;  %v1378_v21 = vld [vmem:[%s23580_s3 + $0x558] sm:$0xff] }
 0x1bb   :  { %6143 = vmatpush1.bf16.msra.mxu0 %v14926_v45  ;;  %v14259_v45 = vcombine.high %v1274_v39, %v1282_v40 }
 0x1bc   :  { %6144 = vmatprep.subr.bf16.mxu0 %v14943_v47  ;;  %v1290_v47 = vld [vmem:[%s23580_s3 + $0x298] sm:$0xff] }
 0x1bd   :  { %6016 = vmatpush1.bf16.msra.mxu1 %v14940_v48  ;;  %v1298_v48 = vld [vmem:[%s23580_s3 + $0x2d8] sm:$0xff] }
 0x1be   :  { %6157 = vmatprep.subr.bf16.mxu1 %v14193_v52  ;;  %v14273_v52 = vcombine.high %v1289_v61, %v1297_v46 }
 0x1bf   :  { %6145 = vmatpush1.bf16.msra.mxu0 %v14942_v54  ;;  %v14275_v54 = vcombine.high %v1290_v47, %v1298_v48 }
 0x1c0   :  { %6286 = vmatprep.subr.bf16.mxu0 %v14195_v57  ;;  %v1305_v57 = vld [vmem:[%s23580_s3 + $0x310] sm:$0xff] }
 0x1d5   :  { %v1192_v2 = vpop.f32.mrb[8].mxu0 }
 0x1d6   :  { %v1194_v4 = vpop.f32.mrb[9].mxu0  ;;  %v16040_v6 = vadd.f32 %v1192_v2, %v196_v63  ;;  %v1306_v2 = vld [vmem:[%s23580_s3 + $0x318] sm:$0xff] }
 0x1d7   :  { %v1196_v5 = vpop.f32.mrb[10].mxu0  ;;  %v16041_v9 = vadd.f32 %v1194_v4, %v200_v3  ;;  %v14272_v4 = vcombine.low %v1289_v61, %v1297_v46  ;;  %v1394_v61 = vld [vmem:[%s23580_s3 + $0x5d8] sm:$0xff] }
 0x1d8   :  { %v16042_v7 = vadd.f32 %v1196_v5, %v196_v63  ;;  %v1198_v8 = vpop.f32.mrb[11].mxu0  ;;  %v1313_v63 = vld [vmem:[%s23580_s3 + $0x350] sm:$0xff]  ;;  %v14274_v5 = vcombine.low %v1290_v47, %v1298_v48 }
 0x1d9   :  { %v16043_v10 = vadd.f32 %v1198_v8, %v200_v3  ;;  %v1314_v3 = vld [vmem:[%s23580_s3 + $0x358] sm:$0xff]  ;;  %v1321_v8 = vld [vmem:[%s23580_s3 + $0x390] sm:$0xff]  ;;  %v14288_v60 = vcombine.low %v1305_v57, %v1313_v63 }
 0x1da   :  { %v18942_v59 = vpack.c.bf16 %v16042_v7, %v16040_v6  ;;  %v14289_v6 = vcombine.high %v1305_v57, %v1313_v63  ;;  %v14291_v7 = vcombine.high %v1306_v2, %v1314_v3  ;;  %v14290_v31 = vcombine.low %v1306_v2, %v1314_v3  ;;  %v1410_v57 = vld [vmem:[%s23580_s3 + $0x658] sm:$0xff] }
 0x1db   :  { %v18953_v12 = vpack.c.bf16 %v16043_v10, %v16041_v9  ;;  %v1329_v9 = vld [vmem:[%s23580_s3 + $0x3d0] sm:$0xff]  ;;  %v1322_v10 = vld [vmem:[%s23580_s3 + $0x398] sm:$0xff] }
 0x1dc   :  { %v14305_v0 = vcombine.high %v1321_v8, %v1329_v9  ;;  %v14304_v44 = vcombine.low %v1321_v8, %v1329_v9  ;;  %v14306_v1 = vcombine.low %v1322_v10, %v1330_v11  ;;  %v1426_v8 = vld [vmem:[%s23580_s3 + $0x6d8] sm:$0xff] }
 0x1dd   :  { %6017 = vmatprep.mubr.bf16.mxu1 %v18953_v12  ;;  %6146 = vmatprep.mubr.bf16.mxu0 %v18953_v12 }
 0x1de   :  { %6018 = vmatmul.mubr.bf16.vlgmr.msra.gmra.mrb[4].mxu1 %v18942_v59  ;;  %6147 = vmatmul.mubr.bf16.vlgmr.msra.gmra.mrb[12].mxu0 %v18942_v59 }
 0x1df   :  { %6158 = vmatpush1.bf16.msra.mxu1 %v14192_v13  ;;  %6287 = vmatpush1.bf16.msra.mxu0 %v14194_v16  ;;  %v14307_v13 = vcombine.high %v1322_v10, %v1330_v11  ;;  %v1337_v16 = vld [vmem:[%s23580_s3 + $0x410] sm:$0xff] }
 0x1e0   :  { %6189 = vmatprep.mubr.bf16.mxu1 %v18520_v56  ;;  %6318 = vmatprep.mubr.bf16.mxu0 %v18520_v56  ;;  %v14321_v23 = vcombine.high %v1337_v16, %v1345_v17  ;;  %v14320_v30 = vcombine.low %v1337_v16, %v1345_v17  ;;  %v1442_v16 = vld [vmem:[%s23580_s3 + $0x758] sm:$0xff] }
 0x1e1   :  { %6159 = vmatprep.subr.bf16.mxu1 %v14209_v20  ;;  %6288 = vmatprep.subr.bf16.mxu0 %v14211_v22  ;;  %v1338_v20 = vld [vmem:[%s23580_s3 + $0x418] sm:$0xff] }
 0x1e2   :  { %v1346_v22 = vld [vmem:[%s23580_s3 + $0x458] sm:$0xff] }
 0x1e3   :  { %6160 = vmatpush1.bf16.msra.mxu1 %v14208_v24  ;;  %6289 = vmatpush1.bf16.msra.mxu0 %v14210_v25  ;;  %v14323_v24 = vcombine.high %v1338_v20, %v1346_v22  ;;  %v1353_v25 = vld [vmem:[%s23580_s3 + $0x490] sm:$0xff]  ;;  %v14322_v33 = vcombine.low %v1338_v20, %v1346_v22 }
 0x1e4   :  { %6161 = vmatprep.subr.bf16.mxu1 %v14225_v14  ;;  %6290 = vmatprep.subr.bf16.mxu0 %v14227_v27  ;;  %v1361_v14 = vld [vmem:[%s23580_s3 + $0x4d0] sm:$0xff]  ;;  %v1354_v27 = vld [vmem:[%s23580_s3 + $0x498] sm:$0xff] }
 0x1e5   :  { %v14337_v15 = vcombine.high %v1353_v25, %v1361_v14  ;;  %v14336_v38 = vcombine.low %v1353_v25, %v1361_v14  ;;  %v14338_v39 = vcombine.low %v1354_v27, %v1362_v28  ;;  %v1458_v25 = vld [vmem:[%s23580_s3 + $0x7d8] sm:$0xff] }
 0x1e7   :  { %6162 = vmatpush1.bf16.msra.mxu1 %v14224_v34  ;;  %6291 = vmatpush1.bf16.msra.mxu0 %v14226_v18  ;;  %v14339_v34 = vcombine.high %v1354_v27, %v1362_v28  ;;  %v1369_v18 = vld [vmem:[%s23580_s3 + $0x510] sm:$0xff] }
 0x1e8   :  { %6163 = vmatprep.subr.bf16.mxu1 %v14241_v36  ;;  %6292 = vmatprep.subr.bf16.mxu0 %v14243_v37  ;;  %v1377_v36 = vld [vmem:[%s23580_s3 + $0x550] sm:$0xff]  ;;  %v1370_v37 = vld [vmem:[%s23580_s3 + $0x518] sm:$0xff] }
 0x1e9   :  { %v14353_v40 = vcombine.high %v1369_v18, %v1377_v36  ;;  %v14352_v46 = vcombine.low %v1369_v18, %v1377_v36  ;;  %v14354_v47 = vcombine.low %v1370_v37, %v1378_v21  ;;  %v1474_v18 = vld [vmem:[%s23580_s3 + $0x858] sm:$0xff] }
 0x1eb   :  { %6164 = vmatpush1.bf16.msra.mxu1 %v14240_v41  ;;  %6293 = vmatpush1.bf16.msra.mxu0 %v14242_v42  ;;  %v14355_v41 = vcombine.high %v1370_v37, %v1378_v21  ;;  %v1385_v42 = vld [vmem:[%s23580_s3 + $0x590] sm:$0xff] }
 0x1ec   :  { %6165 = vmatprep.subr.bf16.mxu1 %v14257_v43  ;;  %6294 = vmatprep.subr.bf16.mxu0 %v14259_v45  ;;  %v1393_v43 = vld [vmem:[%s23580_s3 + $0x5d0] sm:$0xff]  ;;  %v1386_v45 = vld [vmem:[%s23580_s3 + $0x598] sm:$0xff] }
 0x1ed   :  { %v14369_v48 = vcombine.high %v1385_v42, %v1393_v43  ;;  %v14368_v63 = vcombine.low %v1385_v42, %v1393_v43  ;;  %v14370_v2 = vcombine.low %v1386_v45, %v1394_v61  ;;  %v1490_v42 = vld [vmem:[%s23580_s3 + $0x8d8] sm:$0xff] }
 0x1ef   :  { %6166 = vmatpush1.bf16.msra.mxu1 %v14256_v49  ;;  %6295 = vmatpush1.bf16.msra.mxu0 %v14258_v51  ;;  %v14371_v49 = vcombine.high %v1386_v45, %v1394_v61  ;;  %v1401_v51 = vld [vmem:[%s23580_s3 + $0x610] sm:$0xff] }
 0x1f0   :  { %6167 = vmatprep.subr.bf16.mxu1 %v14273_v52  ;;  %6296 = vmatprep.subr.bf16.mxu0 %v14275_v54  ;;  %v1409_v52 = vld [vmem:[%s23580_s3 + $0x650] sm:$0xff]  ;;  %v1402_v54 = vld [vmem:[%s23580_s3 + $0x618] sm:$0xff] }
 0x1f1   :  { %v14385_v3 = vcombine.high %v1401_v51, %v1409_v52  ;;  %v14384_v9 = vcombine.low %v1401_v51, %v1409_v52  ;;  %v14386_v10 = vcombine.low %v1402_v54, %v1410_v57  ;;  %v1506_v51 = vld [vmem:[%s23580_s3 + $0x958] sm:$0xff] }
 0x1f3   :  { %6168 = vmatpush1.bf16.msra.mxu1 %v14272_v4  ;;  %6297 = vmatpush1.bf16.msra.mxu0 %v14274_v5  ;;  %v14387_v4 = vcombine.high %v1402_v54, %v1410_v57  ;;  %v1417_v5 = vld [vmem:[%s23580_s3 + $0x690] sm:$0xff] }
 0x1f4   :  { %6169 = vmatprep.subr.bf16.mxu1 %v14289_v6  ;;  %6298 = vmatprep.subr.bf16.mxu0 %v14291_v7  ;;  %v1425_v6 = vld [vmem:[%s23580_s3 + $0x6d0] sm:$0xff]  ;;  %v1418_v7 = vld [vmem:[%s23580_s3 + $0x698] sm:$0xff] }
 0x1f5   :  { %v14401_v11 = vcombine.high %v1417_v5, %v1425_v6  ;;  %v14400_v17 = vcombine.low %v1417_v5, %v1425_v6  ;;  %v14402_v20 = vcombine.low %v1418_v7, %v1426_v8  ;;  %v1522_v5 = vld [vmem:[%s23580_s3 + $0x9d8] sm:$0xff] }
 0x1f7   :  { %6170 = vmatpush1.bf16.msra.mxu1 %v14288_v60  ;;  %6299 = vmatpush1.bf16.msra.mxu0 %v14290_v31  ;;  %v14403_v60 = vcombine.high %v1418_v7, %v1426_v8  ;;  %v1433_v31 = vld [vmem:[%s23580_s3 + $0x710] sm:$0xff] }
 0x1f8   :  { %6171 = vmatprep.subr.bf16.mxu1 %v14305_v0  ;;  %6300 = vmatprep.subr.bf16.mxu0 %v14307_v13  ;;  %v1441_v0 = vld [vmem:[%s23580_s3 + $0x750] sm:$0xff]  ;;  %v1434_v13 = vld [vmem:[%s23580_s3 + $0x718] sm:$0xff] }
 0x1f9   :  { %v14417_v22 = vcombine.high %v1433_v31, %v1441_v0  ;;  %v14416_v14 = vcombine.low %v1433_v31, %v1441_v0  ;;  %v14418_v27 = vcombine.low %v1434_v13, %v1442_v16  ;;  %v1538_v31 = vld [vmem:[%s23580_s3 + $0xa58] sm:$0xff] }
 0x1fb   :  { %6172 = vmatpush1.bf16.msra.mxu1 %v14304_v44  ;;  %6301 = vmatpush1.bf16.msra.mxu0 %v14306_v1  ;;  %v14419_v44 = vcombine.high %v1434_v13, %v1442_v16  ;;  %v1449_v1 = vld [vmem:[%s23580_s3 + $0x790] sm:$0xff] }
 0x1fc   :  { %6173 = vmatprep.subr.bf16.mxu1 %v14321_v23  ;;  %6302 = vmatprep.subr.bf16.mxu0 %v14323_v24  ;;  %v1457_v23 = vld [vmem:[%s23580_s3 + $0x7d0] sm:$0xff]  ;;  %v1450_v24 = vld [vmem:[%s23580_s3 + $0x798] sm:$0xff] }
 0x1fd   :  { %v14433_v28 = vcombine.high %v1449_v1, %v1457_v23  ;;  %v14432_v36 = vcombine.low %v1449_v1, %v1457_v23  ;;  %v14434_v37 = vcombine.low %v1450_v24, %v1458_v25  ;;  %v1554_v1 = vld [vmem:[%s23580_s3 + $0xad8] sm:$0xff] }
 0x1ff   :  { %6174 = vmatpush1.bf16.msra.mxu1 %v14320_v30  ;;  %6303 = vmatpush1.bf16.msra.mxu0 %v14322_v33  ;;  %v14435_v30 = vcombine.high %v1450_v24, %v1458_v25  ;;  %v1465_v33 = vld [vmem:[%s23580_s3 + $0x810] sm:$0xff] }
 0x200   :  { %6175 = vmatprep.subr.bf16.mxu1 %v14337_v15  ;;  %6304 = vmatprep.subr.bf16.mxu0 %v14339_v34  ;;  %v1473_v15 = vld [vmem:[%s23580_s3 + $0x850] sm:$0xff]  ;;  %v1466_v34 = vld [vmem:[%s23580_s3 + $0x818] sm:$0xff] }
 0x201   :  { %v14449_v21 = vcombine.high %v1465_v33, %v1473_v15  ;;  %v14448_v43 = vcombine.low %v1465_v33, %v1473_v15  ;;  %v14450_v45 = vcombine.low %v1466_v34, %v1474_v18  ;;  %v1570_v33 = vld [vmem:[%s23580_s3 + $0xb58] sm:$0xff] }
 0x203   :  { %6176 = vmatpush1.bf16.msra.mxu1 %v14336_v38  ;;  %6305 = vmatpush1.bf16.msra.mxu0 %v14338_v39  ;;  %v14451_v38 = vcombine.high %v1466_v34, %v1474_v18  ;;  %v1481_v39 = vld [vmem:[%s23580_s3 + $0x890] sm:$0xff] }
 0x204   :  { %6177 = vmatprep.subr.bf16.mxu1 %v14353_v40  ;;  %6306 = vmatprep.subr.bf16.mxu0 %v14355_v41  ;;  %v1489_v40 = vld [vmem:[%s23580_s3 + $0x8d0] sm:$0xff]  ;;  %v1482_v41 = vld [vmem:[%s23580_s3 + $0x898] sm:$0xff] }
 0x205   :  { %v14465_v61 = vcombine.high %v1481_v39, %v1489_v40  ;;  %v14464_v52 = vcombine.low %v1481_v39, %v1489_v40  ;;  %v14466_v54 = vcombine.low %v1482_v41, %v1490_v42  ;;  %v1586_v39 = vld [vmem:[%s23580_s3 + $0xbd8] sm:$0xff] }
 0x207   :  { %6178 = vmatpush1.bf16.msra.mxu1 %v14352_v46  ;;  %6307 = vmatpush1.bf16.msra.mxu0 %v14354_v47  ;;  %v14467_v46 = vcombine.high %v1482_v41, %v1490_v42  ;;  %v1497_v47 = vld [vmem:[%s23580_s3 + $0x910] sm:$0xff] }
 0x208   :  { %6179 = vmatprep.subr.bf16.mxu1 %v14369_v48  ;;  %6308 = vmatprep.subr.bf16.mxu0 %v14371_v49  ;;  %v1505_v48 = vld [vmem:[%s23580_s3 + $0x950] sm:$0xff]  ;;  %v1498_v49 = vld [vmem:[%s23580_s3 + $0x918] sm:$0xff] }
 0x209   :  { %v14481_v57 = vcombine.high %v1497_v47, %v1505_v48  ;;  %v14480_v6 = vcombine.low %v1497_v47, %v1505_v48  ;;  %v14482_v7 = vcombine.low %v1498_v49, %v1506_v51  ;;  %v1602_v47 = vld [vmem:[%s23580_s3 + $0xc58] sm:$0xff] }
 0x20b   :  { %6180 = vmatpush1.bf16.msra.mxu1 %v14368_v63  ;;  %6309 = vmatpush1.bf16.msra.mxu0 %v14370_v2  ;;  %v14483_v63 = vcombine.high %v1498_v49, %v1506_v51  ;;  %v1513_v2 = vld [vmem:[%s23580_s3 + $0x990] sm:$0xff] }
 0x20c   :  { %6181 = vmatprep.subr.bf16.mxu1 %v14385_v3  ;;  %6310 = vmatprep.subr.bf16.mxu0 %v14387_v4  ;;  %v1521_v3 = vld [vmem:[%s23580_s3 + $0x9d0] sm:$0xff]  ;;  %v1514_v4 = vld [vmem:[%s23580_s3 + $0x998] sm:$0xff] }
 0x20d   :  { %v14497_v8 = vcombine.high %v1513_v2, %v1521_v3  ;;  %v14496_v0 = vcombine.low %v1513_v2, %v1521_v3  ;;  %v14498_v13 = vcombine.low %v1514_v4, %v1522_v5  ;;  %v1618_v2 = vld [vmem:[%s23580_s3 + $0xcd8] sm:$0xff] }
 0x20f   :  { %6182 = vmatpush1.bf16.msra.mxu1 %v14384_v9  ;;  %6311 = vmatpush1.bf16.msra.mxu0 %v14386_v10  ;;  %v14499_v9 = vcombine.high %v1514_v4, %v1522_v5  ;;  %v1529_v10 = vld [vmem:[%s23580_s3 + $0xa10] sm:$0xff] }
 0x210   :  { %6183 = vmatprep.subr.bf16.mxu1 %v14401_v11  ;;  %6312 = vmatprep.subr.bf16.mxu0 %v14403_v60  ;;  %v1537_v11 = vld [vmem:[%s23580_s3 + $0xa50] sm:$0xff]  ;;  %v1530_v60 = vld [vmem:[%s23580_s3 + $0xa18] sm:$0xff] }
 0x211   :  { %v14513_v16 = vcombine.high %v1529_v10, %v1537_v11  ;;  %v14512_v23 = vcombine.low %v1529_v10, %v1537_v11  ;;  %v14514_v24 = vcombine.low %v1530_v60, %v1538_v31  ;;  %v1634_v10 = vld [vmem:[%s23580_s3 + $0xd58] sm:$0xff] }
 0x213   :  { %6184 = vmatpush1.bf16.msra.mxu1 %v14400_v17  ;;  %6313 = vmatpush1.bf16.msra.mxu0 %v14402_v20  ;;  %v14515_v17 = vcombine.high %v1530_v60, %v1538_v31  ;;  %v1545_v20 = vld [vmem:[%s23580_s3 + $0xa90] sm:$0xff] }
 0x214   :  { %6185 = vmatprep.subr.bf16.mxu1 %v14417_v22  ;;  %6314 = vmatprep.subr.bf16.mxu0 %v14419_v44  ;;  %v1553_v22 = vld [vmem:[%s23580_s3 + $0xad0] sm:$0xff]  ;;  %v1546_v44 = vld [vmem:[%s23580_s3 + $0xa98] sm:$0xff] }
 0x215   :  { %v14529_v25 = vcombine.high %v1545_v20, %v1553_v22  ;;  %v14528_v15 = vcombine.low %v1545_v20, %v1553_v22  ;;  %v14530_v34 = vcombine.low %v1546_v44, %v1554_v1  ;;  %v1650_v20 = vld [vmem:[%s23580_s3 + $0xdd8] sm:$0xff] }
 0x217   :  { %6186 = vmatpush1.bf16.msra.mxu1 %v14416_v14  ;;  %6315 = vmatpush1.bf16.msra.mxu0 %v14418_v27  ;;  %v14531_v14 = vcombine.high %v1546_v44, %v1554_v1  ;;  %v1561_v27 = vld [vmem:[%s23580_s3 + $0xb10] sm:$0xff] }
 0x218   :  { %6187 = vmatprep.subr.bf16.mxu1 %v14433_v28  ;;  %6316 = vmatprep.subr.bf16.mxu0 %v14435_v30  ;;  %v1569_v28 = vld [vmem:[%s23580_s3 + $0xb50] sm:$0xff]  ;;  %v1562_v30 = vld [vmem:[%s23580_s3 + $0xb18] sm:$0xff] }
 0x219   :  { %v14545_v18 = vcombine.high %v1561_v27, %v1569_v28  ;;  %v14544_v40 = vcombine.low %v1561_v27, %v1569_v28  ;;  %v14546_v41 = vcombine.low %v1562_v30, %v1570_v33  ;;  %v1666_v27 = vld [vmem:[%s23580_s3 + $0xe58] sm:$0xff] }
 0x21b   :  { %6188 = vmatpush1.bf16.msra.mxu1 %v14432_v36  ;;  %6317 = vmatpush1.bf16.msra.mxu0 %v14434_v37  ;;  %v14547_v36 = vcombine.high %v1562_v30, %v1570_v33  ;;  %v1577_v37 = vld [vmem:[%s23580_s3 + $0xb90] sm:$0xff] }
 0x21c   :  { %6200 = vmatprep.subr.bf16.mxu1 %v14449_v21  ;;  %6329 = vmatprep.subr.bf16.mxu0 %v14451_v38  ;;  %v1585_v21 = vld [vmem:[%s23580_s3 + $0xbd0] sm:$0xff]  ;;  %v1578_v38 = vld [vmem:[%s23580_s3 + $0xb98] sm:$0xff] }
 0x21d   :  { %v14561_v42 = vcombine.high %v1577_v37, %v1585_v21  ;;  %v14560_v48 = vcombine.low %v1577_v37, %v1585_v21  ;;  %v14562_v49 = vcombine.low %v1578_v38, %v1586_v39  ;;  %v1682_v37 = vld [vmem:[%s23580_s3 + $0xed8] sm:$0xff] }
 0x21e   :  { %6190 = vmatmul.mubr.bf16.vlgmr.msra.gmra.mrb[8].mxu1 %v18518_v55  ;;  %6319 = vmatmul.mubr.bf16.vlgmr.msra.gmra.mrb[16].mxu0 %v18518_v55 }
 0x21f   :  { %6201 = vmatpush1.bf16.msra.mxu1 %v14448_v43  ;;  %6232 = vmatprep.mubr.bf16.mxu1 %v18737_v35  ;;  %v14563_v43 = vcombine.high %v1578_v38, %v1586_v39 }
 0x220   :  { %6330 = vmatpush1.bf16.msra.mxu0 %v14450_v45  ;;  %6361 = vmatprep.mubr.bf16.mxu0 %v18737_v35  ;;  %v1593_v45 = vld [vmem:[%s23580_s3 + $0xc10] sm:$0xff] }
 0x221   :  { %6202 = vmatprep.subr.bf16.mxu1 %v14465_v61  ;;  %6331 = vmatprep.subr.bf16.mxu0 %v14467_v46  ;;  %v1601_v61 = vld [vmem:[%s23580_s3 + $0xc50] sm:$0xff]  ;;  %v1594_v46 = vld [vmem:[%s23580_s3 + $0xc18] sm:$0xff] }
 0x222   :  { %v14577_v51 = vcombine.high %v1593_v45, %v1601_v61  ;;  %v14576_v3 = vcombine.low %v1593_v45, %v1601_v61  ;;  %v14578_v4 = vcombine.low %v1594_v46, %v1602_v47  ;;  %v1698_v45 = vld [vmem:[%s23580_s3 + $0xf58] sm:$0xff] }
 0x223   :  { %6203 = vmatpush1.bf16.msra.mxu1 %v14464_v52  ;;  %v14579_v52 = vcombine.high %v1594_v46, %v1602_v47 }
 0x224   :  { %6332 = vmatpush1.bf16.msra.mxu0 %v14466_v54  ;;  %6204 = vmatprep.subr.bf16.mxu1 %v14481_v57  ;;  %v1609_v54 = vld [vmem:[%s23580_s3 + $0xc90] sm:$0xff] }
 0x225   :  { %6333 = vmatprep.subr.bf16.mxu0 %v14483_v63  ;;  %v1617_v57 = vld [vmem:[%s23580_s3 + $0xcd0] sm:$0xff]  ;;  %v1610_v63 = vld [vmem:[%s23580_s3 + $0xc98] sm:$0xff] }
 0x226   :  { %v14593_v5 = vcombine.high %v1609_v54, %v1617_v57  ;;  %v14592_v11 = vcombine.low %v1609_v54, %v1617_v57  ;;  %v14594_v60 = vcombine.low %v1610_v63, %v1618_v2  ;;  %v1714_v54 = vld [vmem:[%s23580_s3 + $0xfd8] sm:$0xff] }
 0x227   :  { %6205 = vmatpush1.bf16.msra.mxu1 %v14480_v6  ;;  %v14595_v6 = vcombine.high %v1610_v63, %v1618_v2 }
 0x228   :  { %6334 = vmatpush1.bf16.msra.mxu0 %v14482_v7  ;;  %6206 = vmatprep.subr.bf16.mxu1 %v14497_v8  ;;  %v1625_v7 = vld [vmem:[%s23580_s3 + $0xd10] sm:$0xff] }
 0x229   :  { %6335 = vmatprep.subr.bf16.mxu0 %v14499_v9  ;;  %v1633_v8 = vld [vmem:[%s23580_s3 + $0xd50] sm:$0xff]  ;;  %v1626_v9 = vld [vmem:[%s23580_s3 + $0xd18] sm:$0xff] }
 0x22a   :  { %v14609_v31 = vcombine.high %v1625_v7, %v1633_v8  ;;  %v14608_v22 = vcombine.low %v1625_v7, %v1633_v8  ;;  %v14610_v44 = vcombine.low %v1626_v9, %v1634_v10  ;;  %v1730_v7 = vld [vmem:[%s23580_s3 + $0x1058] sm:$0xff] }
 0x22b   :  { %6207 = vmatpush1.bf16.msra.mxu1 %v14496_v0  ;;  %v14611_v0 = vcombine.high %v1626_v9, %v1634_v10 }
 0x22c   :  { %6336 = vmatpush1.bf16.msra.mxu0 %v14498_v13  ;;  %6208 = vmatprep.subr.bf16.mxu1 %v14513_v16  ;;  %v1641_v13 = vld [vmem:[%s23580_s3 + $0xd90] sm:$0xff] }
 0x22d   :  { %6337 = vmatprep.subr.bf16.mxu0 %v14515_v17  ;;  %v1649_v16 = vld [vmem:[%s23580_s3 + $0xdd0] sm:$0xff]  ;;  %v1642_v17 = vld [vmem:[%s23580_s3 + $0xd98] sm:$0xff] }
 0x22e   :  { %v14625_v1 = vcombine.high %v1641_v13, %v1649_v16  ;;  %v14624_v28 = vcombine.low %v1641_v13, %v1649_v16  ;;  %v14626_v30 = vcombine.low %v1642_v17, %v1650_v20  ;;  %v1738_v13 = vld [vmem:[%s23580_s3 + $0x1098] sm:$0xff] }
 0x22f   :  { %6209 = vmatpush1.bf16.msra.mxu1 %v14512_v23  ;;  %v14627_v23 = vcombine.high %v1642_v17, %v1650_v20  ;;  %v1746_v16 = vld [vmem:[%s23580_s3 + $0x10d8] sm:$0xff] }
 0x230   :  { %6338 = vmatpush1.bf16.msra.mxu0 %v14514_v24  ;;  %6210 = vmatprep.subr.bf16.mxu1 %v14529_v25  ;;  %v1657_v24 = vld [vmem:[%s23580_s3 + $0xe10] sm:$0xff] }
 0x231   :  { %6339 = vmatprep.subr.bf16.mxu0 %v14531_v14  ;;  %v1665_v25 = vld [vmem:[%s23580_s3 + $0xe50] sm:$0xff]  ;;  %v1658_v14 = vld [vmem:[%s23580_s3 + $0xe18] sm:$0xff] }
 0x232   :  { %v14641_v33 = vcombine.high %v1657_v24, %v1665_v25  ;;  %v14640_v21 = vcombine.low %v1657_v24, %v1665_v25  ;;  %v14642_v38 = vcombine.low %v1658_v14, %v1666_v27  ;;  %v1762_v24 = vld [vmem:[%s23580_s3 + $0x1158] sm:$0xff] }
 0x233   :  { %6211 = vmatpush1.bf16.msra.mxu1 %v14528_v15  ;;  %v14643_v15 = vcombine.high %v1658_v14, %v1666_v27  ;;  %v14722_v14 = vcombine.low %v1738_v13, %v1746_v16 }
 0x234   :  { %6340 = vmatpush1.bf16.msra.mxu0 %v14530_v34  ;;  %6212 = vmatprep.subr.bf16.mxu1 %v14545_v18  ;;  %v1673_v34 = vld [vmem:[%s23580_s3 + $0xe90] sm:$0xff] }
 0x235   :  { %6341 = vmatprep.subr.bf16.mxu0 %v14547_v36  ;;  %v1681_v18 = vld [vmem:[%s23580_s3 + $0xed0] sm:$0xff]  ;;  %v1674_v36 = vld [vmem:[%s23580_s3 + $0xe98] sm:$0xff] }
 0x236   :  { %v14657_v39 = vcombine.high %v1673_v34, %v1681_v18  ;;  %v14656_v61 = vcombine.low %v1673_v34, %v1681_v18  ;;  %v14658_v46 = vcombine.low %v1674_v36, %v1682_v37  ;;  %v1778_v34 = vld [vmem:[%s23580_s3 + $0x11d8] sm:$0xff] }
 0x237   :  { %6213 = vmatpush1.bf16.msra.mxu1 %v14544_v40  ;;  %v14659_v40 = vcombine.high %v1674_v36, %v1682_v37 }
 0x238   :  { %6342 = vmatpush1.bf16.msra.mxu0 %v14546_v41  ;;  %6214 = vmatprep.subr.bf16.mxu1 %v14561_v42  ;;  %v1689_v41 = vld [vmem:[%s23580_s3 + $0xf10] sm:$0xff] }
 0x239   :  { %6343 = vmatprep.subr.bf16.mxu0 %v14563_v43  ;;  %v1697_v42 = vld [vmem:[%s23580_s3 + $0xf50] sm:$0xff]  ;;  %v1690_v43 = vld [vmem:[%s23580_s3 + $0xf18] sm:$0xff] }
 0x23a   :  { %v14673_v47 = vcombine.high %v1689_v41, %v1697_v42  ;;  %v14672_v57 = vcombine.low %v1689_v41, %v1697_v42  ;;  %v14674_v63 = vcombine.low %v1690_v43, %v1698_v45  ;;  %v1794_v41 = vld [vmem:[%s23580_s3 + $0x1258] sm:$0xff] }
 0x23b   :  { %6215 = vmatpush1.bf16.msra.mxu1 %v14560_v48  ;;  %v14675_v48 = vcombine.high %v1690_v43, %v1698_v45 }
 0x23c   :  { %6344 = vmatpush1.bf16.msra.mxu0 %v14562_v49  ;;  %6216 = vmatprep.subr.bf16.mxu1 %v14577_v51  ;;  %v1705_v49 = vld [vmem:[%s23580_s3 + $0xf90] sm:$0xff] }
 0x23d   :  { %6345 = vmatprep.subr.bf16.mxu0 %v14579_v52  ;;  %v1713_v51 = vld [vmem:[%s23580_s3 + $0xfd0] sm:$0xff]  ;;  %v1706_v52 = vld [vmem:[%s23580_s3 + $0xf98] sm:$0xff] }
 0x23e   :  { %v14689_v2 = vcombine.high %v1705_v49, %v1713_v51  ;;  %v14688_v8 = vcombine.low %v1705_v49, %v1713_v51  ;;  %v14690_v9 = vcombine.low %v1706_v52, %v1714_v54  ;;  %v1810_v49 = vld [vmem:[%s23580_s3 + $0x12d8] sm:$0xff] }
 0x23f   :  { %6217 = vmatpush1.bf16.msra.mxu1 %v14576_v3  ;;  %v14691_v3 = vcombine.high %v1706_v52, %v1714_v54 }
 0x240   :  { %6346 = vmatpush1.bf16.msra.mxu0 %v14578_v4  ;;  %6218 = vmatprep.subr.bf16.mxu1 %v14593_v5  ;;  %v1721_v4 = vld [vmem:[%s23580_s3 + $0x1010] sm:$0xff] }
 0x241   :  { %6347 = vmatprep.subr.bf16.mxu0 %v14595_v6  ;;  %v1729_v5 = vld [vmem:[%s23580_s3 + $0x1050] sm:$0xff]  ;;  %v1722_v6 = vld [vmem:[%s23580_s3 + $0x1018] sm:$0xff] }
 0x242   :  { %v14705_v10 = vcombine.high %v1721_v4, %v1729_v5  ;;  %v14706_v17 = vcombine.low %v1722_v6, %v1730_v7 }
 0x243   :  { %6219 = vmatpush1.bf16.msra.mxu1 %v14592_v11  ;;  %v14707_v11 = vcombine.high %v1722_v6, %v1730_v7 }
 0x244   :  { %6348 = vmatpush1.bf16.msra.mxu0 %v14594_v60  ;;  %6220 = vmatprep.subr.bf16.mxu1 %v14609_v31  ;;  %v1737_v60 = vld [vmem:[%s23580_s3 + $0x1090] sm:$0xff] }
 0x245   :  { %6349 = vmatprep.subr.bf16.mxu0 %v14611_v0  ;;  %v1745_v31 = vld [vmem:[%s23580_s3 + $0x10d0] sm:$0xff]  ;;  %v14704_v0 = vcombine.low %v1721_v4, %v1729_v5  ;;  %v1826_v4 = vld [vmem:[%s23580_s3 + $0x1358] sm:$0xff] }
 0x246   :  { %v14721_v20 = vcombine.high %v1737_v60, %v1745_v31  ;;  %v14720_v25 = vcombine.low %v1737_v60, %v1745_v31  ;;  %v1842_v60 = vld [vmem:[%s23580_s3 + $0x13d8] sm:$0xff] }
 0x247   :  { %6221 = vmatpush1.bf16.msra.mxu1 %v14608_v22  ;;  %v1753_v22 = vld [vmem:[%s23580_s3 + $0x1110] sm:$0xff] }
 0x248   :  { %6350 = vmatpush1.bf16.msra.mxu0 %v14610_v44  ;;  %6222 = vmatprep.subr.bf16.mxu1 %v14625_v1  ;;  %v1761_v44 = vld [vmem:[%s23580_s3 + $0x1150] sm:$0xff]  ;;  %v14723_v1 = vcombine.high %v1738_v13, %v1746_v16 }
 0x249   :  { %6351 = vmatprep.subr.bf16.mxu0 %v14627_v23  ;;  %v1754_v23 = vld [vmem:[%s23580_s3 + $0x1118] sm:$0xff]  ;;  %v14737_v27 = vcombine.high %v1753_v22, %v1761_v44  ;;  %v14736_v18 = vcombine.low %v1753_v22, %v1761_v44 }
 0x24a   :  { %v14738_v36 = vcombine.low %v1754_v23, %v1762_v24  ;;  %v1850_v22 = vld [vmem:[%s23580_s3 + $0x1418] sm:$0xff] }
 0x24b   :  { %6223 = vmatpush1.bf16.msra.mxu1 %v14624_v28  ;;  %v14739_v28 = vcombine.high %v1754_v23, %v1762_v24  ;;  %v1858_v44 = vld [vmem:[%s23580_s3 + $0x1458] sm:$0xff] }
 0x24c   :  { %6352 = vmatpush1.bf16.msra.mxu0 %v14626_v30  ;;  %6224 = vmatprep.subr.bf16.mxu1 %v14641_v33  ;;  %v1769_v30 = vld [vmem:[%s23580_s3 + $0x1190] sm:$0xff] }
 0x24d   :  { %6353 = vmatprep.subr.bf16.mxu0 %v14643_v15  ;;  %v1777_v33 = vld [vmem:[%s23580_s3 + $0x11d0] sm:$0xff]  ;;  %v1770_v15 = vld [vmem:[%s23580_s3 + $0x1198] sm:$0xff] }
 0x24e   :  { %v14753_v37 = vcombine.high %v1769_v30, %v1777_v33  ;;  %v14752_v42 = vcombine.low %v1769_v30, %v1777_v33  ;;  %v14754_v43 = vcombine.low %v1770_v15, %v1778_v34  ;;  %v1874_v30 = vld [vmem:[%s23580_s3 + $0x14d8] sm:$0xff] }
 0x24f   :  { %6225 = vmatpush1.bf16.msra.mxu1 %v14640_v21  ;;  %v14755_v21 = vcombine.high %v1770_v15, %v1778_v34  ;;  %v14834_v15 = vcombine.low %v1850_v22, %v1858_v44 }
 0x250   :  { %6354 = vmatpush1.bf16.msra.mxu0 %v14642_v38  ;;  %6226 = vmatprep.subr.bf16.mxu1 %v14657_v39  ;;  %v1785_v38 = vld [vmem:[%s23580_s3 + $0x1210] sm:$0xff] }
 0x251   :  { %6355 = vmatprep.subr.bf16.mxu0 %v14659_v40  ;;  %v1793_v39 = vld [vmem:[%s23580_s3 + $0x1250] sm:$0xff]  ;;  %v1786_v40 = vld [vmem:[%s23580_s3 + $0x1218] sm:$0xff] }
 0x252   :  { %v14769_v45 = vcombine.high %v1785_v38, %v1793_v39  ;;  %v14768_v51 = vcombine.low %v1785_v38, %v1793_v39  ;;  %v14770_v52 = vcombine.low %v1786_v40, %v1794_v41  ;;  %v1890_v38 = vld [vmem:[%s23580_s3 + $0x1558] sm:$0xff] }
 0x253   :  { %6227 = vmatpush1.bf16.msra.mxu1 %v14656_v61  ;;  %v14771_v61 = vcombine.high %v1786_v40, %v1794_v41 }
 0x254   :  { %6356 = vmatpush1.bf16.msra.mxu0 %v14658_v46  ;;  %6228 = vmatprep.subr.bf16.mxu1 %v14673_v47  ;;  %v1801_v46 = vld [vmem:[%s23580_s3 + $0x1290] sm:$0xff] }
 0x255   :  { %6357 = vmatprep.subr.bf16.mxu0 %v14675_v48  ;;  %v1809_v47 = vld [vmem:[%s23580_s3 + $0x12d0] sm:$0xff]  ;;  %v1802_v48 = vld [vmem:[%s23580_s3 + $0x1298] sm:$0xff] }
 0x256   :  { %v14785_v54 = vcombine.high %v1801_v46, %v1809_v47  ;;  %v14784_v5 = vcombine.low %v1801_v46, %v1809_v47  ;;  %v14786_v6 = vcombine.low %v1802_v48, %v1810_v49  ;;  %v1906_v46 = vld [vmem:[%s23580_s3 + $0x15d8] sm:$0xff] }
 0x257   :  { %6229 = vmatpush1.bf16.msra.mxu1 %v14672_v57  ;;  %v14787_v57 = vcombine.high %v1802_v48, %v1810_v49 }
 0x258   :  { %6358 = vmatpush1.bf16.msra.mxu0 %v14674_v63  ;;  %6230 = vmatprep.subr.bf16.mxu1 %v14689_v2  ;;  %v1817_v63 = vld [vmem:[%s23580_s3 + $0x1310] sm:$0xff] }
 0x259   :  { %6359 = vmatprep.subr.bf16.mxu0 %v14691_v3  ;;  %v1825_v2 = vld [vmem:[%s23580_s3 + $0x1350] sm:$0xff]  ;;  %v1818_v3 = vld [vmem:[%s23580_s3 + $0x1318] sm:$0xff] }
 0x25a   :  { %v14801_v7 = vcombine.high %v1817_v63, %v1825_v2  ;;  %v14800_v31 = vcombine.low %v1817_v63, %v1825_v2  ;;  %v1922_v63 = vld [vmem:[%s23580_s3 + $0x1658] sm:$0xff] }
 0x25b   :  { %6231 = vmatpush1.bf16.msra.mxu1 %v14688_v8  ;;  %v14803_v8 = vcombine.high %v1818_v3, %v1826_v4 }
 0x25c   :  { %6360 = vmatpush1.bf16.msra.mxu0 %v14690_v9  ;;  %6243 = vmatprep.subr.bf16.mxu1 %v14705_v10  ;;  %v1833_v9 = vld [vmem:[%s23580_s3 + $0x1390] sm:$0xff] }
 0x25d   :  { %6372 = vmatprep.subr.bf16.mxu0 %v14707_v11  ;;  %v1841_v10 = vld [vmem:[%s23580_s3 + $0x13d0] sm:$0xff]  ;;  %v1834_v11 = vld [vmem:[%s23580_s3 + $0x1398] sm:$0xff] }
 0x25e   :  { %6233 = vmatmul.mubr.bf16.vlgmr.msra.gmra.mrb[8].mxu1 %v18735_v19  ;;  %v14817_v13 = vcombine.high %v1833_v9, %v1841_v10  ;;  %v14819_v16 = vcombine.high %v1834_v11, %v1842_v60  ;;  %v14818_v23 = vcombine.low %v1834_v11, %v1842_v60 }
 0x25f   :  { %6362 = vmatmul.mubr.bf16.vlgmr.msra.gmra.mrb[16].mxu0 %v18735_v19  ;;  %6244 = vmatpush1.bf16.msra.mxu1 %v14704_v0  ;;  %v14802_v0 = vcombine.low %v1818_v3, %v1826_v4 }
 0x260   :  { %6275 = vmatprep.mubr.bf16.mxu1 %v18953_v12  ;;  %6373 = vmatpush1.bf16.msra.mxu0 %v14706_v17  ;;  %v1849_v17 = vld [vmem:[%s23580_s3 + $0x1410] sm:$0xff] }
 0x261   :  { %6404 = vmatprep.mubr.bf16.mxu0 %v18953_v12  ;;  %6245 = vmatprep.subr.bf16.mxu1 %v14721_v20  ;;  %v1857_v20 = vld [vmem:[%s23580_s3 + $0x1450] sm:$0xff] }
 0x262   :  { %6374 = vmatprep.subr.bf16.mxu0 %v14723_v1  ;;  %v14816_v1 = vcombine.low %v1833_v9, %v1841_v10  ;;  %v14833_v24 = vcombine.high %v1849_v17, %v1857_v20  ;;  %v14832_v33 = vcombine.low %v1849_v17, %v1857_v20  ;;  %v1938_v9 = vld [vmem:[%s23580_s3 + $0x16d8] sm:$0xff] }
 0x263   :  { %6246 = vmatpush1.bf16.msra.mxu1 %v14720_v25  ;;  %v14835_v25 = vcombine.high %v1850_v22, %v1858_v44  ;;  %v1954_v17 = vld [vmem:[%s23580_s3 + $0x1758] sm:$0xff] }
 0x264   :  { %6375 = vmatpush1.bf16.msra.mxu0 %v14722_v14  ;;  %6247 = vmatprep.subr.bf16.mxu1 %v14737_v27  ;;  %v1865_v14 = vld [vmem:[%s23580_s3 + $0x1490] sm:$0xff] }
 0x265   :  { %6376 = vmatprep.subr.bf16.mxu0 %v14739_v28  ;;  %v1873_v27 = vld [vmem:[%s23580_s3 + $0x14d0] sm:$0xff]  ;;  %v1866_v28 = vld [vmem:[%s23580_s3 + $0x1498] sm:$0xff] }
 0x266   :  { %v14849_v34 = vcombine.high %v1865_v14, %v1873_v27  ;;  %v14848_v39 = vcombine.low %v1865_v14, %v1873_v27  ;;  %v14850_v40 = vcombine.low %v1866_v28, %v1874_v30  ;;  %v1970_v14 = vld [vmem:[%s23580_s3 + $0x17d8] sm:$0xff] }
 0x267   :  { %6248 = vmatpush1.bf16.msra.mxu1 %v14736_v18  ;;  %v14851_v18 = vcombine.high %v1866_v28, %v1874_v30 }
 0x268   :  { %6377 = vmatpush1.bf16.msra.mxu0 %v14738_v36  ;;  %6249 = vmatprep.subr.bf16.mxu1 %v14753_v37  ;;  %v1881_v36 = vld [vmem:[%s23580_s3 + $0x1510] sm:$0xff] }
 0x269   :  { %6378 = vmatprep.subr.bf16.mxu0 %v14755_v21  ;;  %v1889_v37 = vld [vmem:[%s23580_s3 + $0x1550] sm:$0xff]  ;;  %v1882_v21 = vld [vmem:[%s23580_s3 + $0x1518] sm:$0xff] }
 0x26a   :  { %v14865_v41 = vcombine.high %v1881_v36, %v1889_v37  ;;  %v14864_v47 = vcombine.low %v1881_v36, %v1889_v37  ;;  %v14866_v48 = vcombine.low %v1882_v21, %v1890_v38  ;;  %v1220_v36 = vld [vmem:[%s23580_s3 + $0x68] sm:$0xff] }
 0x26b   :  { %6250 = vmatpush1.bf16.msra.mxu1 %v14752_v42  ;;  %v14867_v42 = vcombine.high %v1882_v21, %v1890_v38 }
 0x26c   :  { %6379 = vmatpush1.bf16.msra.mxu0 %v14754_v43  ;;  %6251 = vmatprep.subr.bf16.mxu1 %v14769_v45  ;;  %v1897_v43 = vld [vmem:[%s23580_s3 + $0x1590] sm:$0xff] }
 0x26d   :  { %6380 = vmatprep.subr.bf16.mxu0 %v14771_v61  ;;  %v1905_v45 = vld [vmem:[%s23580_s3 + $0x15d0] sm:$0xff]  ;;  %v1898_v61 = vld [vmem:[%s23580_s3 + $0x1598] sm:$0xff] }
 0x26e   :  { %v14881_v49 = vcombine.high %v1897_v43, %v1905_v45  ;;  %v14880_v2 = vcombine.low %v1897_v43, %v1905_v45  ;;  %v14882_v3 = vcombine.low %v1898_v61, %v1906_v46  ;;  %v1228_v43 = vld [vmem:[%s23580_s3 + $0xa8] sm:$0xff] }
 0x26f   :  { %6252 = vmatpush1.bf16.msra.mxu1 %v14768_v51  ;;  %v14883_v51 = vcombine.high %v1898_v61, %v1906_v46  ;;  %v1236_v45 = vld [vmem:[%s23580_s3 + $0xe8] sm:$0xff] }
 0x270   :  { %6381 = vmatpush1.bf16.msra.mxu0 %v14770_v52  ;;  %6253 = vmatprep.subr.bf16.mxu1 %v14785_v54  ;;  %v1913_v52 = vld [vmem:[%s23580_s3 + $0x1610] sm:$0xff] }
 0x271   :  { %6382 = vmatprep.subr.bf16.mxu0 %v14787_v57  ;;  %v1921_v54 = vld [vmem:[%s23580_s3 + $0x1650] sm:$0xff]  ;;  %v1914_v57 = vld [vmem:[%s23580_s3 + $0x1618] sm:$0xff] }
 0x272   :  { %v14897_v4 = vcombine.high %v1913_v52, %v1921_v54  ;;  %v14896_v10 = vcombine.low %v1913_v52, %v1921_v54  ;;  %v14898_v11 = vcombine.low %v1914_v57, %v1922_v63  ;;  %v1252_v52 = vld [vmem:[%s23580_s3 + $0x168] sm:$0xff] }
 0x273   :  { %6254 = vmatpush1.bf16.msra.mxu1 %v14784_v5  ;;  %v14899_v5 = vcombine.high %v1914_v57, %v1922_v63  ;;  %v14214_v57 = vcombine.low %v1228_v43, %v1236_v45 }
 0x274   :  { %6383 = vmatpush1.bf16.msra.mxu0 %v14786_v6  ;;  %6255 = vmatprep.subr.bf16.mxu1 %v14801_v7  ;;  %v1929_v6 = vld [vmem:[%s23580_s3 + $0x1690] sm:$0xff] }
 0x275   :  { %6384 = vmatprep.subr.bf16.mxu0 %v14803_v8  ;;  %v1937_v7 = vld [vmem:[%s23580_s3 + $0x16d0] sm:$0xff]  ;;  %v1930_v8 = vld [vmem:[%s23580_s3 + $0x1698] sm:$0xff] }
 0x276   :  { %v14913_v60 = vcombine.high %v1929_v6, %v1937_v7  ;;  %v14912_v20 = vcombine.low %v1929_v6, %v1937_v7  ;;  %v14914_v22 = vcombine.low %v1930_v8, %v1938_v9  ;;  %v1268_v6 = vld [vmem:[%s23580_s3 + $0x1e8] sm:$0xff] }
 0x277   :  { %6256 = vmatpush1.bf16.msra.mxu1 %v14800_v31  ;;  %v14915_v31 = vcombine.high %v1930_v8, %v1938_v9 }
 0x278   :  { %6385 = vmatpush1.bf16.msra.mxu0 %v14802_v0  ;;  %6257 = vmatprep.subr.bf16.mxu1 %v14817_v13  ;;  %v1945_v0 = vld [vmem:[%s23580_s3 + $0x1710] sm:$0xff] }
 0x279   :  { %6386 = vmatprep.subr.bf16.mxu0 %v14819_v16  ;;  %v1953_v13 = vld [vmem:[%s23580_s3 + $0x1750] sm:$0xff]  ;;  %v1946_v16 = vld [vmem:[%s23580_s3 + $0x1718] sm:$0xff] }
 0x27a   :  { %v14929_v44 = vcombine.high %v1945_v0, %v1953_v13  ;;  %v14928_v27 = vcombine.low %v1945_v0, %v1953_v13  ;;  %v14930_v28 = vcombine.low %v1946_v16, %v1954_v17  ;;  %v1284_v0 = vld [vmem:[%s23580_s3 + $0x268] sm:$0xff] }
 0x27b   :  { %6258 = vmatpush1.bf16.msra.mxu1 %v14816_v1  ;;  %v14931_v1 = vcombine.high %v1946_v16, %v1954_v17 }
 0x27c   :  { %6387 = vmatpush1.bf16.msra.mxu0 %v14818_v23  ;;  %6259 = vmatprep.subr.bf16.mxu1 %v14833_v24  ;;  %v1961_v23 = vld [vmem:[%s23580_s3 + $0x1790] sm:$0xff] }
 0x27d   :  { %6388 = vmatprep.subr.bf16.mxu0 %v14835_v25  ;;  %v1969_v24 = vld [vmem:[%s23580_s3 + $0x17d0] sm:$0xff]  ;;  %v1962_v25 = vld [vmem:[%s23580_s3 + $0x1798] sm:$0xff] }
 0x27e   :  { %v14945_v30 = vcombine.high %v1961_v23, %v1969_v24  ;;  %v14944_v37 = vcombine.low %v1961_v23, %v1969_v24  ;;  %v14946_v21 = vcombine.low %v1962_v25, %v1970_v14  ;;  %v1300_v23 = vld [vmem:[%s23580_s3 + $0x2e8] sm:$0xff] }
 0x27f   :  { %6260 = vmatpush1.bf16.msra.mxu1 %v14832_v33  ;;  %v14947_v33 = vcombine.high %v1962_v25, %v1970_v14  ;;  %v1975_v25 = vld [vmem:[%s23582_s4] sm:$0xff] }
 0x280   :  { %6389 = vmatpush1.bf16.msra.mxu0 %v14834_v15  ;;  %6261 = vmatprep.subr.bf16.mxu1 %v14849_v34  ;;  %v1211_v15 = vld [vmem:[%s23580_s3 + $0x20] sm:$0xff] }
 0x281   :  { %6390 = vmatprep.subr.bf16.mxu0 %v14851_v18  ;;  %v1219_v34 = vld [vmem:[%s23580_s3 + $0x60] sm:$0xff]  ;;  %v1212_v18 = vld [vmem:[%s23580_s3 + $0x28] sm:$0xff] }
 0x282   :  { %v14197_v38 = vcombine.high %v1211_v15, %v1219_v34  ;;  %v14198_v61 = vcombine.low %v1212_v18, %v1220_v36 }
 0x283   :  { %6262 = vmatpush1.bf16.msra.mxu1 %v14848_v39  ;;  %v14199_v39 = vcombine.high %v1212_v18, %v1220_v36  ;;  %v1308_v18 = vld [vmem:[%s23580_s3 + $0x328] sm:$0xff] }
 0x284   :  { %6391 = vmatpush1.bf16.msra.mxu0 %v14850_v40  ;;  %6263 = vmatprep.subr.bf16.mxu1 %v14865_v41  ;;  %v1227_v40 = vld [vmem:[%s23580_s3 + $0xa0] sm:$0xff]  ;;  %v1316_v36 = vld [vmem:[%s23580_s3 + $0x368] sm:$0xff] }
 0x285   :  { %6392 = vmatprep.subr.bf16.mxu0 %v14867_v42  ;;  %v1235_v41 = vld [vmem:[%s23580_s3 + $0xe0] sm:$0xff]  ;;  %v14196_v42 = vcombine.low %v1211_v15, %v1219_v34  ;;  %v1982_v15 = vrot.slane %v1975_v25, %v18480_v29  ;;  %v1990_v34 = vrot.slane %v1975_v25, %v18686_v50 }
 0x286   :  { %v14213_v46 = vcombine.high %v1227_v40, %v1235_v41  ;;  %v14212_v54 = vcombine.low %v1227_v40, %v1235_v41  ;;  %v1323_v41 = vld [vmem:[%s23580_s3 + $0x3a0] sm:$0xff] }
 0x287   :  { %6264 = vmatpush1.bf16.msra.mxu1 %v14864_v47  ;;  %v1243_v47 = vld [vmem:[%s23580_s3 + $0x120] sm:$0xff] }
 0x288   :  { %6393 = vmatpush1.bf16.msra.mxu0 %v14866_v48  ;;  %6265 = vmatprep.subr.bf16.mxu1 %v14881_v49  ;;  %v1251_v48 = vld [vmem:[%s23580_s3 + $0x160] sm:$0xff]  ;;  %v14215_v49 = vcombine.high %v1228_v43, %v1236_v45 }
 0x289   :  { %6394 = vmatprep.subr.bf16.mxu0 %v14883_v51  ;;  %v1244_v51 = vld [vmem:[%s23580_s3 + $0x128] sm:$0xff]  ;;  %v14229_v63 = vcombine.high %v1243_v47, %v1251_v48  ;;  %v14228_v7 = vcombine.low %v1243_v47, %v1251_v48 }
 0x28a   :  { %v14230_v8 = vcombine.low %v1244_v51, %v1252_v52 }
 0x28b   :  { %6266 = vmatpush1.bf16.msra.mxu1 %v14880_v2  ;;  %v14231_v2 = vcombine.high %v1244_v51, %v1252_v52  ;;  %v1324_v52 = vld [vmem:[%s23580_s3 + $0x3a8] sm:$0xff] }
 0x28c   :  { %6395 = vmatpush1.bf16.msra.mxu0 %v14882_v3  ;;  %6267 = vmatprep.subr.bf16.mxu1 %v14897_v4  ;;  %v1259_v3 = vld [vmem:[%s23580_s3 + $0x1a0] sm:$0xff] }
 0x28d   :  { %6396 = vmatprep.subr.bf16.mxu0 %v14899_v5  ;;  %v1267_v4 = vld [vmem:[%s23580_s3 + $0x1e0] sm:$0xff]  ;;  %v1260_v5 = vld [vmem:[%s23580_s3 + $0x1a8] sm:$0xff] }
 0x28e   :  { %v14245_v9 = vcombine.high %v1259_v3, %v1267_v4  ;;  %v14244_v13 = vcombine.low %v1259_v3, %v1267_v4  ;;  %v14246_v16 = vcombine.low %v1260_v5, %v1268_v6  ;;  %v14294_v4 = vcombine.low %v1308_v18, %v1316_v36 }
 0x28f   :  { %6268 = vmatpush1.bf16.msra.mxu1 %v14896_v10  ;;  %v14247_v10 = vcombine.high %v1260_v5, %v1268_v6 }
 0x290   :  { %6397 = vmatpush1.bf16.msra.mxu0 %v14898_v11  ;;  %6269 = vmatprep.subr.bf16.mxu1 %v14913_v60  ;;  %v1275_v11 = vld [vmem:[%s23580_s3 + $0x220] sm:$0xff] }
 0x291   :  { %6398 = vmatprep.subr.bf16.mxu0 %v14915_v31  ;;  %v1283_v60 = vld [vmem:[%s23580_s3 + $0x260] sm:$0xff]  ;;  %v1276_v31 = vld [vmem:[%s23580_s3 + $0x228] sm:$0xff] }
 0x292   :  { %v14261_v17 = vcombine.high %v1275_v11, %v1283_v60  ;;  %v14260_v24 = vcombine.low %v1275_v11, %v1283_v60  ;;  %v14262_v14 = vcombine.low %v1276_v31, %v1284_v0 }
 0x293   :  { %6270 = vmatpush1.bf16.msra.mxu1 %v14912_v20  ;;  %v14263_v20 = vcombine.high %v1276_v31, %v1284_v0 }
 0x294   :  { %6399 = vmatpush1.bf16.msra.mxu0 %v14914_v22  ;;  %6271 = vmatprep.subr.bf16.mxu1 %v14929_v44  ;;  %v1291_v22 = vld [vmem:[%s23580_s3 + $0x2a0] sm:$0xff] }
 0x295   :  { %6400 = vmatprep.subr.bf16.mxu0 %v14931_v1  ;;  %v1299_v44 = vld [vmem:[%s23580_s3 + $0x2e0] sm:$0xff]  ;;  %v1292_v1 = vld [vmem:[%s23580_s3 + $0x2a8] sm:$0xff] }
 0x297   :  { %6272 = vmatpush1.bf16.msra.mxu1 %v14928_v27  ;;  %v14277_v27 = vcombine.high %v1291_v22, %v1299_v44 }
 0x298   :  { %6401 = vmatpush1.bf16.msra.mxu0 %v14930_v28  ;;  %6273 = vmatprep.subr.bf16.mxu1 %v14945_v30  ;;  %v14279_v28 = vcombine.high %v1292_v1, %v1300_v23  ;;  %v1307_v30 = vld [vmem:[%s23580_s3 + $0x320] sm:$0xff] }
 0x299   :  { %6402 = vmatprep.subr.bf16.mxu0 %v14947_v33  ;;  %v1315_v33 = vld [vmem:[%s23580_s3 + $0x360] sm:$0xff] }
 0x29a   :  { %v14293_v40 = vcombine.high %v1307_v30, %v1315_v33  ;;  %v14292_v51 = vcombine.low %v1307_v30, %v1315_v33 }
 0x29b   :  { %6274 = vmatpush1.bf16.msra.mxu1 %v14944_v37  ;;  %v14276_v37 = vcombine.low %v1291_v22, %v1299_v44 }
 0x29c   :  { %6403 = vmatpush1.bf16.msra.mxu0 %v14946_v21  ;;  %6415 = vmatprep.subr.bf16.mxu1 %v14197_v38  ;;  %v1986_v21 = vrot.slane %v1975_v25, %v18488_v32  ;;  %v1994_v38 = vrot.slane %v1975_v25, %v18689_v53 }
 0x29d   :  { %6544 = vmatprep.subr.bf16.mxu0 %v14199_v39  ;;  %v14278_v39 = vcombine.low %v1292_v1, %v1300_v23  ;;  %v1340_v1 = vld [vmem:[%s23580_s3 + $0x428] sm:$0xff] }
 0x29e   :  { %6276 = vmatmul.mubr.bf16.vlgmr.msra.gmra.mrb[8].mxu1 %v18942_v59  ;;  %v1348_v23 = vld [vmem:[%s23580_s3 + $0x468] sm:$0xff] }
 0x29f   :  { %6405 = vmatmul.mubr.bf16.vlgmr.msra.gmra.mrb[16].mxu0 %v18942_v59  ;;  %6416 = vmatpush1.bf16.msra.mxu1 %v14196_v42  ;;  %v1331_v42 = vld [vmem:[%s23580_s3 + $0x3e0] sm:$0xff] }
 0x2a0   :  { %6447 = vmatprep.mubr.bf16.mxu1 %v18520_v56  ;;  %6545 = vmatpush1.bf16.msra.mxu0 %v14198_v61  ;;  %v14295_v61 = vcombine.high %v1308_v18, %v1316_v36  ;;  %v14308_v5 = vcombine.low %v1323_v41, %v1331_v42  ;;  %v14327_v18 = vcombine.high %v1340_v1, %v1348_v23  ;;  %v1355_v36 = vld [vmem:[%s23580_s3 + $0x4a0] sm:$0xff] }
 0x2a1   :  { %6576 = vmatprep.mubr.bf16.mxu0 %v18520_v56  ;;  %6417 = vmatprep.subr.bf16.mxu1 %v14213_v46 }
 0x2a2   :  { %6546 = vmatprep.subr.bf16.mxu0 %v14215_v49 }
 0x2a3   :  { %6418 = vmatpush1.bf16.msra.mxu1 %v14212_v54  ;;  %v1332_v54 = vld [vmem:[%s23580_s3 + $0x3e8] sm:$0xff] }
 0x2a4   :  { %6547 = vmatpush1.bf16.msra.mxu0 %v14214_v57  ;;  %6419 = vmatprep.subr.bf16.mxu1 %v14229_v63  ;;  %v14310_v31 = vcombine.low %v1324_v52, %v1332_v54  ;;  %v14311_v0 = vcombine.high %v1324_v52, %v1332_v54  ;;  %v1387_v52 = vld [vmem:[%s23580_s3 + $0x5a0] sm:$0xff] }
 0x2a5   :  { %6548 = vmatprep.subr.bf16.mxu0 %v14231_v2  ;;  %v1395_v54 = vld [vmem:[%s23580_s3 + $0x5e0] sm:$0xff] }
 0x2a7   :  { %6420 = vmatpush1.bf16.msra.mxu1 %v14228_v7 }
 0x2a8   :  { %6549 = vmatpush1.bf16.msra.mxu0 %v14230_v8  ;;  %6421 = vmatprep.subr.bf16.mxu1 %v14245_v9 }
 0x2a9   :  { %6550 = vmatprep.subr.bf16.mxu0 %v14247_v10  ;;  %v14309_v10 = vcombine.high %v1323_v41, %v1331_v42 }
 0x2ab   :  { %6422 = vmatpush1.bf16.msra.mxu1 %v14244_v13  ;;  %v1339_v13 = vld [vmem:[%s23580_s3 + $0x420] sm:$0xff] }
 0x2ac   :  { %6551 = vmatpush1.bf16.msra.mxu0 %v14246_v16  ;;  %6423 = vmatprep.subr.bf16.mxu1 %v14261_v17  ;;  %v1347_v16 = vld [vmem:[%s23580_s3 + $0x460] sm:$0xff] }
 0x2ad   :  { %6552 = vmatprep.subr.bf16.mxu0 %v14263_v20  ;;  %v14325_v33 = vcombine.high %v1339_v13, %v1347_v16 }
 0x2af   :  { %6424 = vmatpush1.bf16.msra.mxu1 %v14260_v24 }
 0x2b0   :  { %6553 = vmatpush1.bf16.msra.mxu0 %v14262_v14  ;;  %6425 = vmatprep.subr.bf16.mxu1 %v14277_v27 }
 0x2b1   :  { %v6019_v43 = vpop.f32.mrb[4].mxu1  ;;  %v6148_v45 = vpop.f32.mrb[12].mxu0  ;;  %6554 = vmatprep.subr.bf16.mxu0 %v14279_v28 }
 0x2b2   :  { %v16044_v46 = vadd.f32 %v6019_v43, %v1982_v15  ;;  %v16048_v47 = vadd.f32 %v6148_v45, %v1990_v34  ;;  %v6021_v48 = vpop.f32.mrb[5].mxu1  ;;  %v6150_v49 = vpop.f32.mrb[13].mxu0  ;;  %v1371_v43 = vld [vmem:[%s23580_s3 + $0x520] sm:$0xff] }
 0x2b3   :  { %v16045_v57 = vadd.f32 %v6021_v48, %v1986_v21  ;;  %v16049_v63 = vadd.f32 %v6150_v49, %v1994_v38  ;;  %6426 = vmatpush1.bf16.msra.mxu1 %v14276_v37  ;;  %v6023_v2 = vpop.f32.mrb[6].mxu1  ;;  %v6152_v3 = vpop.f32.mrb[14].mxu0  ;;  %v1363_v37 = vld [vmem:[%s23580_s3 + $0x4e0] sm:$0xff] }
 0x2b4   :  { %6555 = vmatpush1.bf16.msra.mxu0 %v14278_v39  ;;  %v16046_v6 = vadd.f32 %v6023_v2, %v1982_v15  ;;  %v16050_v7 = vadd.f32 %v6152_v3, %v1990_v34  ;;  %v6025_v8 = vpop.f32.mrb[7].mxu1  ;;  %v6154_v9 = vpop.f32.mrb[15].mxu0  ;;  %6427 = vmatprep.subr.bf16.mxu1 %v14293_v40  ;;  %v6931_v17 = vmax.f32 %v16044_v46, 0.0  ;;  %v6933_v20 = vmax.f32 %v16048_v47, 0.0  ;;  %v1379_v45 = vld [vmem:[%s23580_s3 + $0x560] sm:$0xff]  ;;  %v1380_v46 = vld [vmem:[%s23580_s3 + $0x568] sm:$0xff] }
 0x2b5   :  { %v16047_v11 = vadd.f32 %v6025_v8, %v1986_v21  ;;  %v16051_v60 = vadd.f32 %v6154_v9, %v1994_v38  ;;  %6556 = vmatprep.subr.bf16.mxu0 %v14295_v61  ;;  %v6932_v24 = vmax.f32 %v16045_v57, 0.0  ;;  %v6934_v25 = vmax.f32 %v16049_v63, 0.0  ;;  %v1356_v21 = vld [vmem:[%s23580_s3 + $0x4a8] sm:$0xff] }
 0x2b6   :  { %v6947_v22 = vmax.f32 %v16046_v6, 0.0  ;;  %v6949_v44 = vmax.f32 %v16050_v7, 0.0  ;;  %v1364_v38 = vld [vmem:[%s23580_s3 + $0x4e8] sm:$0xff]  ;;  %v14324_v39 = vcombine.low %v1339_v13, %v1347_v16  ;;  %v14326_v40 = vcombine.low %v1340_v1, %v1348_v23  ;;  %v1403_v6 = vld [vmem:[%s23580_s3 + $0x620] sm:$0xff] }
 0x2b7   :  { %v6948_v14 = vmax.f32 %v16047_v11, 0.0  ;;  %v6950_v27 = vmax.f32 %v16051_v60, 0.0  ;;  %6428 = vmatpush1.bf16.msra.mxu1 %v14292_v51  ;;  %v14341_v41 = vcombine.high %v1355_v36, %v1363_v37  ;;  %v14343_v42 = vcombine.high %v1356_v21, %v1364_v38  ;;  %v1372_v61 = vld [vmem:[%s23580_s3 + $0x528] sm:$0xff]  ;;  %v1411_v7 = vld [vmem:[%s23580_s3 + $0x660] sm:$0xff] }
 0x2b8   :  { %v19640_v28 = vpack.c.bf16 %v6947_v22, %v6931_v17  ;;  %v19642_v30 = vpack.c.bf16 %v6949_v44, %v6933_v20  ;;  %6557 = vmatpush1.bf16.msra.mxu0 %v14294_v4  ;;  %6429 = vmatprep.subr.bf16.mxu1 %v14309_v10  ;;  %v14340_v47 = vcombine.low %v1355_v36, %v1363_v37  ;;  %v1388_v57 = vld [vmem:[%s23580_s3 + $0x5a8] sm:$0xff]  ;;  %v1427_v13 = vld [vmem:[%s23580_s3 + $0x6e0] sm:$0xff] }
 0x2b9   :  { %v19644_v15 = vpack.c.bf16 %v6948_v14, %v6932_v24  ;;  %v19646_v34 = vpack.c.bf16 %v6950_v27, %v6934_v25  ;;  %6558 = vmatprep.subr.bf16.mxu0 %v14311_v0  ;;  %v14342_v48 = vcombine.low %v1356_v21, %v1364_v38  ;;  %v14357_v49 = vcombine.high %v1371_v43, %v1379_v45  ;;  %v1396_v63 = vld [vmem:[%s23580_s3 + $0x5e8] sm:$0xff]  ;;  %v1419_v0 = vld [vmem:[%s23580_s3 + $0x6a0] sm:$0xff] }
 0x2ba   :  { %v14359_v51 = vcombine.high %v1372_v61, %v1380_v46  ;;  %v14356_v2 = vcombine.low %v1371_v43, %v1379_v45  ;;  %v14358_v3 = vcombine.low %v1372_v61, %v1380_v46  ;;  %v14373_v4 = vcombine.high %v1387_v52, %v1395_v54  ;;  %v1404_v8 = vld [vmem:[%s23580_s3 + $0x628] sm:$0xff]  ;;  %v1435_v23 = vld [vmem:[%s23580_s3 + $0x720] sm:$0xff] }
 0x2bb   :  { %6430 = vmatpush1.bf16.msra.mxu1 %v14308_v5  ;;  %v14375_v5 = vcombine.high %v1388_v57, %v1396_v63  ;;  %v1412_v9 = vld [vmem:[%s23580_s3 + $0x668] sm:$0xff]  ;;  %v14372_v10 = vcombine.low %v1387_v52, %v1395_v54  ;;  %v14374_v11 = vcombine.low %v1388_v57, %v1396_v63  ;;  %v14389_v60 = vcombine.high %v1403_v6, %v1411_v7  ;;  %v1443_v24 = vld [vmem:[%s23580_s3 + $0x760] sm:$0xff] }
 0x2bc   :  { %6559 = vmatpush1.bf16.msra.mxu0 %v14310_v31  ;;  %6431 = vmatprep.subr.bf16.mxu1 %v14325_v33  ;;  %v14391_v31 = vcombine.high %v1404_v8, %v1412_v9  ;;  %v1420_v16 = vld [vmem:[%s23580_s3 + $0x6a8] sm:$0xff]  ;;  %v14388_v20 = vcombine.low %v1403_v6, %v1411_v7  ;;  %v14390_v22 = vcombine.low %v1404_v8, %v1412_v9  ;;  %v1451_v37 = vld [vmem:[%s23580_s3 + $0x7a0] sm:$0xff] }
 0x2bd   :  { %6560 = vmatprep.subr.bf16.mxu0 %v14327_v18  ;;  %v1428_v17 = vld [vmem:[%s23580_s3 + $0x6e8] sm:$0xff]  ;;  %v14405_v44 = vcombine.high %v1419_v0, %v1427_v13  ;;  %v14404_v27 = vcombine.low %v1419_v0, %v1427_v13  ;;  %v14421_v18 = vcombine.high %v1435_v23, %v1443_v24  ;;  %v1459_v21 = vld [vmem:[%s23580_s3 + $0x7e0] sm:$0xff] }
 0x2be   :  { %v14407_v1 = vcombine.high %v1420_v16, %v1428_v17  ;;  %v1436_v25 = vld [vmem:[%s23580_s3 + $0x728] sm:$0xff]  ;;  %v14406_v33 = vcombine.low %v1420_v16, %v1428_v17  ;;  %v1467_v45 = vld [vmem:[%s23580_s3 + $0x820] sm:$0xff] }
 0x2bf   :  { %6432 = vmatpush1.bf16.msra.mxu1 %v14324_v39  ;;  %v1444_v14 = vld [vmem:[%s23580_s3 + $0x768] sm:$0xff]  ;;  %v1475_v61 = vld [vmem:[%s23580_s3 + $0x860] sm:$0xff] }
 0x2c0   :  { %6561 = vmatpush1.bf16.msra.mxu0 %v14326_v40  ;;  %6433 = vmatprep.subr.bf16.mxu1 %v14341_v41  ;;  %v14423_v36 = vcombine.high %v1436_v25, %v1444_v14  ;;  %v1452_v38 = vld [vmem:[%s23580_s3 + $0x7a8] sm:$0xff]  ;;  %v14420_v40 = vcombine.low %v1435_v23, %v1443_v24  ;;  %v14422_v41 = vcombine.low %v1436_v25, %v1444_v14  ;;  %v1483_v54 = vld [vmem:[%s23580_s3 + $0x8a0] sm:$0xff] }
 0x2c1   :  { %6562 = vmatprep.subr.bf16.mxu0 %v14343_v42  ;;  %v1460_v39 = vld [vmem:[%s23580_s3 + $0x7e8] sm:$0xff]  ;;  %v14437_v42 = vcombine.high %v1451_v37, %v1459_v21  ;;  %v1491_v57 = vld [vmem:[%s23580_s3 + $0x8e0] sm:$0xff]  ;;  %v14452_v63 = vcombine.low %v1467_v45, %v1475_v61 }
 0x2c2   :  { %v14439_v43 = vcombine.high %v1452_v38, %v1460_v39  ;;  %v1468_v46 = vld [vmem:[%s23580_s3 + $0x828] sm:$0xff]  ;;  %v1499_v6 = vld [vmem:[%s23580_s3 + $0x920] sm:$0xff] }
 0x2c3   :  { %6434 = vmatpush1.bf16.msra.mxu1 %v14340_v47  ;;  %v1476_v47 = vld [vmem:[%s23580_s3 + $0x868] sm:$0xff]  ;;  %v1507_v7 = vld [vmem:[%s23580_s3 + $0x960] sm:$0xff] }
 0x2c4   :  { %6563 = vmatpush1.bf16.msra.mxu0 %v14342_v48  ;;  %6435 = vmatprep.subr.bf16.mxu1 %v14357_v49  ;;  %v14436_v48 = vcombine.low %v1451_v37, %v1459_v21  ;;  %v14438_v49 = vcombine.low %v1452_v38, %v1460_v39  ;;  %v14455_v52 = vcombine.high %v1468_v46, %v1476_v47  ;;  %v1500_v9 = vld [vmem:[%s23580_s3 + $0x928] sm:$0xff]  ;;  %v1515_v13 = vld [vmem:[%s23580_s3 + $0x9a0] sm:$0xff] }
 0x2c5   :  { %6564 = vmatprep.subr.bf16.mxu0 %v14359_v51  ;;  %v14453_v51 = vcombine.high %v1467_v45, %v1475_v61  ;;  %v1523_v16 = vld [vmem:[%s23580_s3 + $0x9e0] sm:$0xff]  ;;  %v1516_v17 = vld [vmem:[%s23580_s3 + $0x9a8] sm:$0xff] }
 0x2c6   :  { %v1531_v24 = vld [vmem:[%s23580_s3 + $0xa20] sm:$0xff]  ;;  %v1532_v14 = vld [vmem:[%s23580_s3 + $0xa28] sm:$0xff] }
 0x2c7   :  { %6436 = vmatpush1.bf16.msra.mxu1 %v14356_v2  ;;  %v1484_v2 = vld [vmem:[%s23580_s3 + $0x8a8] sm:$0xff]  ;;  %v1539_v25 = vld [vmem:[%s23580_s3 + $0xa60] sm:$0xff] }
 0x2c8   :  { %6565 = vmatpush1.bf16.msra.mxu0 %v14358_v3  ;;  %6437 = vmatprep.subr.bf16.mxu1 %v14373_v4  ;;  %v1492_v3 = vld [vmem:[%s23580_s3 + $0x8e8] sm:$0xff]  ;;  %v14454_v4 = vcombine.low %v1468_v46, %v1476_v47  ;;  %v1547_v21 = vld [vmem:[%s23580_s3 + $0xaa0] sm:$0xff] }
 0x2c9   :  { %6566 = vmatprep.subr.bf16.mxu0 %v14375_v5  ;;  %v14469_v5 = vcombine.high %v1483_v54, %v1491_v57  ;;  %v14471_v8 = vcombine.high %v1484_v2, %v1492_v3  ;;  %v1555_v38 = vld [vmem:[%s23580_s3 + $0xae0] sm:$0xff]  ;;  %v1548_v39 = vld [vmem:[%s23580_s3 + $0xaa8] sm:$0xff] }
 0x2ca   :  { %v1563_v61 = vld [vmem:[%s23580_s3 + $0xb20] sm:$0xff]  ;;  %v1564_v47 = vld [vmem:[%s23580_s3 + $0xb28] sm:$0xff] }
 0x2cb   :  { %6438 = vmatpush1.bf16.msra.mxu1 %v14372_v10  ;;  %v1508_v10 = vld [vmem:[%s23580_s3 + $0x968] sm:$0xff]  ;;  %v1571_v46 = vld [vmem:[%s23580_s3 + $0xb60] sm:$0xff] }
 0x2cc   :  { %6567 = vmatpush1.bf16.msra.mxu0 %v14374_v11  ;;  %6439 = vmatprep.subr.bf16.mxu1 %v14389_v60  ;;  %v14468_v11 = vcombine.low %v1483_v54, %v1491_v57  ;;  %v14470_v60 = vcombine.low %v1484_v2, %v1492_v3  ;;  %v14487_v0 = vcombine.high %v1500_v9, %v1508_v10  ;;  %v1579_v57 = vld [vmem:[%s23580_s3 + $0xba0] sm:$0xff]  ;;  %v1580_v2 = vld [vmem:[%s23580_s3 + $0xba8] sm:$0xff] }
 0x2cd   :  { %6568 = vmatprep.subr.bf16.mxu0 %v14391_v31  ;;  %v14485_v31 = vcombine.high %v1499_v6, %v1507_v7  ;;  %v1588_v3 = vld [vmem:[%s23580_s3 + $0xbe8] sm:$0xff] }
 0x2cf   :  { %6440 = vmatpush1.bf16.msra.mxu1 %v14388_v20  ;;  %v1524_v20 = vld [vmem:[%s23580_s3 + $0x9e8] sm:$0xff] }
 0x2d0   :  { %6569 = vmatpush1.bf16.msra.mxu0 %v14390_v22  ;;  %6441 = vmatprep.subr.bf16.mxu1 %v14405_v44  ;;  %v14484_v22 = vcombine.low %v1499_v6, %v1507_v7  ;;  %v14486_v44 = vcombine.low %v1500_v9, %v1508_v10  ;;  %v14503_v23 = vcombine.high %v1516_v17, %v1524_v20  ;;  %v1603_v9 = vld [vmem:[%s23580_s3 + $0xc60] sm:$0xff]  ;;  %v1596_v10 = vld [vmem:[%s23580_s3 + $0xc28] sm:$0xff] }
 0x2d1   :  { %6570 = vmatprep.subr.bf16.mxu0 %v14407_v1  ;;  %v14501_v1 = vcombine.high %v1515_v13, %v1523_v16  ;;  %v14567_v7 = vcombine.high %v1580_v2, %v1588_v3 }
 0x2d3   :  { %6442 = vmatpush1.bf16.msra.mxu1 %v14404_v27  ;;  %v1540_v27 = vld [vmem:[%s23580_s3 + $0xa68] sm:$0xff] }
 0x2d4   :  { %6571 = vmatpush1.bf16.msra.mxu0 %v14406_v33  ;;  %6443 = vmatprep.subr.bf16.mxu1 %v14421_v18  ;;  %v14500_v33 = vcombine.low %v1515_v13, %v1523_v16  ;;  %v14502_v18 = vcombine.low %v1516_v17, %v1524_v20  ;;  %v14519_v37 = vcombine.high %v1532_v14, %v1540_v27  ;;  %v1611_v16 = vld [vmem:[%s23580_s3 + $0xca0] sm:$0xff]  ;;  %v1612_v20 = vld [vmem:[%s23580_s3 + $0xca8] sm:$0xff] }
 0x2d5   :  { %6572 = vmatprep.subr.bf16.mxu0 %v14423_v36  ;;  %v14517_v36 = vcombine.high %v1531_v24, %v1539_v25  ;;  %v1619_v17 = vld [vmem:[%s23580_s3 + $0xce0] sm:$0xff] }
 0x2d7   :  { %6444 = vmatpush1.bf16.msra.mxu1 %v14420_v40  ;;  %v1556_v40 = vld [vmem:[%s23580_s3 + $0xae8] sm:$0xff] }
 0x2d8   :  { %6573 = vmatpush1.bf16.msra.mxu0 %v14422_v41  ;;  %6445 = vmatprep.subr.bf16.mxu1 %v14437_v42  ;;  %v14516_v41 = vcombine.low %v1531_v24, %v1539_v25  ;;  %v14518_v42 = vcombine.low %v1532_v14, %v1540_v27  ;;  %v14535_v45 = vcombine.high %v1548_v39, %v1556_v40  ;;  %v1627_v25 = vld [vmem:[%s23580_s3 + $0xd20] sm:$0xff]  ;;  %v1628_v27 = vld [vmem:[%s23580_s3 + $0xd28] sm:$0xff] }
 0x2d9   :  { %6574 = vmatprep.subr.bf16.mxu0 %v14439_v43  ;;  %v14533_v43 = vcombine.high %v1547_v21, %v1555_v38  ;;  %v1635_v14 = vld [vmem:[%s23580_s3 + $0xd60] sm:$0xff] }
 0x2db   :  { %6446 = vmatpush1.bf16.msra.mxu1 %v14436_v48  ;;  %v1572_v48 = vld [vmem:[%s23580_s3 + $0xb68] sm:$0xff] }
 0x2dc   :  { %6575 = vmatpush1.bf16.msra.mxu0 %v14438_v49  ;;  %6458 = vmatprep.subr.bf16.mxu1 %v14453_v51  ;;  %v14532_v49 = vcombine.low %v1547_v21, %v1555_v38  ;;  %v14534_v51 = vcombine.low %v1548_v39, %v1556_v40  ;;  %v14551_v54 = vcombine.high %v1564_v47, %v1572_v48  ;;  %v1643_v38 = vld [vmem:[%s23580_s3 + $0xda0] sm:$0xff]  ;;  %v1644_v40 = vld [vmem:[%s23580_s3 + $0xda8] sm:$0xff] }
 0x2dd   :  { %6587 = vmatprep.subr.bf16.mxu0 %v14455_v52  ;;  %v14549_v52 = vcombine.high %v1563_v61, %v1571_v46  ;;  %v1651_v39 = vld [vmem:[%s23580_s3 + $0xde0] sm:$0xff] }
 0x2de   :  { %6448 = vmatmul.mubr.bf16.vlgmr.msra.gmra.mrb[12].mxu1 %v18518_v55 }
 0x2df   :  { %6577 = vmatmul.mubr.bf16.vlgmr.msra.gmra.mrb[20].mxu0 %v18518_v55  ;;  %6459 = vmatpush1.bf16.msra.mxu1 %v14452_v63  ;;  %v1587_v63 = vld [vmem:[%s23580_s3 + $0xbe0] sm:$0xff] }
 0x2e0   :  { %6490 = vmatprep.mubr.bf16.mxu1 %v18737_v35  ;;  %6588 = vmatpush1.bf16.msra.mxu0 %v14454_v4  ;;  %v14548_v4 = vcombine.low %v1563_v61, %v1571_v46  ;;  %v14565_v6 = vcombine.high %v1579_v57, %v1587_v63  ;;  %v1659_v46 = vld [vmem:[%s23580_s3 + $0xe20] sm:$0xff] }
 0x2e1   :  { %6619 = vmatprep.mubr.bf16.mxu0 %v18737_v35  ;;  %6460 = vmatprep.subr.bf16.mxu1 %v14469_v5  ;;  %v14550_v5 = vcombine.low %v1564_v47, %v1572_v48  ;;  %v1667_v47 = vld [vmem:[%s23580_s3 + $0xe60] sm:$0xff]  ;;  %v1660_v48 = vld [vmem:[%s23580_s3 + $0xe28] sm:$0xff] }
 0x2e2   :  { %6589 = vmatprep.subr.bf16.mxu0 %v14471_v8  ;;  %v1595_v8 = vld [vmem:[%s23580_s3 + $0xc20] sm:$0xff] }
 0x2e3   :  { %6461 = vmatpush1.bf16.msra.mxu1 %v14468_v11  ;;  %v1604_v11 = vld [vmem:[%s23580_s3 + $0xc68] sm:$0xff] }
 0x2e4   :  { %6590 = vmatpush1.bf16.msra.mxu0 %v14470_v60  ;;  %6462 = vmatprep.subr.bf16.mxu1 %v14485_v31  ;;  %v14564_v60 = vcombine.low %v1579_v57, %v1587_v63  ;;  %v14566_v31 = vcombine.low %v1580_v2, %v1588_v3  ;;  %v14583_v13 = vcombine.high %v1596_v10, %v1604_v11  ;;  %v1675_v63 = vld [vmem:[%s23580_s3 + $0xea0] sm:$0xff]  ;;  %v1676_v3 = vld [vmem:[%s23580_s3 + $0xea8] sm:$0xff] }
 0x2e5   :  { %6591 = vmatprep.subr.bf16.mxu0 %v14487_v0  ;;  %v14581_v0 = vcombine.high %v1595_v8, %v1603_v9  ;;  %v1683_v2 = vld [vmem:[%s23580_s3 + $0xee0] sm:$0xff] }
 0x2e7   :  { %6463 = vmatpush1.bf16.msra.mxu1 %v14484_v22  ;;  %v1620_v22 = vld [vmem:[%s23580_s3 + $0xce8] sm:$0xff] }
 0x2e8   :  { %6592 = vmatpush1.bf16.msra.mxu0 %v14486_v44  ;;  %6464 = vmatprep.subr.bf16.mxu1 %v14501_v1  ;;  %v14580_v44 = vcombine.low %v1595_v8, %v1603_v9  ;;  %v14582_v1 = vcombine.low %v1596_v10, %v1604_v11  ;;  %v14599_v24 = vcombine.high %v1612_v20, %v1620_v22  ;;  %v1691_v9 = vld [vmem:[%s23580_s3 + $0xf20] sm:$0xff]  ;;  %v1692_v11 = vld [vmem:[%s23580_s3 + $0xf28] sm:$0xff] }
 0x2e9   :  { %6593 = vmatprep.subr.bf16.mxu0 %v14503_v23  ;;  %v14597_v23 = vcombine.high %v1611_v16, %v1619_v17  ;;  %v1699_v10 = vld [vmem:[%s23580_s3 + $0xf60] sm:$0xff] }
 0x2eb   :  { %6465 = vmatpush1.bf16.msra.mxu1 %v14500_v33  ;;  %v1636_v33 = vld [vmem:[%s23580_s3 + $0xd68] sm:$0xff] }
 0x2ec   :  { %6594 = vmatpush1.bf16.msra.mxu0 %v14502_v18  ;;  %6466 = vmatprep.subr.bf16.mxu1 %v14517_v36  ;;  %v14596_v18 = vcombine.low %v1611_v16, %v1619_v17  ;;  %v14598_v36 = vcombine.low %v1612_v20, %v1620_v22  ;;  %v14615_v21 = vcombine.high %v1628_v27, %v1636_v33  ;;  %v1707_v17 = vld [vmem:[%s23580_s3 + $0xfa0] sm:$0xff]  ;;  %v1708_v22 = vld [vmem:[%s23580_s3 + $0xfa8] sm:$0xff] }
 0x2ed   :  { %6595 = vmatprep.subr.bf16.mxu0 %v14519_v37  ;;  %v14613_v37 = vcombine.high %v1627_v25, %v1635_v14  ;;  %v1715_v20 = vld [vmem:[%s23580_s3 + $0xfe0] sm:$0xff] }
 0x2ef   :  { %6467 = vmatpush1.bf16.msra.mxu1 %v14516_v41  ;;  %v1652_v41 = vld [vmem:[%s23580_s3 + $0xde8] sm:$0xff] }
 0x2f0   :  { %6596 = vmatpush1.bf16.msra.mxu0 %v14518_v42  ;;  %6468 = vmatprep.subr.bf16.mxu1 %v14533_v43  ;;  %v14612_v42 = vcombine.low %v1627_v25, %v1635_v14  ;;  %v14614_v43 = vcombine.low %v1628_v27, %v1636_v33  ;;  %v14631_v61 = vcombine.high %v1644_v40, %v1652_v41  ;;  %v1723_v14 = vld [vmem:[%s23580_s3 + $0x1020] sm:$0xff]  ;;  %v1724_v33 = vld [vmem:[%s23580_s3 + $0x1028] sm:$0xff] }
 0x2f1   :  { %6597 = vmatprep.subr.bf16.mxu0 %v14535_v45  ;;  %v14629_v45 = vcombine.high %v1643_v38, %v1651_v39  ;;  %v1731_v27 = vld [vmem:[%s23580_s3 + $0x1060] sm:$0xff] }
 0x2f3   :  { %6469 = vmatpush1.bf16.msra.mxu1 %v14532_v49  ;;  %v1668_v49 = vld [vmem:[%s23580_s3 + $0xe68] sm:$0xff] }
 0x2f4   :  { %6598 = vmatpush1.bf16.msra.mxu0 %v14534_v51  ;;  %6470 = vmatprep.subr.bf16.mxu1 %v14549_v52  ;;  %v14628_v51 = vcombine.low %v1643_v38, %v1651_v39  ;;  %v14630_v52 = vcombine.low %v1644_v40, %v1652_v41  ;;  %v14647_v57 = vcombine.high %v1660_v48, %v1668_v49  ;;  %v1739_v39 = vld [vmem:[%s23580_s3 + $0x10a0] sm:$0xff] }
 0x2f5   :  { %6599 = vmatprep.subr.bf16.mxu0 %v14551_v54  ;;  %v14645_v54 = vcombine.high %v1659_v46, %v1667_v47  ;;  %v1747_v40 = vld [vmem:[%s23580_s3 + $0x10e0] sm:$0xff]  ;;  %v14708_v41 = vcombine.low %v1723_v14, %v1731_v27 }
 0x2f7   :  { %6471 = vmatpush1.bf16.msra.mxu1 %v14548_v4  ;;  %v1684_v4 = vld [vmem:[%s23580_s3 + $0xee8] sm:$0xff] }
 0x2f8   :  { %6600 = vmatpush1.bf16.msra.mxu0 %v14550_v5  ;;  %6472 = vmatprep.subr.bf16.mxu1 %v14565_v6  ;;  %v14644_v5 = vcombine.low %v1659_v46, %v1667_v47  ;;  %v14646_v6 = vcombine.low %v1660_v48, %v1668_v49  ;;  %v14663_v8 = vcombine.high %v1676_v3, %v1684_v4  ;;  %v1755_v46 = vld [vmem:[%s23580_s3 + $0x1120] sm:$0xff]  ;;  %v1756_v49 = vld [vmem:[%s23580_s3 + $0x1128] sm:$0xff] }
 0x2f9   :  { %6601 = vmatprep.subr.bf16.mxu0 %v14567_v7  ;;  %v14661_v7 = vcombine.high %v1675_v63, %v1683_v2  ;;  %v1763_v47 = vld [vmem:[%s23580_s3 + $0x1160] sm:$0xff] }
 0x2fb   :  { %6473 = vmatpush1.bf16.msra.mxu1 %v14564_v60  ;;  %v1700_v60 = vld [vmem:[%s23580_s3 + $0xf68] sm:$0xff] }
 0x2fc   :  { %6602 = vmatpush1.bf16.msra.mxu0 %v14566_v31  ;;  %6474 = vmatprep.subr.bf16.mxu1 %v14581_v0  ;;  %v14660_v31 = vcombine.low %v1675_v63, %v1683_v2  ;;  %v14662_v0 = vcombine.low %v1676_v3, %v1684_v4  ;;  %v14679_v16 = vcombine.high %v1692_v11, %v1700_v60  ;;  %v1771_v2 = vld [vmem:[%s23580_s3 + $0x11a0] sm:$0xff]  ;;  %v1772_v4 = vld [vmem:[%s23580_s3 + $0x11a8] sm:$0xff] }
 0x2fd   :  { %6603 = vmatprep.subr.bf16.mxu0 %v14583_v13  ;;  %v14677_v13 = vcombine.high %v1691_v9, %v1699_v10  ;;  %v1779_v3 = vld [vmem:[%s23580_s3 + $0x11e0] sm:$0xff] }
 0x2ff   :  { %6475 = vmatpush1.bf16.msra.mxu1 %v14580_v44  ;;  %v1716_v44 = vld [vmem:[%s23580_s3 + $0xfe8] sm:$0xff] }
 0x300   :  { %6604 = vmatpush1.bf16.msra.mxu0 %v14582_v1  ;;  %6476 = vmatprep.subr.bf16.mxu1 %v14597_v23  ;;  %v14676_v1 = vcombine.low %v1691_v9, %v1699_v10  ;;  %v14678_v23 = vcombine.low %v1692_v11, %v1700_v60  ;;  %v14695_v25 = vcombine.high %v1708_v22, %v1716_v44  ;;  %v1787_v10 = vld [vmem:[%s23580_s3 + $0x1220] sm:$0xff]  ;;  %v1788_v60 = vld [vmem:[%s23580_s3 + $0x1228] sm:$0xff] }
 0x301   :  { %6605 = vmatprep.subr.bf16.mxu0 %v14599_v24  ;;  %v14693_v24 = vcombine.high %v1707_v17, %v1715_v20  ;;  %v1795_v11 = vld [vmem:[%s23580_s3 + $0x1260] sm:$0xff] }
 0x303   :  { %6477 = vmatpush1.bf16.msra.mxu1 %v14596_v18  ;;  %v1732_v18 = vld [vmem:[%s23580_s3 + $0x1068] sm:$0xff] }
 0x304   :  { %6606 = vmatpush1.bf16.msra.mxu0 %v14598_v36  ;;  %6478 = vmatprep.subr.bf16.mxu1 %v14613_v37  ;;  %v14692_v36 = vcombine.low %v1707_v17, %v1715_v20  ;;  %v14694_v37 = vcombine.low %v1708_v22, %v1716_v44  ;;  %v14711_v38 = vcombine.high %v1724_v33, %v1732_v18  ;;  %v1803_v20 = vld [vmem:[%s23580_s3 + $0x12a0] sm:$0xff]  ;;  %v1804_v44 = vld [vmem:[%s23580_s3 + $0x12a8] sm:$0xff] }
 0x305   :  { %6607 = vmatprep.subr.bf16.mxu0 %v14615_v21  ;;  %v14709_v21 = vcombine.high %v1723_v14, %v1731_v27  ;;  %v1811_v22 = vld [vmem:[%s23580_s3 + $0x12e0] sm:$0xff] }
 0x306   :  { %v1819_v27 = vld [vmem:[%s23580_s3 + $0x1320] sm:$0xff] }
 0x307   :  { %6479 = vmatpush1.bf16.msra.mxu1 %v14612_v42  ;;  %v1740_v42 = vld [vmem:[%s23580_s3 + $0x10a8] sm:$0xff] }
 0x308   :  { %6608 = vmatpush1.bf16.msra.mxu0 %v14614_v43  ;;  %6480 = vmatprep.subr.bf16.mxu1 %v14629_v45  ;;  %v1748_v43 = vld [vmem:[%s23580_s3 + $0x10e8] sm:$0xff]  ;;  %v14710_v45 = vcombine.low %v1724_v33, %v1732_v18  ;;  %v1827_v33 = vld [vmem:[%s23580_s3 + $0x1360] sm:$0xff] }
 0x309   :  { %6609 = vmatprep.subr.bf16.mxu0 %v14631_v61  ;;  %v14725_v61 = vcombine.high %v1739_v39, %v1747_v40  ;;  %v14727_v48 = vcombine.high %v1740_v42, %v1748_v43  ;;  %v1820_v18 = vld [vmem:[%s23580_s3 + $0x1328] sm:$0xff] }
 0x30b   :  { %6481 = vmatpush1.bf16.msra.mxu1 %v14628_v51  ;;  %v1764_v51 = vld [vmem:[%s23580_s3 + $0x1168] sm:$0xff] }
 0x30c   :  { %6610 = vmatpush1.bf16.msra.mxu0 %v14630_v52  ;;  %6482 = vmatprep.subr.bf16.mxu1 %v14645_v54  ;;  %v14724_v52 = vcombine.low %v1739_v39, %v1747_v40  ;;  %v14726_v54 = vcombine.low %v1740_v42, %v1748_v43  ;;  %v14743_v63 = vcombine.high %v1756_v49, %v1764_v51  ;;  %v1835_v40 = vld [vmem:[%s23580_s3 + $0x13a0] sm:$0xff]  ;;  %v1836_v42 = vld [vmem:[%s23580_s3 + $0x13a8] sm:$0xff] }
 0x30d   :  { %6611 = vmatprep.subr.bf16.mxu0 %v14647_v57  ;;  %v14741_v57 = vcombine.high %v1755_v46, %v1763_v47  ;;  %v1844_v43 = vld [vmem:[%s23580_s3 + $0x13e8] sm:$0xff] }
 0x30f   :  { %6483 = vmatpush1.bf16.msra.mxu1 %v14644_v5  ;;  %v1780_v5 = vld [vmem:[%s23580_s3 + $0x11e8] sm:$0xff] }
 0x310   :  { %6612 = vmatpush1.bf16.msra.mxu0 %v14646_v6  ;;  %6484 = vmatprep.subr.bf16.mxu1 %v14661_v7  ;;  %v14740_v6 = vcombine.low %v1755_v46, %v1763_v47  ;;  %v14742_v7 = vcombine.low %v1756_v49, %v1764_v51  ;;  %v14759_v9 = vcombine.high %v1772_v4, %v1780_v5  ;;  %v1859_v49 = vld [vmem:[%s23580_s3 + $0x1460] sm:$0xff]  ;;  %v1852_v51 = vld [vmem:[%s23580_s3 + $0x1428] sm:$0xff] }
 0x311   :  { %6613 = vmatprep.subr.bf16.mxu0 %v14663_v8  ;;  %v14757_v8 = vcombine.high %v1771_v2, %v1779_v3  ;;  %v14823_v47 = vcombine.high %v1836_v42, %v1844_v43 }
 0x313   :  { %6485 = vmatpush1.bf16.msra.mxu1 %v14660_v31  ;;  %v1796_v31 = vld [vmem:[%s23580_s3 + $0x1268] sm:$0xff] }
 0x314   :  { %6614 = vmatpush1.bf16.msra.mxu0 %v14662_v0  ;;  %6486 = vmatprep.subr.bf16.mxu1 %v14677_v13  ;;  %v14756_v0 = vcombine.low %v1771_v2, %v1779_v3  ;;  %v14758_v13 = vcombine.low %v1772_v4, %v1780_v5  ;;  %v14775_v17 = vcombine.high %v1788_v60, %v1796_v31  ;;  %v1867_v3 = vld [vmem:[%s23580_s3 + $0x14a0] sm:$0xff]  ;;  %v1868_v5 = vld [vmem:[%s23580_s3 + $0x14a8] sm:$0xff] }
 0x315   :  { %6615 = vmatprep.subr.bf16.mxu0 %v14679_v16  ;;  %v14773_v16 = vcombine.high %v1787_v10, %v1795_v11  ;;  %v1875_v4 = vld [vmem:[%s23580_s3 + $0x14e0] sm:$0xff] }
 0x317   :  { %6487 = vmatpush1.bf16.msra.mxu1 %v14676_v1  ;;  %v1812_v1 = vld [vmem:[%s23580_s3 + $0x12e8] sm:$0xff] }
 0x318   :  { %6616 = vmatpush1.bf16.msra.mxu0 %v14678_v23  ;;  %6488 = vmatprep.subr.bf16.mxu1 %v14693_v24  ;;  %v14772_v23 = vcombine.low %v1787_v10, %v1795_v11  ;;  %v14774_v24 = vcombine.low %v1788_v60, %v1796_v31  ;;  %v14791_v14 = vcombine.high %v1804_v44, %v1812_v1  ;;  %v1883_v11 = vld [vmem:[%s23580_s3 + $0x1520] sm:$0xff]  ;;  %v1884_v31 = vld [vmem:[%s23580_s3 + $0x1528] sm:$0xff] }
 0x319   :  { %6617 = vmatprep.subr.bf16.mxu0 %v14695_v25  ;;  %v14789_v25 = vcombine.high %v1803_v20, %v1811_v22  ;;  %v1891_v60 = vld [vmem:[%s23580_s3 + $0x1560] sm:$0xff] }
 0x31b   :  { %6489 = vmatpush1.bf16.msra.mxu1 %v14692_v36  ;;  %v1828_v36 = vld [vmem:[%s23580_s3 + $0x1368] sm:$0xff] }
 0x31c   :  { %6618 = vmatpush1.bf16.msra.mxu0 %v14694_v37  ;;  %6501 = vmatprep.subr.bf16.mxu1 %v14709_v21  ;;  %v14788_v37 = vcombine.low %v1803_v20, %v1811_v22  ;;  %v14790_v21 = vcombine.low %v1804_v44, %v1812_v1  ;;  %v14807_v39 = vcombine.high %v1820_v18, %v1828_v36  ;;  %v1899_v22 = vld [vmem:[%s23580_s3 + $0x15a0] sm:$0xff]  ;;  %v1900_v1 = vld [vmem:[%s23580_s3 + $0x15a8] sm:$0xff] }
 0x31d   :  { %6630 = vmatprep.subr.bf16.mxu0 %v14711_v38  ;;  %v14805_v38 = vcombine.high %v1819_v27, %v1827_v33  ;;  %v1907_v44 = vld [vmem:[%s23580_s3 + $0x15e0] sm:$0xff] }
 0x31e   :  { %6491 = vmatmul.mubr.bf16.vlgmr.msra.gmra.mrb[12].mxu1 %v18735_v19 }
 0x31f   :  { %6620 = vmatmul.mubr.bf16.vlgmr.msra.gmra.mrb[20].mxu0 %v18735_v19  ;;  %6502 = vmatpush1.bf16.msra.mxu1 %v14708_v41  ;;  %v1843_v41 = vld [vmem:[%s23580_s3 + $0x13e0] sm:$0xff] }
 0x320   :  { %6533 = vmatprep.mubr.bf16.mxu1 %v18953_v12  ;;  %6631 = vmatpush1.bf16.msra.mxu0 %v14710_v45  ;;  %v14804_v45 = vcombine.low %v1819_v27, %v1827_v33  ;;  %v14821_v46 = vcombine.high %v1835_v40, %v1843_v41  ;;  %v1915_v33 = vld [vmem:[%s23580_s3 + $0x1620] sm:$0xff] }
 0x321   :  { %6662 = vmatprep.mubr.bf16.mxu0 %v18953_v12  ;;  %6503 = vmatprep.subr.bf16.mxu1 %v14725_v61  ;;  %v14806_v61 = vcombine.low %v1820_v18, %v1828_v36  ;;  %v1923_v18 = vld [vmem:[%s23580_s3 + $0x1660] sm:$0xff]  ;;  %v1916_v36 = vld [vmem:[%s23580_s3 + $0x1628] sm:$0xff] }
 0x322   :  { %6632 = vmatprep.subr.bf16.mxu0 %v14727_v48  ;;  %v1851_v48 = vld [vmem:[%s23580_s3 + $0x1420] sm:$0xff] }
 0x323   :  { %6504 = vmatpush1.bf16.msra.mxu1 %v14724_v52  ;;  %v1860_v52 = vld [vmem:[%s23580_s3 + $0x1468] sm:$0xff] }
 0x324   :  { %6633 = vmatpush1.bf16.msra.mxu0 %v14726_v54  ;;  %6505 = vmatprep.subr.bf16.mxu1 %v14741_v57  ;;  %v14820_v54 = vcombine.low %v1835_v40, %v1843_v41  ;;  %v14822_v57 = vcombine.low %v1836_v42, %v1844_v43  ;;  %v14839_v2 = vcombine.high %v1852_v51, %v1860_v52  ;;  %v1931_v41 = vld [vmem:[%s23580_s3 + $0x16a0] sm:$0xff]  ;;  %v1932_v43 = vld [vmem:[%s23580_s3 + $0x16a8] sm:$0xff] }
 0x325   :  { %6634 = vmatprep.subr.bf16.mxu0 %v14743_v63  ;;  %v14837_v63 = vcombine.high %v1851_v48, %v1859_v49  ;;  %v1939_v42 = vld [vmem:[%s23580_s3 + $0x16e0] sm:$0xff] }
 0x327   :  { %6506 = vmatpush1.bf16.msra.mxu1 %v14740_v6  ;;  %v1876_v6 = vld [vmem:[%s23580_s3 + $0x14e8] sm:$0xff] }
 0x328   :  { %6635 = vmatpush1.bf16.msra.mxu0 %v14742_v7  ;;  %6507 = vmatprep.subr.bf16.mxu1 %v14757_v8  ;;  %v14836_v7 = vcombine.low %v1851_v48, %v1859_v49  ;;  %v14838_v8 = vcombine.low %v1852_v51, %v1860_v52  ;;  %v14855_v10 = vcombine.high %v1868_v5, %v1876_v6  ;;  %v1947_v49 = vld [vmem:[%s23580_s3 + $0x1720] sm:$0xff]  ;;  %v1948_v52 = vld [vmem:[%s23580_s3 + $0x1728] sm:$0xff] }
 0x329   :  { %6636 = vmatprep.subr.bf16.mxu0 %v14759_v9  ;;  %v14853_v9 = vcombine.high %v1867_v3, %v1875_v4  ;;  %v1955_v51 = vld [vmem:[%s23580_s3 + $0x1760] sm:$0xff] }
 0x32b   :  { %6508 = vmatpush1.bf16.msra.mxu1 %v14756_v0  ;;  %v1892_v0 = vld [vmem:[%s23580_s3 + $0x1568] sm:$0xff] }
 0x32c   :  { %6637 = vmatpush1.bf16.msra.mxu0 %v14758_v13  ;;  %6509 = vmatprep.subr.bf16.mxu1 %v14773_v16  ;;  %v14852_v13 = vcombine.low %v1867_v3, %v1875_v4  ;;  %v14854_v16 = vcombine.low %v1868_v5, %v1876_v6  ;;  %v14871_v20 = vcombine.high %v1884_v31, %v1892_v0  ;;  %v1963_v4 = vld [vmem:[%s23580_s3 + $0x17a0] sm:$0xff]  ;;  %v1964_v6 = vld [vmem:[%s23580_s3 + $0x17a8] sm:$0xff] }
 0x32d   :  { %6638 = vmatprep.subr.bf16.mxu0 %v14775_v17  ;;  %v14869_v17 = vcombine.high %v1883_v11, %v1891_v60  ;;  %v1971_v5 = vld [vmem:[%s23580_s3 + $0x17e0] sm:$0xff] }
 0x32f   :  { %6510 = vmatpush1.bf16.msra.mxu1 %v14772_v23  ;;  %v1908_v23 = vld [vmem:[%s23580_s3 + $0x15e8] sm:$0xff] }
 0x330   :  { %6639 = vmatpush1.bf16.msra.mxu0 %v14774_v24  ;;  %6511 = vmatprep.subr.bf16.mxu1 %v14789_v25  ;;  %v14868_v24 = vcombine.low %v1883_v11, %v1891_v60  ;;  %v14870_v25 = vcombine.low %v1884_v31, %v1892_v0  ;;  %v14887_v27 = vcombine.high %v1900_v1, %v1908_v23  ;;  %v1213_v60 = vld [vmem:[%s23580_s3 + $0x30] sm:$0xff]  ;;  %v1214_v0 = vld [vmem:[%s23580_s3 + $0x38] sm:$0xff] }
 0x331   :  { %6640 = vmatprep.subr.bf16.mxu0 %v14791_v14  ;;  %v14885_v14 = vcombine.high %v1899_v22, %v1907_v44  ;;  %v1221_v31 = vld [vmem:[%s23580_s3 + $0x70] sm:$0xff] }
 0x333   :  { %6512 = vmatpush1.bf16.msra.mxu1 %v14788_v37  ;;  %v1924_v37 = vld [vmem:[%s23580_s3 + $0x1668] sm:$0xff] }
 0x334   :  { %6641 = vmatpush1.bf16.msra.mxu0 %v14790_v21  ;;  %6513 = vmatprep.subr.bf16.mxu1 %v14805_v38  ;;  %v14884_v21 = vcombine.low %v1899_v22, %v1907_v44  ;;  %v14886_v38 = vcombine.low %v1900_v1, %v1908_v23  ;;  %v14903_v40 = vcombine.high %v1916_v36, %v1924_v37  ;;  %v1229_v44 = vld [vmem:[%s23580_s3 + $0xb0] sm:$0xff] }
 0x335   :  { %6642 = vmatprep.subr.bf16.mxu0 %v14807_v39  ;;  %v14901_v39 = vcombine.high %v1915_v33, %v1923_v18  ;;  %v1237_v1 = vld [vmem:[%s23580_s3 + $0xf0] sm:$0xff]  ;;  %v14200_v23 = vcombine.low %v1213_v60, %v1221_v31 }
 0x337   :  { %6514 = vmatpush1.bf16.msra.mxu1 %v14804_v45  ;;  %v1940_v45 = vld [vmem:[%s23580_s3 + $0x16e8] sm:$0xff] }
 0x338   :  { %6643 = vmatpush1.bf16.msra.mxu0 %v14806_v61  ;;  %6515 = vmatprep.subr.bf16.mxu1 %v14821_v46  ;;  %v14900_v61 = vcombine.low %v1915_v33, %v1923_v18  ;;  %v14902_v46 = vcombine.low %v1916_v36, %v1924_v37  ;;  %v14919_v48 = vcombine.high %v1932_v43, %v1940_v45  ;;  %v1245_v33 = vld [vmem:[%s23580_s3 + $0x130] sm:$0xff]  ;;  %v1246_v37 = vld [vmem:[%s23580_s3 + $0x138] sm:$0xff] }
 0x339   :  { %6644 = vmatprep.subr.bf16.mxu0 %v14823_v47  ;;  %v14917_v47 = vcombine.high %v1931_v41, %v1939_v42  ;;  %v1253_v18 = vld [vmem:[%s23580_s3 + $0x170] sm:$0xff] }
 0x33b   :  { %6516 = vmatpush1.bf16.msra.mxu1 %v14820_v54  ;;  %v1956_v54 = vld [vmem:[%s23580_s3 + $0x1768] sm:$0xff] }
 0x33c   :  { %6645 = vmatpush1.bf16.msra.mxu0 %v14822_v57  ;;  %6517 = vmatprep.subr.bf16.mxu1 %v14837_v63  ;;  %v14916_v57 = vcombine.low %v1931_v41, %v1939_v42  ;;  %v14918_v63 = vcombine.low %v1932_v43, %v1940_v45  ;;  %v14935_v3 = vcombine.high %v1948_v52, %v1956_v54  ;;  %v1261_v42 = vld [vmem:[%s23580_s3 + $0x1b0] sm:$0xff]  ;;  %v1262_v45 = vld [vmem:[%s23580_s3 + $0x1b8] sm:$0xff] }
 0x33d   :  { %6646 = vmatprep.subr.bf16.mxu0 %v14839_v2  ;;  %v14933_v2 = vcombine.high %v1947_v49, %v1955_v51  ;;  %v1269_v43 = vld [vmem:[%s23580_s3 + $0x1f0] sm:$0xff] }
 0x33f   :  { %6518 = vmatpush1.bf16.msra.mxu1 %v14836_v7  ;;  %v1972_v7 = vld [vmem:[%s23580_s3 + $0x17e8] sm:$0xff] }
 0x340   :  { %6647 = vmatpush1.bf16.msra.mxu0 %v14838_v8  ;;  %6519 = vmatprep.subr.bf16.mxu1 %v14853_v9  ;;  %v14932_v8 = vcombine.low %v1947_v49, %v1955_v51  ;;  %v14934_v9 = vcombine.low %v1948_v52, %v1956_v54  ;;  %v14951_v11 = vcombine.high %v1964_v6, %v1972_v7  ;;  %v1277_v49 = vld [vmem:[%s23580_s3 + $0x230] sm:$0xff]  ;;  %v1278_v52 = vld [vmem:[%s23580_s3 + $0x238] sm:$0xff] }
 0x341   :  { %6648 = vmatprep.subr.bf16.mxu0 %v14855_v10  ;;  %v14949_v10 = vcombine.high %v1963_v4, %v1971_v5  ;;  %v1285_v51 = vld [vmem:[%s23580_s3 + $0x270] sm:$0xff]  ;;  %v1286_v54 = vld [vmem:[%s23580_s3 + $0x278] sm:$0xff] }
 0x343   :  { %6520 = vmatpush1.bf16.msra.mxu1 %v14852_v13  ;;  %v1222_v13 = vld [vmem:[%s23580_s3 + $0x78] sm:$0xff] }
 0x344   :  { %6649 = vmatpush1.bf16.msra.mxu0 %v14854_v16  ;;  %6521 = vmatprep.subr.bf16.mxu1 %v14869_v17  ;;  %v14948_v16 = vcombine.low %v1963_v4, %v1971_v5  ;;  %v14950_v17 = vcombine.low %v1964_v6, %v1972_v7  ;;  %v14203_v22 = vcombine.high %v1214_v0, %v1222_v13  ;;  %v1293_v4 = vld [vmem:[%s23580_s3 + $0x2b0] sm:$0xff]  ;;  %v1294_v6 = vld [vmem:[%s23580_s3 + $0x2b8] sm:$0xff] }
 0x345   :  { %6650 = vmatprep.subr.bf16.mxu0 %v14871_v20  ;;  %v14201_v20 = vcombine.high %v1213_v60, %v1221_v31  ;;  %v1301_v5 = vld [vmem:[%s23580_s3 + $0x2f0] sm:$0xff]  ;;  %v1302_v7 = vld [vmem:[%s23580_s3 + $0x2f8] sm:$0xff] }
 0x346   :  { %v14281_v60 = vcombine.high %v1293_v4, %v1301_v5  ;;  %v14283_v31 = vcombine.high %v1294_v6, %v1302_v7 }
 0x347   :  { %6522 = vmatpush1.bf16.msra.mxu1 %v14868_v24  ;;  %v1230_v24 = vld [vmem:[%s23580_s3 + $0xb8] sm:$0xff] }
 0x348   :  { %6651 = vmatpush1.bf16.msra.mxu0 %v14870_v25  ;;  %6523 = vmatprep.subr.bf16.mxu1 %v14885_v14  ;;  %v1238_v25 = vld [vmem:[%s23580_s3 + $0xf8] sm:$0xff]  ;;  %v14202_v14 = vcombine.low %v1214_v0, %v1222_v13  ;;  %v1309_v0 = vld [vmem:[%s23580_s3 + $0x330] sm:$0xff] }
 0x349   :  { %6652 = vmatprep.subr.bf16.mxu0 %v14887_v27  ;;  %v14217_v27 = vcombine.high %v1229_v44, %v1237_v1  ;;  %v14219_v36 = vcombine.high %v1230_v24, %v1238_v25  ;;  %v1317_v13 = vld [vmem:[%s23580_s3 + $0x370] sm:$0xff] }
 0x34b   :  { %6524 = vmatpush1.bf16.msra.mxu1 %v14884_v21  ;;  %v1254_v21 = vld [vmem:[%s23580_s3 + $0x178] sm:$0xff] }
 0x34c   :  { %6653 = vmatpush1.bf16.msra.mxu0 %v14886_v38  ;;  %6525 = vmatprep.subr.bf16.mxu1 %v14901_v39  ;;  %v14216_v38 = vcombine.low %v1229_v44, %v1237_v1  ;;  %v14218_v39 = vcombine.low %v1230_v24, %v1238_v25  ;;  %v14235_v41 = vcombine.high %v1246_v37, %v1254_v21 }
 0x34d   :  { %6654 = vmatprep.subr.bf16.mxu0 %v14903_v40  ;;  %v14233_v40 = vcombine.high %v1245_v33, %v1253_v18  ;;  %v14282_v25 = vcombine.low %v1294_v6, %v1302_v7 }
 0x34f   :  { %6526 = vmatpush1.bf16.msra.mxu1 %v14900_v61  ;;  %v1270_v61 = vld [vmem:[%s23580_s3 + $0x1f8] sm:$0xff] }
 0x350   :  { %6655 = vmatpush1.bf16.msra.mxu0 %v14902_v46  ;;  %6527 = vmatprep.subr.bf16.mxu1 %v14917_v47  ;;  %v14234_v46 = vcombine.low %v1246_v37, %v1254_v21  ;;  %v14249_v47 = vcombine.high %v1261_v42, %v1269_v43 }
 0x351   :  { %6656 = vmatprep.subr.bf16.mxu0 %v14919_v48  ;;  %v14251_v48 = vcombine.high %v1262_v45, %v1270_v61 }
 0x353   :  { %6528 = vmatpush1.bf16.msra.mxu1 %v14916_v57  ;;  %v14248_v57 = vcombine.low %v1261_v42, %v1269_v43 }
 0x354   :  { %6657 = vmatpush1.bf16.msra.mxu0 %v14918_v63  ;;  %6529 = vmatprep.subr.bf16.mxu1 %v14933_v2  ;;  %v14250_v63 = vcombine.low %v1262_v45, %v1270_v61  ;;  %v14265_v2 = vcombine.high %v1277_v49, %v1285_v51  ;;  %v14296_v61 = vcombine.low %v1309_v0, %v1317_v13 }
 0x355   :  { %6658 = vmatprep.subr.bf16.mxu0 %v14935_v3  ;;  %v14267_v3 = vcombine.high %v1278_v52, %v1286_v54 }
 0x357   :  { %6530 = vmatpush1.bf16.msra.mxu1 %v14932_v8  ;;  %v14264_v8 = vcombine.low %v1277_v49, %v1285_v51 }
 0x358   :  { %6659 = vmatpush1.bf16.msra.mxu0 %v14934_v9  ;;  %6531 = vmatprep.subr.bf16.mxu1 %v14949_v10  ;;  %v20201_v9 = vsub.s32 6, %v18471_v26  ;;  %v14266_v10 = vcombine.low %v1278_v52, %v1286_v54 }
 0x359   :  { %6660 = vmatprep.subr.bf16.mxu0 %v14951_v11  ;;  %v2009_v11 = vsub.s32 7, %v18471_v26  ;;  %v16789_v26 = vld [vmem:[%s23583_s5 + $0xbd0] ss:$28 sps:$4 sm:$0xff]  }
 0x35b   :  { %6532 = vmatpush1.bf16.msra.mxu1 %v14948_v16  ;;  %v17773_v16 = vld [vmem:[%s23582_s4] sm:$0xff] }
 0x35c   :  { %6661 = vmatpush1.bf16.msra.mxu0 %v14950_v17  ;;  %6673 = vmatprep.subr.bf16.mxu1 %v14201_v20  ;;  %v1998_v17 = vrot.slane %v17773_v16, %v18930_v58  ;;  %v1310_v20 = vld [vmem:[%s23580_s3 + $0x338] sm:$0xff]  ;;  %v2006_v44 = vrot.slane %v17773_v16, %v20201_v9  ;;  %v2002_v1 = vrot.slane %v17773_v16, %v18933_v62 }
 0x35d   :  { %6802 = vmatprep.subr.bf16.mxu0 %v14203_v22  ;;  %v1318_v22 = vld [vmem:[%s23580_s3 + $0x378] sm:$0xff]  ;;  %v2010_v24 = vrot.slane %v17773_v16, %v2009_v11 }
 0x35e   :  { %6534 = vmatmul.mubr.bf16.vlgmr.msra.gmra.mrb[12].mxu1 %v18942_v59 }
 0x35f   :  { %6663 = vmatmul.mubr.bf16.vlgmr.msra.gmra.mrb[20].mxu0 %v18942_v59  ;;  %6674 = vmatpush1.bf16.msra.mxu1 %v14200_v23  ;;  %v14280_v23 = vcombine.low %v1293_v4, %v1301_v5  ;;  %v1349_v4 = vld [vmem:[%s23580_s3 + $0x470] sm:$0xff] }
 0x360   :  { %6705 = vmatprep.mubr.bf16.mxu1 %v18520_v56  ;;  %6803 = vmatpush1.bf16.msra.mxu0 %v14202_v14  ;;  %v14297_v14 = vcombine.high %v1309_v0, %v1317_v13 }
 0x361   :  { %6834 = vmatprep.mubr.bf16.mxu0 %v18520_v56  ;;  %6675 = vmatprep.subr.bf16.mxu1 %v14217_v27  ;;  %v14232_v56 = vcombine.low %v1245_v33, %v1253_v18  ;;  %v14299_v33 = vcombine.high %v1310_v20, %v1318_v22  ;;  %v1325_v18 = vld [vmem:[%s23580_s3 + $0x3b0] sm:$0xff] }
 0x362   :  { %6804 = vmatprep.subr.bf16.mxu0 %v14219_v36  ;;  %v1333_v36 = vld [vmem:[%s23580_s3 + $0x3f0] sm:$0xff] }
 0x363   :  { %6676 = vmatpush1.bf16.msra.mxu1 %v14216_v38  ;;  %v14313_v51 = vcombine.high %v1325_v18, %v1333_v36 }
 0x364   :  { %6805 = vmatpush1.bf16.msra.mxu0 %v14218_v39  ;;  %6677 = vmatprep.subr.bf16.mxu1 %v14233_v40  ;;  %v1326_v39 = vld [vmem:[%s23580_s3 + $0x3b8] sm:$0xff] }
 0x365   :  { %6806 = vmatprep.subr.bf16.mxu0 %v14235_v41  ;;  %v1334_v40 = vld [vmem:[%s23580_s3 + $0x3f8] sm:$0xff] }
 0x367   :  { %6678 = vmatpush1.bf16.msra.mxu1 %v14232_v56  ;;  %v14298_v56 = vcombine.low %v1310_v20, %v1318_v22 }
 0x368   :  { %6807 = vmatpush1.bf16.msra.mxu0 %v14234_v46  ;;  %6679 = vmatprep.subr.bf16.mxu1 %v14249_v47 }
 0x369   :  { %6808 = vmatprep.subr.bf16.mxu0 %v14251_v48 }
 0x36b   :  { %6680 = vmatpush1.bf16.msra.mxu1 %v14248_v57 }
 0x36c   :  { %6809 = vmatpush1.bf16.msra.mxu0 %v14250_v63  ;;  %6681 = vmatprep.subr.bf16.mxu1 %v14265_v2  ;;  %v14312_v63 = vcombine.low %v1325_v18, %v1333_v36  ;;  %v14315_v2 = vcombine.high %v1326_v39, %v1334_v40  ;;  %v1366_v18 = vld [vmem:[%s23580_s3 + $0x4f8] sm:$0xff] }
 0x36d   :  { %6810 = vmatprep.subr.bf16.mxu0 %v14267_v3  ;;  %v1341_v3 = vld [vmem:[%s23580_s3 + $0x430] sm:$0xff] }
 0x36e   :  { %v14328_v36 = vcombine.low %v1341_v3, %v1349_v4 }
 0x36f   :  { %6682 = vmatpush1.bf16.msra.mxu1 %v14264_v8  ;;  %v14314_v8 = vcombine.low %v1326_v39, %v1334_v40  ;;  %v1373_v39 = vld [vmem:[%s23580_s3 + $0x530] sm:$0xff] }
 0x370   :  { %6811 = vmatpush1.bf16.msra.mxu0 %v14266_v10  ;;  %6683 = vmatprep.subr.bf16.mxu1 %v14281_v60  ;;  %v1342_v10 = vld [vmem:[%s23580_s3 + $0x438] sm:$0xff]  ;;  %v1381_v40 = vld [vmem:[%s23580_s3 + $0x570] sm:$0xff] }
 0x371   :  { %v6277_v27 = vpop.f32.mrb[8].mxu1  ;;  %6812 = vmatprep.subr.bf16.mxu0 %v14283_v31  ;;  %v1350_v60 = vld [vmem:[%s23580_s3 + $0x478] sm:$0xff] }
 0x372   :  { %v16052_v37 = vadd.f32 %v6277_v27, %v1998_v17  ;;  %v6406_v21 = vpop.f32.mrb[16].mxu0  ;;  %v6279_v38 = vpop.f32.mrb[9].mxu1 }
 0x373   :  { %v16056_v41 = vadd.f32 %v6406_v21, %v2006_v44  ;;  %v16053_v42 = vadd.f32 %v6279_v38, %v2002_v1  ;;  %v6408_v43 = vpop.f32.mrb[17].mxu0  ;;  %v6281_v45 = vpop.f32.mrb[10].mxu1  ;;  %6684 = vmatpush1.bf16.msra.mxu1 %v14280_v23 }
 0x374   :  { %v16057_v46 = vadd.f32 %v6408_v43, %v2010_v24  ;;  %v16054_v47 = vadd.f32 %v6281_v45, %v1998_v17  ;;  %v6410_v48 = vpop.f32.mrb[18].mxu0  ;;  %6813 = vmatpush1.bf16.msra.mxu0 %v14282_v25  ;;  %v6283_v49 = vpop.f32.mrb[11].mxu1  ;;  %6685 = vmatprep.subr.bf16.mxu1 %v14297_v14  ;;  %v6935_v5 = vmax.f32 %v16052_v37, 0.0  ;;  %v1357_v25 = vld [vmem:[%s23580_s3 + $0x4b0] sm:$0xff]  ;;  %v14330_v37 = vcombine.low %v1342_v10, %v1350_v60 }
 0x375   :  { %v16058_v52 = vadd.f32 %v6410_v48, %v2006_v44  ;;  %v16055_v54 = vadd.f32 %v6283_v49, %v2002_v1  ;;  %v6412_v57 = vpop.f32.mrb[19].mxu0  ;;  %6814 = vmatprep.subr.bf16.mxu0 %v14299_v33  ;;  %v6937_v31 = vmax.f32 %v16056_v41, 0.0  ;;  %v6936_v0 = vmax.f32 %v16053_v42, 0.0  ;;  %v1365_v14 = vld [vmem:[%s23580_s3 + $0x4f0] sm:$0xff]  ;;  %v1358_v33 = vld [vmem:[%s23580_s3 + $0x4b8] sm:$0xff] }
 0x376   :  { %v6951_v6 = vmax.f32 %v16054_v47, 0.0  ;;  %v16059_v7 = vadd.f32 %v6412_v57, %v2010_v24  ;;  %v6938_v17 = vmax.f32 %v16057_v46, 0.0  ;;  %v14329_v44 = vcombine.high %v1341_v3, %v1349_v4  ;;  %v1374_v41 = vld [vmem:[%s23580_s3 + $0x538] sm:$0xff]  ;;  %v1389_v46 = vld [vmem:[%s23580_s3 + $0x5b0] sm:$0xff] }
 0x377   :  { %v6953_v13 = vmax.f32 %v16058_v52, 0.0  ;;  %v6952_v16 = vmax.f32 %v16055_v54, 0.0  ;;  %6686 = vmatpush1.bf16.msra.mxu1 %v14296_v61  ;;  %v14331_v24 = vcombine.high %v1342_v10, %v1350_v60  ;;  %v14345_v21 = vcombine.high %v1357_v25, %v1365_v14  ;;  %v1382_v42 = vld [vmem:[%s23580_s3 + $0x578] sm:$0xff]  ;;  %v1397_v47 = vld [vmem:[%s23580_s3 + $0x5f0] sm:$0xff] }
 0x378   :  { %v20248_v20 = vpack.c.bf16 %v6951_v6, %v6935_v5  ;;  %v6954_v22 = vmax.f32 %v16059_v7, 0.0  ;;  %6815 = vmatpush1.bf16.msra.mxu0 %v14298_v56  ;;  %6687 = vmatprep.subr.bf16.mxu1 %v14313_v51  ;;  %v14347_v38 = vcombine.high %v1358_v33, %v1366_v18  ;;  %v14344_v43 = vcombine.low %v1357_v25, %v1365_v14  ;;  %v1390_v48 = vld [vmem:[%s23580_s3 + $0x5b8] sm:$0xff]  ;;  %v1421_v10 = vld [vmem:[%s23580_s3 + $0x6b0] sm:$0xff] }
 0x379   :  { %v20250_v1 = vpack.c.bf16 %v6953_v13, %v6937_v31  ;;  %v20252_v23 = vpack.c.bf16 %v6952_v16, %v6936_v0  ;;  %6816 = vmatprep.subr.bf16.mxu0 %v14315_v2  ;;  %v14346_v45 = vcombine.low %v1358_v33, %v1366_v18  ;;  %v14361_v61 = vcombine.high %v1373_v39, %v1381_v40  ;;  %v1398_v49 = vld [vmem:[%s23580_s3 + $0x5f8] sm:$0xff]  ;;  %v1413_v2 = vld [vmem:[%s23580_s3 + $0x670] sm:$0xff] }
 0x37a   :  { %v20260_v27 = vpack.c.bf16 %v6954_v22, %v6938_v17  ;;  %v14363_v56 = vcombine.high %v1374_v41, %v1382_v42  ;;  %v14360_v51 = vcombine.low %v1373_v39, %v1381_v40  ;;  %v14362_v52 = vcombine.low %v1374_v41, %v1382_v42  ;;  %v1406_v3 = vld [vmem:[%s23580_s3 + $0x638] sm:$0xff]  ;;  %v1429_v60 = vld [vmem:[%s23580_s3 + $0x6f0] sm:$0xff] }
 0x37b   :  { %6688 = vmatpush1.bf16.msra.mxu1 %v14312_v63  ;;  %v14377_v54 = vcombine.high %v1389_v46, %v1397_v47  ;;  %v14379_v57 = vcombine.high %v1390_v48, %v1398_v49  ;;  %v1405_v63 = vld [vmem:[%s23580_s3 + $0x630] sm:$0xff]  ;;  %v1414_v4 = vld [vmem:[%s23580_s3 + $0x678] sm:$0xff]  ;;  %v14376_v5 = vcombine.low %v1389_v46, %v1397_v47  ;;  %v14378_v6 = vcombine.low %v1390_v48, %v1398_v49 }
 0x37c   :  { %6817 = vmatpush1.bf16.msra.mxu0 %v14314_v8  ;;  %6689 = vmatprep.subr.bf16.mxu1 %v14329_v44  ;;  %v14393_v7 = vcombine.high %v1405_v63, %v1413_v2  ;;  %v14395_v8 = vcombine.high %v1406_v3, %v1414_v4  ;;  %v1422_v31 = vld [vmem:[%s23580_s3 + $0x6b8] sm:$0xff]  ;;  %v14392_v13 = vcombine.low %v1405_v63, %v1413_v2  ;;  %v1437_v44 = vld [vmem:[%s23580_s3 + $0x730] sm:$0xff] }
 0x37d   :  { %6818 = vmatprep.subr.bf16.mxu0 %v14331_v24  ;;  %v1430_v0 = vld [vmem:[%s23580_s3 + $0x6f8] sm:$0xff]  ;;  %v14394_v16 = vcombine.low %v1406_v3, %v1414_v4  ;;  %v14409_v17 = vcombine.high %v1421_v10, %v1429_v60  ;;  %v1445_v24 = vld [vmem:[%s23580_s3 + $0x770] sm:$0xff]  ;;  %v14408_v33 = vcombine.low %v1421_v10, %v1429_v60 }
 0x37e   :  { %v14411_v22 = vcombine.high %v1422_v31, %v1430_v0  ;;  %v1438_v25 = vld [vmem:[%s23580_s3 + $0x738] sm:$0xff]  ;;  %v14410_v18 = vcombine.low %v1422_v31, %v1430_v0  ;;  %v14424_v41 = vcombine.low %v1437_v44, %v1445_v24 }
 0x37f   :  { %6690 = vmatpush1.bf16.msra.mxu1 %v14328_v36  ;;  %v1446_v14 = vld [vmem:[%s23580_s3 + $0x778] sm:$0xff]  ;;  %v14425_v36 = vcombine.high %v1437_v44, %v1445_v24 }
 0x380   :  { %6819 = vmatpush1.bf16.msra.mxu0 %v14330_v37  ;;  %6691 = vmatprep.subr.bf16.mxu1 %v14345_v21  ;;  %v14427_v37 = vcombine.high %v1438_v25, %v1446_v14  ;;  %v1453_v21 = vld [vmem:[%s23580_s3 + $0x7b0] sm:$0xff]  ;;  %v1454_v39 = vld [vmem:[%s23580_s3 + $0x7b8] sm:$0xff]  ;;  %v14426_v42 = vcombine.low %v1438_v25, %v1446_v14 }
 0x381   :  { %6820 = vmatprep.subr.bf16.mxu0 %v14347_v38  ;;  %v1461_v38 = vld [vmem:[%s23580_s3 + $0x7f0] sm:$0xff]  ;;  %v1462_v40 = vld [vmem:[%s23580_s3 + $0x7f8] sm:$0xff] }
 0x382   :  { %v1470_v46 = vld [vmem:[%s23580_s3 + $0x838] sm:$0xff]  ;;  %v14440_v48 = vcombine.low %v1453_v21, %v1461_v38  ;;  %v14442_v49 = vcombine.low %v1454_v39, %v1462_v40  ;;  %v1533_v14 = vld [vmem:[%s23580_s3 + $0xa30] sm:$0xff] }
 0x383   :  { %6692 = vmatpush1.bf16.msra.mxu1 %v14344_v43  ;;  %v14441_v43 = vcombine.high %v1453_v21, %v1461_v38  ;;  %v1478_v47 = vld [vmem:[%s23580_s3 + $0x878] sm:$0xff] }
 0x384   :  { %6821 = vmatpush1.bf16.msra.mxu0 %v14346_v45  ;;  %6693 = vmatprep.subr.bf16.mxu1 %v14361_v61  ;;  %v14443_v45 = vcombine.high %v1454_v39, %v1462_v40  ;;  %v1469_v61 = vld [vmem:[%s23580_s3 + $0x830] sm:$0xff]  ;;  %v1486_v2 = vld [vmem:[%s23580_s3 + $0x8b8] sm:$0xff]  ;;  %v14458_v4 = vcombine.low %v1470_v46, %v1478_v47 }
 0x385   :  { %6822 = vmatprep.subr.bf16.mxu0 %v14363_v56  ;;  %v1477_v56 = vld [vmem:[%s23580_s3 + $0x870] sm:$0xff]  ;;  %v1494_v3 = vld [vmem:[%s23580_s3 + $0x8f8] sm:$0xff] }
 0x386   :  { %v14456_v63 = vcombine.low %v1469_v61, %v1477_v56  ;;  %v14475_v10 = vcombine.high %v1486_v2, %v1494_v3  ;;  %v1510_v60 = vld [vmem:[%s23580_s3 + $0x978] sm:$0xff]  ;;  %v14474_v0 = vcombine.low %v1486_v2, %v1494_v3  ;;  %v1549_v40 = vld [vmem:[%s23580_s3 + $0xab0] sm:$0xff] }
 0x387   :  { %6694 = vmatpush1.bf16.msra.mxu1 %v14360_v51  ;;  %v14457_v51 = vcombine.high %v1469_v61, %v1477_v56  ;;  %v1526_v44 = vld [vmem:[%s23580_s3 + $0x9f8] sm:$0xff]  ;;  %v1589_v3 = vld [vmem:[%s23580_s3 + $0xbf0] sm:$0xff] }
 0x388   :  { %6823 = vmatpush1.bf16.msra.mxu0 %v14362_v52  ;;  %6695 = vmatprep.subr.bf16.mxu1 %v14377_v54  ;;  %v14459_v52 = vcombine.high %v1470_v46, %v1478_v47  ;;  %v1485_v54 = vld [vmem:[%s23580_s3 + $0x8b0] sm:$0xff] }
 0x389   :  { %6824 = vmatprep.subr.bf16.mxu0 %v14379_v57  ;;  %v1493_v57 = vld [vmem:[%s23580_s3 + $0x8f0] sm:$0xff] }
 0x38a   :  { %v14472_v31 = vcombine.low %v1485_v54, %v1493_v57  ;;  %v1565_v47 = vld [vmem:[%s23580_s3 + $0xb30] sm:$0xff] }
 0x38b   :  { %6696 = vmatpush1.bf16.msra.mxu1 %v14376_v5  ;;  %v14473_v5 = vcombine.high %v1485_v54, %v1493_v57  ;;  %v1581_v57 = vld [vmem:[%s23580_s3 + $0xbb0] sm:$0xff] }
 0x38c   :  { %6825 = vmatpush1.bf16.msra.mxu0 %v14378_v6  ;;  %6697 = vmatprep.subr.bf16.mxu1 %v14393_v7  ;;  %v1501_v6 = vld [vmem:[%s23580_s3 + $0x930] sm:$0xff] }
 0x38d   :  { %6826 = vmatprep.subr.bf16.mxu0 %v14395_v8  ;;  %v1509_v7 = vld [vmem:[%s23580_s3 + $0x970] sm:$0xff]  ;;  %v1502_v8 = vld [vmem:[%s23580_s3 + $0x938] sm:$0xff] }
 0x38e   :  { %v14488_v24 = vcombine.low %v1501_v6, %v1509_v7 }
 0x38f   :  { %6698 = vmatpush1.bf16.msra.mxu1 %v14392_v13  ;;  %v14489_v13 = vcombine.high %v1501_v6, %v1509_v7  ;;  %v1590_v6 = vld [vmem:[%s23580_s3 + $0xbf8] sm:$0xff] }
 0x390   :  { %6827 = vmatpush1.bf16.msra.mxu0 %v14394_v16  ;;  %6699 = vmatprep.subr.bf16.mxu1 %v14409_v17  ;;  %v1517_v16 = vld [vmem:[%s23580_s3 + $0x9b0] sm:$0xff]  ;;  %v14491_v17 = vcombine.high %v1502_v8, %v1510_v60 }
 0x391   :  { %6828 = vmatprep.subr.bf16.mxu0 %v14411_v22  ;;  %v1525_v22 = vld [vmem:[%s23580_s3 + $0x9f0] sm:$0xff] }
 0x392   :  { %v14505_v25 = vcombine.high %v1517_v16, %v1525_v22  ;;  %v14504_v21 = vcombine.low %v1517_v16, %v1525_v22  ;;  %v1606_v16 = vld [vmem:[%s23580_s3 + $0xc78] sm:$0xff]  ;;  %v1613_v22 = vld [vmem:[%s23580_s3 + $0xcb0] sm:$0xff] }
 0x393   :  { %6700 = vmatpush1.bf16.msra.mxu1 %v14408_v33  ;;  %v1541_v33 = vld [vmem:[%s23580_s3 + $0xa70] sm:$0xff] }
 0x394   :  { %6829 = vmatpush1.bf16.msra.mxu0 %v14410_v18  ;;  %6701 = vmatprep.subr.bf16.mxu1 %v14425_v36  ;;  %v1534_v36 = vld [vmem:[%s23580_s3 + $0xa38] sm:$0xff]  ;;  %v14521_v39 = vcombine.high %v1533_v14, %v1541_v33  ;;  %v14520_v61 = vcombine.low %v1533_v14, %v1541_v33 }
 0x395   :  { %6830 = vmatprep.subr.bf16.mxu0 %v14427_v37  ;;  %v1542_v37 = vld [vmem:[%s23580_s3 + $0xa78] sm:$0xff] }
 0x396   :  { %v14522_v56 = vcombine.low %v1534_v36, %v1542_v37  ;;  %v1622_v14 = vld [vmem:[%s23580_s3 + $0xcf8] sm:$0xff] }
 0x397   :  { %6702 = vmatpush1.bf16.msra.mxu1 %v14424_v41  ;;  %v1557_v41 = vld [vmem:[%s23580_s3 + $0xaf0] sm:$0xff] }
 0x398   :  { %6831 = vmatpush1.bf16.msra.mxu0 %v14426_v42  ;;  %6703 = vmatprep.subr.bf16.mxu1 %v14441_v43  ;;  %v1550_v42 = vld [vmem:[%s23580_s3 + $0xab8] sm:$0xff]  ;;  %v14523_v43 = vcombine.high %v1534_v36, %v1542_v37  ;;  %v14537_v46 = vcombine.high %v1549_v40, %v1557_v41  ;;  %v14536_v54 = vcombine.low %v1549_v40, %v1557_v41  ;;  %v1629_v37 = vld [vmem:[%s23580_s3 + $0xd30] sm:$0xff] }
 0x399   :  { %6832 = vmatprep.subr.bf16.mxu0 %v14443_v45  ;;  %v1558_v45 = vld [vmem:[%s23580_s3 + $0xaf8] sm:$0xff] }
 0x39a   :  { %v1638_v40 = vld [vmem:[%s23580_s3 + $0xd78] sm:$0xff] }
 0x39b   :  { %6704 = vmatpush1.bf16.msra.mxu1 %v14440_v48  ;;  %v1573_v48 = vld [vmem:[%s23580_s3 + $0xb70] sm:$0xff] }
 0x39c   :  { %6833 = vmatpush1.bf16.msra.mxu0 %v14442_v49  ;;  %6716 = vmatprep.subr.bf16.mxu1 %v14457_v51  ;;  %v1566_v49 = vld [vmem:[%s23580_s3 + $0xb38] sm:$0xff]  ;;  %v14539_v51 = vcombine.high %v1550_v42, %v1558_v45  ;;  %v14553_v2 = vcombine.high %v1565_v47, %v1573_v48  ;;  %v14552_v7 = vcombine.low %v1565_v47, %v1573_v48 }
 0x39d   :  { %6845 = vmatprep.subr.bf16.mxu0 %v14459_v52  ;;  %v1574_v52 = vld [vmem:[%s23580_s3 + $0xb78] sm:$0xff] }
 0x39e   :  { %6706 = vmatmul.mubr.bf16.vlgmr.msra.gmra.mrb[16].mxu1 %v18518_v55  ;;  %v1654_v47 = vld [vmem:[%s23580_s3 + $0xdf8] sm:$0xff] }
 0x39f   :  { %6835 = vmatmul.mubr.bf16.vlgmr.msra.gmra.mrb[24].mxu0 %v18518_v55  ;;  %6717 = vmatpush1.bf16.msra.mxu1 %v14456_v63  ;;  %v1518_v55 = vld [vmem:[%s23580_s3 + $0x9b8] sm:$0xff]  ;;  %v14538_v63 = vcombine.low %v1550_v42, %v1558_v45  ;;  %v1645_v45 = vld [vmem:[%s23580_s3 + $0xdb0] sm:$0xff] }
 0x3a0   :  { %6748 = vmatprep.mubr.bf16.mxu1 %v18737_v35  ;;  %6846 = vmatpush1.bf16.msra.mxu0 %v14458_v4  ;;  %v14507_v18 = vcombine.high %v1518_v55, %v1526_v44  ;;  %v14506_v38 = vcombine.low %v1518_v55, %v1526_v44  ;;  %v14555_v4 = vcombine.high %v1566_v49, %v1574_v52  ;;  %v1621_v55 = vld [vmem:[%s23580_s3 + $0xcf0] sm:$0xff] }
 0x3a1   :  { %6877 = vmatprep.mubr.bf16.mxu0 %v18737_v35  ;;  %6718 = vmatprep.subr.bf16.mxu1 %v14473_v5  ;;  %v14490_v35 = vcombine.low %v1502_v8, %v1510_v60  ;;  %v1582_v5 = vld [vmem:[%s23580_s3 + $0xbb8] sm:$0xff]  ;;  %v1597_v8 = vld [vmem:[%s23580_s3 + $0xc30] sm:$0xff]  ;;  %v14554_v60 = vcombine.low %v1566_v49, %v1574_v52  ;;  %v14601_v36 = vcombine.high %v1613_v22, %v1621_v55 }
 0x3a2   :  { %6847 = vmatprep.subr.bf16.mxu0 %v14475_v10  ;;  %v1605_v10 = vld [vmem:[%s23580_s3 + $0xc70] sm:$0xff]  ;;  %v14570_v44 = vcombine.low %v1582_v5, %v1590_v6  ;;  %v14600_v41 = vcombine.low %v1613_v22, %v1621_v55  ;;  %v1694_v22 = vld [vmem:[%s23580_s3 + $0xf38] sm:$0xff] }
 0x3a3   :  { %6719 = vmatpush1.bf16.msra.mxu1 %v14472_v31  ;;  %v14569_v31 = vcombine.high %v1581_v57, %v1589_v3  ;;  %v14584_v33 = vcombine.low %v1597_v8, %v1605_v10  ;;  %v1661_v52 = vld [vmem:[%s23580_s3 + $0xe30] sm:$0xff] }
 0x3a4   :  { %6848 = vmatpush1.bf16.msra.mxu0 %v14474_v0  ;;  %6720 = vmatprep.subr.bf16.mxu1 %v14489_v13  ;;  %v14571_v0 = vcombine.high %v1582_v5, %v1590_v6  ;;  %v1598_v13 = vld [vmem:[%s23580_s3 + $0xc38] sm:$0xff]  ;;  %v1677_v6 = vld [vmem:[%s23580_s3 + $0xeb0] sm:$0xff] }
 0x3a5   :  { %6849 = vmatprep.subr.bf16.mxu0 %v14491_v17  ;;  %v14568_v17 = vcombine.low %v1581_v57, %v1589_v3  ;;  %v1662_v57 = vld [vmem:[%s23580_s3 + $0xe38] sm:$0xff] }
 0x3a7   :  { %6721 = vmatpush1.bf16.msra.mxu1 %v14488_v24  ;;  %v14585_v24 = vcombine.high %v1597_v8, %v1605_v10  ;;  %v1678_v8 = vld [vmem:[%s23580_s3 + $0xeb8] sm:$0xff] }
 0x3a8   :  { %6850 = vmatpush1.bf16.msra.mxu0 %v14490_v35  ;;  %6722 = vmatprep.subr.bf16.mxu1 %v14505_v25  ;;  %v14587_v35 = vcombine.high %v1598_v13, %v1606_v16  ;;  %v1614_v25 = vld [vmem:[%s23580_s3 + $0xcb8] sm:$0xff] }
 0x3a9   :  { %6851 = vmatprep.subr.bf16.mxu0 %v14507_v18  ;;  %v14586_v18 = vcombine.low %v1598_v13, %v1606_v16  ;;  %v14602_v42 = vcombine.low %v1614_v25, %v1622_v14  ;;  %v1693_v16 = vld [vmem:[%s23580_s3 + $0xf30] sm:$0xff] }
 0x3ab   :  { %6723 = vmatpush1.bf16.msra.mxu1 %v14504_v21  ;;  %v1637_v21 = vld [vmem:[%s23580_s3 + $0xd70] sm:$0xff] }
 0x3ac   :  { %6852 = vmatpush1.bf16.msra.mxu0 %v14506_v38  ;;  %6724 = vmatprep.subr.bf16.mxu1 %v14521_v39  ;;  %v1630_v38 = vld [vmem:[%s23580_s3 + $0xd38] sm:$0xff]  ;;  %v14603_v39 = vcombine.high %v1614_v25, %v1622_v14  ;;  %v14616_v48 = vcombine.low %v1629_v37, %v1637_v21  ;;  %v1709_v14 = vld [vmem:[%s23580_s3 + $0xfb0] sm:$0xff] }
 0x3ad   :  { %6853 = vmatprep.subr.bf16.mxu0 %v14523_v43  ;;  %v14617_v43 = vcombine.high %v1629_v37, %v1637_v21  ;;  %v14618_v49 = vcombine.low %v1630_v38, %v1638_v40  ;;  %v1718_v37 = vld [vmem:[%s23580_s3 + $0xff8] sm:$0xff] }
 0x3af   :  { %6725 = vmatpush1.bf16.msra.mxu1 %v14520_v61  ;;  %v1653_v61 = vld [vmem:[%s23580_s3 + $0xdf0] sm:$0xff] }
 0x3b0   :  { %6854 = vmatpush1.bf16.msra.mxu0 %v14522_v56  ;;  %6726 = vmatprep.subr.bf16.mxu1 %v14537_v46  ;;  %v1646_v56 = vld [vmem:[%s23580_s3 + $0xdb8] sm:$0xff]  ;;  %v14619_v46 = vcombine.high %v1630_v38, %v1638_v40  ;;  %v14632_v3 = vcombine.low %v1645_v45, %v1653_v61  ;;  %v1725_v40 = vld [vmem:[%s23580_s3 + $0x1030] sm:$0xff] }
 0x3b1   :  { %6855 = vmatprep.subr.bf16.mxu0 %v14539_v51  ;;  %v14633_v51 = vcombine.high %v1645_v45, %v1653_v61  ;;  %v1734_v45 = vld [vmem:[%s23580_s3 + $0x1078] sm:$0xff] }
 0x3b3   :  { %6727 = vmatpush1.bf16.msra.mxu1 %v14536_v54  ;;  %v1669_v54 = vld [vmem:[%s23580_s3 + $0xe70] sm:$0xff] }
 0x3b4   :  { %6856 = vmatpush1.bf16.msra.mxu0 %v14538_v63  ;;  %6728 = vmatprep.subr.bf16.mxu1 %v14553_v2  ;;  %v14635_v63 = vcombine.high %v1646_v56, %v1654_v47  ;;  %v1670_v2 = vld [vmem:[%s23580_s3 + $0xe78] sm:$0xff]  ;;  %v14649_v5 = vcombine.high %v1661_v52, %v1669_v54 }
 0x3b5   :  { %6857 = vmatprep.subr.bf16.mxu0 %v14555_v4  ;;  %v14634_v4 = vcombine.low %v1646_v56, %v1654_v47  ;;  %v14651_v10 = vcombine.high %v1662_v57, %v1670_v2  ;;  %v1741_v47 = vld [vmem:[%s23580_s3 + $0x10b0] sm:$0xff] }
 0x3b7   :  { %6729 = vmatpush1.bf16.msra.mxu1 %v14552_v7  ;;  %v1685_v7 = vld [vmem:[%s23580_s3 + $0xef0] sm:$0xff] }
 0x3b8   :  { %6858 = vmatpush1.bf16.msra.mxu0 %v14554_v60  ;;  %6730 = vmatprep.subr.bf16.mxu1 %v14569_v31  ;;  %v1686_v60 = vld [vmem:[%s23580_s3 + $0xef8] sm:$0xff]  ;;  %v14648_v31 = vcombine.low %v1661_v52, %v1669_v54  ;;  %v14665_v13 = vcombine.high %v1677_v6, %v1685_v7 }
 0x3b9   :  { %6859 = vmatprep.subr.bf16.mxu0 %v14571_v0  ;;  %v14650_v0 = vcombine.low %v1662_v57, %v1670_v2  ;;  %v14667_v55 = vcombine.high %v1678_v8, %v1686_v60  ;;  %v1750_v52 = vld [vmem:[%s23580_s3 + $0x10f8] sm:$0xff]  ;;  %v1757_v57 = vld [vmem:[%s23580_s3 + $0x1130] sm:$0xff] }
 0x3bb   :  { %6731 = vmatpush1.bf16.msra.mxu1 %v14568_v17  ;;  %v1701_v17 = vld [vmem:[%s23580_s3 + $0xf70] sm:$0xff] }
 0x3bc   :  { %6860 = vmatpush1.bf16.msra.mxu0 %v14570_v44  ;;  %6732 = vmatprep.subr.bf16.mxu1 %v14585_v24  ;;  %v1702_v44 = vld [vmem:[%s23580_s3 + $0xf78] sm:$0xff]  ;;  %v14664_v24 = vcombine.low %v1677_v6, %v1685_v7  ;;  %v14681_v25 = vcombine.high %v1693_v16, %v1701_v17  ;;  %v14680_v21 = vcombine.low %v1693_v16, %v1701_v17 }
 0x3bd   :  { %6861 = vmatprep.subr.bf16.mxu0 %v14587_v35  ;;  %v14666_v35 = vcombine.low %v1678_v8, %v1686_v60  ;;  %v14682_v38 = vcombine.low %v1694_v22, %v1702_v44  ;;  %v1766_v6 = vld [vmem:[%s23580_s3 + $0x1178] sm:$0xff] }
 0x3bf   :  { %6733 = vmatpush1.bf16.msra.mxu1 %v14584_v33  ;;  %v1717_v33 = vld [vmem:[%s23580_s3 + $0xff0] sm:$0xff] }
 0x3c0   :  { %6862 = vmatpush1.bf16.msra.mxu0 %v14586_v18  ;;  %6734 = vmatprep.subr.bf16.mxu1 %v14601_v36  ;;  %v1710_v18 = vld [vmem:[%s23580_s3 + $0xfb8] sm:$0xff]  ;;  %v14683_v36 = vcombine.high %v1694_v22, %v1702_v44  ;;  %v14696_v61 = vcombine.low %v1709_v14, %v1717_v33  ;;  %v1789_v22 = vld [vmem:[%s23580_s3 + $0x1230] sm:$0xff] }
 0x3c1   :  { %6863 = vmatprep.subr.bf16.mxu0 %v14603_v39  ;;  %v14697_v39 = vcombine.high %v1709_v14, %v1717_v33  ;;  %v14698_v56 = vcombine.low %v1710_v18, %v1718_v37  ;;  %v1790_v44 = vld [vmem:[%s23580_s3 + $0x1238] sm:$0xff] }
 0x3c3   :  { %6735 = vmatpush1.bf16.msra.mxu1 %v14600_v41  ;;  %v1733_v41 = vld [vmem:[%s23580_s3 + $0x1070] sm:$0xff] }
 0x3c4   :  { %6864 = vmatpush1.bf16.msra.mxu0 %v14602_v42  ;;  %6736 = vmatprep.subr.bf16.mxu1 %v14617_v43  ;;  %v1726_v42 = vld [vmem:[%s23580_s3 + $0x1038] sm:$0xff]  ;;  %v14699_v43 = vcombine.high %v1710_v18, %v1718_v37  ;;  %v14712_v54 = vcombine.low %v1725_v40, %v1733_v41  ;;  %v1805_v18 = vld [vmem:[%s23580_s3 + $0x12b0] sm:$0xff] }
 0x3c5   :  { %6865 = vmatprep.subr.bf16.mxu0 %v14619_v46  ;;  %v14713_v46 = vcombine.high %v1725_v40, %v1733_v41  ;;  %v14714_v2 = vcombine.low %v1726_v42, %v1734_v45  ;;  %v1806_v37 = vld [vmem:[%s23580_s3 + $0x12b8] sm:$0xff] }
 0x3c7   :  { %6737 = vmatpush1.bf16.msra.mxu1 %v14616_v48  ;;  %v1749_v48 = vld [vmem:[%s23580_s3 + $0x10f0] sm:$0xff] }
 0x3c8   :  { %6866 = vmatpush1.bf16.msra.mxu0 %v14618_v49  ;;  %6738 = vmatprep.subr.bf16.mxu1 %v14633_v51  ;;  %v14715_v49 = vcombine.high %v1726_v42, %v1734_v45  ;;  %v1742_v51 = vld [vmem:[%s23580_s3 + $0x10b8] sm:$0xff]  ;;  %v14728_v7 = vcombine.low %v1741_v47, %v1749_v48  ;;  %v1821_v42 = vld [vmem:[%s23580_s3 + $0x1330] sm:$0xff] }
 0x3c9   :  { %6867 = vmatprep.subr.bf16.mxu0 %v14635_v63  ;;  %v1765_v63 = vld [vmem:[%s23580_s3 + $0x1170] sm:$0xff]  ;;  %v14730_v8 = vcombine.low %v1742_v51, %v1750_v52  ;;  %v1822_v45 = vld [vmem:[%s23580_s3 + $0x1338] sm:$0xff] }
 0x3cb   :  { %6739 = vmatpush1.bf16.msra.mxu1 %v14632_v3  ;;  %v14729_v3 = vcombine.high %v1741_v47, %v1749_v48 }
 0x3cc   :  { %6868 = vmatpush1.bf16.msra.mxu0 %v14634_v4  ;;  %6740 = vmatprep.subr.bf16.mxu1 %v14649_v5  ;;  %v14731_v4 = vcombine.high %v1742_v51, %v1750_v52  ;;  %v1758_v5 = vld [vmem:[%s23580_s3 + $0x1138] sm:$0xff]  ;;  %v1845_v51 = vld [vmem:[%s23580_s3 + $0x13f0] sm:$0xff] }
 0x3cd   :  { %6869 = vmatprep.subr.bf16.mxu0 %v14651_v10  ;;  %v14745_v10 = vcombine.high %v1757_v57, %v1765_v63  ;;  %v14747_v60 = vcombine.high %v1758_v5, %v1766_v6  ;;  %v14746_v16 = vcombine.low %v1758_v5, %v1766_v6  ;;  %v1838_v52 = vld [vmem:[%s23580_s3 + $0x13b8] sm:$0xff]  ;;  %v1861_v5 = vld [vmem:[%s23580_s3 + $0x1470] sm:$0xff] }
 0x3ce   :  { %v1854_v6 = vld [vmem:[%s23580_s3 + $0x1438] sm:$0xff] }
 0x3cf   :  { %6741 = vmatpush1.bf16.msra.mxu1 %v14648_v31  ;;  %v1773_v31 = vld [vmem:[%s23580_s3 + $0x11b0] sm:$0xff] }
 0x3d0   :  { %6870 = vmatpush1.bf16.msra.mxu0 %v14650_v0  ;;  %6742 = vmatprep.subr.bf16.mxu1 %v14665_v13  ;;  %v1781_v0 = vld [vmem:[%s23580_s3 + $0x11f0] sm:$0xff]  ;;  %v1782_v13 = vld [vmem:[%s23580_s3 + $0x11f8] sm:$0xff] }
 0x3d1   :  { %6871 = vmatprep.subr.bf16.mxu0 %v14667_v55  ;;  %v14761_v17 = vcombine.high %v1773_v31, %v1781_v0  ;;  %v1797_v55 = vld [vmem:[%s23580_s3 + $0x1270] sm:$0xff] }
 0x3d2   :  { %v14777_v33 = vcombine.high %v1789_v22, %v1797_v55 }
 0x3d3   :  { %6743 = vmatpush1.bf16.msra.mxu1 %v14664_v24 }
 0x3d4   :  { %6872 = vmatpush1.bf16.msra.mxu0 %v14666_v35  ;;  %6744 = vmatprep.subr.bf16.mxu1 %v14681_v25  ;;  %v1798_v35 = vld [vmem:[%s23580_s3 + $0x1278] sm:$0xff]  ;;  %v14760_v25 = vcombine.low %v1773_v31, %v1781_v0  ;;  %v1869_v0 = vld [vmem:[%s23580_s3 + $0x14b0] sm:$0xff] }
 0x3d5   :  { %6873 = vmatprep.subr.bf16.mxu0 %v14683_v36  ;;  %v1813_v36 = vld [vmem:[%s23580_s3 + $0x12f0] sm:$0xff]  ;;  %v14778_v40 = vcombine.low %v1790_v44, %v1798_v35 }
 0x3d6   :  { %v14793_v41 = vcombine.high %v1805_v18, %v1813_v36 }
 0x3d7   :  { %6745 = vmatpush1.bf16.msra.mxu1 %v14680_v21  ;;  %v14779_v21 = vcombine.high %v1790_v44, %v1798_v35  ;;  %v1885_v44 = vld [vmem:[%s23580_s3 + $0x1530] sm:$0xff]  ;;  %v1886_v35 = vld [vmem:[%s23580_s3 + $0x1538] sm:$0xff] }
 0x3d8   :  { %6874 = vmatpush1.bf16.msra.mxu0 %v14682_v38  ;;  %6746 = vmatprep.subr.bf16.mxu1 %v14697_v39  ;;  %v1814_v38 = vld [vmem:[%s23580_s3 + $0x12f8] sm:$0xff]  ;;  %v14776_v39 = vcombine.low %v1789_v22, %v1797_v55 }
 0x3d9   :  { %6875 = vmatprep.subr.bf16.mxu0 %v14699_v43  ;;  %v1829_v43 = vld [vmem:[%s23580_s3 + $0x1370] sm:$0xff]  ;;  %v14794_v47 = vcombine.low %v1806_v37, %v1814_v38 }
 0x3da   :  { %v14809_v48 = vcombine.high %v1821_v42, %v1829_v43 }
 0x3db   :  { %6747 = vmatpush1.bf16.msra.mxu1 %v14696_v61  ;;  %v14795_v61 = vcombine.high %v1806_v37, %v1814_v38  ;;  %v1901_v37 = vld [vmem:[%s23580_s3 + $0x15b0] sm:$0xff]  ;;  %v1902_v38 = vld [vmem:[%s23580_s3 + $0x15b8] sm:$0xff] }
 0x3dc   :  { %6876 = vmatpush1.bf16.msra.mxu0 %v14698_v56  ;;  %6759 = vmatprep.subr.bf16.mxu1 %v14713_v46  ;;  %v1830_v56 = vld [vmem:[%s23580_s3 + $0x1378] sm:$0xff]  ;;  %v14792_v46 = vcombine.low %v1805_v18, %v1813_v36 }
 0x3dd   :  { %6888 = vmatprep.subr.bf16.mxu0 %v14715_v49  ;;  %v1837_v49 = vld [vmem:[%s23580_s3 + $0x13b0] sm:$0xff] }
 0x3de   :  { %6749 = vmatmul.mubr.bf16.vlgmr.msra.gmra.mrb[16].mxu1 %v18735_v19 }
 0x3df   :  { %6878 = vmatmul.mubr.bf16.vlgmr.msra.gmra.mrb[24].mxu0 %v18735_v19  ;;  %6760 = vmatpush1.bf16.msra.mxu1 %v14712_v54  ;;  %v1774_v19 = vld [vmem:[%s23580_s3 + $0x11b8] sm:$0xff]  ;;  %v14811_v54 = vcombine.high %v1822_v45, %v1830_v56 }
 0x3e0   :  { %6791 = vmatprep.mubr.bf16.mxu1 %v18953_v12  ;;  %6889 = vmatpush1.bf16.msra.mxu0 %v14714_v2  ;;  %v14763_v24 = vcombine.high %v1774_v19, %v1782_v13  ;;  %v14762_v14 = vcombine.low %v1774_v19, %v1782_v13  ;;  %v14810_v2 = vcombine.low %v1822_v45, %v1830_v56  ;;  %v1877_v19 = vld [vmem:[%s23580_s3 + $0x14f0] sm:$0xff]  ;;  %v1870_v13 = vld [vmem:[%s23580_s3 + $0x14b8] sm:$0xff] }
 0x3e1   :  { %6920 = vmatprep.mubr.bf16.mxu0 %v18953_v12  ;;  %6761 = vmatprep.subr.bf16.mxu1 %v14729_v3  ;;  %v14744_v12 = vcombine.low %v1757_v57, %v1765_v63  ;;  %v1846_v57 = vld [vmem:[%s23580_s3 + $0x13f8] sm:$0xff]  ;;  %v14808_v63 = vcombine.low %v1821_v42, %v1829_v43  ;;  %v14825_v3 = vcombine.high %v1837_v49, %v1845_v51  ;;  %v1917_v45 = vld [vmem:[%s23580_s3 + $0x1630] sm:$0xff] }
 0x3e2   :  { %6890 = vmatprep.subr.bf16.mxu0 %v14731_v4  ;;  %v1853_v4 = vld [vmem:[%s23580_s3 + $0x1430] sm:$0xff]  ;;  %v14857_v55 = vcombine.high %v1869_v0, %v1877_v19  ;;  %v1918_v56 = vld [vmem:[%s23580_s3 + $0x1638] sm:$0xff] }
 0x3e3   :  { %6762 = vmatpush1.bf16.msra.mxu1 %v14728_v7  ;;  %v14827_v7 = vcombine.high %v1838_v52, %v1846_v57  ;;  %v14841_v31 = vcombine.high %v1853_v4, %v1861_v5 }
 0x3e4   :  { %6891 = vmatpush1.bf16.msra.mxu0 %v14730_v8  ;;  %6763 = vmatprep.subr.bf16.mxu1 %v14745_v10  ;;  %v1862_v8 = vld [vmem:[%s23580_s3 + $0x1478] sm:$0xff]  ;;  %v14824_v10 = vcombine.low %v1837_v49, %v1845_v51 }
 0x3e5   :  { %6892 = vmatprep.subr.bf16.mxu0 %v14747_v60  ;;  %v14826_v60 = vcombine.low %v1838_v52, %v1846_v57  ;;  %v14842_v22 = vcombine.low %v1854_v6, %v1862_v8  ;;  %v1933_v52 = vld [vmem:[%s23580_s3 + $0x16b0] sm:$0xff]  ;;  %v1934_v57 = vld [vmem:[%s23580_s3 + $0x16b8] sm:$0xff] }
 0x3e7   :  { %6764 = vmatpush1.bf16.msra.mxu1 %v14744_v12  ;;  %v14843_v12 = vcombine.high %v1854_v6, %v1862_v8  ;;  %v1949_v6 = vld [vmem:[%s23580_s3 + $0x1730] sm:$0xff]  ;;  %v1950_v8 = vld [vmem:[%s23580_s3 + $0x1738] sm:$0xff] }
 0x3e8   :  { %6893 = vmatpush1.bf16.msra.mxu0 %v14746_v16  ;;  %6765 = vmatprep.subr.bf16.mxu1 %v14761_v17  ;;  %v1878_v16 = vld [vmem:[%s23580_s3 + $0x14f8] sm:$0xff]  ;;  %v14840_v17 = vcombine.low %v1853_v4, %v1861_v5 }
 0x3e9   :  { %6894 = vmatprep.subr.bf16.mxu0 %v14763_v24  ;;  %v1893_v24 = vld [vmem:[%s23580_s3 + $0x1570] sm:$0xff]  ;;  %v14858_v18 = vcombine.low %v1870_v13, %v1878_v16 }
 0x3ea   :  { %v14873_v36 = vcombine.high %v1885_v44, %v1893_v24 }
 0x3eb   :  { %6766 = vmatpush1.bf16.msra.mxu1 %v14760_v25  ;;  %v14859_v25 = vcombine.high %v1870_v13, %v1878_v16  ;;  %v1965_v13 = vld [vmem:[%s23580_s3 + $0x17b0] sm:$0xff]  ;;  %v1966_v16 = vld [vmem:[%s23580_s3 + $0x17b8] sm:$0xff] }
 0x3ec   :  { %6895 = vmatpush1.bf16.msra.mxu0 %v14762_v14  ;;  %6767 = vmatprep.subr.bf16.mxu1 %v14777_v33  ;;  %v1894_v14 = vld [vmem:[%s23580_s3 + $0x1578] sm:$0xff]  ;;  %v14856_v33 = vcombine.low %v1869_v0, %v1877_v19 }
 0x3ed   :  { %6896 = vmatprep.subr.bf16.mxu0 %v14779_v21  ;;  %v1909_v21 = vld [vmem:[%s23580_s3 + $0x15f0] sm:$0xff]  ;;  %v14874_v42 = vcombine.low %v1886_v35, %v1894_v14 }
 0x3ee   :  { %v14889_v43 = vcombine.high %v1901_v37, %v1909_v21 }
 0x3ef   :  { %6768 = vmatpush1.bf16.msra.mxu1 %v14776_v39  ;;  %v14875_v39 = vcombine.high %v1886_v35, %v1894_v14 }
 0x3f0   :  { %6897 = vmatpush1.bf16.msra.mxu0 %v14778_v40  ;;  %6769 = vmatprep.subr.bf16.mxu1 %v14793_v41  ;;  %v1910_v40 = vld [vmem:[%s23580_s3 + $0x15f8] sm:$0xff]  ;;  %v14872_v41 = vcombine.low %v1885_v44, %v1893_v24 }
 0x3f1   :  { %6898 = vmatprep.subr.bf16.mxu0 %v14795_v61  ;;  %v1925_v61 = vld [vmem:[%s23580_s3 + $0x1670] sm:$0xff]  ;;  %v14890_v49 = vcombine.low %v1902_v38, %v1910_v40 }
 0x3f2   :  { %v14905_v51 = vcombine.high %v1917_v45, %v1925_v61 }
 0x3f3   :  { %6770 = vmatpush1.bf16.msra.mxu1 %v14792_v46  ;;  %v14891_v46 = vcombine.high %v1902_v38, %v1910_v40  ;;  %v16471_v38 = vld [vmem:[%s23583_s5 + $0x38] ss:$28 sps:$4 sm:$0xff]   ;;  %v16476_v40 = vld [vmem:[%s23583_s5 + $0x44] ss:$28 sps:$4 sm:$0xff]  }
 0x3f4   :  { %6899 = vmatpush1.bf16.msra.mxu0 %v14794_v47  ;;  %6771 = vmatprep.subr.bf16.mxu1 %v14809_v48  ;;  %v1926_v47 = vld [vmem:[%s23580_s3 + $0x1678] sm:$0xff]  ;;  %v14888_v48 = vcombine.low %v1901_v37, %v1909_v21  ;;  %v16468_v37 = vld [vmem:[%s23583_s5 + $0x8] ss:$28 sps:$4 sm:$0xff]  }
 0x3f5   :  { %6900 = vmatprep.subr.bf16.mxu0 %v14811_v54  ;;  %v1941_v54 = vld [vmem:[%s23580_s3 + $0x16f0] sm:$0xff]  ;;  %v14906_v4 = vcombine.low %v1918_v56, %v1926_v47  ;;  %v16473_v21 = vld [vmem:[%s23583_s5 + $0x3c] ss:$28 sps:$4 sm:$0xff]  }
 0x3f6   :  { %v14921_v5 = vcombine.high %v1933_v52, %v1941_v54 }
 0x3f7   :  { %6772 = vmatpush1.bf16.msra.mxu1 %v14808_v63  ;;  %v14907_v63 = vcombine.high %v1918_v56, %v1926_v47  ;;  %v16488_v56 = vld [vmem:[%s23583_s5 + $0xb4] ss:$28 sps:$4 sm:$0xff]   ;;  %v16491_v47 = vld [vmem:[%s23583_s5 + $0xe4] ss:$28 sps:$4 sm:$0xff]  }
 0x3f8   :  { %6901 = vmatpush1.bf16.msra.mxu0 %v14810_v2  ;;  %6773 = vmatprep.subr.bf16.mxu1 %v14825_v3  ;;  %v1942_v2 = vld [vmem:[%s23580_s3 + $0x16f8] sm:$0xff]  ;;  %v14904_v3 = vcombine.low %v1917_v45, %v1925_v61  ;;  %v16485_v45 = vld [vmem:[%s23583_s5 + $0xac] ss:$28 sps:$4 sm:$0xff]  }
 0x3f9   :  { %6902 = vmatprep.subr.bf16.mxu0 %v14827_v7  ;;  %v1957_v7 = vld [vmem:[%s23580_s3 + $0x1770] sm:$0xff]  ;;  %v14922_v0 = vcombine.low %v1934_v57, %v1942_v2  ;;  %v16483_v61 = vld [vmem:[%s23583_s5 + $0xa8] ss:$28 sps:$4 sm:$0xff]  }
 0x3fa   :  { %v14937_v19 = vcombine.high %v1949_v6, %v1957_v7 }
 0x3fb   :  { %6774 = vmatpush1.bf16.msra.mxu1 %v14824_v10  ;;  %v14923_v10 = vcombine.high %v1934_v57, %v1942_v2  ;;  %v16500_v57 = vld [vmem:[%s23583_s5 + $0x124] ss:$28 sps:$4 sm:$0xff]  }
 0x3fc   :  { %6903 = vmatpush1.bf16.msra.mxu0 %v14826_v60  ;;  %6775 = vmatprep.subr.bf16.mxu1 %v14841_v31  ;;  %v1958_v60 = vld [vmem:[%s23580_s3 + $0x1778] sm:$0xff]  ;;  %v14920_v31 = vcombine.low %v1933_v52, %v1941_v54  ;;  %v16492_v52 = vld [vmem:[%s23583_s5 + $0xe8] ss:$28 sps:$4 sm:$0xff]  }
 0x3fd   :  { %6904 = vmatprep.subr.bf16.mxu0 %v14843_v12  ;;  %v1973_v12 = vld [vmem:[%s23580_s3 + $0x17f0] sm:$0xff]  ;;  %v14938_v44 = vcombine.low %v1950_v8, %v1958_v60  ;;  %v16497_v54 = vld [vmem:[%s23583_s5 + $0x11c] ss:$28 sps:$4 sm:$0xff]  }
 0x3fe   :  { %v14953_v24 = vcombine.high %v1965_v13, %v1973_v12 }
 0x3ff   :  { %6776 = vmatpush1.bf16.msra.mxu1 %v14840_v17  ;;  %v14939_v17 = vcombine.high %v1950_v8, %v1958_v60  ;;  %v16506_v8 = vld [vmem:[%s23583_s5 + $0x15c] ss:$28 sps:$4 sm:$0xff]   ;;  %v16501_v60 = vld [vmem:[%s23583_s5 + $0x150] ss:$28 sps:$4 sm:$0xff]  }
 0x400   :  { %6905 = vmatpush1.bf16.msra.mxu0 %v14842_v22  ;;  %6777 = vmatprep.subr.bf16.mxu1 %v14857_v55  ;;  %v1974_v22 = vld [vmem:[%s23580_s3 + $0x17f8] sm:$0xff]  ;;  %v14936_v55 = vcombine.low %v1949_v6, %v1957_v7  ;;  %v16503_v7 = vld [vmem:[%s23583_s5 + $0x154] ss:$28 sps:$4 sm:$0xff]  }
 0x401   :  { %6906 = vmatprep.subr.bf16.mxu0 %v14859_v25  ;;  %v14955_v35 = vcombine.high %v1966_v16, %v1974_v22  ;;  %v14952_v25 = vcombine.low %v1965_v13, %v1973_v12  ;;  %v14954_v14 = vcombine.low %v1966_v16, %v1974_v22  ;;  %v16498_v6 = vld [vmem:[%s23583_s5 + $0x120] ss:$28 sps:$4 sm:$0xff]   ;;  %v16504_v13 = vld [vmem:[%s23583_s5 + $0x158] ss:$28 sps:$4 sm:$0xff]  }
 0x403   :  { %6778 = vmatpush1.bf16.msra.mxu1 %v14856_v33  ;;  %v16467_v33 = vld [vmem:[%s23583_s5 + $0x4] ss:$28 sps:$4 sm:$0xff]  }
 0x404   :  { %6907 = vmatpush1.bf16.msra.mxu0 %v14858_v18  ;;  %6779 = vmatprep.subr.bf16.mxu1 %v14873_v36  ;;  %v16465_v18 = vld [vmem:[%s23583_s5] ss:$28 sps:$4 sm:$0xff]   ;;  %v16470_v36 = vld [vmem:[%s23583_s5 + $0xc] ss:$28 sps:$4 sm:$0xff]  }
 0x405   :  { %6908 = vmatprep.subr.bf16.mxu0 %v14875_v39  ;;  %v16474_v39 = vld [vmem:[%s23583_s5 + $0x40] ss:$28 sps:$4 sm:$0xff]  }
 0x407   :  { %6780 = vmatpush1.bf16.msra.mxu1 %v14872_v41  ;;  %v16479_v41 = vld [vmem:[%s23583_s5 + $0x74] ss:$28 sps:$4 sm:$0xff]  }
 0x408   :  { %6909 = vmatpush1.bf16.msra.mxu0 %v14874_v42  ;;  %6781 = vmatprep.subr.bf16.mxu1 %v14889_v43  ;;  %v16482_v42 = vld [vmem:[%s23583_s5 + $0x7c] ss:$28 sps:$4 sm:$0xff]  }
 0x409   :  { %6910 = vmatprep.subr.bf16.mxu0 %v14891_v46  ;;  %v16480_v43 = vld [vmem:[%s23583_s5 + $0x78] ss:$28 sps:$4 sm:$0xff]   ;;  %v16486_v46 = vld [vmem:[%s23583_s5 + $0xb0] ss:$28 sps:$4 sm:$0xff]  }
 0x40b   :  { %6782 = vmatpush1.bf16.msra.mxu1 %v14888_v48  ;;  %v16494_v48 = vld [vmem:[%s23583_s5 + $0xec] ss:$28 sps:$4 sm:$0xff]  }
 0x40c   :  { %6911 = vmatpush1.bf16.msra.mxu0 %v14890_v49  ;;  %6783 = vmatprep.subr.bf16.mxu1 %v14905_v51  ;;  %v16489_v49 = vld [vmem:[%s23583_s5 + $0xe0] ss:$28 sps:$4 sm:$0xff]   ;;  %v1976_v51 = vld [vmem:[%s23582_s4 + $0x8] sm:$0xff] }
 0x40d   :  { %6912 = vmatprep.subr.bf16.mxu0 %v14907_v63  ;;  %v16495_v63 = vld [vmem:[%s23583_s5 + $0x118] ss:$28 sps:$4 sm:$0xff]   ;;  %v2014_v2 = vrot.slane %v1976_v51, %v18480_v29 }
 0x40f   :  { %6784 = vmatpush1.bf16.msra.mxu1 %v14904_v3  ;;  %v2022_v3 = vrot.slane %v1976_v51, %v18686_v50 }
 0x410   :  { %6913 = vmatpush1.bf16.msra.mxu0 %v14906_v4  ;;  %6785 = vmatprep.subr.bf16.mxu1 %v14921_v5  ;;  %v2018_v4 = vrot.slane %v1976_v51, %v18488_v32  ;;  %v2026_v5 = vrot.slane %v1976_v51, %v18689_v53  ;;  %v16518_v51 = vld [vmem:[%s23583_s5 + $0x1cc] ss:$28 sps:$4 sm:$0xff]  }
 0x411   :  { %6914 = vmatprep.subr.bf16.mxu0 %v14923_v10 }
 0x413   :  { %6786 = vmatpush1.bf16.msra.mxu1 %v14920_v31 }
 0x414   :  { %6915 = vmatpush1.bf16.msra.mxu0 %v14922_v0  ;;  %6787 = vmatprep.subr.bf16.mxu1 %v14937_v19 }
 0x415   :  { %6916 = vmatprep.subr.bf16.mxu0 %v14939_v17 }
 0x417   :  { %6788 = vmatpush1.bf16.msra.mxu1 %v14936_v55 }
 0x418   :  { %6917 = vmatpush1.bf16.msra.mxu0 %v14938_v44  ;;  %6789 = vmatprep.subr.bf16.mxu1 %v14953_v24 }
 0x419   :  { %6918 = vmatprep.subr.bf16.mxu0 %v14955_v35 }
 0x41b   :  { %6790 = vmatpush1.bf16.msra.mxu1 %v14952_v25  ;;  %v16509_v25 = vld [vmem:[%s23583_s5 + $0x18c] ss:$28 sps:$4 sm:$0xff]  }
 0x41c   :  { %6919 = vmatpush1.bf16.msra.mxu0 %v14954_v14  ;;  %12648 = vmatprep.subr.bf16.mxu1 %v16467_v33 }
 0x41d   :  { %12992 = vmatprep.subr.bf16.mxu0 %v16470_v36  ;;  %v16507_v36 = vld [vmem:[%s23583_s5 + $0x188] ss:$28 sps:$4 sm:$0xff]  }
 0x41e   :  { %6792 = vmatmul.mubr.bf16.vlgmr.msra.gmra.mrb[16].mxu1 %v18942_v59 }
 0x41f   :  { %6921 = vmatmul.mubr.bf16.vlgmr.msra.gmra.mrb[24].mxu0 %v18942_v59  ;;  %12649 = vmatpush1.bf16.msra.mxu1 %v16465_v18  ;;  %v16477_v59 = vld [vmem:[%s23583_s5 + $0x70] ss:$28 sps:$4 sm:$0xff]  }
 0x420   :  { %12680 = vmatprep.mubr.bf16.mxu1 %v19644_v15  ;;  %12993 = vmatpush1.bf16.msra.mxu0 %v16468_v37  ;;  %v16512_v37 = vld [vmem:[%s23583_s5 + $0x194] ss:$28 sps:$4 sm:$0xff]  }
 0x421   :  { %13024 = vmatprep.mubr.bf16.mxu0 %v19644_v15  ;;  %12650 = vmatprep.subr.bf16.mxu1 %v16473_v21 }
 0x422   :  { %12994 = vmatprep.subr.bf16.mxu0 %v16476_v40 }
 0x423   :  { %12651 = vmatpush1.bf16.msra.mxu1 %v16471_v38 }
 0x424   :  { %12995 = vmatpush1.bf16.msra.mxu0 %v16474_v39  ;;  %12652 = vmatprep.subr.bf16.mxu1 %v16479_v41  ;;  %v16510_v41 = vld [vmem:[%s23583_s5 + $0x190] ss:$28 sps:$4 sm:$0xff]  }
 0x425   :  { %12996 = vmatprep.subr.bf16.mxu0 %v16482_v42 }
 0x427   :  { %12653 = vmatpush1.bf16.msra.mxu1 %v16477_v59 }
 0x428   :  { %12997 = vmatpush1.bf16.msra.mxu0 %v16480_v43  ;;  %12654 = vmatprep.subr.bf16.mxu1 %v16485_v45 }
 0x429   :  { %12998 = vmatprep.subr.bf16.mxu0 %v16488_v56 }
 0x42b   :  { %12655 = vmatpush1.bf16.msra.mxu1 %v16483_v61 }
 0x42c   :  { %12999 = vmatpush1.bf16.msra.mxu0 %v16486_v46  ;;  %12656 = vmatprep.subr.bf16.mxu1 %v16491_v47  ;;  %v16515_v46 = vld [vmem:[%s23583_s5 + $0x1c4] ss:$28 sps:$4 sm:$0xff]  }
 0x42d   :  { %13000 = vmatprep.subr.bf16.mxu0 %v16494_v48 }
 0x42f   :  { %12657 = vmatpush1.bf16.msra.mxu1 %v16489_v49  ;;  %v16513_v49 = vld [vmem:[%s23583_s5 + $0x1c0] ss:$28 sps:$4 sm:$0xff]  }
 0x430   :  { %13001 = vmatpush1.bf16.msra.mxu0 %v16492_v52  ;;  %12658 = vmatprep.subr.bf16.mxu1 %v16497_v54  ;;  %v16516_v54 = vld [vmem:[%s23583_s5 + $0x1c8] ss:$28 sps:$4 sm:$0xff]  }
 0x431   :  { %v6535_v10 = vpop.f32.mrb[12].mxu1  ;;  %13002 = vmatprep.subr.bf16.mxu0 %v16500_v57  ;;  %v16521_v57 = vld [vmem:[%s23583_s5 + $0x1fc] ss:$28 sps:$4 sm:$0xff]  }
 0x432   :  { %v16060_v31 = vadd.f32 %v6535_v10, %v2014_v2  ;;  %v6664_v0 = vpop.f32.mrb[20].mxu0  ;;  %v6537_v19 = vpop.f32.mrb[13].mxu1  ;;  %v16531_v10 = vld [vmem:[%s23583_s5 + $0x268] ss:$28 sps:$4 sm:$0xff]  }
 0x433   :  { %v16064_v12 = vadd.f32 %v6664_v0, %v2022_v3  ;;  %v16061_v16 = vadd.f32 %v6537_v19, %v2018_v4  ;;  %v6666_v17 = vpop.f32.mrb[21].mxu0  ;;  %v6539_v22 = vpop.f32.mrb[14].mxu1  ;;  %12659 = vmatpush1.bf16.msra.mxu1 %v16495_v63  ;;  %v16519_v63 = vld [vmem:[%s23583_s5 + $0x1f8] ss:$28 sps:$4 sm:$0xff]   ;;  %v16539_v0 = vld [vmem:[%s23583_s5 + $0x2a4] ss:$28 sps:$4 sm:$0xff]  }
 0x434   :  { %v16065_v55 = vadd.f32 %v6666_v17, %v2026_v5  ;;  %v16062_v44 = vadd.f32 %v6539_v22, %v2014_v2  ;;  %v6668_v24 = vpop.f32.mrb[22].mxu0  ;;  %13003 = vmatpush1.bf16.msra.mxu0 %v16498_v6  ;;  %v6541_v35 = vpop.f32.mrb[15].mxu1  ;;  %12660 = vmatprep.subr.bf16.mxu1 %v16503_v7  ;;  %v6939_v21 = vmax.f32 %v16060_v31, 0.0  ;;  %v16524_v2 = vld [vmem:[%s23583_s5 + $0x204] ss:$28 sps:$4 sm:$0xff]  }
 0x435   :  { %v16066_v14 = vadd.f32 %v6668_v24, %v2022_v3  ;;  %v16063_v33 = vadd.f32 %v6541_v35, %v2018_v4  ;;  %v6670_v18 = vpop.f32.mrb[23].mxu0  ;;  %13004 = vmatprep.subr.bf16.mxu0 %v16506_v8  ;;  %v6941_v38 = vmax.f32 %v16064_v12, 0.0  ;;  %v6940_v42 = vmax.f32 %v16061_v16, 0.0  ;;  %v16522_v3 = vld [vmem:[%s23583_s5 + $0x200] ss:$28 sps:$4 sm:$0xff]  }
 0x436   :  { %v6955_v39 = vmax.f32 %v16062_v44, 0.0  ;;  %v16067_v40 = vadd.f32 %v6670_v18, %v2026_v5  ;;  %v6942_v45 = vmax.f32 %v16065_v55, 0.0  ;;  %v16527_v4 = vld [vmem:[%s23583_s5 + $0x234] ss:$28 sps:$4 sm:$0xff]   ;;  %v16530_v6 = vld [vmem:[%s23583_s5 + $0x23c] ss:$28 sps:$4 sm:$0xff]  }
 0x437   :  { %v6957_v59 = vmax.f32 %v16066_v14, 0.0  ;;  %v6956_v43 = vmax.f32 %v16063_v33, 0.0  ;;  %12661 = vmatpush1.bf16.msra.mxu1 %v16501_v60  ;;  %v16525_v5 = vld [vmem:[%s23583_s5 + $0x230] ss:$28 sps:$4 sm:$0xff]   ;;  %v16528_v7 = vld [vmem:[%s23583_s5 + $0x238] ss:$28 sps:$4 sm:$0xff]  }
 0x438   :  { %v20839_v61 = vpack.c.bf16 %v6955_v39, %v6939_v21  ;;  %v6958_v56 = vmax.f32 %v16067_v40, 0.0  ;;  %13005 = vmatpush1.bf16.msra.mxu0 %v16504_v13  ;;  %12662 = vmatprep.subr.bf16.mxu1 %v16509_v25  ;;  %v16533_v8 = vld [vmem:[%s23583_s5 + $0x26c] ss:$28 sps:$4 sm:$0xff]   ;;  %v16536_v60 = vld [vmem:[%s23583_s5 + $0x274] ss:$28 sps:$4 sm:$0xff]  }
 0x439   :  { %v20844_v47 = vpack.c.bf16 %v6957_v59, %v6941_v38  ;;  %v20846_v48 = vpack.c.bf16 %v6956_v43, %v6940_v42  ;;  %13006 = vmatprep.subr.bf16.mxu0 %v16512_v37  ;;  %v16534_v31 = vld [vmem:[%s23583_s5 + $0x270] ss:$28 sps:$4 sm:$0xff]   ;;  %v16537_v19 = vld [vmem:[%s23583_s5 + $0x2a0] ss:$28 sps:$4 sm:$0xff]   ;;  %v16540_v12 = vld [vmem:[%s23583_s5 + $0x2a8] ss:$28 sps:$4 sm:$0xff]  }
 0x43a   :  { %v20854_v52 = vpack.c.bf16 %v6958_v56, %v6942_v45  ;;  %v16542_v13 = vld [vmem:[%s23583_s5 + $0x2ac] ss:$28 sps:$4 sm:$0xff]   ;;  %v16545_v16 = vld [vmem:[%s23583_s5 + $0x2dc] ss:$28 sps:$4 sm:$0xff]   ;;  %v16548_v22 = vld [vmem:[%s23583_s5 + $0x2e4] ss:$28 sps:$4 sm:$0xff]  }
 0x43b   :  { %12663 = vmatpush1.bf16.msra.mxu1 %v16507_v36  ;;  %v16543_v17 = vld [vmem:[%s23583_s5 + $0x2d8] ss:$28 sps:$4 sm:$0xff]   ;;  %v16546_v55 = vld [vmem:[%s23583_s5 + $0x2e0] ss:$28 sps:$4 sm:$0xff]   ;;  %v16549_v24 = vld [vmem:[%s23583_s5 + $0x310] ss:$28 sps:$4 sm:$0xff]  }
 0x43c   :  { %13007 = vmatpush1.bf16.msra.mxu0 %v16510_v41  ;;  %12664 = vmatprep.subr.bf16.mxu1 %v16515_v46  ;;  %v16551_v44 = vld [vmem:[%s23583_s5 + $0x314] ss:$28 sps:$4 sm:$0xff]   ;;  %v16554_v35 = vld [vmem:[%s23583_s5 + $0x31c] ss:$28 sps:$4 sm:$0xff]   ;;  %v16557_v14 = vld [vmem:[%s23583_s5 + $0x34c] ss:$28 sps:$4 sm:$0xff]  }
 0x43d   :  { %13008 = vmatprep.subr.bf16.mxu0 %v16518_v51  ;;  %v16552_v25 = vld [vmem:[%s23583_s5 + $0x318] ss:$28 sps:$4 sm:$0xff]   ;;  %v16555_v33 = vld [vmem:[%s23583_s5 + $0x348] ss:$28 sps:$4 sm:$0xff]   ;;  %v16558_v36 = vld [vmem:[%s23583_s5 + $0x350] ss:$28 sps:$4 sm:$0xff]  }
 0x43e   :  { %v16560_v18 = vld [vmem:[%s23583_s5 + $0x354] ss:$28 sps:$4 sm:$0xff]   ;;  %v16563_v37 = vld [vmem:[%s23583_s5 + $0x384] ss:$28 sps:$4 sm:$0xff]   ;;  %v16566_v38 = vld [vmem:[%s23583_s5 + $0x38c] ss:$28 sps:$4 sm:$0xff]  }
 0x43f   :  { %12665 = vmatpush1.bf16.msra.mxu1 %v16513_v49  ;;  %v16561_v21 = vld [vmem:[%s23583_s5 + $0x380] ss:$28 sps:$4 sm:$0xff]   ;;  %v16564_v39 = vld [vmem:[%s23583_s5 + $0x388] ss:$28 sps:$4 sm:$0xff]   ;;  %v16567_v41 = vld [vmem:[%s23583_s5 + $0x3b8] ss:$28 sps:$4 sm:$0xff]  }
 0x440   :  { %13009 = vmatpush1.bf16.msra.mxu0 %v16516_v54  ;;  %12666 = vmatprep.subr.bf16.mxu1 %v16521_v57  ;;  %v16569_v40 = vld [vmem:[%s23583_s5 + $0x3bc] ss:$28 sps:$4 sm:$0xff]   ;;  %v16572_v59 = vld [vmem:[%s23583_s5 + $0x3c4] ss:$28 sps:$4 sm:$0xff]   ;;  %v16575_v43 = vld [vmem:[%s23583_s5 + $0x3f4] ss:$28 sps:$4 sm:$0xff]  }
 0x441   :  { %13010 = vmatprep.subr.bf16.mxu0 %v16524_v2  ;;  %v16570_v42 = vld [vmem:[%s23583_s5 + $0x3c0] ss:$28 sps:$4 sm:$0xff]   ;;  %v16573_v56 = vld [vmem:[%s23583_s5 + $0x3f0] ss:$28 sps:$4 sm:$0xff]   ;;  %v16576_v46 = vld [vmem:[%s23583_s5 + $0x3f8] ss:$28 sps:$4 sm:$0xff]  }
 0x442   :  { %v16578_v45 = vld [vmem:[%s23583_s5 + $0x3fc] ss:$28 sps:$4 sm:$0xff]   ;;  %v16581_v49 = vld [vmem:[%s23583_s5 + $0x42c] ss:$28 sps:$4 sm:$0xff]   ;;  %v16584_v54 = vld [vmem:[%s23583_s5 + $0x434] ss:$28 sps:$4 sm:$0xff]  }
 0x443   :  { %12667 = vmatpush1.bf16.msra.mxu1 %v16519_v63  ;;  %v16579_v51 = vld [vmem:[%s23583_s5 + $0x428] ss:$28 sps:$4 sm:$0xff]   ;;  %v16582_v57 = vld [vmem:[%s23583_s5 + $0x430] ss:$28 sps:$4 sm:$0xff]   ;;  %v16585_v2 = vld [vmem:[%s23583_s5 + $0x460] ss:$28 sps:$4 sm:$0xff]  }
 0x444   :  { %13011 = vmatpush1.bf16.msra.mxu0 %v16522_v3  ;;  %12668 = vmatprep.subr.bf16.mxu1 %v16527_v4  ;;  %v16587_v63 = vld [vmem:[%s23583_s5 + $0x464] ss:$28 sps:$4 sm:$0xff]   ;;  %v16590_v3 = vld [vmem:[%s23583_s5 + $0x46c] ss:$28 sps:$4 sm:$0xff]  }
 0x445   :  { %13012 = vmatprep.subr.bf16.mxu0 %v16530_v6  ;;  %v16588_v4 = vld [vmem:[%s23583_s5 + $0x468] ss:$28 sps:$4 sm:$0xff]   ;;  %v16591_v6 = vld [vmem:[%s23583_s5 + $0x498] ss:$28 sps:$4 sm:$0xff]  }
 0x447   :  { %12669 = vmatpush1.bf16.msra.mxu1 %v16525_v5  ;;  %v16593_v5 = vld [vmem:[%s23583_s5 + $0x49c] ss:$28 sps:$4 sm:$0xff]  }
 0x448   :  { %13013 = vmatpush1.bf16.msra.mxu0 %v16528_v7  ;;  %12670 = vmatprep.subr.bf16.mxu1 %v16533_v8  ;;  %v16596_v7 = vld [vmem:[%s23583_s5 + $0x4a4] ss:$28 sps:$4 sm:$0xff]  }
 0x449   :  { %13014 = vmatprep.subr.bf16.mxu0 %v16536_v60  ;;  %v16594_v8 = vld [vmem:[%s23583_s5 + $0x4a0] ss:$28 sps:$4 sm:$0xff]  }
 0x44a   :  { %v16602_v60 = vld [vmem:[%s23583_s5 + $0x4dc] ss:$28 sps:$4 sm:$0xff]  }
 0x44b   :  { %12671 = vmatpush1.bf16.msra.mxu1 %v16531_v10  ;;  %v16599_v10 = vld [vmem:[%s23583_s5 + $0x4d4] ss:$28 sps:$4 sm:$0xff]  }
 0x44c   :  { %13015 = vmatpush1.bf16.msra.mxu0 %v16534_v31  ;;  %12672 = vmatprep.subr.bf16.mxu1 %v16539_v0  ;;  %v16597_v31 = vld [vmem:[%s23583_s5 + $0x4d0] ss:$28 sps:$4 sm:$0xff]   ;;  %v16600_v0 = vld [vmem:[%s23583_s5 + $0x4d8] ss:$28 sps:$4 sm:$0xff]  }
 0x44d   :  { %13016 = vmatprep.subr.bf16.mxu0 %v16542_v13  ;;  %v16608_v13 = vld [vmem:[%s23583_s5 + $0x514] ss:$28 sps:$4 sm:$0xff]  }
 0x44f   :  { %12673 = vmatpush1.bf16.msra.mxu1 %v16537_v19  ;;  %v16605_v19 = vld [vmem:[%s23583_s5 + $0x50c] ss:$28 sps:$4 sm:$0xff]  }
 0x450   :  { %13017 = vmatpush1.bf16.msra.mxu0 %v16540_v12  ;;  %12674 = vmatprep.subr.bf16.mxu1 %v16545_v16  ;;  %v16603_v12 = vld [vmem:[%s23583_s5 + $0x508] ss:$28 sps:$4 sm:$0xff]   ;;  %v16606_v16 = vld [vmem:[%s23583_s5 + $0x510] ss:$28 sps:$4 sm:$0xff]  }
 0x451   :  { %13018 = vmatprep.subr.bf16.mxu0 %v16548_v22  ;;  %v16614_v22 = vld [vmem:[%s23583_s5 + $0x54c] ss:$28 sps:$4 sm:$0xff]  }
 0x453   :  { %12675 = vmatpush1.bf16.msra.mxu1 %v16543_v17  ;;  %v16611_v17 = vld [vmem:[%s23583_s5 + $0x544] ss:$28 sps:$4 sm:$0xff]  }
 0x454   :  { %13019 = vmatpush1.bf16.msra.mxu0 %v16546_v55  ;;  %12676 = vmatprep.subr.bf16.mxu1 %v16551_v44  ;;  %v16609_v55 = vld [vmem:[%s23583_s5 + $0x540] ss:$28 sps:$4 sm:$0xff]   ;;  %v16612_v44 = vld [vmem:[%s23583_s5 + $0x548] ss:$28 sps:$4 sm:$0xff]  }
 0x455   :  { %13020 = vmatprep.subr.bf16.mxu0 %v16554_v35  ;;  %v16615_v35 = vld [vmem:[%s23583_s5 + $0x578] ss:$28 sps:$4 sm:$0xff]  }
 0x457   :  { %12677 = vmatpush1.bf16.msra.mxu1 %v16549_v24  ;;  %v16617_v24 = vld [vmem:[%s23583_s5 + $0x57c] ss:$28 sps:$4 sm:$0xff]  }
 0x458   :  { %13021 = vmatpush1.bf16.msra.mxu0 %v16552_v25  ;;  %12678 = vmatprep.subr.bf16.mxu1 %v16557_v14  ;;  %v16620_v25 = vld [vmem:[%s23583_s5 + $0x584] ss:$28 sps:$4 sm:$0xff]  }
 0x459   :  { %13022 = vmatprep.subr.bf16.mxu0 %v16560_v18  ;;  %v16618_v14 = vld [vmem:[%s23583_s5 + $0x580] ss:$28 sps:$4 sm:$0xff]   ;;  %v16621_v18 = vld [vmem:[%s23583_s5 + $0x5b0] ss:$28 sps:$4 sm:$0xff]  }
 0x45b   :  { %12679 = vmatpush1.bf16.msra.mxu1 %v16555_v33  ;;  %v16623_v33 = vld [vmem:[%s23583_s5 + $0x5b4] ss:$28 sps:$4 sm:$0xff]  }
 0x45c   :  { %13023 = vmatpush1.bf16.msra.mxu0 %v16558_v36  ;;  %12691 = vmatprep.subr.bf16.mxu1 %v16563_v37  ;;  %v16626_v36 = vld [vmem:[%s23583_s5 + $0x5bc] ss:$28 sps:$4 sm:$0xff]  }
 0x45d   :  { %13035 = vmatprep.subr.bf16.mxu0 %v16566_v38  ;;  %v16624_v37 = vld [vmem:[%s23583_s5 + $0x5b8] ss:$28 sps:$4 sm:$0xff]   ;;  %v16627_v38 = vld [vmem:[%s23583_s5 + $0x5e8] ss:$28 sps:$4 sm:$0xff]  }
 0x45e   :  { %12681 = vmatmul.mubr.bf16.vlgmr.msra.gmra.mrb[20].mxu1 %v19640_v28 }
 0x45f   :  { %13025 = vmatmul.mubr.bf16.vlgmr.msra.gmra.mrb[28].mxu0 %v19640_v28  ;;  %12692 = vmatpush1.bf16.msra.mxu1 %v16561_v21  ;;  %v16629_v21 = vld [vmem:[%s23583_s5 + $0x5ec] ss:$28 sps:$4 sm:$0xff]  }
 0x460   :  { %12723 = vmatprep.mubr.bf16.mxu1 %v19646_v34  ;;  %13036 = vmatpush1.bf16.msra.mxu0 %v16564_v39  ;;  %v16632_v39 = vld [vmem:[%s23583_s5 + $0x5f4] ss:$28 sps:$4 sm:$0xff]  }
 0x461   :  { %13067 = vmatprep.mubr.bf16.mxu0 %v19646_v34  ;;  %12693 = vmatprep.subr.bf16.mxu1 %v16569_v40  ;;  %v16630_v40 = vld [vmem:[%s23583_s5 + $0x5f0] ss:$28 sps:$4 sm:$0xff]  }
 0x462   :  { %13037 = vmatprep.subr.bf16.mxu0 %v16572_v59  ;;  %v16638_v59 = vld [vmem:[%s23583_s5 + $0x62c] ss:$28 sps:$4 sm:$0xff]  }
 0x463   :  { %12694 = vmatpush1.bf16.msra.mxu1 %v16567_v41  ;;  %v16635_v41 = vld [vmem:[%s23583_s5 + $0x624] ss:$28 sps:$4 sm:$0xff]  }
 0x464   :  { %13038 = vmatpush1.bf16.msra.mxu0 %v16570_v42  ;;  %12695 = vmatprep.subr.bf16.mxu1 %v16575_v43  ;;  %v16633_v42 = vld [vmem:[%s23583_s5 + $0x620] ss:$28 sps:$4 sm:$0xff]   ;;  %v16636_v43 = vld [vmem:[%s23583_s5 + $0x628] ss:$28 sps:$4 sm:$0xff]  }
 0x465   :  { %13039 = vmatprep.subr.bf16.mxu0 %v16578_v45  ;;  %v16641_v45 = vld [vmem:[%s23583_s5 + $0x65c] ss:$28 sps:$4 sm:$0xff]  }
 0x467   :  { %12696 = vmatpush1.bf16.msra.mxu1 %v16573_v56  ;;  %v16639_v56 = vld [vmem:[%s23583_s5 + $0x658] ss:$28 sps:$4 sm:$0xff]  }
 0x468   :  { %13040 = vmatpush1.bf16.msra.mxu0 %v16576_v46  ;;  %12697 = vmatprep.subr.bf16.mxu1 %v16581_v49  ;;  %v16644_v46 = vld [vmem:[%s23583_s5 + $0x664] ss:$28 sps:$4 sm:$0xff]  }
 0x469   :  { %13041 = vmatprep.subr.bf16.mxu0 %v16584_v54  ;;  %v16642_v49 = vld [vmem:[%s23583_s5 + $0x660] ss:$28 sps:$4 sm:$0xff]   ;;  %v16645_v54 = vld [vmem:[%s23583_s5 + $0x690] ss:$28 sps:$4 sm:$0xff]  }
 0x46b   :  { %12698 = vmatpush1.bf16.msra.mxu1 %v16579_v51  ;;  %v16647_v51 = vld [vmem:[%s23583_s5 + $0x694] ss:$28 sps:$4 sm:$0xff]  }
 0x46c   :  { %13042 = vmatpush1.bf16.msra.mxu0 %v16582_v57  ;;  %12699 = vmatprep.subr.bf16.mxu1 %v16587_v63  ;;  %v16650_v57 = vld [vmem:[%s23583_s5 + $0x69c] ss:$28 sps:$4 sm:$0xff]  }
 0x46d   :  { %13043 = vmatprep.subr.bf16.mxu0 %v16590_v3  ;;  %v16648_v63 = vld [vmem:[%s23583_s5 + $0x698] ss:$28 sps:$4 sm:$0xff]   ;;  %v16651_v3 = vld [vmem:[%s23583_s5 + $0x6c8] ss:$28 sps:$4 sm:$0xff]  }
 0x46f   :  { %12700 = vmatpush1.bf16.msra.mxu1 %v16585_v2  ;;  %v16653_v2 = vld [vmem:[%s23583_s5 + $0x6cc] ss:$28 sps:$4 sm:$0xff]  }
 0x470   :  { %13044 = vmatpush1.bf16.msra.mxu0 %v16588_v4  ;;  %12701 = vmatprep.subr.bf16.mxu1 %v16593_v5  ;;  %v16656_v4 = vld [vmem:[%s23583_s5 + $0x6d4] ss:$28 sps:$4 sm:$0xff]  }
 0x471   :  { %13045 = vmatprep.subr.bf16.mxu0 %v16596_v7  ;;  %v16654_v5 = vld [vmem:[%s23583_s5 + $0x6d0] ss:$28 sps:$4 sm:$0xff]   ;;  %v16657_v7 = vld [vmem:[%s23583_s5 + $0x700] ss:$28 sps:$4 sm:$0xff]  }
 0x473   :  { %12702 = vmatpush1.bf16.msra.mxu1 %v16591_v6  ;;  %v16659_v6 = vld [vmem:[%s23583_s5 + $0x704] ss:$28 sps:$4 sm:$0xff]  }
 0x474   :  { %13046 = vmatpush1.bf16.msra.mxu0 %v16594_v8  ;;  %12703 = vmatprep.subr.bf16.mxu1 %v16599_v10  ;;  %v16662_v8 = vld [vmem:[%s23583_s5 + $0x70c] ss:$28 sps:$4 sm:$0xff]  }
 0x475   :  { %13047 = vmatprep.subr.bf16.mxu0 %v16602_v60  ;;  %v16660_v10 = vld [vmem:[%s23583_s5 + $0x708] ss:$28 sps:$4 sm:$0xff]   ;;  %v16665_v60 = vld [vmem:[%s23583_s5 + $0x73c] ss:$28 sps:$4 sm:$0xff]  }
 0x477   :  { %12704 = vmatpush1.bf16.msra.mxu1 %v16597_v31  ;;  %v16663_v31 = vld [vmem:[%s23583_s5 + $0x738] ss:$28 sps:$4 sm:$0xff]  }
 0x478   :  { %13048 = vmatpush1.bf16.msra.mxu0 %v16600_v0  ;;  %12705 = vmatprep.subr.bf16.mxu1 %v16605_v19  ;;  %v16666_v0 = vld [vmem:[%s23583_s5 + $0x740] ss:$28 sps:$4 sm:$0xff]  }
 0x479   :  { %13049 = vmatprep.subr.bf16.mxu0 %v16608_v13  ;;  %v16668_v19 = vld [vmem:[%s23583_s5 + $0x744] ss:$28 sps:$4 sm:$0xff]   ;;  %v16671_v13 = vld [vmem:[%s23583_s5 + $0x774] ss:$28 sps:$4 sm:$0xff]  }
 0x47b   :  { %12706 = vmatpush1.bf16.msra.mxu1 %v16603_v12  ;;  %v16674_v12 = vld [vmem:[%s23583_s5 + $0x77c] ss:$28 sps:$4 sm:$0xff]  }
 0x47c   :  { %13050 = vmatpush1.bf16.msra.mxu0 %v16606_v16  ;;  %12707 = vmatprep.subr.bf16.mxu1 %v16611_v17  ;;  %v16669_v16 = vld [vmem:[%s23583_s5 + $0x770] ss:$28 sps:$4 sm:$0xff]   ;;  %v16672_v17 = vld [vmem:[%s23583_s5 + $0x778] ss:$28 sps:$4 sm:$0xff]  }
 0x47d   :  { %13051 = vmatprep.subr.bf16.mxu0 %v16614_v22  ;;  %v16677_v22 = vld [vmem:[%s23583_s5 + $0x7ac] ss:$28 sps:$4 sm:$0xff]  }
 0x47f   :  { %12708 = vmatpush1.bf16.msra.mxu1 %v16609_v55  ;;  %v16675_v55 = vld [vmem:[%s23583_s5 + $0x7a8] ss:$28 sps:$4 sm:$0xff]  }
 0x480   :  { %13052 = vmatpush1.bf16.msra.mxu0 %v16612_v44  ;;  %12709 = vmatprep.subr.bf16.mxu1 %v16617_v24  ;;  %v16680_v44 = vld [vmem:[%s23583_s5 + $0x7b4] ss:$28 sps:$4 sm:$0xff]  }
 0x481   :  { %13053 = vmatprep.subr.bf16.mxu0 %v16620_v25  ;;  %v16678_v24 = vld [vmem:[%s23583_s5 + $0x7b0] ss:$28 sps:$4 sm:$0xff]   ;;  %v16681_v25 = vld [vmem:[%s23583_s5 + $0x7e0] ss:$28 sps:$4 sm:$0xff]  }
 0x483   :  { %12710 = vmatpush1.bf16.msra.mxu1 %v16615_v35  ;;  %v16683_v35 = vld [vmem:[%s23583_s5 + $0x7e4] ss:$28 sps:$4 sm:$0xff]  }
 0x484   :  { %13054 = vmatpush1.bf16.msra.mxu0 %v16618_v14  ;;  %12711 = vmatprep.subr.bf16.mxu1 %v16623_v33  ;;  %v16686_v14 = vld [vmem:[%s23583_s5 + $0x7ec] ss:$28 sps:$4 sm:$0xff]  }
 0x485   :  { %13055 = vmatprep.subr.bf16.mxu0 %v16626_v36  ;;  %v16684_v33 = vld [vmem:[%s23583_s5 + $0x7e8] ss:$28 sps:$4 sm:$0xff]   ;;  %v16687_v36 = vld [vmem:[%s23583_s5 + $0x818] ss:$28 sps:$4 sm:$0xff]  }
 0x487   :  { %12712 = vmatpush1.bf16.msra.mxu1 %v16621_v18  ;;  %v16689_v18 = vld [vmem:[%s23583_s5 + $0x81c] ss:$28 sps:$4 sm:$0xff]  }
 0x488   :  { %13056 = vmatpush1.bf16.msra.mxu0 %v16624_v37  ;;  %12713 = vmatprep.subr.bf16.mxu1 %v16629_v21  ;;  %v16692_v37 = vld [vmem:[%s23583_s5 + $0x824] ss:$28 sps:$4 sm:$0xff]  }
 0x489   :  { %13057 = vmatprep.subr.bf16.mxu0 %v16632_v39  ;;  %v16690_v21 = vld [vmem:[%s23583_s5 + $0x820] ss:$28 sps:$4 sm:$0xff]   ;;  %v16693_v39 = vld [vmem:[%s23583_s5 + $0x850] ss:$28 sps:$4 sm:$0xff]  }
 0x48b   :  { %12714 = vmatpush1.bf16.msra.mxu1 %v16627_v38  ;;  %v16695_v38 = vld [vmem:[%s23583_s5 + $0x854] ss:$28 sps:$4 sm:$0xff]  }
 0x48c   :  { %13058 = vmatpush1.bf16.msra.mxu0 %v16630_v40  ;;  %12715 = vmatprep.subr.bf16.mxu1 %v16635_v41  ;;  %v16698_v40 = vld [vmem:[%s23583_s5 + $0x85c] ss:$28 sps:$4 sm:$0xff]  }
 0x48d   :  { %13059 = vmatprep.subr.bf16.mxu0 %v16638_v59  ;;  %v16696_v41 = vld [vmem:[%s23583_s5 + $0x858] ss:$28 sps:$4 sm:$0xff]   ;;  %v16699_v59 = vld [vmem:[%s23583_s5 + $0x888] ss:$28 sps:$4 sm:$0xff]  }
 0x48f   :  { %12716 = vmatpush1.bf16.msra.mxu1 %v16633_v42  ;;  %v16701_v42 = vld [vmem:[%s23583_s5 + $0x88c] ss:$28 sps:$4 sm:$0xff]  }
 0x490   :  { %13060 = vmatpush1.bf16.msra.mxu0 %v16636_v43  ;;  %12717 = vmatprep.subr.bf16.mxu1 %v16641_v45  ;;  %v16704_v43 = vld [vmem:[%s23583_s5 + $0x894] ss:$28 sps:$4 sm:$0xff]  }
 0x491   :  { %13061 = vmatprep.subr.bf16.mxu0 %v16644_v46  ;;  %v16702_v45 = vld [vmem:[%s23583_s5 + $0x890] ss:$28 sps:$4 sm:$0xff]   ;;  %v16705_v46 = vld [vmem:[%s23583_s5 + $0x8c0] ss:$28 sps:$4 sm:$0xff]  }
 0x493   :  { %12718 = vmatpush1.bf16.msra.mxu1 %v16639_v56  ;;  %v16707_v56 = vld [vmem:[%s23583_s5 + $0x8c4] ss:$28 sps:$4 sm:$0xff]  }
 0x494   :  { %13062 = vmatpush1.bf16.msra.mxu0 %v16642_v49  ;;  %12719 = vmatprep.subr.bf16.mxu1 %v16647_v51  ;;  %v16710_v49 = vld [vmem:[%s23583_s5 + $0x8cc] ss:$28 sps:$4 sm:$0xff]  }
 0x495   :  { %13063 = vmatprep.subr.bf16.mxu0 %v16650_v57  ;;  %v16708_v51 = vld [vmem:[%s23583_s5 + $0x8c8] ss:$28 sps:$4 sm:$0xff]   ;;  %v16711_v57 = vld [vmem:[%s23583_s5 + $0x8f8] ss:$28 sps:$4 sm:$0xff]  }
 0x497   :  { %12720 = vmatpush1.bf16.msra.mxu1 %v16645_v54  ;;  %v16713_v54 = vld [vmem:[%s23583_s5 + $0x8fc] ss:$28 sps:$4 sm:$0xff]  }
 0x498   :  { %13064 = vmatpush1.bf16.msra.mxu0 %v16648_v63  ;;  %12721 = vmatprep.subr.bf16.mxu1 %v16653_v2  ;;  %v16716_v63 = vld [vmem:[%s23583_s5 + $0x904] ss:$28 sps:$4 sm:$0xff]  }
 0x499   :  { %13065 = vmatprep.subr.bf16.mxu0 %v16656_v4  ;;  %v16714_v2 = vld [vmem:[%s23583_s5 + $0x900] ss:$28 sps:$4 sm:$0xff]   ;;  %v16717_v4 = vld [vmem:[%s23583_s5 + $0x930] ss:$28 sps:$4 sm:$0xff]  }
 0x49b   :  { %12722 = vmatpush1.bf16.msra.mxu1 %v16651_v3  ;;  %v16719_v3 = vld [vmem:[%s23583_s5 + $0x934] ss:$28 sps:$4 sm:$0xff]  }
 0x49c   :  { %13066 = vmatpush1.bf16.msra.mxu0 %v16654_v5  ;;  %12734 = vmatprep.subr.bf16.mxu1 %v16659_v6  ;;  %v16722_v5 = vld [vmem:[%s23583_s5 + $0x93c] ss:$28 sps:$4 sm:$0xff]  }
 0x49d   :  { %13078 = vmatprep.subr.bf16.mxu0 %v16662_v8  ;;  %v16720_v6 = vld [vmem:[%s23583_s5 + $0x938] ss:$28 sps:$4 sm:$0xff]   ;;  %v16723_v8 = vld [vmem:[%s23583_s5 + $0x968] ss:$28 sps:$4 sm:$0xff]  }
 0x49e   :  { %12724 = vmatmul.mubr.bf16.vlgmr.msra.gmra.mrb[20].mxu1 %v19642_v30 }
 0x49f   :  { %13068 = vmatmul.mubr.bf16.vlgmr.msra.gmra.mrb[28].mxu0 %v19642_v30  ;;  %12735 = vmatpush1.bf16.msra.mxu1 %v16657_v7  ;;  %v16725_v7 = vld [vmem:[%s23583_s5 + $0x96c] ss:$28 sps:$4 sm:$0xff]  }
 0x4a0   :  { %12766 = vmatprep.mubr.bf16.mxu1 %v20252_v23  ;;  %13079 = vmatpush1.bf16.msra.mxu0 %v16660_v10  ;;  %v16728_v10 = vld [vmem:[%s23583_s5 + $0x974] ss:$28 sps:$4 sm:$0xff]  }
 0x4a1   :  { %13110 = vmatprep.mubr.bf16.mxu0 %v20252_v23  ;;  %12736 = vmatprep.subr.bf16.mxu1 %v16665_v60  ;;  %v16726_v60 = vld [vmem:[%s23583_s5 + $0x970] ss:$28 sps:$4 sm:$0xff]  }
 0x4a2   :  { %13080 = vmatprep.subr.bf16.mxu0 %v16668_v19  ;;  %v16734_v19 = vld [vmem:[%s23583_s5 + $0x9ac] ss:$28 sps:$4 sm:$0xff]  }
 0x4a3   :  { %12737 = vmatpush1.bf16.msra.mxu1 %v16663_v31  ;;  %v16731_v31 = vld [vmem:[%s23583_s5 + $0x9a4] ss:$28 sps:$4 sm:$0xff]  }
 0x4a4   :  { %13081 = vmatpush1.bf16.msra.mxu0 %v16666_v0  ;;  %12738 = vmatprep.subr.bf16.mxu1 %v16671_v13  ;;  %v16729_v0 = vld [vmem:[%s23583_s5 + $0x9a0] ss:$28 sps:$4 sm:$0xff]   ;;  %v16732_v13 = vld [vmem:[%s23583_s5 + $0x9a8] ss:$28 sps:$4 sm:$0xff]  }
 0x4a5   :  { %13082 = vmatprep.subr.bf16.mxu0 %v16674_v12  ;;  %v16737_v12 = vld [vmem:[%s23583_s5 + $0x9dc] ss:$28 sps:$4 sm:$0xff]  }
 0x4a7   :  { %12739 = vmatpush1.bf16.msra.mxu1 %v16669_v16  ;;  %v16735_v16 = vld [vmem:[%s23583_s5 + $0x9d8] ss:$28 sps:$4 sm:$0xff]  }
 0x4a8   :  { %13083 = vmatpush1.bf16.msra.mxu0 %v16672_v17  ;;  %12740 = vmatprep.subr.bf16.mxu1 %v16677_v22  ;;  %v16740_v17 = vld [vmem:[%s23583_s5 + $0x9e4] ss:$28 sps:$4 sm:$0xff]  }
 0x4a9   :  { %13084 = vmatprep.subr.bf16.mxu0 %v16680_v44  ;;  %v16738_v22 = vld [vmem:[%s23583_s5 + $0x9e0] ss:$28 sps:$4 sm:$0xff]   ;;  %v16741_v44 = vld [vmem:[%s23583_s5 + $0xa10] ss:$28 sps:$4 sm:$0xff]  }
 0x4ab   :  { %12741 = vmatpush1.bf16.msra.mxu1 %v16675_v55  ;;  %v16743_v55 = vld [vmem:[%s23583_s5 + $0xa14] ss:$28 sps:$4 sm:$0xff]  }
 0x4ac   :  { %13085 = vmatpush1.bf16.msra.mxu0 %v16678_v24  ;;  %12742 = vmatprep.subr.bf16.mxu1 %v16683_v35  ;;  %v16746_v24 = vld [vmem:[%s23583_s5 + $0xa1c] ss:$28 sps:$4 sm:$0xff]  }
 0x4ad   :  { %13086 = vmatprep.subr.bf16.mxu0 %v16686_v14  ;;  %v16744_v35 = vld [vmem:[%s23583_s5 + $0xa18] ss:$28 sps:$4 sm:$0xff]   ;;  %v16747_v14 = vld [vmem:[%s23583_s5 + $0xa48] ss:$28 sps:$4 sm:$0xff]  }
 0x4af   :  { %12743 = vmatpush1.bf16.msra.mxu1 %v16681_v25  ;;  %v16749_v25 = vld [vmem:[%s23583_s5 + $0xa4c] ss:$28 sps:$4 sm:$0xff]  }
 0x4b0   :  { %13087 = vmatpush1.bf16.msra.mxu0 %v16684_v33  ;;  %12744 = vmatprep.subr.bf16.mxu1 %v16689_v18  ;;  %v16752_v33 = vld [vmem:[%s23583_s5 + $0xa54] ss:$28 sps:$4 sm:$0xff]  }
 0x4b1   :  { %13088 = vmatprep.subr.bf16.mxu0 %v16692_v37  ;;  %v16750_v18 = vld [vmem:[%s23583_s5 + $0xa50] ss:$28 sps:$4 sm:$0xff]   ;;  %v16753_v37 = vld [vmem:[%s23583_s5 + $0xa80] ss:$28 sps:$4 sm:$0xff]  }
 0x4b3   :  { %12745 = vmatpush1.bf16.msra.mxu1 %v16687_v36  ;;  %v16755_v36 = vld [vmem:[%s23583_s5 + $0xa84] ss:$28 sps:$4 sm:$0xff]  }
 0x4b4   :  { %13089 = vmatpush1.bf16.msra.mxu0 %v16690_v21  ;;  %12746 = vmatprep.subr.bf16.mxu1 %v16695_v38  ;;  %v16758_v21 = vld [vmem:[%s23583_s5 + $0xa8c] ss:$28 sps:$4 sm:$0xff]  }
 0x4b5   :  { %13090 = vmatprep.subr.bf16.mxu0 %v16698_v40  ;;  %v16756_v38 = vld [vmem:[%s23583_s5 + $0xa88] ss:$28 sps:$4 sm:$0xff]   ;;  %v16759_v40 = vld [vmem:[%s23583_s5 + $0xab8] ss:$28 sps:$4 sm:$0xff]  }
 0x4b7   :  { %12747 = vmatpush1.bf16.msra.mxu1 %v16693_v39  ;;  %v16761_v39 = vld [vmem:[%s23583_s5 + $0xabc] ss:$28 sps:$4 sm:$0xff]  }
 0x4b8   :  { %13091 = vmatpush1.bf16.msra.mxu0 %v16696_v41  ;;  %12748 = vmatprep.subr.bf16.mxu1 %v16701_v42  ;;  %v16762_v41 = vld [vmem:[%s23583_s5 + $0xac0] ss:$28 sps:$4 sm:$0xff]  }
 0x4b9   :  { %13092 = vmatprep.subr.bf16.mxu0 %v16704_v43  ;;  %v16764_v42 = vld [vmem:[%s23583_s5 + $0xac4] ss:$28 sps:$4 sm:$0xff]   ;;  %v16770_v43 = vld [vmem:[%s23583_s5 + $0xafc] ss:$28 sps:$4 sm:$0xff]  }
 0x4bb   :  { %12749 = vmatpush1.bf16.msra.mxu1 %v16699_v59  ;;  %v16767_v59 = vld [vmem:[%s23583_s5 + $0xaf4] ss:$28 sps:$4 sm:$0xff]  }
 0x4bc   :  { %13093 = vmatpush1.bf16.msra.mxu0 %v16702_v45  ;;  %12750 = vmatprep.subr.bf16.mxu1 %v16707_v56  ;;  %v16765_v45 = vld [vmem:[%s23583_s5 + $0xaf0] ss:$28 sps:$4 sm:$0xff]   ;;  %v16768_v56 = vld [vmem:[%s23583_s5 + $0xaf8] ss:$28 sps:$4 sm:$0xff]  }
 0x4bd   :  { %13094 = vmatprep.subr.bf16.mxu0 %v16710_v49  ;;  %v16771_v49 = vld [vmem:[%s23583_s5 + $0xb28] ss:$28 sps:$4 sm:$0xff]  }
 0x4bf   :  { %12751 = vmatpush1.bf16.msra.mxu1 %v16705_v46  ;;  %v16773_v46 = vld [vmem:[%s23583_s5 + $0xb2c] ss:$28 sps:$4 sm:$0xff]  }
 0x4c0   :  { %13095 = vmatpush1.bf16.msra.mxu0 %v16708_v51  ;;  %12752 = vmatprep.subr.bf16.mxu1 %v16713_v54  ;;  %v16776_v51 = vld [vmem:[%s23583_s5 + $0xb34] ss:$28 sps:$4 sm:$0xff]  }
 0x4c1   :  { %13096 = vmatprep.subr.bf16.mxu0 %v16716_v63  ;;  %v16774_v54 = vld [vmem:[%s23583_s5 + $0xb30] ss:$28 sps:$4 sm:$0xff]   ;;  %v16777_v63 = vld [vmem:[%s23583_s5 + $0xb60] ss:$28 sps:$4 sm:$0xff]  }
 0x4c3   :  { %12753 = vmatpush1.bf16.msra.mxu1 %v16711_v57  ;;  %v16779_v57 = vld [vmem:[%s23583_s5 + $0xb64] ss:$28 sps:$4 sm:$0xff]  }
 0x4c4   :  { %13097 = vmatpush1.bf16.msra.mxu0 %v16714_v2  ;;  %12754 = vmatprep.subr.bf16.mxu1 %v16719_v3  ;;  %v16782_v2 = vld [vmem:[%s23583_s5 + $0xb6c] ss:$28 sps:$4 sm:$0xff]  }
 0x4c5   :  { %13098 = vmatprep.subr.bf16.mxu0 %v16722_v5  ;;  %v16780_v3 = vld [vmem:[%s23583_s5 + $0xb68] ss:$28 sps:$4 sm:$0xff]  }
 0x4c6   :  { %v16788_v5 = vld [vmem:[%s23583_s5 + $0xba4] ss:$28 sps:$4 sm:$0xff]  }
 0x4c7   :  { %12755 = vmatpush1.bf16.msra.mxu1 %v16717_v4  ;;  %v16785_v4 = vld [vmem:[%s23583_s5 + $0xb9c] ss:$28 sps:$4 sm:$0xff]  }
 0x4c8   :  { %13099 = vmatpush1.bf16.msra.mxu0 %v16720_v6  ;;  %12756 = vmatprep.subr.bf16.mxu1 %v16725_v7  ;;  %v16783_v6 = vld [vmem:[%s23583_s5 + $0xb98] ss:$28 sps:$4 sm:$0xff]   ;;  %v17774_v7 = vld [vmem:[%s23582_s4 + $0x8] sm:$0xff] }
 0x4c9   :  { %13100 = vmatprep.subr.bf16.mxu0 %v16728_v10  ;;  %v2038_v10 = vrot.slane %v17774_v7, %v20201_v9 }
 0x4cb   :  { %12757 = vmatpush1.bf16.msra.mxu1 %v16723_v8  ;;  %v2030_v8 = vrot.slane %v17774_v7, %v18930_v58 }
 0x4cc   :  { %13101 = vmatpush1.bf16.msra.mxu0 %v16726_v60  ;;  %12758 = vmatprep.subr.bf16.mxu1 %v16731_v31  ;;  %v2034_v60 = vrot.slane %v17774_v7, %v18933_v62  ;;  %v2042_v31 = vrot.slane %v17774_v7, %v2009_v11  ;;  %v16804_v7 = vld [vmem:[%s23583_s5 + $0xc48] ss:$28 sps:$4 sm:$0xff]  }
 0x4cd   :  { %13102 = vmatprep.subr.bf16.mxu0 %v16734_v19  ;;  %v16791_v19 = vld [vmem:[%s23583_s5 + $0xbd4] ss:$28 sps:$4 sm:$0xff]  }
 0x4cf   :  { %12759 = vmatpush1.bf16.msra.mxu1 %v16729_v0  ;;  %v16786_v0 = vld [vmem:[%s23583_s5 + $0xba0] ss:$28 sps:$4 sm:$0xff]  }
 0x4d0   :  { %13103 = vmatpush1.bf16.msra.mxu0 %v16732_v13  ;;  %12760 = vmatprep.subr.bf16.mxu1 %v16737_v12  ;;  %v16794_v13 = vld [vmem:[%s23583_s5 + $0xbdc] ss:$28 sps:$4 sm:$0xff]  }
 0x4d1   :  { %13104 = vmatprep.subr.bf16.mxu0 %v16740_v17 }
 0x4d3   :  { %12761 = vmatpush1.bf16.msra.mxu1 %v16735_v16 }
 0x4d4   :  { %13105 = vmatpush1.bf16.msra.mxu0 %v16738_v22  ;;  %12762 = vmatprep.subr.bf16.mxu1 %v16743_v55  ;;  %v16792_v22 = vld [vmem:[%s23583_s5 + $0xbd8] ss:$28 sps:$4 sm:$0xff]  }
 0x4d5   :  { %13106 = vmatprep.subr.bf16.mxu0 %v16746_v24 }
 0x4d7   :  { %12763 = vmatpush1.bf16.msra.mxu1 %v16741_v44 }
 0x4d8   :  { %13107 = vmatpush1.bf16.msra.mxu0 %v16744_v35  ;;  %12764 = vmatprep.subr.bf16.mxu1 %v16749_v25 }
 0x4d9   :  { %13108 = vmatprep.subr.bf16.mxu0 %v16752_v33 }
 0x4db   :  { %12765 = vmatpush1.bf16.msra.mxu1 %v16747_v14 }
 0x4dc   :  { %13109 = vmatpush1.bf16.msra.mxu0 %v16750_v18  ;;  %12777 = vmatprep.subr.bf16.mxu1 %v16755_v36  ;;  %v16797_v36 = vld [vmem:[%s23583_s5 + $0xc0c] ss:$28 sps:$4 sm:$0xff]  }
 0x4dd   :  { %13121 = vmatprep.subr.bf16.mxu0 %v16758_v21 }
 0x4de   :  { %12767 = vmatmul.mubr.bf16.vlgmr.msra.gmra.mrb[20].mxu1 %v20248_v20 }
 0x4df   :  { %13111 = vmatmul.mubr.bf16.vlgmr.msra.gmra.mrb[28].mxu0 %v20248_v20  ;;  %12778 = vmatpush1.bf16.msra.mxu1 %v16753_v37 }
 0x4e0   :  { %12809 = vmatprep.mubr.bf16.mxu1 %v20260_v27  ;;  %13122 = vmatpush1.bf16.msra.mxu0 %v16756_v38 }
 0x4e1   :  { %13153 = vmatprep.mubr.bf16.mxu0 %v20260_v27  ;;  %12779 = vmatprep.subr.bf16.mxu1 %v16761_v39 }
 0x4e2   :  { %13123 = vmatprep.subr.bf16.mxu0 %v16764_v42 }
 0x4e3   :  { %12780 = vmatpush1.bf16.msra.mxu1 %v16759_v40  ;;  %v16795_v40 = vld [vmem:[%s23583_s5 + $0xc08] ss:$28 sps:$4 sm:$0xff]  }
 0x4e4   :  { %13124 = vmatpush1.bf16.msra.mxu0 %v16762_v41  ;;  %12781 = vmatprep.subr.bf16.mxu1 %v16767_v59  ;;  %v16800_v41 = vld [vmem:[%s23583_s5 + $0xc14] ss:$28 sps:$4 sm:$0xff]  }
 0x4e5   :  { %13125 = vmatprep.subr.bf16.mxu0 %v16770_v43 }
 0x4e7   :  { %12782 = vmatpush1.bf16.msra.mxu1 %v16765_v45 }
 0x4e8   :  { %13126 = vmatpush1.bf16.msra.mxu0 %v16768_v56  ;;  %12783 = vmatprep.subr.bf16.mxu1 %v16773_v46  ;;  %v16798_v56 = vld [vmem:[%s23583_s5 + $0xc10] ss:$28 sps:$4 sm:$0xff]  }
 0x4e9   :  { %13127 = vmatprep.subr.bf16.mxu0 %v16776_v51 }
 0x4eb   :  { %12784 = vmatpush1.bf16.msra.mxu1 %v16771_v49 }
 0x4ec   :  { %13128 = vmatpush1.bf16.msra.mxu0 %v16774_v54  ;;  %12785 = vmatprep.subr.bf16.mxu1 %v16779_v57 }
 0x4ed   :  { %13129 = vmatprep.subr.bf16.mxu0 %v16782_v2 }
 0x4ef   :  { %12786 = vmatpush1.bf16.msra.mxu1 %v16777_v63  ;;  %v16803_v63 = vld [vmem:[%s23583_s5 + $0xc44] ss:$28 sps:$4 sm:$0xff]  }
 0x4f0   :  { %13130 = vmatpush1.bf16.msra.mxu0 %v16780_v3  ;;  %12787 = vmatprep.subr.bf16.mxu1 %v16785_v4  ;;  %v16801_v4 = vld [vmem:[%s23583_s5 + $0xc40] ss:$28 sps:$4 sm:$0xff]  }
 0x4f1   :  { %v6793_v12 = vpop.f32.mrb[16].mxu1  ;;  %13131 = vmatprep.subr.bf16.mxu0 %v16788_v5  ;;  %v16806_v5 = vld [vmem:[%s23583_s5 + $0xc4c] ss:$28 sps:$4 sm:$0xff]  }
 0x4f2   :  { %v16068_v11 = vadd.f32 %v6793_v12, %v2030_v8  ;;  %v6922_v16 = vpop.f32.mrb[24].mxu0  ;;  %v6795_v17 = vpop.f32.mrb[17].mxu1  ;;  %v16816_v12 = vld [vmem:[%s23583_s5 + $0xcb8] ss:$28 sps:$4 sm:$0xff]  }
 0x4f3   :  { %v16072_v55 = vadd.f32 %v6922_v16, %v2038_v10  ;;  %v16069_v44 = vadd.f32 %v6795_v17, %v2034_v60  ;;  %v6924_v24 = vpop.f32.mrb[25].mxu0  ;;  %v6797_v35 = vpop.f32.mrb[18].mxu1  ;;  %12788 = vmatpush1.bf16.msra.mxu1 %v16783_v6  ;;  %v16824_v16 = vld [vmem:[%s23583_s5 + $0xcf4] ss:$28 sps:$4 sm:$0xff]  }
 0x4f4   :  { %v16073_v25 = vadd.f32 %v6924_v24, %v2042_v31  ;;  %v16070_v14 = vadd.f32 %v6797_v35, %v2030_v8  ;;  %v6926_v33 = vpop.f32.mrb[26].mxu0  ;;  %13132 = vmatpush1.bf16.msra.mxu0 %v16786_v0  ;;  %v6799_v18 = vpop.f32.mrb[19].mxu1  ;;  %12789 = vmatprep.subr.bf16.mxu1 %v16791_v19  ;;  %v6943_v37 = vmax.f32 %v16068_v11, 0.0  ;;  %v16809_v8 = vld [vmem:[%s23583_s5 + $0xc7c] ss:$28 sps:$4 sm:$0xff]  }
 0x4f5   :  { %v16074_v21 = vadd.f32 %v6926_v33, %v2038_v10  ;;  %v16071_v38 = vadd.f32 %v6799_v18, %v2034_v60  ;;  %v6928_v39 = vpop.f32.mrb[27].mxu0  ;;  %13133 = vmatprep.subr.bf16.mxu0 %v16794_v13  ;;  %v6945_v42 = vmax.f32 %v16072_v55, 0.0  ;;  %v6944_v59 = vmax.f32 %v16069_v44, 0.0  ;;  %v16807_v10 = vld [vmem:[%s23583_s5 + $0xc78] ss:$28 sps:$4 sm:$0xff]  }
 0x4f6   :  { %v6959_v43 = vmax.f32 %v16070_v14, 0.0  ;;  %v16075_v45 = vadd.f32 %v6928_v39, %v2042_v31  ;;  %v6946_v51 = vmax.f32 %v16073_v25, 0.0  ;;  %v16812_v60 = vld [vmem:[%s23583_s5 + $0xc84] ss:$28 sps:$4 sm:$0xff]   ;;  %v16815_v0 = vld [vmem:[%s23583_s5 + $0xcb4] ss:$28 sps:$4 sm:$0xff]  }
 0x4f7   :  { %v6961_v46 = vmax.f32 %v16074_v21, 0.0  ;;  %v6960_v49 = vmax.f32 %v16071_v38, 0.0  ;;  %12790 = vmatpush1.bf16.msra.mxu1 %v16789_v26  ;;  %v16810_v31 = vld [vmem:[%s23583_s5 + $0xc80] ss:$28 sps:$4 sm:$0xff]   ;;  %v16813_v19 = vld [vmem:[%s23583_s5 + $0xcb0] ss:$28 sps:$4 sm:$0xff]  }
 0x4f8   :  { %v21443_v54 = vpack.c.bf16 %v6959_v43, %v6943_v37  ;;  %v6962_v57 = vmax.f32 %v16075_v45, 0.0  ;;  %13134 = vmatpush1.bf16.msra.mxu0 %v16792_v22  ;;  %12791 = vmatprep.subr.bf16.mxu1 %v16797_v36  ;;  %v16818_v13 = vld [vmem:[%s23583_s5 + $0xcbc] ss:$28 sps:$4 sm:$0xff]   ;;  %v16821_v26 = vld [vmem:[%s23583_s5 + $0xcec] ss:$28 sps:$4 sm:$0xff]  }
 0x4f9   :  { %v21448_v2 = vpack.c.bf16 %v6961_v46, %v6945_v42  ;;  %v21450_v3 = vpack.c.bf16 %v6960_v49, %v6944_v59  ;;  %13135 = vmatprep.subr.bf16.mxu0 %v16800_v41  ;;  %v16819_v11 = vld [vmem:[%s23583_s5 + $0xce8] ss:$28 sps:$4 sm:$0xff]   ;;  %v16822_v17 = vld [vmem:[%s23583_s5 + $0xcf0] ss:$28 sps:$4 sm:$0xff]   ;;  %v16825_v55 = vld [vmem:[%s23583_s5 + $0xd20] ss:$28 sps:$4 sm:$0xff]  }
 0x4fa   :  { %v21458_v6 = vpack.c.bf16 %v6962_v57, %v6946_v51  ;;  %v16827_v22 = vld [vmem:[%s23583_s5 + $0xd24] ss:$28 sps:$4 sm:$0xff]   ;;  %v16830_v44 = vld [vmem:[%s23583_s5 + $0xd2c] ss:$28 sps:$4 sm:$0xff]   ;;  %v16833_v35 = vld [vmem:[%s23583_s5 + $0xd5c] ss:$28 sps:$4 sm:$0xff]  }
 0x4fb   :  { %12792 = vmatpush1.bf16.msra.mxu1 %v16795_v40  ;;  %v16828_v24 = vld [vmem:[%s23583_s5 + $0xd28] ss:$28 sps:$4 sm:$0xff]   ;;  %v16831_v25 = vld [vmem:[%s23583_s5 + $0xd58] ss:$28 sps:$4 sm:$0xff]   ;;  %v16834_v33 = vld [vmem:[%s23583_s5 + $0xd60] ss:$28 sps:$4 sm:$0xff]  }
 0x4fc   :  { %13136 = vmatpush1.bf16.msra.mxu0 %v16798_v56  ;;  %12793 = vmatprep.subr.bf16.mxu1 %v16803_v63  ;;  %v16836_v14 = vld [vmem:[%s23583_s5 + $0xd64] ss:$28 sps:$4 sm:$0xff]   ;;  %v16839_v18 = vld [vmem:[%s23583_s5 + $0xd94] ss:$28 sps:$4 sm:$0xff]   ;;  %v16842_v37 = vld [vmem:[%s23583_s5 + $0xd9c] ss:$28 sps:$4 sm:$0xff]  }
 0x4fd   :  { %13137 = vmatprep.subr.bf16.mxu0 %v16806_v5  ;;  %v16837_v36 = vld [vmem:[%s23583_s5 + $0xd90] ss:$28 sps:$4 sm:$0xff]   ;;  %v16840_v21 = vld [vmem:[%s23583_s5 + $0xd98] ss:$28 sps:$4 sm:$0xff]   ;;  %v16843_v39 = vld [vmem:[%s23583_s5 + $0xdc8] ss:$28 sps:$4 sm:$0xff]  }
 0x4fe   :  { %v16845_v38 = vld [vmem:[%s23583_s5 + $0xdcc] ss:$28 sps:$4 sm:$0xff]   ;;  %v16848_v40 = vld [vmem:[%s23583_s5 + $0xdd4] ss:$28 sps:$4 sm:$0xff]   ;;  %v16851_v42 = vld [vmem:[%s23583_s5 + $0xe04] ss:$28 sps:$4 sm:$0xff]  }
 0x4ff   :  { %12794 = vmatpush1.bf16.msra.mxu1 %v16801_v4  ;;  %v16846_v41 = vld [vmem:[%s23583_s5 + $0xdd0] ss:$28 sps:$4 sm:$0xff]   ;;  %v16849_v59 = vld [vmem:[%s23583_s5 + $0xe00] ss:$28 sps:$4 sm:$0xff]   ;;  %v16852_v45 = vld [vmem:[%s23583_s5 + $0xe08] ss:$28 sps:$4 sm:$0xff]  }
 0x500   :  { %13138 = vmatpush1.bf16.msra.mxu0 %v16804_v7  ;;  %12795 = vmatprep.subr.bf16.mxu1 %v16809_v8  ;;  %v16854_v43 = vld [vmem:[%s23583_s5 + $0xe0c] ss:$28 sps:$4 sm:$0xff]   ;;  %v16857_v56 = vld [vmem:[%s23583_s5 + $0xe3c] ss:$28 sps:$4 sm:$0xff]   ;;  %v16860_v51 = vld [vmem:[%s23583_s5 + $0xe44] ss:$28 sps:$4 sm:$0xff]  }
 0x501   :  { %13139 = vmatprep.subr.bf16.mxu0 %v16812_v60  ;;  %v16855_v46 = vld [vmem:[%s23583_s5 + $0xe38] ss:$28 sps:$4 sm:$0xff]   ;;  %v16858_v49 = vld [vmem:[%s23583_s5 + $0xe40] ss:$28 sps:$4 sm:$0xff]   ;;  %v16861_v4 = vld [vmem:[%s23583_s5 + $0xe70] ss:$28 sps:$4 sm:$0xff]  }
 0x502   :  { %v16863_v57 = vld [vmem:[%s23583_s5 + $0xe74] ss:$28 sps:$4 sm:$0xff]   ;;  %v16866_v63 = vld [vmem:[%s23583_s5 + $0xe7c] ss:$28 sps:$4 sm:$0xff]   ;;  %v16869_v7 = vld [vmem:[%s23583_s5 + $0xeac] ss:$28 sps:$4 sm:$0xff]  }
 0x503   :  { %12796 = vmatpush1.bf16.msra.mxu1 %v16807_v10  ;;  %v16864_v5 = vld [vmem:[%s23583_s5 + $0xe78] ss:$28 sps:$4 sm:$0xff]   ;;  %v16867_v8 = vld [vmem:[%s23583_s5 + $0xea8] ss:$28 sps:$4 sm:$0xff]   ;;  %v16870_v60 = vld [vmem:[%s23583_s5 + $0xeb0] ss:$28 sps:$4 sm:$0xff]  }
 0x504   :  { %13140 = vmatpush1.bf16.msra.mxu0 %v16810_v31  ;;  %12797 = vmatprep.subr.bf16.mxu1 %v16815_v0  ;;  %v16872_v10 = vld [vmem:[%s23583_s5 + $0xeb4] ss:$28 sps:$4 sm:$0xff]   ;;  %v16875_v31 = vld [vmem:[%s23583_s5 + $0xee4] ss:$28 sps:$4 sm:$0xff]  }
 0x505   :  { %13141 = vmatprep.subr.bf16.mxu0 %v16818_v13  ;;  %v16873_v0 = vld [vmem:[%s23583_s5 + $0xee0] ss:$28 sps:$4 sm:$0xff]   ;;  %v16876_v13 = vld [vmem:[%s23583_s5 + $0xee8] ss:$28 sps:$4 sm:$0xff]  }
 0x507   :  { %12798 = vmatpush1.bf16.msra.mxu1 %v16813_v19  ;;  %v16878_v19 = vld [vmem:[%s23583_s5 + $0xeec] ss:$28 sps:$4 sm:$0xff]  }
 0x508   :  { %13142 = vmatpush1.bf16.msra.mxu0 %v16816_v12  ;;  %12799 = vmatprep.subr.bf16.mxu1 %v16821_v26  ;;  %v16881_v12 = vld [vmem:[%s23583_s5 + $0xf1c] ss:$28 sps:$4 sm:$0xff]  }
 0x509   :  { %13143 = vmatprep.subr.bf16.mxu0 %v16824_v16  ;;  %v16879_v26 = vld [vmem:[%s23583_s5 + $0xf18] ss:$28 sps:$4 sm:$0xff]   ;;  %v16882_v16 = vld [vmem:[%s23583_s5 + $0xf20] ss:$28 sps:$4 sm:$0xff]  }
 0x50b   :  { %12800 = vmatpush1.bf16.msra.mxu1 %v16819_v11  ;;  %v16884_v11 = vld [vmem:[%s23583_s5 + $0xf24] ss:$28 sps:$4 sm:$0xff]  }
 0x50c   :  { %13144 = vmatpush1.bf16.msra.mxu0 %v16822_v17  ;;  %12801 = vmatprep.subr.bf16.mxu1 %v16827_v22  ;;  %v16887_v17 = vld [vmem:[%s23583_s5 + $0xf54] ss:$28 sps:$4 sm:$0xff]  }
 0x50d   :  { %13145 = vmatprep.subr.bf16.mxu0 %v16830_v44  ;;  %v16885_v22 = vld [vmem:[%s23583_s5 + $0xf50] ss:$28 sps:$4 sm:$0xff]   ;;  %v16888_v44 = vld [vmem:[%s23583_s5 + $0xf58] ss:$28 sps:$4 sm:$0xff]  }
 0x50f   :  { %12802 = vmatpush1.bf16.msra.mxu1 %v16825_v55  ;;  %v16890_v55 = vld [vmem:[%s23583_s5 + $0xf5c] ss:$28 sps:$4 sm:$0xff]  }
 0x510   :  { %13146 = vmatpush1.bf16.msra.mxu0 %v16828_v24  ;;  %12803 = vmatprep.subr.bf16.mxu1 %v16833_v35  ;;  %v16893_v24 = vld [vmem:[%s23583_s5 + $0xf8c] ss:$28 sps:$4 sm:$0xff]  }
 0x511   :  { %13147 = vmatprep.subr.bf16.mxu0 %v16836_v14  ;;  %v16891_v35 = vld [vmem:[%s23583_s5 + $0xf88] ss:$28 sps:$4 sm:$0xff]   ;;  %v16894_v14 = vld [vmem:[%s23583_s5 + $0xf90] ss:$28 sps:$4 sm:$0xff]  }
 0x513   :  { %12804 = vmatpush1.bf16.msra.mxu1 %v16831_v25  ;;  %v16896_v25 = vld [vmem:[%s23583_s5 + $0xf94] ss:$28 sps:$4 sm:$0xff]  }
 0x514   :  { %13148 = vmatpush1.bf16.msra.mxu0 %v16834_v33  ;;  %12805 = vmatprep.subr.bf16.mxu1 %v16839_v18  ;;  %v16899_v33 = vld [vmem:[%s23583_s5 + $0xfc4] ss:$28 sps:$4 sm:$0xff]  }
 0x515   :  { %13149 = vmatprep.subr.bf16.mxu0 %v16842_v37  ;;  %v16897_v18 = vld [vmem:[%s23583_s5 + $0xfc0] ss:$28 sps:$4 sm:$0xff]   ;;  %v16900_v37 = vld [vmem:[%s23583_s5 + $0xfc8] ss:$28 sps:$4 sm:$0xff]  }
 0x517   :  { %12806 = vmatpush1.bf16.msra.mxu1 %v16837_v36  ;;  %v16902_v36 = vld [vmem:[%s23583_s5 + $0xfcc] ss:$28 sps:$4 sm:$0xff]  }
 0x518   :  { %13150 = vmatpush1.bf16.msra.mxu0 %v16840_v21  ;;  %12807 = vmatprep.subr.bf16.mxu1 %v16845_v38  ;;  %v16905_v21 = vld [vmem:[%s23583_s5 + $0xffc] ss:$28 sps:$4 sm:$0xff]  }
 0x519   :  { %13151 = vmatprep.subr.bf16.mxu0 %v16848_v40  ;;  %v16903_v38 = vld [vmem:[%s23583_s5 + $0xff8] ss:$28 sps:$4 sm:$0xff]   ;;  %v16906_v40 = vld [vmem:[%s23583_s5 + $0x1000] ss:$28 sps:$4 sm:$0xff]  }
 0x51b   :  { %12808 = vmatpush1.bf16.msra.mxu1 %v16843_v39  ;;  %v16908_v39 = vld [vmem:[%s23583_s5 + $0x1004] ss:$28 sps:$4 sm:$0xff]  }
 0x51c   :  { %13152 = vmatpush1.bf16.msra.mxu0 %v16846_v41  ;;  %12820 = vmatprep.subr.bf16.mxu1 %v16851_v42  ;;  %v16911_v41 = vld [vmem:[%s23583_s5 + $0x1034] ss:$28 sps:$4 sm:$0xff]  }
 0x51d   :  { %13164 = vmatprep.subr.bf16.mxu0 %v16854_v43  ;;  %v16909_v42 = vld [vmem:[%s23583_s5 + $0x1030] ss:$28 sps:$4 sm:$0xff]   ;;  %v16912_v43 = vld [vmem:[%s23583_s5 + $0x1038] ss:$28 sps:$4 sm:$0xff]  }
 0x51e   :  { %12810 = vmatmul.mubr.bf16.vlgmr.msra.gmra.mrb[20].mxu1 %v20250_v1 }
 0x51f   :  { %13154 = vmatmul.mubr.bf16.vlgmr.msra.gmra.mrb[28].mxu0 %v20250_v1  ;;  %12821 = vmatpush1.bf16.msra.mxu1 %v16849_v59  ;;  %v16914_v59 = vld [vmem:[%s23583_s5 + $0x103c] ss:$28 sps:$4 sm:$0xff]  }
 0x520   :  { %12852 = vmatprep.mubr.bf16.mxu1 %v20846_v48  ;;  %13165 = vmatpush1.bf16.msra.mxu0 %v16852_v45  ;;  %v16917_v45 = vld [vmem:[%s23583_s5 + $0x106c] ss:$28 sps:$4 sm:$0xff]  }
 0x521   :  { %13196 = vmatprep.mubr.bf16.mxu0 %v20846_v48  ;;  %12822 = vmatprep.subr.bf16.mxu1 %v16857_v56  ;;  %v16915_v56 = vld [vmem:[%s23583_s5 + $0x1068] ss:$28 sps:$4 sm:$0xff]  }
 0x522   :  { %13166 = vmatprep.subr.bf16.mxu0 %v16860_v51  ;;  %v16923_v51 = vld [vmem:[%s23583_s5 + $0x10a4] ss:$28 sps:$4 sm:$0xff]  }
 0x523   :  { %12823 = vmatpush1.bf16.msra.mxu1 %v16855_v46  ;;  %v16920_v46 = vld [vmem:[%s23583_s5 + $0x1074] ss:$28 sps:$4 sm:$0xff]  }
 0x524   :  { %13167 = vmatpush1.bf16.msra.mxu0 %v16858_v49  ;;  %12824 = vmatprep.subr.bf16.mxu1 %v16863_v57  ;;  %v16918_v49 = vld [vmem:[%s23583_s5 + $0x1070] ss:$28 sps:$4 sm:$0xff]   ;;  %v16921_v57 = vld [vmem:[%s23583_s5 + $0x10a0] ss:$28 sps:$4 sm:$0xff]  }
 0x525   :  { %13168 = vmatprep.subr.bf16.mxu0 %v16866_v63  ;;  %v16926_v63 = vld [vmem:[%s23583_s5 + $0x10ac] ss:$28 sps:$4 sm:$0xff]  }
 0x527   :  { %12825 = vmatpush1.bf16.msra.mxu1 %v16861_v4  ;;  %v16924_v4 = vld [vmem:[%s23583_s5 + $0x10a8] ss:$28 sps:$4 sm:$0xff]  }
 0x528   :  { %13169 = vmatpush1.bf16.msra.mxu0 %v16864_v5  ;;  %12826 = vmatprep.subr.bf16.mxu1 %v16869_v7  ;;  %v16929_v5 = vld [vmem:[%s23583_s5 + $0x10dc] ss:$28 sps:$4 sm:$0xff]  }
 0x529   :  { %13170 = vmatprep.subr.bf16.mxu0 %v16872_v10  ;;  %v16927_v7 = vld [vmem:[%s23583_s5 + $0x10d8] ss:$28 sps:$4 sm:$0xff]   ;;  %v16930_v10 = vld [vmem:[%s23583_s5 + $0x10e0] ss:$28 sps:$4 sm:$0xff]  }
 0x52b   :  { %12827 = vmatpush1.bf16.msra.mxu1 %v16867_v8  ;;  %v16932_v8 = vld [vmem:[%s23583_s5 + $0x10e4] ss:$28 sps:$4 sm:$0xff]  }
 0x52c   :  { %13171 = vmatpush1.bf16.msra.mxu0 %v16870_v60  ;;  %12828 = vmatprep.subr.bf16.mxu1 %v16875_v31  ;;  %v16935_v60 = vld [vmem:[%s23583_s5 + $0x1114] ss:$28 sps:$4 sm:$0xff]  }
 0x52d   :  { %13172 = vmatprep.subr.bf16.mxu0 %v16878_v19  ;;  %v16933_v31 = vld [vmem:[%s23583_s5 + $0x1110] ss:$28 sps:$4 sm:$0xff]   ;;  %v16936_v19 = vld [vmem:[%s23583_s5 + $0x1118] ss:$28 sps:$4 sm:$0xff]  }
 0x52f   :  { %12829 = vmatpush1.bf16.msra.mxu1 %v16873_v0  ;;  %v16938_v0 = vld [vmem:[%s23583_s5 + $0x111c] ss:$28 sps:$4 sm:$0xff]  }
 0x530   :  { %13173 = vmatpush1.bf16.msra.mxu0 %v16876_v13  ;;  %12830 = vmatprep.subr.bf16.mxu1 %v16881_v12  ;;  %v16941_v13 = vld [vmem:[%s23583_s5 + $0x114c] ss:$28 sps:$4 sm:$0xff]  }
 0x531   :  { %13174 = vmatprep.subr.bf16.mxu0 %v16884_v11  ;;  %v16939_v12 = vld [vmem:[%s23583_s5 + $0x1148] ss:$28 sps:$4 sm:$0xff]   ;;  %v16942_v11 = vld [vmem:[%s23583_s5 + $0x1150] ss:$28 sps:$4 sm:$0xff]  }
 0x533   :  { %12831 = vmatpush1.bf16.msra.mxu1 %v16879_v26  ;;  %v16944_v26 = vld [vmem:[%s23583_s5 + $0x1154] ss:$28 sps:$4 sm:$0xff]  }
 0x534   :  { %13175 = vmatpush1.bf16.msra.mxu0 %v16882_v16  ;;  %12832 = vmatprep.subr.bf16.mxu1 %v16887_v17  ;;  %v16947_v16 = vld [vmem:[%s23583_s5 + $0x1184] ss:$28 sps:$4 sm:$0xff]  }
 0x535   :  { %13176 = vmatprep.subr.bf16.mxu0 %v16890_v55  ;;  %v16945_v17 = vld [vmem:[%s23583_s5 + $0x1180] ss:$28 sps:$4 sm:$0xff]   ;;  %v16948_v55 = vld [vmem:[%s23583_s5 + $0x1188] ss:$28 sps:$4 sm:$0xff]  }
 0x537   :  { %12833 = vmatpush1.bf16.msra.mxu1 %v16885_v22  ;;  %v16950_v22 = vld [vmem:[%s23583_s5 + $0x118c] ss:$28 sps:$4 sm:$0xff]  }
 0x538   :  { %13177 = vmatpush1.bf16.msra.mxu0 %v16888_v44  ;;  %12834 = vmatprep.subr.bf16.mxu1 %v16893_v24  ;;  %v16953_v44 = vld [vmem:[%s23583_s5 + $0x11bc] ss:$28 sps:$4 sm:$0xff]  }
 0x539   :  { %13178 = vmatprep.subr.bf16.mxu0 %v16896_v25  ;;  %v16951_v24 = vld [vmem:[%s23583_s5 + $0x11b8] ss:$28 sps:$4 sm:$0xff]   ;;  %v16956_v25 = vld [vmem:[%s23583_s5 + $0x11c4] ss:$28 sps:$4 sm:$0xff]  }
 0x53b   :  { %12835 = vmatpush1.bf16.msra.mxu1 %v16891_v35  ;;  %v16954_v35 = vld [vmem:[%s23583_s5 + $0x11c0] ss:$28 sps:$4 sm:$0xff]  }
 0x53c   :  { %13179 = vmatpush1.bf16.msra.mxu0 %v16894_v14  ;;  %12836 = vmatprep.subr.bf16.mxu1 %v16899_v33  ;;  %v16959_v14 = vld [vmem:[%s23583_s5 + $0x11f4] ss:$28 sps:$4 sm:$0xff]   ;;  %v16962_v33 = vld [vmem:[%s23583_s5 + $0x11fc] ss:$28 sps:$4 sm:$0xff]  }
 0x53d   :  { %13180 = vmatprep.subr.bf16.mxu0 %v16902_v36  ;;  %v16960_v36 = vld [vmem:[%s23583_s5 + $0x11f8] ss:$28 sps:$4 sm:$0xff]  }
 0x53f   :  { %12837 = vmatpush1.bf16.msra.mxu1 %v16897_v18  ;;  %v16957_v18 = vld [vmem:[%s23583_s5 + $0x11f0] ss:$28 sps:$4 sm:$0xff]  }
 0x540   :  { %13181 = vmatpush1.bf16.msra.mxu0 %v16900_v37  ;;  %12838 = vmatprep.subr.bf16.mxu1 %v16905_v21  ;;  %v16965_v37 = vld [vmem:[%s23583_s5 + $0x122c] ss:$28 sps:$4 sm:$0xff]  }
 0x541   :  { %13182 = vmatprep.subr.bf16.mxu0 %v16908_v39  ;;  %v16963_v21 = vld [vmem:[%s23583_s5 + $0x1228] ss:$28 sps:$4 sm:$0xff]   ;;  %v16966_v39 = vld [vmem:[%s23583_s5 + $0x1230] ss:$28 sps:$4 sm:$0xff]  }
 0x543   :  { %12839 = vmatpush1.bf16.msra.mxu1 %v16903_v38  ;;  %v16968_v38 = vld [vmem:[%s23583_s5 + $0x1234] ss:$28 sps:$4 sm:$0xff]  }
 0x544   :  { %13183 = vmatpush1.bf16.msra.mxu0 %v16906_v40  ;;  %12840 = vmatprep.subr.bf16.mxu1 %v16911_v41  ;;  %v16971_v40 = vld [vmem:[%s23583_s5 + $0x1264] ss:$28 sps:$4 sm:$0xff]  }
 0x545   :  { %13184 = vmatprep.subr.bf16.mxu0 %v16914_v59  ;;  %v16969_v41 = vld [vmem:[%s23583_s5 + $0x1260] ss:$28 sps:$4 sm:$0xff]   ;;  %v16972_v59 = vld [vmem:[%s23583_s5 + $0x1268] ss:$28 sps:$4 sm:$0xff]  }
 0x547   :  { %12841 = vmatpush1.bf16.msra.mxu1 %v16909_v42  ;;  %v16974_v42 = vld [vmem:[%s23583_s5 + $0x126c] ss:$28 sps:$4 sm:$0xff]  }
 0x548   :  { %13185 = vmatpush1.bf16.msra.mxu0 %v16912_v43  ;;  %12842 = vmatprep.subr.bf16.mxu1 %v16917_v45  ;;  %v16977_v43 = vld [vmem:[%s23583_s5 + $0x129c] ss:$28 sps:$4 sm:$0xff]  }
 0x549   :  { %13186 = vmatprep.subr.bf16.mxu0 %v16920_v46  ;;  %v16975_v45 = vld [vmem:[%s23583_s5 + $0x1298] ss:$28 sps:$4 sm:$0xff]   ;;  %v16978_v46 = vld [vmem:[%s23583_s5 + $0x12a0] ss:$28 sps:$4 sm:$0xff]  }
 0x54b   :  { %12843 = vmatpush1.bf16.msra.mxu1 %v16915_v56  ;;  %v16980_v56 = vld [vmem:[%s23583_s5 + $0x12a4] ss:$28 sps:$4 sm:$0xff]  }
 0x54c   :  { %13187 = vmatpush1.bf16.msra.mxu0 %v16918_v49  ;;  %12844 = vmatprep.subr.bf16.mxu1 %v16923_v51  ;;  %v16983_v49 = vld [vmem:[%s23583_s5 + $0x12d4] ss:$28 sps:$4 sm:$0xff]  }
 0x54d   :  { %13188 = vmatprep.subr.bf16.mxu0 %v16926_v63  ;;  %v16981_v51 = vld [vmem:[%s23583_s5 + $0x12d0] ss:$28 sps:$4 sm:$0xff]   ;;  %v16984_v63 = vld [vmem:[%s23583_s5 + $0x12d8] ss:$28 sps:$4 sm:$0xff]  }
 0x54f   :  { %12845 = vmatpush1.bf16.msra.mxu1 %v16921_v57  ;;  %v16986_v57 = vld [vmem:[%s23583_s5 + $0x12dc] ss:$28 sps:$4 sm:$0xff]  }
 0x550   :  { %13189 = vmatpush1.bf16.msra.mxu0 %v16924_v4  ;;  %12846 = vmatprep.subr.bf16.mxu1 %v16929_v5  ;;  %v16989_v4 = vld [vmem:[%s23583_s5 + $0x130c] ss:$28 sps:$4 sm:$0xff]  }
 0x551   :  { %13190 = vmatprep.subr.bf16.mxu0 %v16932_v8  ;;  %v16987_v5 = vld [vmem:[%s23583_s5 + $0x1308] ss:$28 sps:$4 sm:$0xff]   ;;  %v16990_v8 = vld [vmem:[%s23583_s5 + $0x1310] ss:$28 sps:$4 sm:$0xff]  }
 0x553   :  { %12847 = vmatpush1.bf16.msra.mxu1 %v16927_v7  ;;  %v16992_v7 = vld [vmem:[%s23583_s5 + $0x1314] ss:$28 sps:$4 sm:$0xff]  }
 0x554   :  { %13191 = vmatpush1.bf16.msra.mxu0 %v16930_v10  ;;  %12848 = vmatprep.subr.bf16.mxu1 %v16935_v60  ;;  %v16995_v10 = vld [vmem:[%s23583_s5 + $0x1344] ss:$28 sps:$4 sm:$0xff]  }
 0x555   :  { %13192 = vmatprep.subr.bf16.mxu0 %v16938_v0  ;;  %v16993_v60 = vld [vmem:[%s23583_s5 + $0x1340] ss:$28 sps:$4 sm:$0xff]   ;;  %v16996_v0 = vld [vmem:[%s23583_s5 + $0x1348] ss:$28 sps:$4 sm:$0xff]  }
 0x557   :  { %12849 = vmatpush1.bf16.msra.mxu1 %v16933_v31  ;;  %v16998_v31 = vld [vmem:[%s23583_s5 + $0x134c] ss:$28 sps:$4 sm:$0xff]  }
 0x558   :  { %13193 = vmatpush1.bf16.msra.mxu0 %v16936_v19  ;;  %12850 = vmatprep.subr.bf16.mxu1 %v16941_v13  ;;  %v17001_v19 = vld [vmem:[%s23583_s5 + $0x137c] ss:$28 sps:$4 sm:$0xff]  }
 0x559   :  { %13194 = vmatprep.subr.bf16.mxu0 %v16944_v26  ;;  %v16999_v13 = vld [vmem:[%s23583_s5 + $0x1378] ss:$28 sps:$4 sm:$0xff]   ;;  %v17002_v26 = vld [vmem:[%s23583_s5 + $0x1380] ss:$28 sps:$4 sm:$0xff]  }
 0x55b   :  { %12851 = vmatpush1.bf16.msra.mxu1 %v16939_v12  ;;  %v17004_v12 = vld [vmem:[%s23583_s5 + $0x1384] ss:$28 sps:$4 sm:$0xff]  }
 0x55c   :  { %13195 = vmatpush1.bf16.msra.mxu0 %v16942_v11  ;;  %12863 = vmatprep.subr.bf16.mxu1 %v16947_v16  ;;  %v17007_v11 = vld [vmem:[%s23583_s5 + $0x13b4] ss:$28 sps:$4 sm:$0xff]  }
 0x55d   :  { %13207 = vmatprep.subr.bf16.mxu0 %v16950_v22  ;;  %v17005_v16 = vld [vmem:[%s23583_s5 + $0x13b0] ss:$28 sps:$4 sm:$0xff]   ;;  %v17008_v22 = vld [vmem:[%s23583_s5 + $0x13b8] ss:$28 sps:$4 sm:$0xff]  }
 0x55e   :  { %12853 = vmatmul.mubr.bf16.vlgmr.msra.gmra.mrb[20].mxu1 %v20839_v61 }
 0x55f   :  { %13197 = vmatmul.mubr.bf16.vlgmr.msra.gmra.mrb[28].mxu0 %v20839_v61  ;;  %12864 = vmatpush1.bf16.msra.mxu1 %v16945_v17  ;;  %v17010_v17 = vld [vmem:[%s23583_s5 + $0x13bc] ss:$28 sps:$4 sm:$0xff]  }
 0x560   :  { %12895 = vmatprep.mubr.bf16.mxu1 %v20854_v52  ;;  %13208 = vmatpush1.bf16.msra.mxu0 %v16948_v55  ;;  %v17013_v55 = vld [vmem:[%s23583_s5 + $0x13ec] ss:$28 sps:$4 sm:$0xff]  }
 0x561   :  { %13239 = vmatprep.mubr.bf16.mxu0 %v20854_v52  ;;  %12865 = vmatprep.subr.bf16.mxu1 %v16953_v44  ;;  %v17011_v44 = vld [vmem:[%s23583_s5 + $0x13e8] ss:$28 sps:$4 sm:$0xff]  }
 0x562   :  { %13209 = vmatprep.subr.bf16.mxu0 %v16956_v25  ;;  %v17019_v25 = vld [vmem:[%s23583_s5 + $0x1424] ss:$28 sps:$4 sm:$0xff]  }
 0x563   :  { %12866 = vmatpush1.bf16.msra.mxu1 %v16951_v24  ;;  %v17016_v24 = vld [vmem:[%s23583_s5 + $0x13f4] ss:$28 sps:$4 sm:$0xff]  }
 0x564   :  { %13210 = vmatpush1.bf16.msra.mxu0 %v16954_v35  ;;  %12867 = vmatprep.subr.bf16.mxu1 %v16959_v14  ;;  %v17014_v35 = vld [vmem:[%s23583_s5 + $0x13f0] ss:$28 sps:$4 sm:$0xff]   ;;  %v17017_v14 = vld [vmem:[%s23583_s5 + $0x1420] ss:$28 sps:$4 sm:$0xff]  }
 0x565   :  { %13211 = vmatprep.subr.bf16.mxu0 %v16962_v33  ;;  %v17022_v33 = vld [vmem:[%s23583_s5 + $0x142c] ss:$28 sps:$4 sm:$0xff]  }
 0x567   :  { %12868 = vmatpush1.bf16.msra.mxu1 %v16957_v18  ;;  %v17020_v18 = vld [vmem:[%s23583_s5 + $0x1428] ss:$28 sps:$4 sm:$0xff]  }
 0x568   :  { %13212 = vmatpush1.bf16.msra.mxu0 %v16960_v36  ;;  %12869 = vmatprep.subr.bf16.mxu1 %v16965_v37  ;;  %v17025_v36 = vld [vmem:[%s23583_s5 + $0x145c] ss:$28 sps:$4 sm:$0xff]  }
 0x569   :  { %13213 = vmatprep.subr.bf16.mxu0 %v16968_v38  ;;  %v17023_v37 = vld [vmem:[%s23583_s5 + $0x1458] ss:$28 sps:$4 sm:$0xff]   ;;  %v17026_v38 = vld [vmem:[%s23583_s5 + $0x1460] ss:$28 sps:$4 sm:$0xff]  }
 0x56b   :  { %12870 = vmatpush1.bf16.msra.mxu1 %v16963_v21  ;;  %v17028_v21 = vld [vmem:[%s23583_s5 + $0x1464] ss:$28 sps:$4 sm:$0xff]  }
 0x56c   :  { %13214 = vmatpush1.bf16.msra.mxu0 %v16966_v39  ;;  %12871 = vmatprep.subr.bf16.mxu1 %v16971_v40  ;;  %v17031_v39 = vld [vmem:[%s23583_s5 + $0x1494] ss:$28 sps:$4 sm:$0xff]  }
 0x56d   :  { %13215 = vmatprep.subr.bf16.mxu0 %v16974_v42  ;;  %v17029_v40 = vld [vmem:[%s23583_s5 + $0x1490] ss:$28 sps:$4 sm:$0xff]   ;;  %v17032_v42 = vld [vmem:[%s23583_s5 + $0x1498] ss:$28 sps:$4 sm:$0xff]  }
 0x56f   :  { %12872 = vmatpush1.bf16.msra.mxu1 %v16969_v41  ;;  %v17034_v41 = vld [vmem:[%s23583_s5 + $0x149c] ss:$28 sps:$4 sm:$0xff]  }
 0x570   :  { %13216 = vmatpush1.bf16.msra.mxu0 %v16972_v59  ;;  %12873 = vmatprep.subr.bf16.mxu1 %v16977_v43  ;;  %v17037_v59 = vld [vmem:[%s23583_s5 + $0x14cc] ss:$28 sps:$4 sm:$0xff]  }
 0x571   :  { %13217 = vmatprep.subr.bf16.mxu0 %v16980_v56  ;;  %v17035_v43 = vld [vmem:[%s23583_s5 + $0x14c8] ss:$28 sps:$4 sm:$0xff]   ;;  %v17038_v56 = vld [vmem:[%s23583_s5 + $0x14d0] ss:$28 sps:$4 sm:$0xff]  }
 0x573   :  { %12874 = vmatpush1.bf16.msra.mxu1 %v16975_v45  ;;  %v17040_v45 = vld [vmem:[%s23583_s5 + $0x14d4] ss:$28 sps:$4 sm:$0xff]  }
 0x574   :  { %13218 = vmatpush1.bf16.msra.mxu0 %v16978_v46  ;;  %12875 = vmatprep.subr.bf16.mxu1 %v16983_v49  ;;  %v17043_v46 = vld [vmem:[%s23583_s5 + $0x1504] ss:$28 sps:$4 sm:$0xff]  }
 0x575   :  { %13219 = vmatprep.subr.bf16.mxu0 %v16986_v57  ;;  %v17041_v49 = vld [vmem:[%s23583_s5 + $0x1500] ss:$28 sps:$4 sm:$0xff]   ;;  %v17044_v57 = vld [vmem:[%s23583_s5 + $0x1508] ss:$28 sps:$4 sm:$0xff]  }
 0x577   :  { %12876 = vmatpush1.bf16.msra.mxu1 %v16981_v51  ;;  %v17046_v51 = vld [vmem:[%s23583_s5 + $0x150c] ss:$28 sps:$4 sm:$0xff]  }
 0x578   :  { %13220 = vmatpush1.bf16.msra.mxu0 %v16984_v63  ;;  %12877 = vmatprep.subr.bf16.mxu1 %v16989_v4  ;;  %v17049_v63 = vld [vmem:[%s23583_s5 + $0x153c] ss:$28 sps:$4 sm:$0xff]  }
 0x579   :  { %13221 = vmatprep.subr.bf16.mxu0 %v16992_v7  ;;  %v17047_v4 = vld [vmem:[%s23583_s5 + $0x1538] ss:$28 sps:$4 sm:$0xff]   ;;  %v17050_v7 = vld [vmem:[%s23583_s5 + $0x1540] ss:$28 sps:$4 sm:$0xff]  }
 0x57b   :  { %12878 = vmatpush1.bf16.msra.mxu1 %v16987_v5  ;;  %v17052_v5 = vld [vmem:[%s23583_s5 + $0x1544] ss:$28 sps:$4 sm:$0xff]  }
 0x57c   :  { %13222 = vmatpush1.bf16.msra.mxu0 %v16990_v8  ;;  %12879 = vmatprep.subr.bf16.mxu1 %v16995_v10  ;;  %v17055_v8 = vld [vmem:[%s23583_s5 + $0x1574] ss:$28 sps:$4 sm:$0xff]   ;;  %v17058_v10 = vld [vmem:[%s23583_s5 + $0x157c] ss:$28 sps:$4 sm:$0xff]  }
 0x57d   :  { %13223 = vmatprep.subr.bf16.mxu0 %v16998_v31  ;;  %v17056_v31 = vld [vmem:[%s23583_s5 + $0x1578] ss:$28 sps:$4 sm:$0xff]  }
 0x57f   :  { %12880 = vmatpush1.bf16.msra.mxu1 %v16993_v60  ;;  %v17053_v60 = vld [vmem:[%s23583_s5 + $0x1570] ss:$28 sps:$4 sm:$0xff]  }
 0x580   :  { %13224 = vmatpush1.bf16.msra.mxu0 %v16996_v0  ;;  %12881 = vmatprep.subr.bf16.mxu1 %v17001_v19  ;;  %v17061_v0 = vld [vmem:[%s23583_s5 + $0x15ac] ss:$28 sps:$4 sm:$0xff]   ;;  %v17064_v19 = vld [vmem:[%s23583_s5 + $0x15b4] ss:$28 sps:$4 sm:$0xff]  }
 0x581   :  { %13225 = vmatprep.subr.bf16.mxu0 %v17004_v12  ;;  %v17062_v12 = vld [vmem:[%s23583_s5 + $0x15b0] ss:$28 sps:$4 sm:$0xff]  }
 0x583   :  { %12882 = vmatpush1.bf16.msra.mxu1 %v16999_v13  ;;  %v17059_v13 = vld [vmem:[%s23583_s5 + $0x15a8] ss:$28 sps:$4 sm:$0xff]  }
 0x584   :  { %13226 = vmatpush1.bf16.msra.mxu0 %v17002_v26  ;;  %12883 = vmatprep.subr.bf16.mxu1 %v17007_v11  ;;  %v17067_v26 = vld [vmem:[%s23583_s5 + $0x15e4] ss:$28 sps:$4 sm:$0xff]   ;;  %v17070_v11 = vld [vmem:[%s23583_s5 + $0x15ec] ss:$28 sps:$4 sm:$0xff]  }
 0x585   :  { %13227 = vmatprep.subr.bf16.mxu0 %v17010_v17  ;;  %v17068_v17 = vld [vmem:[%s23583_s5 + $0x15e8] ss:$28 sps:$4 sm:$0xff]  }
 0x587   :  { %12884 = vmatpush1.bf16.msra.mxu1 %v17005_v16  ;;  %v17065_v16 = vld [vmem:[%s23583_s5 + $0x15e0] ss:$28 sps:$4 sm:$0xff]  }
 0x588   :  { %13228 = vmatpush1.bf16.msra.mxu0 %v17008_v22  ;;  %12885 = vmatprep.subr.bf16.mxu1 %v17013_v55  ;;  %v17073_v22 = vld [vmem:[%s23583_s5 + $0x161c] ss:$28 sps:$4 sm:$0xff]   ;;  %v17076_v55 = vld [vmem:[%s23583_s5 + $0x1624] ss:$28 sps:$4 sm:$0xff]  }
 0x589   :  { %13229 = vmatprep.subr.bf16.mxu0 %v17016_v24  ;;  %v17074_v24 = vld [vmem:[%s23583_s5 + $0x1620] ss:$28 sps:$4 sm:$0xff]  }
 0x58b   :  { %12886 = vmatpush1.bf16.msra.mxu1 %v17011_v44  ;;  %v17071_v44 = vld [vmem:[%s23583_s5 + $0x1618] ss:$28 sps:$4 sm:$0xff]  }
 0x58c   :  { %13230 = vmatpush1.bf16.msra.mxu0 %v17014_v35  ;;  %12887 = vmatprep.subr.bf16.mxu1 %v17019_v25  ;;  %v17079_v35 = vld [vmem:[%s23583_s5 + $0x1654] ss:$28 sps:$4 sm:$0xff]   ;;  %v17082_v25 = vld [vmem:[%s23583_s5 + $0x165c] ss:$28 sps:$4 sm:$0xff]  }
 0x58d   :  { %13231 = vmatprep.subr.bf16.mxu0 %v17022_v33  ;;  %v17080_v33 = vld [vmem:[%s23583_s5 + $0x1658] ss:$28 sps:$4 sm:$0xff]  }
 0x58f   :  { %12888 = vmatpush1.bf16.msra.mxu1 %v17017_v14  ;;  %v17077_v14 = vld [vmem:[%s23583_s5 + $0x1650] ss:$28 sps:$4 sm:$0xff]  }
 0x590   :  { %13232 = vmatpush1.bf16.msra.mxu0 %v17020_v18  ;;  %12889 = vmatprep.subr.bf16.mxu1 %v17025_v36  ;;  %v17085_v18 = vld [vmem:[%s23583_s5 + $0x168c] ss:$28 sps:$4 sm:$0xff]   ;;  %v17088_v36 = vld [vmem:[%s23583_s5 + $0x1694] ss:$28 sps:$4 sm:$0xff]  }
 0x591   :  { %13233 = vmatprep.subr.bf16.mxu0 %v17028_v21  ;;  %v17086_v21 = vld [vmem:[%s23583_s5 + $0x1690] ss:$28 sps:$4 sm:$0xff]  }
 0x593   :  { %12890 = vmatpush1.bf16.msra.mxu1 %v17023_v37  ;;  %v17083_v37 = vld [vmem:[%s23583_s5 + $0x1688] ss:$28 sps:$4 sm:$0xff]  }
 0x594   :  { %13234 = vmatpush1.bf16.msra.mxu0 %v17026_v38  ;;  %12891 = vmatprep.subr.bf16.mxu1 %v17031_v39  ;;  %v17091_v38 = vld [vmem:[%s23583_s5 + $0x16c4] ss:$28 sps:$4 sm:$0xff]   ;;  %v17094_v39 = vld [vmem:[%s23583_s5 + $0x16cc] ss:$28 sps:$4 sm:$0xff]  }
 0x595   :  { %13235 = vmatprep.subr.bf16.mxu0 %v17034_v41  ;;  %v17092_v41 = vld [vmem:[%s23583_s5 + $0x16c8] ss:$28 sps:$4 sm:$0xff]  }
 0x597   :  { %12892 = vmatpush1.bf16.msra.mxu1 %v17029_v40  ;;  %v17089_v40 = vld [vmem:[%s23583_s5 + $0x16c0] ss:$28 sps:$4 sm:$0xff]  }
 0x598   :  { %13236 = vmatpush1.bf16.msra.mxu0 %v17032_v42  ;;  %12893 = vmatprep.subr.bf16.mxu1 %v17037_v59  ;;  %v17097_v42 = vld [vmem:[%s23583_s5 + $0x16fc] ss:$28 sps:$4 sm:$0xff]   ;;  %v17100_v59 = vld [vmem:[%s23583_s5 + $0x1704] ss:$28 sps:$4 sm:$0xff]  }
 0x599   :  { %13237 = vmatprep.subr.bf16.mxu0 %v17040_v45  ;;  %v17098_v45 = vld [vmem:[%s23583_s5 + $0x1700] ss:$28 sps:$4 sm:$0xff]  }
 0x59b   :  { %12894 = vmatpush1.bf16.msra.mxu1 %v17035_v43  ;;  %v17095_v43 = vld [vmem:[%s23583_s5 + $0x16f8] ss:$28 sps:$4 sm:$0xff]  }
 0x59c   :  { %13238 = vmatpush1.bf16.msra.mxu0 %v17038_v56  ;;  %12906 = vmatprep.subr.bf16.mxu1 %v17043_v46  ;;  %v17103_v56 = vld [vmem:[%s23583_s5 + $0x1734] ss:$28 sps:$4 sm:$0xff]   ;;  %v17106_v46 = vld [vmem:[%s23583_s5 + $0x173c] ss:$28 sps:$4 sm:$0xff]  }
 0x59d   :  { %13250 = vmatprep.subr.bf16.mxu0 %v17046_v51  ;;  %v17104_v51 = vld [vmem:[%s23583_s5 + $0x1738] ss:$28 sps:$4 sm:$0xff]  }
 0x59e   :  { %12896 = vmatmul.mubr.bf16.vlgmr.msra.gmra.mrb[20].mxu1 %v20844_v47 }
 0x59f   :  { %13240 = vmatmul.mubr.bf16.vlgmr.msra.gmra.mrb[28].mxu0 %v20844_v47  ;;  %12907 = vmatpush1.bf16.msra.mxu1 %v17041_v49  ;;  %v17101_v49 = vld [vmem:[%s23583_s5 + $0x1730] ss:$28 sps:$4 sm:$0xff]  }
 0x5a0   :  { %12938 = vmatprep.mubr.bf16.mxu1 %v21450_v3  ;;  %13251 = vmatpush1.bf16.msra.mxu0 %v17044_v57  ;;  %v17109_v57 = vld [vmem:[%s23583_s5 + $0x176c] ss:$28 sps:$4 sm:$0xff]  }
 0x5a1   :  { %13282 = vmatprep.mubr.bf16.mxu0 %v21450_v3  ;;  %12908 = vmatprep.subr.bf16.mxu1 %v17049_v63  ;;  %v17112_v63 = vld [vmem:[%s23583_s5 + $0x1774] ss:$28 sps:$4 sm:$0xff]  }
 0x5a2   :  { %13252 = vmatprep.subr.bf16.mxu0 %v17052_v5  ;;  %v17110_v5 = vld [vmem:[%s23583_s5 + $0x1770] ss:$28 sps:$4 sm:$0xff]  }
 0x5a3   :  { %12909 = vmatpush1.bf16.msra.mxu1 %v17047_v4  ;;  %v17107_v4 = vld [vmem:[%s23583_s5 + $0x1768] ss:$28 sps:$4 sm:$0xff]  }
 0x5a4   :  { %13253 = vmatpush1.bf16.msra.mxu0 %v17050_v7  ;;  %12910 = vmatprep.subr.bf16.mxu1 %v17055_v8  ;;  %v17115_v7 = vld [vmem:[%s23583_s5 + $0x17a4] ss:$28 sps:$4 sm:$0xff]   ;;  %v17118_v8 = vld [vmem:[%s23583_s5 + $0x17ac] ss:$28 sps:$4 sm:$0xff]  }
 0x5a5   :  { %13254 = vmatprep.subr.bf16.mxu0 %v17058_v10  ;;  %v17113_v10 = vld [vmem:[%s23583_s5 + $0x17a0] ss:$28 sps:$4 sm:$0xff]  }
 0x5a7   :  { %12911 = vmatpush1.bf16.msra.mxu1 %v17053_v60  ;;  %v17116_v60 = vld [vmem:[%s23583_s5 + $0x17a8] ss:$28 sps:$4 sm:$0xff]  }
 0x5a8   :  { %13255 = vmatpush1.bf16.msra.mxu0 %v17056_v31  ;;  %12912 = vmatprep.subr.bf16.mxu1 %v17061_v0  ;;  %v17121_v31 = vld [vmem:[%s23583_s5 + $0x17dc] ss:$28 sps:$4 sm:$0xff]   ;;  %v17124_v0 = vld [vmem:[%s23583_s5 + $0x17e4] ss:$28 sps:$4 sm:$0xff]  }
 0x5a9   :  { %13256 = vmatprep.subr.bf16.mxu0 %v17064_v19  ;;  %v17119_v19 = vld [vmem:[%s23583_s5 + $0x17d8] ss:$28 sps:$4 sm:$0xff]  }
 0x5ab   :  { %12913 = vmatpush1.bf16.msra.mxu1 %v17059_v13  ;;  %v17122_v13 = vld [vmem:[%s23583_s5 + $0x17e0] ss:$28 sps:$4 sm:$0xff]  }
 0x5ac   :  { %13257 = vmatpush1.bf16.msra.mxu0 %v17062_v12  ;;  %12914 = vmatprep.subr.bf16.mxu1 %v17067_v26  ;;  %v17127_v12 = vld [vmem:[%s23583_s5 + $0x1814] ss:$28 sps:$4 sm:$0xff]   ;;  %v17130_v26 = vld [vmem:[%s23583_s5 + $0x181c] ss:$28 sps:$4 sm:$0xff]  }
 0x5ad   :  { %13258 = vmatprep.subr.bf16.mxu0 %v17070_v11  ;;  %v17125_v11 = vld [vmem:[%s23583_s5 + $0x1810] ss:$28 sps:$4 sm:$0xff]  }
 0x5af   :  { %12915 = vmatpush1.bf16.msra.mxu1 %v17065_v16  ;;  %v17128_v16 = vld [vmem:[%s23583_s5 + $0x1818] ss:$28 sps:$4 sm:$0xff]  }
 0x5b0   :  { %13259 = vmatpush1.bf16.msra.mxu0 %v17068_v17  ;;  %12916 = vmatprep.subr.bf16.mxu1 %v17073_v22  ;;  %v17133_v17 = vld [vmem:[%s23583_s5 + $0x184c] ss:$28 sps:$4 sm:$0xff]   ;;  %v17136_v22 = vld [vmem:[%s23583_s5 + $0x1854] ss:$28 sps:$4 sm:$0xff]  }
 0x5b1   :  { %13260 = vmatprep.subr.bf16.mxu0 %v17076_v55  ;;  %v17131_v55 = vld [vmem:[%s23583_s5 + $0x1848] ss:$28 sps:$4 sm:$0xff]  }
 0x5b3   :  { %12917 = vmatpush1.bf16.msra.mxu1 %v17071_v44  ;;  %v17134_v44 = vld [vmem:[%s23583_s5 + $0x1850] ss:$28 sps:$4 sm:$0xff]  }
 0x5b4   :  { %13261 = vmatpush1.bf16.msra.mxu0 %v17074_v24  ;;  %12918 = vmatprep.subr.bf16.mxu1 %v17079_v35  ;;  %v17139_v24 = vld [vmem:[%s23583_s5 + $0x1884] ss:$28 sps:$4 sm:$0xff]   ;;  %v17142_v35 = vld [vmem:[%s23583_s5 + $0x188c] ss:$28 sps:$4 sm:$0xff]  }
 0x5b5   :  { %13262 = vmatprep.subr.bf16.mxu0 %v17082_v25  ;;  %v17137_v25 = vld [vmem:[%s23583_s5 + $0x1880] ss:$28 sps:$4 sm:$0xff]  }
 0x5b7   :  { %12919 = vmatpush1.bf16.msra.mxu1 %v17077_v14  ;;  %v17140_v14 = vld [vmem:[%s23583_s5 + $0x1888] ss:$28 sps:$4 sm:$0xff]  }
 0x5b8   :  { %13263 = vmatpush1.bf16.msra.mxu0 %v17080_v33  ;;  %12920 = vmatprep.subr.bf16.mxu1 %v17085_v18  ;;  %v17145_v33 = vld [vmem:[%s23583_s5 + $0x18bc] ss:$28 sps:$4 sm:$0xff]   ;;  %v17148_v18 = vld [vmem:[%s23583_s5 + $0x18c4] ss:$28 sps:$4 sm:$0xff]  }
 0x5b9   :  { %13264 = vmatprep.subr.bf16.mxu0 %v17088_v36  ;;  %v17143_v36 = vld [vmem:[%s23583_s5 + $0x18b8] ss:$28 sps:$4 sm:$0xff]  }
 0x5bb   :  { %12921 = vmatpush1.bf16.msra.mxu1 %v17083_v37  ;;  %v17146_v37 = vld [vmem:[%s23583_s5 + $0x18c0] ss:$28 sps:$4 sm:$0xff]  }
 0x5bc   :  { %13265 = vmatpush1.bf16.msra.mxu0 %v17086_v21  ;;  %12922 = vmatprep.subr.bf16.mxu1 %v17091_v38  ;;  %v17151_v21 = vld [vmem:[%s23583_s5 + $0x18f4] ss:$28 sps:$4 sm:$0xff]   ;;  %v17154_v38 = vld [vmem:[%s23583_s5 + $0x18fc] ss:$28 sps:$4 sm:$0xff]  }
 0x5bd   :  { %13266 = vmatprep.subr.bf16.mxu0 %v17094_v39  ;;  %v17149_v39 = vld [vmem:[%s23583_s5 + $0x18f0] ss:$28 sps:$4 sm:$0xff]  }
 0x5bf   :  { %12923 = vmatpush1.bf16.msra.mxu1 %v17089_v40  ;;  %v17152_v40 = vld [vmem:[%s23583_s5 + $0x18f8] ss:$28 sps:$4 sm:$0xff]  }
 0x5c0   :  { %13267 = vmatpush1.bf16.msra.mxu0 %v17092_v41  ;;  %12924 = vmatprep.subr.bf16.mxu1 %v17097_v42  ;;  %v17157_v41 = vld [vmem:[%s23583_s5 + $0x192c] ss:$28 sps:$4 sm:$0xff]   ;;  %v17160_v42 = vld [vmem:[%s23583_s5 + $0x1934] ss:$28 sps:$4 sm:$0xff]  }
 0x5c1   :  { %13268 = vmatprep.subr.bf16.mxu0 %v17100_v59  ;;  %v17155_v59 = vld [vmem:[%s23583_s5 + $0x1928] ss:$28 sps:$4 sm:$0xff]  }
 0x5c3   :  { %12925 = vmatpush1.bf16.msra.mxu1 %v17095_v43  ;;  %v17158_v43 = vld [vmem:[%s23583_s5 + $0x1930] ss:$28 sps:$4 sm:$0xff]  }
 0x5c4   :  { %13269 = vmatpush1.bf16.msra.mxu0 %v17098_v45  ;;  %12926 = vmatprep.subr.bf16.mxu1 %v17103_v56  ;;  %v17163_v45 = vld [vmem:[%s23583_s5 + $0x1964] ss:$28 sps:$4 sm:$0xff]   ;;  %v17166_v56 = vld [vmem:[%s23583_s5 + $0x196c] ss:$28 sps:$4 sm:$0xff]  }
 0x5c5   :  { %13270 = vmatprep.subr.bf16.mxu0 %v17106_v46  ;;  %v17161_v46 = vld [vmem:[%s23583_s5 + $0x1960] ss:$28 sps:$4 sm:$0xff]  }
 0x5c7   :  { %12927 = vmatpush1.bf16.msra.mxu1 %v17101_v49  ;;  %v17164_v49 = vld [vmem:[%s23583_s5 + $0x1968] ss:$28 sps:$4 sm:$0xff]  }
 0x5c8   :  { %13271 = vmatpush1.bf16.msra.mxu0 %v17104_v51  ;;  %12928 = vmatprep.subr.bf16.mxu1 %v17109_v57  ;;  %v17169_v51 = vld [vmem:[%s23583_s5 + $0x199c] ss:$28 sps:$4 sm:$0xff]   ;;  %v17172_v57 = vld [vmem:[%s23583_s5 + $0x19a4] ss:$28 sps:$4 sm:$0xff]  }
 0x5c9   :  { %13272 = vmatprep.subr.bf16.mxu0 %v17112_v63  ;;  %v17167_v63 = vld [vmem:[%s23583_s5 + $0x1998] ss:$28 sps:$4 sm:$0xff]  }
 0x5cb   :  { %12929 = vmatpush1.bf16.msra.mxu1 %v17107_v4  ;;  %v17170_v4 = vld [vmem:[%s23583_s5 + $0x19a0] ss:$28 sps:$4 sm:$0xff]  }
 0x5cc   :  { %13273 = vmatpush1.bf16.msra.mxu0 %v17110_v5  ;;  %12930 = vmatprep.subr.bf16.mxu1 %v17115_v7  ;;  %v17175_v5 = vld [vmem:[%s23583_s5 + $0x19d4] ss:$28 sps:$4 sm:$0xff]   ;;  %v17178_v7 = vld [vmem:[%s23583_s5 + $0x19dc] ss:$28 sps:$4 sm:$0xff]  }
 0x5cd   :  { %13274 = vmatprep.subr.bf16.mxu0 %v17118_v8  ;;  %v17173_v8 = vld [vmem:[%s23583_s5 + $0x19d0] ss:$28 sps:$4 sm:$0xff]  }
 0x5cf   :  { %12931 = vmatpush1.bf16.msra.mxu1 %v17113_v10  ;;  %v17176_v10 = vld [vmem:[%s23583_s5 + $0x19d8] ss:$28 sps:$4 sm:$0xff]  }
 0x5d0   :  { %13275 = vmatpush1.bf16.msra.mxu0 %v17116_v60  ;;  %12932 = vmatprep.subr.bf16.mxu1 %v17121_v31  ;;  %v17181_v60 = vld [vmem:[%s23583_s5 + $0x1a0c] ss:$28 sps:$4 sm:$0xff]   ;;  %v17184_v31 = vld [vmem:[%s23583_s5 + $0x1a14] ss:$28 sps:$4 sm:$0xff]  }
 0x5d1   :  { %13276 = vmatprep.subr.bf16.mxu0 %v17124_v0  ;;  %v17179_v0 = vld [vmem:[%s23583_s5 + $0x1a08] ss:$28 sps:$4 sm:$0xff]  }
 0x5d3   :  { %12933 = vmatpush1.bf16.msra.mxu1 %v17119_v19  ;;  %v17182_v19 = vld [vmem:[%s23583_s5 + $0x1a10] ss:$28 sps:$4 sm:$0xff]  }
 0x5d4   :  { %13277 = vmatpush1.bf16.msra.mxu0 %v17122_v13  ;;  %12934 = vmatprep.subr.bf16.mxu1 %v17127_v12  ;;  %v17187_v13 = vld [vmem:[%s23583_s5 + $0x1a44] ss:$28 sps:$4 sm:$0xff]   ;;  %v17190_v12 = vld [vmem:[%s23583_s5 + $0x1a4c] ss:$28 sps:$4 sm:$0xff]  }
 0x5d5   :  { %13278 = vmatprep.subr.bf16.mxu0 %v17130_v26  ;;  %v17185_v26 = vld [vmem:[%s23583_s5 + $0x1a40] ss:$28 sps:$4 sm:$0xff]  }
 0x5d7   :  { %12935 = vmatpush1.bf16.msra.mxu1 %v17125_v11  ;;  %v17188_v11 = vld [vmem:[%s23583_s5 + $0x1a48] ss:$28 sps:$4 sm:$0xff]  }
 0x5d8   :  { %13279 = vmatpush1.bf16.msra.mxu0 %v17128_v16  ;;  %12936 = vmatprep.subr.bf16.mxu1 %v17133_v17  ;;  %v17193_v16 = vld [vmem:[%s23583_s5 + $0x1a7c] ss:$28 sps:$4 sm:$0xff]   ;;  %v17196_v17 = vld [vmem:[%s23583_s5 + $0x1a84] ss:$28 sps:$4 sm:$0xff]  }
 0x5d9   :  { %13280 = vmatprep.subr.bf16.mxu0 %v17136_v22  ;;  %v17191_v22 = vld [vmem:[%s23583_s5 + $0x1a78] ss:$28 sps:$4 sm:$0xff]  }
 0x5db   :  { %12937 = vmatpush1.bf16.msra.mxu1 %v17131_v55  ;;  %v17194_v55 = vld [vmem:[%s23583_s5 + $0x1a80] ss:$28 sps:$4 sm:$0xff]  }
 0x5dc   :  { %13281 = vmatpush1.bf16.msra.mxu0 %v17134_v44  ;;  %12949 = vmatprep.subr.bf16.mxu1 %v17139_v24  ;;  %v17199_v44 = vld [vmem:[%s23583_s5 + $0x1ab4] ss:$28 sps:$4 sm:$0xff]   ;;  %v17202_v24 = vld [vmem:[%s23583_s5 + $0x1abc] ss:$28 sps:$4 sm:$0xff]  }
 0x5dd   :  { %13293 = vmatprep.subr.bf16.mxu0 %v17142_v35  ;;  %v17197_v35 = vld [vmem:[%s23583_s5 + $0x1ab0] ss:$28 sps:$4 sm:$0xff]  }
 0x5de   :  { %12939 = vmatmul.mubr.bf16.vlgmr.msra.gmra.mrb[20].mxu1 %v21443_v54 }
 0x5df   :  { %13283 = vmatmul.mubr.bf16.vlgmr.msra.gmra.mrb[28].mxu0 %v21443_v54  ;;  %12950 = vmatpush1.bf16.msra.mxu1 %v17137_v25  ;;  %v17200_v25 = vld [vmem:[%s23583_s5 + $0x1ab8] ss:$28 sps:$4 sm:$0xff]  }
 0x5e0   :  { %12981 = vmatprep.mubr.bf16.mxu1 %v21458_v6  ;;  %13294 = vmatpush1.bf16.msra.mxu0 %v17140_v14  ;;  %v17205_v14 = vld [vmem:[%s23583_s5 + $0x1aec] ss:$28 sps:$4 sm:$0xff]  }
 0x5e1   :  { %13325 = vmatprep.mubr.bf16.mxu0 %v21458_v6  ;;  %12951 = vmatprep.subr.bf16.mxu1 %v17145_v33  ;;  %v17208_v33 = vld [vmem:[%s23583_s5 + $0x1af4] ss:$28 sps:$4 sm:$0xff]  }
 0x5e2   :  { %13295 = vmatprep.subr.bf16.mxu0 %v17148_v18  ;;  %v17203_v18 = vld [vmem:[%s23583_s5 + $0x1ae8] ss:$28 sps:$4 sm:$0xff]  }
 0x5e3   :  { %12952 = vmatpush1.bf16.msra.mxu1 %v17143_v36  ;;  %v17206_v36 = vld [vmem:[%s23583_s5 + $0x1af0] ss:$28 sps:$4 sm:$0xff]  }
 0x5e4   :  { %13296 = vmatpush1.bf16.msra.mxu0 %v17146_v37  ;;  %12953 = vmatprep.subr.bf16.mxu1 %v17151_v21  ;;  %v17211_v37 = vld [vmem:[%s23583_s5 + $0x1b24] ss:$28 sps:$4 sm:$0xff]   ;;  %v17214_v21 = vld [vmem:[%s23583_s5 + $0x1b2c] ss:$28 sps:$4 sm:$0xff]  }
 0x5e5   :  { %13297 = vmatprep.subr.bf16.mxu0 %v17154_v38  ;;  %v17209_v38 = vld [vmem:[%s23583_s5 + $0x1b20] ss:$28 sps:$4 sm:$0xff]  }
 0x5e7   :  { %12954 = vmatpush1.bf16.msra.mxu1 %v17149_v39  ;;  %v17212_v39 = vld [vmem:[%s23583_s5 + $0x1b28] ss:$28 sps:$4 sm:$0xff]  }
 0x5e8   :  { %13298 = vmatpush1.bf16.msra.mxu0 %v17152_v40  ;;  %12955 = vmatprep.subr.bf16.mxu1 %v17157_v41  ;;  %v17217_v40 = vld [vmem:[%s23583_s5 + $0x1b5c] ss:$28 sps:$4 sm:$0xff]   ;;  %v17220_v41 = vld [vmem:[%s23583_s5 + $0x1b64] ss:$28 sps:$4 sm:$0xff]  }
 0x5e9   :  { %13299 = vmatprep.subr.bf16.mxu0 %v17160_v42  ;;  %v17215_v42 = vld [vmem:[%s23583_s5 + $0x1b58] ss:$28 sps:$4 sm:$0xff]  }
 0x5eb   :  { %12956 = vmatpush1.bf16.msra.mxu1 %v17155_v59  ;;  %v17218_v59 = vld [vmem:[%s23583_s5 + $0x1b60] ss:$28 sps:$4 sm:$0xff]  }
 0x5ec   :  { %13300 = vmatpush1.bf16.msra.mxu0 %v17158_v43  ;;  %12957 = vmatprep.subr.bf16.mxu1 %v17163_v45  ;;  %v17223_v43 = vld [vmem:[%s23583_s5 + $0x1b94] ss:$28 sps:$4 sm:$0xff]   ;;  %v17226_v45 = vld [vmem:[%s23583_s5 + $0x1b9c] ss:$28 sps:$4 sm:$0xff]  }
 0x5ed   :  { %13301 = vmatprep.subr.bf16.mxu0 %v17166_v56  ;;  %v17221_v56 = vld [vmem:[%s23583_s5 + $0x1b90] ss:$28 sps:$4 sm:$0xff]  }
 0x5ef   :  { %12958 = vmatpush1.bf16.msra.mxu1 %v17161_v46  ;;  %v17224_v46 = vld [vmem:[%s23583_s5 + $0x1b98] ss:$28 sps:$4 sm:$0xff]  }
 0x5f0   :  { %13302 = vmatpush1.bf16.msra.mxu0 %v17164_v49  ;;  %12959 = vmatprep.subr.bf16.mxu1 %v17169_v51  ;;  %v17229_v49 = vld [vmem:[%s23583_s5 + $0x1bcc] ss:$28 sps:$4 sm:$0xff]   ;;  %v17232_v51 = vld [vmem:[%s23583_s5 + $0x1bd4] ss:$28 sps:$4 sm:$0xff]  }
 0x5f1   :  { %13303 = vmatprep.subr.bf16.mxu0 %v17172_v57  ;;  %v17227_v57 = vld [vmem:[%s23583_s5 + $0x1bc8] ss:$28 sps:$4 sm:$0xff]  }
 0x5f3   :  { %12960 = vmatpush1.bf16.msra.mxu1 %v17167_v63  ;;  %v17230_v63 = vld [vmem:[%s23583_s5 + $0x1bd0] ss:$28 sps:$4 sm:$0xff]  }
 0x5f4   :  { %13304 = vmatpush1.bf16.msra.mxu0 %v17170_v4  ;;  %12961 = vmatprep.subr.bf16.mxu1 %v17175_v5  ;;  %v17235_v4 = vld [vmem:[%s23583_s5 + $0x14] ss:$28 sps:$4 sm:$0xff]  }
 0x5f5   :  { %13305 = vmatprep.subr.bf16.mxu0 %v17178_v7  ;;  %v17236_v5 = vld [vmem:[%s23583_s5 + $0x1d8] ss:$28 sps:$4 sm:$0xff]   ;;  %v17233_v7 = vld [vmem:[%s23583_s5 + $0x10] ss:$28 sps:$4 sm:$0xff]  }
 0x5f7   :  { %12962 = vmatpush1.bf16.msra.mxu1 %v17173_v8  ;;  %v17237_v8 = vld [vmem:[%s23583_s5 + $0x18] ss:$28 sps:$4 sm:$0xff]  }
 0x5f8   :  { %13306 = vmatpush1.bf16.msra.mxu0 %v17176_v10  ;;  %12963 = vmatprep.subr.bf16.mxu1 %v17181_v60  ;;  %v17240_v10 = vld [vmem:[%s23583_s5 + $0x4c] ss:$28 sps:$4 sm:$0xff]  }
 0x5f9   :  { %13307 = vmatprep.subr.bf16.mxu0 %v17184_v31  ;;  %v17241_v60 = vld [vmem:[%s23583_s5 + $0x210] ss:$28 sps:$4 sm:$0xff]   ;;  %v17238_v31 = vld [vmem:[%s23583_s5 + $0x48] ss:$28 sps:$4 sm:$0xff]  }
 0x5fb   :  { %12964 = vmatpush1.bf16.msra.mxu1 %v17179_v0  ;;  %v17242_v0 = vld [vmem:[%s23583_s5 + $0x50] ss:$28 sps:$4 sm:$0xff]  }
 0x5fc   :  { %13308 = vmatpush1.bf16.msra.mxu0 %v17182_v19  ;;  %12965 = vmatprep.subr.bf16.mxu1 %v17187_v13  ;;  %v17245_v19 = vld [vmem:[%s23583_s5 + $0x84] ss:$28 sps:$4 sm:$0xff]  }
 0x5fd   :  { %13309 = vmatprep.subr.bf16.mxu0 %v17190_v12  ;;  %v17246_v13 = vld [vmem:[%s23583_s5 + $0x248] ss:$28 sps:$4 sm:$0xff]   ;;  %v17243_v12 = vld [vmem:[%s23583_s5 + $0x80] ss:$28 sps:$4 sm:$0xff]  }
 0x5ff   :  { %12966 = vmatpush1.bf16.msra.mxu1 %v17185_v26  ;;  %v17247_v26 = vld [vmem:[%s23583_s5 + $0x88] ss:$28 sps:$4 sm:$0xff]  }
 0x600   :  { %13310 = vmatpush1.bf16.msra.mxu0 %v17188_v11  ;;  %12967 = vmatprep.subr.bf16.mxu1 %v17193_v16  ;;  %v17251_v11 = vld [vmem:[%s23583_s5 + $0x280] ss:$28 sps:$4 sm:$0xff]   ;;  %v17248_v16 = vld [vmem:[%s23583_s5 + $0xb8] ss:$28 sps:$4 sm:$0xff]  }
 0x601   :  { %13311 = vmatprep.subr.bf16.mxu0 %v17196_v17  ;;  %v17252_v17 = vld [vmem:[%s23583_s5 + $0xc0] ss:$28 sps:$4 sm:$0xff]  }
 0x603   :  { %12968 = vmatpush1.bf16.msra.mxu1 %v17191_v22  ;;  %v17255_v22 = vld [vmem:[%s23583_s5 + $0xf4] ss:$28 sps:$4 sm:$0xff]  }
 0x604   :  { %13312 = vmatpush1.bf16.msra.mxu0 %v17194_v55  ;;  %12969 = vmatprep.subr.bf16.mxu1 %v17199_v44  ;;  %v17256_v55 = vld [vmem:[%s23583_s5 + $0x2b8] ss:$28 sps:$4 sm:$0xff]   ;;  %v17253_v44 = vld [vmem:[%s23583_s5 + $0xf0] ss:$28 sps:$4 sm:$0xff]  }
 0x605   :  { %13313 = vmatprep.subr.bf16.mxu0 %v17202_v24  ;;  %v17257_v24 = vld [vmem:[%s23583_s5 + $0xf8] ss:$28 sps:$4 sm:$0xff]  }
 0x607   :  { %12970 = vmatpush1.bf16.msra.mxu1 %v17197_v35  ;;  %v17260_v35 = vld [vmem:[%s23583_s5 + $0x12c] ss:$28 sps:$4 sm:$0xff]  }
 0x608   :  { %13314 = vmatpush1.bf16.msra.mxu0 %v17200_v25  ;;  %12971 = vmatprep.subr.bf16.mxu1 %v17205_v14  ;;  %v17261_v25 = vld [vmem:[%s23583_s5 + $0x2f0] ss:$28 sps:$4 sm:$0xff]   ;;  %v17258_v14 = vld [vmem:[%s23583_s5 + $0x128] ss:$28 sps:$4 sm:$0xff]  }
 0x609   :  { %13315 = vmatprep.subr.bf16.mxu0 %v17208_v33  ;;  %v17262_v33 = vld [vmem:[%s23583_s5 + $0x130] ss:$28 sps:$4 sm:$0xff]  }
 0x60b   :  { %12972 = vmatpush1.bf16.msra.mxu1 %v17203_v18  ;;  %v17265_v18 = vld [vmem:[%s23583_s5 + $0x164] ss:$28 sps:$4 sm:$0xff]  }
 0x60c   :  { %13316 = vmatpush1.bf16.msra.mxu0 %v17206_v36  ;;  %12973 = vmatprep.subr.bf16.mxu1 %v17211_v37  ;;  %v17266_v36 = vld [vmem:[%s23583_s5 + $0x328] ss:$28 sps:$4 sm:$0xff]   ;;  %v17263_v37 = vld [vmem:[%s23583_s5 + $0x160] ss:$28 sps:$4 sm:$0xff]  }
 0x60d   :  { %13317 = vmatprep.subr.bf16.mxu0 %v17214_v21  ;;  %v17267_v21 = vld [vmem:[%s23583_s5 + $0x168] ss:$28 sps:$4 sm:$0xff]  }
 0x60f   :  { %12974 = vmatpush1.bf16.msra.mxu1 %v17209_v38  ;;  %v17270_v38 = vld [vmem:[%s23583_s5 + $0x19c] ss:$28 sps:$4 sm:$0xff]  }
 0x610   :  { %13318 = vmatpush1.bf16.msra.mxu0 %v17212_v39  ;;  %12975 = vmatprep.subr.bf16.mxu1 %v17217_v40  ;;  %v17271_v39 = vld [vmem:[%s23583_s5 + $0x360] ss:$28 sps:$4 sm:$0xff]   ;;  %v17268_v40 = vld [vmem:[%s23583_s5 + $0x198] ss:$28 sps:$4 sm:$0xff]  }
 0x611   :  { %13319 = vmatprep.subr.bf16.mxu0 %v17220_v41  ;;  %v17272_v41 = vld [vmem:[%s23583_s5 + $0x1a0] ss:$28 sps:$4 sm:$0xff]  }
 0x613   :  { %12976 = vmatpush1.bf16.msra.mxu1 %v17215_v42  ;;  %v17275_v42 = vld [vmem:[%s23583_s5 + $0x1d4] ss:$28 sps:$4 sm:$0xff]  }
 0x614   :  { %13320 = vmatpush1.bf16.msra.mxu0 %v17218_v59  ;;  %12977 = vmatprep.subr.bf16.mxu1 %v17223_v43  ;;  %v17276_v59 = vld [vmem:[%s23583_s5 + $0x558] ss:$28 sps:$4 sm:$0xff]   ;;  %v17273_v43 = vld [vmem:[%s23583_s5 + $0x1d0] ss:$28 sps:$4 sm:$0xff]  }
 0x615   :  { %13321 = vmatprep.subr.bf16.mxu0 %v17226_v45  ;;  %v17277_v45 = vld [vmem:[%s23583_s5 + $0x398] ss:$28 sps:$4 sm:$0xff]  }
 0x617   :  { %12978 = vmatpush1.bf16.msra.mxu1 %v17221_v56  ;;  %v17280_v56 = vld [vmem:[%s23583_s5 + $0x20c] ss:$28 sps:$4 sm:$0xff]  }
 0x618   :  { %13322 = vmatpush1.bf16.msra.mxu0 %v17224_v46  ;;  %12979 = vmatprep.subr.bf16.mxu1 %v17229_v49  ;;  %v17281_v46 = vld [vmem:[%s23583_s5 + $0x590] ss:$28 sps:$4 sm:$0xff]   ;;  %v17278_v49 = vld [vmem:[%s23583_s5 + $0x208] ss:$28 sps:$4 sm:$0xff]  }
 0x619   :  { %13323 = vmatprep.subr.bf16.mxu0 %v17232_v51  ;;  %v17282_v51 = vld [vmem:[%s23583_s5 + $0x3d0] ss:$28 sps:$4 sm:$0xff]  }
 0x61b   :  { %12980 = vmatpush1.bf16.msra.mxu1 %v17227_v57  ;;  %v17285_v57 = vld [vmem:[%s23583_s5 + $0x244] ss:$28 sps:$4 sm:$0xff]  }
 0x61c   :  { %13324 = vmatpush1.bf16.msra.mxu0 %v17230_v63  ;;  %13336 = vmatprep.subr.bf16.mxu1 %v17235_v4  ;;  %v17286_v63 = vld [vmem:[%s23583_s5 + $0x5c8] ss:$28 sps:$4 sm:$0xff]   ;;  %v17283_v4 = vld [vmem:[%s23583_s5 + $0x240] ss:$28 sps:$4 sm:$0xff]  }
 0x61d   :  { %15852 = vmatprep.subr.bf16.mxu0 %v17236_v5  ;;  %v17287_v5 = vld [vmem:[%s23583_s5 + $0x408] ss:$28 sps:$4 sm:$0xff]  }
 0x61e   :  { %12982 = vmatmul.mubr.bf16.vlgmr.msra.gmra.mrb[20].mxu1 %v21448_v2 }
 0x61f   :  { %13326 = vmatmul.mubr.bf16.vlgmr.msra.gmra.mrb[28].mxu0 %v21448_v2  ;;  %13337 = vmatpush1.bf16.msra.mxu1 %v17233_v7  ;;  %v17290_v7 = vld [vmem:[%s23583_s5 + $0x27c] ss:$28 sps:$4 sm:$0xff]  }
 0x620   :  { %13368 = vmatprep.mubr.bf16.mxu1 %v19644_v15  ;;  %15853 = vmatpush3.bf16.msra.mxu0 %v17237_v8  ;;  %v17291_v8 = vld [vmem:[%s23583_s5 + $0x600] ss:$28 sps:$4 sm:$0xff]  }
 0x621   :  { %13712 = vmatprep.mubr.bf16.mxu0 %v19644_v15  ;;  %13338 = vmatprep.subr.bf16.mxu1 %v17240_v10  ;;  %v17250_v15 = vld [vmem:[%s23583_s5 + $0xbc] ss:$28 sps:$4 sm:$0xff]  }
 0x622   :  { %15854 = vmatprep.subr.bf16.mxu0 %v17241_v60  ;;  %v17288_v10 = vld [vmem:[%s23583_s5 + $0x278] ss:$28 sps:$4 sm:$0xff]   ;;  %v17292_v60 = vld [vmem:[%s23583_s5 + $0x440] ss:$28 sps:$4 sm:$0xff]  }
 0x623   :  { %13339 = vmatpush1.bf16.msra.mxu1 %v17238_v31  ;;  %v17295_v31 = vld [vmem:[%s23583_s5 + $0x2b4] ss:$28 sps:$4 sm:$0xff]  }
 0x624   :  { %15855 = vmatpush3.bf16.msra.mxu0 %v17242_v0  ;;  %13340 = vmatprep.subr.bf16.mxu1 %v17245_v19  ;;  %v17296_v0 = vld [vmem:[%s23583_s5 + $0x638] ss:$28 sps:$4 sm:$0xff]   ;;  %v17293_v19 = vld [vmem:[%s23583_s5 + $0x2b0] ss:$28 sps:$4 sm:$0xff]  }
 0x625   :  { %15856 = vmatprep.subr.bf16.mxu0 %v17246_v13  ;;  %v17297_v13 = vld [vmem:[%s23583_s5 + $0x478] ss:$28 sps:$4 sm:$0xff]  }
 0x627   :  { %13341 = vmatpush1.bf16.msra.mxu1 %v17243_v12  ;;  %v17300_v12 = vld [vmem:[%s23583_s5 + $0x2ec] ss:$28 sps:$4 sm:$0xff]  }
 0x628   :  { %15857 = vmatpush3.bf16.msra.mxu0 %v17247_v26  ;;  %13342 = vmatprep.subr.bf16.mxu1 %v17250_v15  ;;  %v17301_v26 = vld [vmem:[%s23583_s5 + $0x670] ss:$28 sps:$4 sm:$0xff]   ;;  %v17298_v15 = vld [vmem:[%s23583_s5 + $0x2e8] ss:$28 sps:$4 sm:$0xff]  }
 0x629   :  { %15858 = vmatprep.subr.bf16.mxu0 %v17251_v11  ;;  %v17302_v11 = vld [vmem:[%s23583_s5 + $0x4b0] ss:$28 sps:$4 sm:$0xff]  }
 0x62b   :  { %13343 = vmatpush1.bf16.msra.mxu1 %v17248_v16  ;;  %v17305_v16 = vld [vmem:[%s23583_s5 + $0x324] ss:$28 sps:$4 sm:$0xff]  }
 0x62c   :  { %15859 = vmatpush3.bf16.msra.mxu0 %v17252_v17  ;;  %13344 = vmatprep.subr.bf16.mxu1 %v17255_v22  ;;  %v17306_v17 = vld [vmem:[%s23583_s5 + $0x6a8] ss:$28 sps:$4 sm:$0xff]   ;;  %v17303_v22 = vld [vmem:[%s23583_s5 + $0x320] ss:$28 sps:$4 sm:$0xff]  }
 0x62d   :  { %15860 = vmatprep.subr.bf16.mxu0 %v17256_v55  ;;  %v17307_v55 = vld [vmem:[%s23583_s5 + $0x4e8] ss:$28 sps:$4 sm:$0xff]  }
 0x62f   :  { %13345 = vmatpush1.bf16.msra.mxu1 %v17253_v44  ;;  %v17310_v44 = vld [vmem:[%s23583_s5 + $0x35c] ss:$28 sps:$4 sm:$0xff]  }
 0x630   :  { %15861 = vmatpush3.bf16.msra.mxu0 %v17257_v24  ;;  %13346 = vmatprep.subr.bf16.mxu1 %v17260_v35  ;;  %v17311_v24 = vld [vmem:[%s23583_s5 + $0x6e0] ss:$28 sps:$4 sm:$0xff]   ;;  %v17308_v35 = vld [vmem:[%s23583_s5 + $0x358] ss:$28 sps:$4 sm:$0xff]  }
 0x631   :  { %15862 = vmatprep.subr.bf16.mxu0 %v17261_v25  ;;  %v17312_v25 = vld [vmem:[%s23583_s5 + $0x520] ss:$28 sps:$4 sm:$0xff]  }
 0x633   :  { %13347 = vmatpush1.bf16.msra.mxu1 %v17258_v14  ;;  %v17315_v14 = vld [vmem:[%s23583_s5 + $0x394] ss:$28 sps:$4 sm:$0xff]  }
 0x634   :  { %15863 = vmatpush3.bf16.msra.mxu0 %v17262_v33  ;;  %13348 = vmatprep.subr.bf16.mxu1 %v17265_v18  ;;  %v17316_v33 = vld [vmem:[%s23583_s5 + $0x8d8] ss:$28 sps:$4 sm:$0xff]   ;;  %v17313_v18 = vld [vmem:[%s23583_s5 + $0x390] ss:$28 sps:$4 sm:$0xff]  }
 0x635   :  { %15864 = vmatprep.subr.bf16.mxu0 %v17266_v36  ;;  %v17317_v36 = vld [vmem:[%s23583_s5 + $0x718] ss:$28 sps:$4 sm:$0xff]  }
 0x637   :  { %13349 = vmatpush1.bf16.msra.mxu1 %v17263_v37  ;;  %v17320_v37 = vld [vmem:[%s23583_s5 + $0x3cc] ss:$28 sps:$4 sm:$0xff]  }
 0x638   :  { %15865 = vmatpush3.bf16.msra.mxu0 %v17267_v21  ;;  %13350 = vmatprep.subr.bf16.mxu1 %v17270_v38  ;;  %v17321_v21 = vld [vmem:[%s23583_s5 + $0x910] ss:$28 sps:$4 sm:$0xff]   ;;  %v17318_v38 = vld [vmem:[%s23583_s5 + $0x3c8] ss:$28 sps:$4 sm:$0xff]  }
 0x639   :  { %15866 = vmatprep.subr.bf16.mxu0 %v17271_v39  ;;  %v17322_v39 = vld [vmem:[%s23583_s5 + $0x750] ss:$28 sps:$4 sm:$0xff]  }
 0x63b   :  { %13351 = vmatpush1.bf16.msra.mxu1 %v17268_v40  ;;  %v17326_v40 = vld [vmem:[%s23583_s5 + $0x948] ss:$28 sps:$4 sm:$0xff]  }
 0x63c   :  { %15867 = vmatpush3.bf16.msra.mxu0 %v17272_v41  ;;  %13352 = vmatprep.subr.bf16.mxu1 %v17275_v42  ;;  %v17327_v41 = vld [vmem:[%s23583_s5 + $0x788] ss:$28 sps:$4 sm:$0xff]   ;;  %v17330_v42 = vld [vmem:[%s23583_s5 + $0x43c] ss:$28 sps:$4 sm:$0xff]  }
 0x63d   :  { %15874 = vmatprep.subr.bf16.mxu0 %v17276_v59  ;;  %v17331_v59 = vld [vmem:[%s23583_s5 + $0x980] ss:$28 sps:$4 sm:$0xff]  }
 0x63f   :  { %13713 = vmatmul.mubr.bf16.vlgmr.msra.gmra.mrb[32].mxu0 %v19640_v28  ;;  %13353 = vmatpush1.bf16.msra.mxu1 %v17273_v43  ;;  %v17328_v43 = vld [vmem:[%s23583_s5 + $0x438] ss:$28 sps:$4 sm:$0xff]  }
 0x640   :  { %15875 = vmatpush3.bf16.msra.mxu0 %v17277_v45  ;;  %13753 = vmatprep.mubr.bf16.mxu0 %v19646_v34  ;;  %v17332_v45 = vld [vmem:[%s23583_s5 + $0x7c0] ss:$28 sps:$4 sm:$0xff]  }
 0x641   :  { %13354 = vmatprep.subr.bf16.mxu1 %v17280_v56  ;;  %15876 = vmatprep.subr.bf16.mxu0 %v17281_v46  ;;  %v17335_v56 = vld [vmem:[%s23583_s5 + $0x474] ss:$28 sps:$4 sm:$0xff]  }
 0x642   :  { %v17336_v46 = vld [vmem:[%s23583_s5 + $0x9b8] ss:$28 sps:$4 sm:$0xff]  }
 0x643   :  { %13355 = vmatpush1.bf16.msra.mxu1 %v17278_v49  ;;  %v17333_v49 = vld [vmem:[%s23583_s5 + $0x470] ss:$28 sps:$4 sm:$0xff]  }
 0x644   :  { %15877 = vmatpush3.bf16.msra.mxu0 %v17282_v51  ;;  %13356 = vmatprep.subr.bf16.mxu1 %v17285_v57  ;;  %v17337_v51 = vld [vmem:[%s23583_s5 + $0x7f8] ss:$28 sps:$4 sm:$0xff]   ;;  %v17340_v57 = vld [vmem:[%s23583_s5 + $0x4ac] ss:$28 sps:$4 sm:$0xff]  }
 0x645   :  { %15878 = vmatprep.subr.bf16.mxu0 %v17286_v63  ;;  %v17341_v63 = vld [vmem:[%s23583_s5 + $0x9f0] ss:$28 sps:$4 sm:$0xff]  }
 0x647   :  { %13357 = vmatpush1.bf16.msra.mxu1 %v17283_v4  ;;  %v17338_v4 = vld [vmem:[%s23583_s5 + $0x4a8] ss:$28 sps:$4 sm:$0xff]  }
 0x648   :  { %15879 = vmatpush3.bf16.msra.mxu0 %v17287_v5  ;;  %13358 = vmatprep.subr.bf16.mxu1 %v17290_v7  ;;  %v17342_v5 = vld [vmem:[%s23583_s5 + $0x830] ss:$28 sps:$4 sm:$0xff]   ;;  %v17345_v7 = vld [vmem:[%s23583_s5 + $0x4e4] ss:$28 sps:$4 sm:$0xff]  }
 0x649   :  { %15880 = vmatprep.subr.bf16.mxu0 %v17291_v8  ;;  %v17346_v8 = vld [vmem:[%s23583_s5 + $0xa28] ss:$28 sps:$4 sm:$0xff]  }
 0x64b   :  { %13359 = vmatpush1.bf16.msra.mxu1 %v17288_v10  ;;  %v17343_v10 = vld [vmem:[%s23583_s5 + $0x4e0] ss:$28 sps:$4 sm:$0xff]  }
 0x64c   :  { %15881 = vmatpush3.bf16.msra.mxu0 %v17292_v60  ;;  %13360 = vmatprep.subr.bf16.mxu1 %v17295_v31  ;;  %v17347_v60 = vld [vmem:[%s23583_s5 + $0x868] ss:$28 sps:$4 sm:$0xff]   ;;  %v17350_v31 = vld [vmem:[%s23583_s5 + $0x51c] ss:$28 sps:$4 sm:$0xff]  }
 0x64d   :  { %15882 = vmatprep.subr.bf16.mxu0 %v17296_v0  ;;  %v17351_v0 = vld [vmem:[%s23583_s5 + $0xa60] ss:$28 sps:$4 sm:$0xff]  }
 0x64f   :  { %13361 = vmatpush1.bf16.msra.mxu1 %v17293_v19  ;;  %v17348_v19 = vld [vmem:[%s23583_s5 + $0x518] ss:$28 sps:$4 sm:$0xff]  }
 0x650   :  { %15883 = vmatpush3.bf16.msra.mxu0 %v17297_v13  ;;  %13362 = vmatprep.subr.bf16.mxu1 %v17300_v12  ;;  %v17352_v13 = vld [vmem:[%s23583_s5 + $0x8a0] ss:$28 sps:$4 sm:$0xff]   ;;  %v17355_v12 = vld [vmem:[%s23583_s5 + $0x554] ss:$28 sps:$4 sm:$0xff]  }
 0x651   :  { %15884 = vmatprep.subr.bf16.mxu0 %v17301_v26  ;;  %v17356_v26 = vld [vmem:[%s23583_s5 + $0xc58] ss:$28 sps:$4 sm:$0xff]  }
 0x653   :  { %13363 = vmatpush1.bf16.msra.mxu1 %v17298_v15  ;;  %v17353_v15 = vld [vmem:[%s23583_s5 + $0x550] ss:$28 sps:$4 sm:$0xff]  }
 0x654   :  { %15885 = vmatpush3.bf16.msra.mxu0 %v17302_v11  ;;  %13364 = vmatprep.subr.bf16.mxu1 %v17305_v16  ;;  %v17357_v11 = vld [vmem:[%s23583_s5 + $0xa98] ss:$28 sps:$4 sm:$0xff]   ;;  %v17360_v16 = vld [vmem:[%s23583_s5 + $0x58c] ss:$28 sps:$4 sm:$0xff]  }
 0x655   :  { %15886 = vmatprep.subr.bf16.mxu0 %v17306_v17  ;;  %v17361_v17 = vld [vmem:[%s23583_s5 + $0xc90] ss:$28 sps:$4 sm:$0xff]  }
 0x657   :  { %13365 = vmatpush1.bf16.msra.mxu1 %v17303_v22  ;;  %v17358_v22 = vld [vmem:[%s23583_s5 + $0x588] ss:$28 sps:$4 sm:$0xff]  }
 0x658   :  { %15887 = vmatpush3.bf16.msra.mxu0 %v17307_v55  ;;  %13366 = vmatprep.subr.bf16.mxu1 %v17310_v44  ;;  %v17362_v55 = vld [vmem:[%s23583_s5 + $0xad0] ss:$28 sps:$4 sm:$0xff]   ;;  %v17365_v44 = vld [vmem:[%s23583_s5 + $0x5c4] ss:$28 sps:$4 sm:$0xff]  }
 0x659   :  { %15888 = vmatprep.subr.bf16.mxu0 %v17311_v24  ;;  %v17366_v24 = vld [vmem:[%s23583_s5 + $0xcc8] ss:$28 sps:$4 sm:$0xff]  }
 0x65b   :  { %13367 = vmatpush1.bf16.msra.mxu1 %v17308_v35  ;;  %v17363_v35 = vld [vmem:[%s23583_s5 + $0x5c0] ss:$28 sps:$4 sm:$0xff]  }
 0x65c   :  { %15889 = vmatpush3.bf16.msra.mxu0 %v17312_v25  ;;  %13379 = vmatprep.subr.bf16.mxu1 %v17315_v14  ;;  %v17367_v25 = vld [vmem:[%s23583_s5 + $0xb08] ss:$28 sps:$4 sm:$0xff]   ;;  %v17370_v14 = vld [vmem:[%s23583_s5 + $0x5fc] ss:$28 sps:$4 sm:$0xff]  }
 0x65d   :  { %15896 = vmatprep.subr.bf16.mxu0 %v17316_v33  ;;  %v17371_v33 = vld [vmem:[%s23583_s5 + $0xd00] ss:$28 sps:$4 sm:$0xff]  }
 0x65e   :  { %13369 = vmatmul.mubr.bf16.vlgmr.msra.gmra.mrb[24].mxu1 %v19640_v28  ;;  %v17325_v28 = vld [vmem:[%s23583_s5 + $0x404] ss:$28 sps:$4 sm:$0xff]  }
 0x65f   :  { %13754 = vmatmul.mubr.bf16.vlgmr.msra.gmra.mrb[36].mxu0 %v19642_v30  ;;  %13380 = vmatpush1.bf16.msra.mxu1 %v17313_v18  ;;  %v17368_v18 = vld [vmem:[%s23583_s5 + $0x5f8] ss:$28 sps:$4 sm:$0xff]  }
 0x660   :  { %13411 = vmatprep.mubr.bf16.mxu1 %v19646_v34  ;;  %15897 = vmatpush3.bf16.msra.mxu0 %v17317_v36  ;;  %v17323_v34 = vld [vmem:[%s23583_s5 + $0x400] ss:$28 sps:$4 sm:$0xff]  }
 0x661   :  { %13794 = vmatprep.mubr.bf16.mxu0 %v20252_v23  ;;  %13381 = vmatprep.subr.bf16.mxu1 %v17320_v37  ;;  %v17372_v36 = vld [vmem:[%s23583_s5 + $0xb40] ss:$28 sps:$4 sm:$0xff]   ;;  %v17375_v37 = vld [vmem:[%s23583_s5 + $0x634] ss:$28 sps:$4 sm:$0xff]  }
 0x662   :  { %15898 = vmatprep.subr.bf16.mxu0 %v17321_v21  ;;  %v17376_v21 = vld [vmem:[%s23583_s5 + $0xd38] ss:$28 sps:$4 sm:$0xff]  }
 0x663   :  { %13382 = vmatpush1.bf16.msra.mxu1 %v17318_v38  ;;  %v17373_v38 = vld [vmem:[%s23583_s5 + $0x630] ss:$28 sps:$4 sm:$0xff]  }
 0x664   :  { %15899 = vmatpush3.bf16.msra.mxu0 %v17322_v39  ;;  %13383 = vmatprep.subr.bf16.mxu1 %v17325_v28  ;;  %v17377_v39 = vld [vmem:[%s23583_s5 + $0xb78] ss:$28 sps:$4 sm:$0xff]   ;;  %v17380_v28 = vld [vmem:[%s23583_s5 + $0x66c] ss:$28 sps:$4 sm:$0xff]  }
 0x665   :  { %15900 = vmatprep.subr.bf16.mxu0 %v17326_v40  ;;  %v17381_v40 = vld [vmem:[%s23583_s5 + $0xd70] ss:$28 sps:$4 sm:$0xff]  }
 0x667   :  { %13384 = vmatpush1.bf16.msra.mxu1 %v17323_v34  ;;  %v17378_v34 = vld [vmem:[%s23583_s5 + $0x668] ss:$28 sps:$4 sm:$0xff]  }
 0x668   :  { %15901 = vmatpush3.bf16.msra.mxu0 %v17327_v41  ;;  %13385 = vmatprep.subr.bf16.mxu1 %v17330_v42  ;;  %v17382_v41 = vld [vmem:[%s23583_s5 + $0xbb0] ss:$28 sps:$4 sm:$0xff]   ;;  %v17385_v42 = vld [vmem:[%s23583_s5 + $0x6a4] ss:$28 sps:$4 sm:$0xff]  }
 0x669   :  { %15902 = vmatprep.subr.bf16.mxu0 %v17331_v59  ;;  %v17386_v59 = vld [vmem:[%s23583_s5 + $0xda8] ss:$28 sps:$4 sm:$0xff]  }
 0x66b   :  { %13386 = vmatpush1.bf16.msra.mxu1 %v17328_v43  ;;  %v17383_v43 = vld [vmem:[%s23583_s5 + $0x6a0] ss:$28 sps:$4 sm:$0xff]  }
 0x66c   :  { %15903 = vmatpush3.bf16.msra.mxu0 %v17332_v45  ;;  %13387 = vmatprep.subr.bf16.mxu1 %v17335_v56  ;;  %v17387_v45 = vld [vmem:[%s23583_s5 + $0xbe8] ss:$28 sps:$4 sm:$0xff]   ;;  %v17390_v56 = vld [vmem:[%s23583_s5 + $0x6dc] ss:$28 sps:$4 sm:$0xff]  }
 0x66d   :  { %15904 = vmatprep.subr.bf16.mxu0 %v17336_v46  ;;  %v17391_v46 = vld [vmem:[%s23583_s5 + $0xde0] ss:$28 sps:$4 sm:$0xff]  }
 0x66f   :  { %13388 = vmatpush1.bf16.msra.mxu1 %v17333_v49  ;;  %v17388_v49 = vld [vmem:[%s23583_s5 + $0x6d8] ss:$28 sps:$4 sm:$0xff]  }
 0x670   :  { %15905 = vmatpush3.bf16.msra.mxu0 %v17337_v51  ;;  %13389 = vmatprep.subr.bf16.mxu1 %v17340_v57  ;;  %v17392_v51 = vld [vmem:[%s23583_s5 + $0xc20] ss:$28 sps:$4 sm:$0xff]   ;;  %v17395_v57 = vld [vmem:[%s23583_s5 + $0x714] ss:$28 sps:$4 sm:$0xff]  }
 0x671   :  { %15906 = vmatprep.subr.bf16.mxu0 %v17341_v63  ;;  %v17396_v63 = vld [vmem:[%s23583_s5 + $0xfd8] ss:$28 sps:$4 sm:$0xff]  }
 0x673   :  { %13390 = vmatpush1.bf16.msra.mxu1 %v17338_v4  ;;  %v17393_v4 = vld [vmem:[%s23583_s5 + $0x710] ss:$28 sps:$4 sm:$0xff]  }
 0x674   :  { %15907 = vmatpush3.bf16.msra.mxu0 %v17342_v5  ;;  %13391 = vmatprep.subr.bf16.mxu1 %v17345_v7  ;;  %v17397_v5 = vld [vmem:[%s23583_s5 + $0xe18] ss:$28 sps:$4 sm:$0xff]   ;;  %v17400_v7 = vld [vmem:[%s23583_s5 + $0x74c] ss:$28 sps:$4 sm:$0xff]  }
 0x675   :  { %15908 = vmatprep.subr.bf16.mxu0 %v17346_v8  ;;  %v17401_v8 = vld [vmem:[%s23583_s5 + $0x1010] ss:$28 sps:$4 sm:$0xff]  }
 0x677   :  { %13392 = vmatpush1.bf16.msra.mxu1 %v17343_v10  ;;  %v17398_v10 = vld [vmem:[%s23583_s5 + $0x748] ss:$28 sps:$4 sm:$0xff]  }
 0x678   :  { %15909 = vmatpush3.bf16.msra.mxu0 %v17347_v60  ;;  %13393 = vmatprep.subr.bf16.mxu1 %v17350_v31  ;;  %v17402_v60 = vld [vmem:[%s23583_s5 + $0xe50] ss:$28 sps:$4 sm:$0xff]   ;;  %v17406_v31 = vld [vmem:[%s23583_s5 + $0x1048] ss:$28 sps:$4 sm:$0xff]  }
 0x679   :  { %15910 = vmatprep.subr.bf16.mxu0 %v17351_v0  ;;  %v17407_v0 = vld [vmem:[%s23583_s5 + $0xe88] ss:$28 sps:$4 sm:$0xff]  }
 0x67b   :  { %13394 = vmatpush1.bf16.msra.mxu1 %v17348_v19  ;;  %v17410_v19 = vld [vmem:[%s23583_s5 + $0x7bc] ss:$28 sps:$4 sm:$0xff]  }
 0x67c   :  { %15911 = vmatpush3.bf16.msra.mxu0 %v17352_v13  ;;  %13395 = vmatprep.subr.bf16.mxu1 %v17355_v12  ;;  %v17411_v13 = vld [vmem:[%s23583_s5 + $0x1080] ss:$28 sps:$4 sm:$0xff]   ;;  %v17408_v12 = vld [vmem:[%s23583_s5 + $0x7b8] ss:$28 sps:$4 sm:$0xff]  }
 0x67d   :  { %15918 = vmatprep.subr.bf16.mxu0 %v17356_v26  ;;  %v17412_v26 = vld [vmem:[%s23583_s5 + $0xec0] ss:$28 sps:$4 sm:$0xff]  }
 0x67f   :  { %13795 = vmatmul.mubr.bf16.vlgmr.msra.gmra.mrb[40].mxu0 %v20248_v20  ;;  %13396 = vmatpush1.bf16.msra.mxu1 %v17353_v15  ;;  %v17415_v15 = vld [vmem:[%s23583_s5 + $0x7f4] ss:$28 sps:$4 sm:$0xff]  }
 0x680   :  { %15919 = vmatpush3.bf16.msra.mxu0 %v17357_v11  ;;  %13835 = vmatprep.mubr.bf16.mxu0 %v20260_v27  ;;  %v17416_v11 = vld [vmem:[%s23583_s5 + $0x10b8] ss:$28 sps:$4 sm:$0xff]  }
 0x681   :  { %13397 = vmatprep.subr.bf16.mxu1 %v17360_v16  ;;  %15920 = vmatprep.subr.bf16.mxu0 %v17361_v17  ;;  %v17413_v16 = vld [vmem:[%s23583_s5 + $0x7f0] ss:$28 sps:$4 sm:$0xff]   ;;  %v17417_v17 = vld [vmem:[%s23583_s5 + $0xef8] ss:$28 sps:$4 sm:$0xff]  }
 0x683   :  { %13398 = vmatpush1.bf16.msra.mxu1 %v17358_v22  ;;  %v17420_v22 = vld [vmem:[%s23583_s5 + $0x82c] ss:$28 sps:$4 sm:$0xff]  }
 0x684   :  { %15921 = vmatpush3.bf16.msra.mxu0 %v17362_v55  ;;  %13399 = vmatprep.subr.bf16.mxu1 %v17365_v44  ;;  %v17421_v55 = vld [vmem:[%s23583_s5 + $0x10f0] ss:$28 sps:$4 sm:$0xff]   ;;  %v17418_v44 = vld [vmem:[%s23583_s5 + $0x828] ss:$28 sps:$4 sm:$0xff]  }
 0x685   :  { %15922 = vmatprep.subr.bf16.mxu0 %v17366_v24  ;;  %v17422_v24 = vld [vmem:[%s23583_s5 + $0xf30] ss:$28 sps:$4 sm:$0xff]  }
 0x687   :  { %13400 = vmatpush1.bf16.msra.mxu1 %v17363_v35  ;;  %v17425_v35 = vld [vmem:[%s23583_s5 + $0x864] ss:$28 sps:$4 sm:$0xff]  }
 0x688   :  { %15923 = vmatpush3.bf16.msra.mxu0 %v17367_v25  ;;  %13401 = vmatprep.subr.bf16.mxu1 %v17370_v14  ;;  %v17426_v25 = vld [vmem:[%s23583_s5 + $0x1128] ss:$28 sps:$4 sm:$0xff]   ;;  %v17423_v14 = vld [vmem:[%s23583_s5 + $0x860] ss:$28 sps:$4 sm:$0xff]  }
 0x689   :  { %15924 = vmatprep.subr.bf16.mxu0 %v17371_v33  ;;  %v17427_v33 = vld [vmem:[%s23583_s5 + $0xf68] ss:$28 sps:$4 sm:$0xff]  }
 0x68b   :  { %13402 = vmatpush1.bf16.msra.mxu1 %v17368_v18  ;;  %v17430_v18 = vld [vmem:[%s23583_s5 + $0x89c] ss:$28 sps:$4 sm:$0xff]  }
 0x68c   :  { %15925 = vmatpush3.bf16.msra.mxu0 %v17372_v36  ;;  %13403 = vmatprep.subr.bf16.mxu1 %v17375_v37  ;;  %v17431_v36 = vld [vmem:[%s23583_s5 + $0x1160] ss:$28 sps:$4 sm:$0xff]   ;;  %v17428_v37 = vld [vmem:[%s23583_s5 + $0x898] ss:$28 sps:$4 sm:$0xff]  }
 0x68d   :  { %15926 = vmatprep.subr.bf16.mxu0 %v17376_v21  ;;  %v17432_v21 = vld [vmem:[%s23583_s5 + $0xfa0] ss:$28 sps:$4 sm:$0xff]  }
 0x68f   :  { %13404 = vmatpush1.bf16.msra.mxu1 %v17373_v38  ;;  %v17435_v38 = vld [vmem:[%s23583_s5 + $0x8d4] ss:$28 sps:$4 sm:$0xff]  }
 0x690   :  { %15927 = vmatpush3.bf16.msra.mxu0 %v17377_v39  ;;  %13405 = vmatprep.subr.bf16.mxu1 %v17380_v28  ;;  %v17436_v39 = vld [vmem:[%s23583_s5 + $0x1358] ss:$28 sps:$4 sm:$0xff]   ;;  %v17433_v28 = vld [vmem:[%s23583_s5 + $0x8d0] ss:$28 sps:$4 sm:$0xff]  }
 0x691   :  { %15928 = vmatprep.subr.bf16.mxu0 %v17381_v40  ;;  %v17437_v40 = vld [vmem:[%s23583_s5 + $0x1198] ss:$28 sps:$4 sm:$0xff]  }
 0x693   :  { %13406 = vmatpush1.bf16.msra.mxu1 %v17378_v34  ;;  %v17440_v34 = vld [vmem:[%s23583_s5 + $0x90c] ss:$28 sps:$4 sm:$0xff]  }
 0x694   :  { %15929 = vmatpush3.bf16.msra.mxu0 %v17382_v41  ;;  %13407 = vmatprep.subr.bf16.mxu1 %v17385_v42  ;;  %v17441_v41 = vld [vmem:[%s23583_s5 + $0x1390] ss:$28 sps:$4 sm:$0xff]   ;;  %v17438_v42 = vld [vmem:[%s23583_s5 + $0x908] ss:$28 sps:$4 sm:$0xff]  }
 0x695   :  { %15930 = vmatprep.subr.bf16.mxu0 %v17386_v59  ;;  %v17442_v59 = vld [vmem:[%s23583_s5 + $0x11d0] ss:$28 sps:$4 sm:$0xff]  }
 0x697   :  { %13408 = vmatpush1.bf16.msra.mxu1 %v17383_v43  ;;  %v17445_v43 = vld [vmem:[%s23583_s5 + $0x944] ss:$28 sps:$4 sm:$0xff]  }
 0x698   :  { %15931 = vmatpush3.bf16.msra.mxu0 %v17387_v45  ;;  %13409 = vmatprep.subr.bf16.mxu1 %v17390_v56  ;;  %v17446_v45 = vld [vmem:[%s23583_s5 + $0x13c8] ss:$28 sps:$4 sm:$0xff]   ;;  %v17443_v56 = vld [vmem:[%s23583_s5 + $0x940] ss:$28 sps:$4 sm:$0xff]  }
 0x699   :  { %15932 = vmatprep.subr.bf16.mxu0 %v17391_v46  ;;  %v17447_v46 = vld [vmem:[%s23583_s5 + $0x1208] ss:$28 sps:$4 sm:$0xff]  }
 0x69b   :  { %13410 = vmatpush1.bf16.msra.mxu1 %v17388_v49  ;;  %v17450_v49 = vld [vmem:[%s23583_s5 + $0x97c] ss:$28 sps:$4 sm:$0xff]  }
 0x69c   :  { %15933 = vmatpush3.bf16.msra.mxu0 %v17392_v51  ;;  %13422 = vmatprep.subr.bf16.mxu1 %v17395_v57  ;;  %v17451_v51 = vld [vmem:[%s23583_s5 + $0x1400] ss:$28 sps:$4 sm:$0xff]   ;;  %v17448_v57 = vld [vmem:[%s23583_s5 + $0x978] ss:$28 sps:$4 sm:$0xff]  }
 0x69d   :  { %15940 = vmatprep.subr.bf16.mxu0 %v17396_v63  ;;  %v17452_v63 = vld [vmem:[%s23583_s5 + $0x1240] ss:$28 sps:$4 sm:$0xff]  }
 0x69e   :  { %13412 = vmatmul.mubr.bf16.vlgmr.msra.gmra.mrb[24].mxu1 %v19642_v30  ;;  %v17405_v30 = vld [vmem:[%s23583_s5 + $0x784] ss:$28 sps:$4 sm:$0xff]  }
 0x69f   :  { %13836 = vmatmul.mubr.bf16.vlgmr.msra.gmra.mrb[44].mxu0 %v20250_v1  ;;  %13423 = vmatpush1.bf16.msra.mxu1 %v17393_v4  ;;  %v17455_v4 = vld [vmem:[%s23583_s5 + $0x9b4] ss:$28 sps:$4 sm:$0xff]  }
 0x6a0   :  { %13454 = vmatprep.mubr.bf16.mxu1 %v20252_v23  ;;  %15941 = vmatpush3.bf16.msra.mxu0 %v17397_v5  ;;  %v17403_v23 = vld [vmem:[%s23583_s5 + $0x780] ss:$28 sps:$4 sm:$0xff]   ;;  %v17456_v5 = vld [vmem:[%s23583_s5 + $0x1438] ss:$28 sps:$4 sm:$0xff]  }
 0x6a1   :  { %13876 = vmatprep.mubr.bf16.mxu0 %v20846_v48  ;;  %13424 = vmatprep.subr.bf16.mxu1 %v17400_v7  ;;  %v17453_v7 = vld [vmem:[%s23583_s5 + $0x9b0] ss:$28 sps:$4 sm:$0xff]  }
 0x6a2   :  { %15942 = vmatprep.subr.bf16.mxu0 %v17401_v8  ;;  %v17457_v8 = vld [vmem:[%s23583_s5 + $0x1278] ss:$28 sps:$4 sm:$0xff]  }
 0x6a3   :  { %13425 = vmatpush1.bf16.msra.mxu1 %v17398_v10  ;;  %v17460_v10 = vld [vmem:[%s23583_s5 + $0x9ec] ss:$28 sps:$4 sm:$0xff]  }
 0x6a4   :  { %15943 = vmatpush3.bf16.msra.mxu0 %v17402_v60  ;;  %13426 = vmatprep.subr.bf16.mxu1 %v17405_v30  ;;  %v17461_v60 = vld [vmem:[%s23583_s5 + $0x1470] ss:$28 sps:$4 sm:$0xff]   ;;  %v17458_v30 = vld [vmem:[%s23583_s5 + $0x9e8] ss:$28 sps:$4 sm:$0xff]  }
 0x6a5   :  { %15944 = vmatprep.subr.bf16.mxu0 %v17406_v31  ;;  %v17462_v31 = vld [vmem:[%s23583_s5 + $0x12b0] ss:$28 sps:$4 sm:$0xff]  }
 0x6a7   :  { %13427 = vmatpush1.bf16.msra.mxu1 %v17403_v23  ;;  %v17465_v23 = vld [vmem:[%s23583_s5 + $0xa24] ss:$28 sps:$4 sm:$0xff]  }
 0x6a8   :  { %15945 = vmatpush3.bf16.msra.mxu0 %v17407_v0  ;;  %13428 = vmatprep.subr.bf16.mxu1 %v17410_v19  ;;  %v17466_v0 = vld [vmem:[%s23583_s5 + $0x14a8] ss:$28 sps:$4 sm:$0xff]   ;;  %v17463_v19 = vld [vmem:[%s23583_s5 + $0xa20] ss:$28 sps:$4 sm:$0xff]  }
 0x6a9   :  { %15946 = vmatprep.subr.bf16.mxu0 %v17411_v13  ;;  %v17467_v13 = vld [vmem:[%s23583_s5 + $0x12e8] ss:$28 sps:$4 sm:$0xff]  }
 0x6ab   :  { %13429 = vmatpush1.bf16.msra.mxu1 %v17408_v12  ;;  %v17470_v12 = vld [vmem:[%s23583_s5 + $0xa5c] ss:$28 sps:$4 sm:$0xff]  }
 0x6ac   :  { %15947 = vmatpush3.bf16.msra.mxu0 %v17412_v26  ;;  %13430 = vmatprep.subr.bf16.mxu1 %v17415_v15  ;;  %v17471_v26 = vld [vmem:[%s23583_s5 + $0x14e0] ss:$28 sps:$4 sm:$0xff]   ;;  %v17468_v15 = vld [vmem:[%s23583_s5 + $0xa58] ss:$28 sps:$4 sm:$0xff]  }
 0x6ad   :  { %15948 = vmatprep.subr.bf16.mxu0 %v17416_v11  ;;  %v17472_v11 = vld [vmem:[%s23583_s5 + $0x1320] ss:$28 sps:$4 sm:$0xff]  }
 0x6af   :  { %13431 = vmatpush1.bf16.msra.mxu1 %v17413_v16  ;;  %v17475_v16 = vld [vmem:[%s23583_s5 + $0xa94] ss:$28 sps:$4 sm:$0xff]  }
 0x6b0   :  { %15949 = vmatpush3.bf16.msra.mxu0 %v17417_v17  ;;  %13432 = vmatprep.subr.bf16.mxu1 %v17420_v22  ;;  %v17476_v17 = vld [vmem:[%s23583_s5 + $0x16d8] ss:$28 sps:$4 sm:$0xff]   ;;  %v17473_v22 = vld [vmem:[%s23583_s5 + $0xa90] ss:$28 sps:$4 sm:$0xff]  }
 0x6b1   :  { %15950 = vmatprep.subr.bf16.mxu0 %v17421_v55  ;;  %v17477_v55 = vld [vmem:[%s23583_s5 + $0x1518] ss:$28 sps:$4 sm:$0xff]  }
 0x6b3   :  { %13433 = vmatpush1.bf16.msra.mxu1 %v17418_v44  ;;  %v17480_v44 = vld [vmem:[%s23583_s5 + $0xacc] ss:$28 sps:$4 sm:$0xff]  }
 0x6b4   :  { %15951 = vmatpush3.bf16.msra.mxu0 %v17422_v24  ;;  %13434 = vmatprep.subr.bf16.mxu1 %v17425_v35  ;;  %v17481_v24 = vld [vmem:[%s23583_s5 + $0x1710] ss:$28 sps:$4 sm:$0xff]   ;;  %v17478_v35 = vld [vmem:[%s23583_s5 + $0xac8] ss:$28 sps:$4 sm:$0xff]  }
 0x6b5   :  { %15952 = vmatprep.subr.bf16.mxu0 %v17426_v25  ;;  %v17482_v25 = vld [vmem:[%s23583_s5 + $0x1550] ss:$28 sps:$4 sm:$0xff]  }
 0x6b7   :  { %13435 = vmatpush1.bf16.msra.mxu1 %v17423_v14  ;;  %v17486_v14 = vld [vmem:[%s23583_s5 + $0x1748] ss:$28 sps:$4 sm:$0xff]  }
 0x6b8   :  { %15953 = vmatpush3.bf16.msra.mxu0 %v17427_v33  ;;  %13436 = vmatprep.subr.bf16.mxu1 %v17430_v18  ;;  %v17487_v33 = vld [vmem:[%s23583_s5 + $0x1588] ss:$28 sps:$4 sm:$0xff]   ;;  %v17490_v18 = vld [vmem:[%s23583_s5 + $0xb3c] ss:$28 sps:$4 sm:$0xff]  }
 0x6b9   :  { %15954 = vmatprep.subr.bf16.mxu0 %v17431_v36  ;;  %v17491_v36 = vld [vmem:[%s23583_s5 + $0x1780] ss:$28 sps:$4 sm:$0xff]  }
 0x6bb   :  { %13437 = vmatpush1.bf16.msra.mxu1 %v17428_v37  ;;  %v17488_v37 = vld [vmem:[%s23583_s5 + $0xb38] ss:$28 sps:$4 sm:$0xff]  }
 0x6bc   :  { %15955 = vmatpush3.bf16.msra.mxu0 %v17432_v21  ;;  %13438 = vmatprep.subr.bf16.mxu1 %v17435_v38  ;;  %v17492_v21 = vld [vmem:[%s23583_s5 + $0x15c0] ss:$28 sps:$4 sm:$0xff]   ;;  %v17495_v38 = vld [vmem:[%s23583_s5 + $0xb74] ss:$28 sps:$4 sm:$0xff]  }
 0x6bd   :  { %15962 = vmatprep.subr.bf16.mxu0 %v17436_v39  ;;  %v17496_v39 = vld [vmem:[%s23583_s5 + $0x17b8] ss:$28 sps:$4 sm:$0xff]  }
 0x6bf   :  { %13877 = vmatmul.mubr.bf16.vlgmr.msra.gmra.mrb[48].mxu0 %v20839_v61  ;;  %13439 = vmatpush1.bf16.msra.mxu1 %v17433_v28  ;;  %v17493_v28 = vld [vmem:[%s23583_s5 + $0xb70] ss:$28 sps:$4 sm:$0xff]  }
 0x6c0   :  { %15963 = vmatpush3.bf16.msra.mxu0 %v17437_v40  ;;  %13917 = vmatprep.mubr.bf16.mxu0 %v20854_v52  ;;  %v22989_v40 = vld [vmem:[%s23584_s6] sm:$0x7f] }
 0x6c1   :  { %13440 = vmatprep.subr.bf16.mxu1 %v17440_v34  ;;  %15964 = vmatprep.subr.bf16.mxu0 %v17441_v41  ;;  %v17497_v34 = vld [vmem:[%s23583_s5 + $0x15f8] ss:$28 sps:$4 sm:$0xff]   ;;  %v17500_v41 = vld [vmem:[%s23583_s5 + $0xbac] ss:$28 sps:$4 sm:$0xff]  }
 0x6c3   :  { %13441 = vmatpush1.bf16.msra.mxu1 %v17438_v42  ;;  %v17501_v42 = vld [vmem:[%s23583_s5 + $0x17f0] ss:$28 sps:$4 sm:$0xff]  }
 0x6c4   :  { %15965 = vmatpush3.bf16.msra.mxu0 %v17442_v59  ;;  %13442 = vmatprep.subr.bf16.mxu1 %v17445_v43  ;;  %v8008_v59 = vrot.slane %v22989_v40, %v18480_v29  ;;  %v8016_v43 = vrot.slane %v22989_v40, %v18686_v50  ;;  %v17502_v29 = vld [vmem:[%s23583_s5 + $0x1630] ss:$28 sps:$4 sm:$0xff]   ;;  %v17505_v50 = vld [vmem:[%s23583_s5 + $0xbe4] ss:$28 sps:$4 sm:$0xff]  }
 0x6c5   :  { %15966 = vmatprep.subr.bf16.mxu0 %v17446_v45  ;;  %v8012_v45 = vrot.slane %v22989_v40, %v18488_v32  ;;  %v17506_v32 = vld [vmem:[%s23583_s5 + $0x1828] ss:$28 sps:$4 sm:$0xff]  }
 0x6c7   :  { %13443 = vmatpush1.bf16.msra.mxu1 %v17443_v56  ;;  %v17498_v56 = vld [vmem:[%s23583_s5 + $0xba8] ss:$28 sps:$4 sm:$0xff]  }
 0x6c8   :  { %15967 = vmatpush3.bf16.msra.mxu0 %v17447_v46  ;;  %13444 = vmatprep.subr.bf16.mxu1 %v17450_v49  ;;  %v8020_v46 = vrot.slane %v22989_v40, %v18689_v53 }
 0x6c9   :  { %15968 = vmatprep.subr.bf16.mxu0 %v17451_v51 }
 0x6cb   :  { %13445 = vmatpush1.bf16.msra.mxu1 %v17448_v57 }
 0x6cc   :  { %15969 = vmatpush3.bf16.msra.mxu0 %v17452_v63  ;;  %13446 = vmatprep.subr.bf16.mxu1 %v17455_v4 }
 0x6cd   :  { %15970 = vmatprep.subr.bf16.mxu0 %v17456_v5 }
 0x6cf   :  { %13447 = vmatpush1.bf16.msra.mxu1 %v17453_v7 }
 0x6d0   :  { %15971 = vmatpush3.bf16.msra.mxu0 %v17457_v8  ;;  %13448 = vmatprep.subr.bf16.mxu1 %v17460_v10  ;;  %v17503_v8 = vld [vmem:[%s23583_s5 + $0xbe0] ss:$28 sps:$4 sm:$0xff]  }
 0x6d1   :  { %15972 = vmatprep.subr.bf16.mxu0 %v17461_v60 }
 0x6d3   :  { %13449 = vmatpush1.bf16.msra.mxu1 %v17458_v30 }
 0x6d4   :  { %15973 = vmatpush3.bf16.msra.mxu0 %v17462_v31  ;;  %13450 = vmatprep.subr.bf16.mxu1 %v17465_v23  ;;  %v17507_v23 = vld [vmem:[%s23583_s5 + $0x1668] ss:$28 sps:$4 sm:$0xff]  }
 0x6d5   :  { %15974 = vmatprep.subr.bf16.mxu0 %v17466_v0  ;;  %v17510_v0 = vld [vmem:[%s23583_s5 + $0xc1c] ss:$28 sps:$4 sm:$0xff]  }
 0x6d7   :  { %13451 = vmatpush1.bf16.msra.mxu1 %v17463_v19 }
 0x6d8   :  { %15975 = vmatpush3.bf16.msra.mxu0 %v17467_v13  ;;  %13452 = vmatprep.subr.bf16.mxu1 %v17470_v12  ;;  %v17511_v12 = vld [vmem:[%s23583_s5 + $0x1860] ss:$28 sps:$4 sm:$0xff]  }
 0x6d9   :  { %15976 = vmatprep.subr.bf16.mxu0 %v17471_v26 }
 0x6db   :  { %13453 = vmatpush1.bf16.msra.mxu1 %v17468_v15 }
 0x6dc   :  { %15977 = vmatpush3.bf16.msra.mxu0 %v17472_v11  ;;  %13465 = vmatprep.subr.bf16.mxu1 %v17475_v16  ;;  %v17508_v11 = vld [vmem:[%s23583_s5 + $0xc18] ss:$28 sps:$4 sm:$0xff]   ;;  %v17512_v16 = vld [vmem:[%s23583_s5 + $0x16a0] ss:$28 sps:$4 sm:$0xff]  }
 0x6dd   :  { %15984 = vmatprep.subr.bf16.mxu0 %v17476_v17  ;;  %v17515_v17 = vld [vmem:[%s23583_s5 + $0xc54] ss:$28 sps:$4 sm:$0xff]  }
 0x6de   :  { %13455 = vmatmul.mubr.bf16.vlgmr.msra.gmra.mrb[24].mxu1 %v20248_v20  ;;  %v17485_v20 = vld [vmem:[%s23583_s5 + $0xb04] ss:$28 sps:$4 sm:$0xff]  }
 0x6df   :  { %13918 = vmatmul.mubr.bf16.vlgmr.msra.gmra.mrb[52].mxu0 %v20844_v47  ;;  %13466 = vmatpush1.bf16.msra.mxu1 %v17473_v22  ;;  %v17516_v22 = vld [vmem:[%s23583_s5 + $0x1a58] ss:$28 sps:$4 sm:$0xff]  }
 0x6e0   :  { %13497 = vmatprep.mubr.bf16.mxu1 %v20260_v27  ;;  %15985 = vmatpush3.bf16.msra.mxu0 %v17477_v55  ;;  %v17483_v27 = vld [vmem:[%s23583_s5 + $0xb00] ss:$28 sps:$4 sm:$0xff]   ;;  %v17513_v55 = vld [vmem:[%s23583_s5 + $0xc50] ss:$28 sps:$4 sm:$0xff]  }
 0x6e1   :  { %13958 = vmatprep.mubr.bf16.mxu0 %v21450_v3  ;;  %13467 = vmatprep.subr.bf16.mxu1 %v17480_v44  ;;  %v17517_v44 = vld [vmem:[%s23583_s5 + $0x1898] ss:$28 sps:$4 sm:$0xff]  }
 0x6e2   :  { %15986 = vmatprep.subr.bf16.mxu0 %v17481_v24  ;;  %v17520_v24 = vld [vmem:[%s23583_s5 + $0xc8c] ss:$28 sps:$4 sm:$0xff]  }
 0x6e3   :  { %13468 = vmatpush1.bf16.msra.mxu1 %v17478_v35  ;;  %v17521_v35 = vld [vmem:[%s23583_s5 + $0x1a90] ss:$28 sps:$4 sm:$0xff]  }
 0x6e4   :  { %15987 = vmatpush3.bf16.msra.mxu0 %v17482_v25  ;;  %13469 = vmatprep.subr.bf16.mxu1 %v17485_v20 }
 0x6e5   :  { %15988 = vmatprep.subr.bf16.mxu0 %v17486_v14  ;;  %v17518_v14 = vld [vmem:[%s23583_s5 + $0xc88] ss:$28 sps:$4 sm:$0xff]  }
 0x6e7   :  { %13470 = vmatpush1.bf16.msra.mxu1 %v17483_v27 }
 0x6e8   :  { %15989 = vmatpush3.bf16.msra.mxu0 %v17487_v33  ;;  %13471 = vmatprep.subr.bf16.mxu1 %v17490_v18  ;;  %v17522_v33 = vld [vmem:[%s23583_s5 + $0x18d0] ss:$28 sps:$4 sm:$0xff]   ;;  %v17525_v18 = vld [vmem:[%s23583_s5 + $0xcc4] ss:$28 sps:$4 sm:$0xff]  }
 0x6e9   :  { %15990 = vmatprep.subr.bf16.mxu0 %v17491_v36 }
 0x6eb   :  { %13472 = vmatpush1.bf16.msra.mxu1 %v17488_v37  ;;  %v17526_v37 = vld [vmem:[%s23583_s5 + $0x1ac8] ss:$28 sps:$4 sm:$0xff]  }
 0x6ec   :  { %15991 = vmatpush3.bf16.msra.mxu0 %v17492_v21  ;;  %13473 = vmatprep.subr.bf16.mxu1 %v17495_v38 }
 0x6ed   :  { %15992 = vmatprep.subr.bf16.mxu0 %v17496_v39  ;;  %v17523_v39 = vld [vmem:[%s23583_s5 + $0xcc0] ss:$28 sps:$4 sm:$0xff]  }
 0x6ef   :  { %13474 = vmatpush1.bf16.msra.mxu1 %v17493_v28 }
 0x6f0   :  { %15993 = vmatpush3.bf16.msra.mxu0 %v17497_v34  ;;  %13475 = vmatprep.subr.bf16.mxu1 %v17500_v41  ;;  %v17527_v34 = vld [vmem:[%s23583_s5 + $0x1908] ss:$28 sps:$4 sm:$0xff]   ;;  %v17530_v41 = vld [vmem:[%s23583_s5 + $0xcfc] ss:$28 sps:$4 sm:$0xff]  }
 0x6f1   :  { %v12983_v49 = vpop.f32.mrb[20].mxu1  ;;  %15994 = vmatprep.subr.bf16.mxu0 %v17501_v42 }
 0x6f2   :  { %v16076_v51 = vadd.f32 %v12983_v49, %v8008_v59  ;;  %v13327_v57 = vpop.f32.mrb[28].mxu0  ;;  %v12985_v63 = vpop.f32.mrb[21].mxu1  ;;  %v17540_v49 = vld [vmem:[%s23583_s5 + $0xd6c] ss:$28 sps:$4 sm:$0xff]  }
 0x6f3   :  { %v16080_v4 = vadd.f32 %v13327_v57, %v8016_v43  ;;  %v16077_v53 = vadd.f32 %v12985_v63, %v8012_v45  ;;  %v13329_v5 = vpop.f32.mrb[29].mxu0  ;;  %v12987_v7 = vpop.f32.mrb[22].mxu1  ;;  %13476 = vmatpush1.bf16.msra.mxu1 %v17498_v56  ;;  %v17535_v56 = vld [vmem:[%s23583_s5 + $0xd34] ss:$28 sps:$4 sm:$0xff]   ;;  %v17545_v63 = vld [vmem:[%s23583_s5 + $0xda4] ss:$28 sps:$4 sm:$0xff]  }
 0x6f4   :  { %17745 = vtanh.f32 %v16076_v51  ;;  %v16081_v10 = vadd.f32 %v13329_v5, %v8020_v46  ;;  %v16078_v60 = vadd.f32 %v12987_v7, %v8008_v59  ;;  %v13331_v30 = vpop.f32.mrb[30].mxu0  ;;  %15995 = vmatpush3.bf16.msra.mxu0 %v17502_v29  ;;  %v12989_v31 = vpop.f32.mrb[23].mxu1  ;;  %13477 = vmatprep.subr.bf16.mxu1 %v17505_v50  ;;  %v17531_v59 = vld [vmem:[%s23583_s5 + $0x1b00] ss:$28 sps:$4 sm:$0xff]   ;;  %v17533_v29 = vld [vmem:[%s23583_s5 + $0xd30] ss:$28 sps:$4 sm:$0xff]  }
 0x6f5   :  { %17747 = vtanh.f32 %v16080_v4  ;;  %v16082_v19 = vadd.f32 %v13331_v30, %v8016_v43  ;;  %v13333_v13 = vpop.f32.mrb[31].mxu0  ;;  %15996 = vmatprep.subr.bf16.mxu0 %v17506_v32  ;;  %v16079_v26 = vadd.f32 %v12989_v31, %v8012_v45  ;;  %v17528_v43 = vld [vmem:[%s23583_s5 + $0xcf8] ss:$28 sps:$4 sm:$0xff]   ;;  %v17532_v45 = vld [vmem:[%s23583_s5 + $0x1940] ss:$28 sps:$4 sm:$0xff]  }
 0x6f6   :  { %17749 = vtanh.f32 %v16077_v53  ;;  %v16083_v15 = vadd.f32 %v13333_v13, %v8020_v46  ;;  %v17536_v46 = vld [vmem:[%s23583_s5 + $0x1b38] ss:$28 sps:$4 sm:$0xff]   ;;  %v17541_v32 = vld [vmem:[%s23583_s5 + $0x1b70] ss:$28 sps:$4 sm:$0xff]   ;;  %v17538_v51 = vld [vmem:[%s23583_s5 + $0xd68] ss:$28 sps:$4 sm:$0xff]  }
 0x6f7   :  { %17751 = vtanh.f32 %v16081_v10  ;;  %13478 = vmatpush1.bf16.msra.mxu1 %v17503_v8  ;;  %v17537_v50 = vld [vmem:[%s23583_s5 + $0x1978] ss:$28 sps:$4 sm:$0xff]   ;;  %v17542_v57 = vld [vmem:[%s23583_s5 + $0x19b0] ss:$28 sps:$4 sm:$0xff]   ;;  %v17546_v4 = vld [vmem:[%s23583_s5 + $0x1ba8] ss:$28 sps:$4 sm:$0xff]  }
 0x6f8   :  { %17753 = vtanh.f32 %v16078_v60  ;;  %15997 = vmatpush3.bf16.msra.mxu0 %v17507_v23  ;;  %13479 = vmatprep.subr.bf16.mxu1 %v17510_v0  ;;  %v17543_v7 = vld [vmem:[%s23583_s5 + $0xda0] ss:$28 sps:$4 sm:$0xff]   ;;  %v17547_v60 = vld [vmem:[%s23583_s5 + $0x19e8] ss:$28 sps:$4 sm:$0xff]  }
 0x6f9   :  { %17755 = vtanh.f32 %v16082_v19  ;;  %15998 = vmatprep.subr.bf16.mxu0 %v17511_v12  ;;  %v17550_v30 = vld [vmem:[%s23583_s5 + $0xddc] ss:$28 sps:$4 sm:$0xff]   ;;  %v17555_v12 = vld [vmem:[%s23583_s5 + $0xe14] ss:$28 sps:$4 sm:$0xff]  }
 0x6fa   :  { %17757 = vtanh.f32 %v16079_v26  ;;  %v17551_v23 = vld [vmem:[%s23583_s5 + $0x1be0] ss:$28 sps:$4 sm:$0xff]   ;;  %v17548_v19 = vld [vmem:[%s23583_s5 + $0xdd8] ss:$28 sps:$4 sm:$0xff]   ;;  %v17553_v26 = vld [vmem:[%s23583_s5 + $0xe10] ss:$28 sps:$4 sm:$0xff]  }
 0x6fb   :  { %17759 = vtanh.f32 %v16083_v15  ;;  %13480 = vmatpush1.bf16.msra.mxu1 %v17508_v11  ;;  %v17552_v13 = vld [vmem:[%s23583_s5 + $0x1a20] ss:$28 sps:$4 sm:$0xff]   ;;  %v17558_v15 = vld [vmem:[%s23583_s5 + $0xe4c] ss:$28 sps:$4 sm:$0xff]  }
 0x6fc   :  { %15999 = vmatpush3.bf16.msra.mxu0 %v17512_v16  ;;  %13481 = vmatprep.subr.bf16.mxu1 %v17515_v17  ;;  %v17556_v11 = vld [vmem:[%s23583_s5 + $0xe48] ss:$28 sps:$4 sm:$0xff]   ;;  %v17559_v17 = vld [vmem:[%s23583_s5 + $0xe80] ss:$28 sps:$4 sm:$0xff]  }
 0x6fd   :  { %16006 = vmatprep.subr.bf16.mxu0 %v17516_v22  ;;  %v17561_v16 = vld [vmem:[%s23583_s5 + $0xe84] ss:$28 sps:$4 sm:$0xff]   ;;  %v17567_v22 = vld [vmem:[%s23583_s5 + $0xef4] ss:$28 sps:$4 sm:$0xff]  }
 0x6fe   :  { %v17746_v25 = vpop.eup %17745 }
 0x6ff   :  { %v17748_v20 = vpop.eup %17747  ;;  %14022 = vst [vmem:[%s23585_s7] sm:$0xff] %v17746_v25  ;;  %13959 = vmatmul.mubr.bf16.vlgmr.msra.gmra.mrb[56].mxu0 %v21443_v54  ;;  %13482 = vmatpush1.bf16.msra.mxu1 %v17513_v55  ;;  %v17565_v55 = vld [vmem:[%s23583_s5 + $0xef0] ss:$28 sps:$4 sm:$0xff]   ;;  %v17573_v25 = vld [vmem:[%s23583_s5 + $0xf64] ss:$28 sps:$4 sm:$0xff]  }
 0x700   :  { %v17750_v27 = vpop.eup %17749  ;;  %14024 = vst [vmem:[%s23585_s7 + $0x10] sm:$0xff] %v17748_v20  ;;  %16007 = vmatpush3.bf16.msra.mxu0 %v17517_v44  ;;  %13999 = vmatprep.mubr.bf16.mxu0 %v21458_v6  ;;  %v17570_v44 = vld [vmem:[%s23583_s5 + $0xf2c] ss:$28 sps:$4 sm:$0xff]  }
 0x701   :  { %v17752_v36 = vpop.eup %17751  ;;  %14023 = vst [vmem:[%s23585_s7 + $0x8] sm:$0xff] %v17750_v27  ;;  %13483 = vmatprep.subr.bf16.mxu1 %v17520_v24  ;;  %16008 = vmatprep.subr.bf16.mxu0 %v17521_v35  ;;  %v17568_v24 = vld [vmem:[%s23583_s5 + $0xf28] ss:$28 sps:$4 sm:$0xff]   ;;  %v8032_v35 = vrot.slane %v22989_v40, %v20201_v9  ;;  %v17571_v27 = vld [vmem:[%s23583_s5 + $0xf60] ss:$28 sps:$4 sm:$0xff]  }
 0x702   :  { %v17754_v21 = vpop.eup %17753  ;;  %14025 = vst [vmem:[%s23585_s7 + $0x18] sm:$0xff] %v17752_v36  ;;  %v17576_v9 = vld [vmem:[%s23583_s5 + $0xf9c] ss:$28 sps:$4 sm:$0xff]  }
 0x703   :  { %v17756_v38 = vpop.eup %17755  ;;  %14030 = vst [vmem:[%s23585_s7 + $0x38] sm:$0xff] %v17754_v21  ;;  %13484 = vmatpush1.bf16.msra.mxu1 %v17518_v14 }
 0x704   :  { %v17758_v28 = vpop.eup %17757  ;;  %14032 = vst [vmem:[%s23585_s7 + $0x48] sm:$0xff] %v17756_v38  ;;  %16009 = vmatpush3.bf16.msra.mxu0 %v17522_v33  ;;  %13485 = vmatprep.subr.bf16.mxu1 %v17525_v18 }
 0x705   :  { %v17760_v42 = vpop.eup %17759  ;;  %14031 = vst [vmem:[%s23585_s7 + $0x40] sm:$0xff] %v17758_v28  ;;  %16010 = vmatprep.subr.bf16.mxu0 %v17526_v37  ;;  %v17574_v28 = vld [vmem:[%s23583_s5 + $0xf98] ss:$28 sps:$4 sm:$0xff]  }
 0x706   :  { %14033 = vst [vmem:[%s23585_s7 + $0x50] sm:$0xff] %v17760_v42  ;;  %v17577_v42 = vld [vmem:[%s23583_s5 + $0xfd0] ss:$28 sps:$4 sm:$0xff]  }
 0x707   :  { %13486 = vmatpush1.bf16.msra.mxu1 %v17523_v39 }
 0x708   :  { %16011 = vmatpush3.bf16.msra.mxu0 %v17527_v34  ;;  %13487 = vmatprep.subr.bf16.mxu1 %v17530_v41  ;;  %v17579_v41 = vld [vmem:[%s23583_s5 + $0xfd4] ss:$28 sps:$4 sm:$0xff]  }
 0x709   :  { %16012 = vmatprep.subr.bf16.mxu0 %v17531_v59  ;;  %v17582_v59 = vld [vmem:[%s23583_s5 + $0x100c] ss:$28 sps:$4 sm:$0xff]  }
 0x70b   :  { %13488 = vmatpush1.bf16.msra.mxu1 %v17528_v43  ;;  %v17580_v43 = vld [vmem:[%s23583_s5 + $0x1008] ss:$28 sps:$4 sm:$0xff]  }
 0x70c   :  { %16013 = vmatpush3.bf16.msra.mxu0 %v17532_v45  ;;  %13489 = vmatprep.subr.bf16.mxu1 %v17535_v56  ;;  %v17585_v45 = vld [vmem:[%s23583_s5 + $0x1044] ss:$28 sps:$4 sm:$0xff]  }
 0x70d   :  { %16014 = vmatprep.subr.bf16.mxu0 %v17536_v46  ;;  %v17583_v56 = vld [vmem:[%s23583_s5 + $0x1040] ss:$28 sps:$4 sm:$0xff]  }
 0x70e   :  { %v17588_v46 = vld [vmem:[%s23583_s5 + $0x107c] ss:$28 sps:$4 sm:$0xff]  }
 0x70f   :  { %13490 = vmatpush1.bf16.msra.mxu1 %v17533_v29  ;;  %v17586_v29 = vld [vmem:[%s23583_s5 + $0x1078] ss:$28 sps:$4 sm:$0xff]  }
 0x710   :  { %16015 = vmatpush3.bf16.msra.mxu0 %v17537_v50  ;;  %13491 = vmatprep.subr.bf16.mxu1 %v17540_v49  ;;  %v17591_v50 = vld [vmem:[%s23583_s5 + $0x10b4] ss:$28 sps:$4 sm:$0xff]  }
 0x711   :  { %16016 = vmatprep.subr.bf16.mxu0 %v17541_v32  ;;  %v17589_v49 = vld [vmem:[%s23583_s5 + $0x10b0] ss:$28 sps:$4 sm:$0xff]  }
 0x712   :  { %v15868_v53 = vpop.f32.mrb[32].mxu0  ;;  %v17594_v32 = vld [vmem:[%s23583_s5 + $0x10ec] ss:$28 sps:$4 sm:$0xff]  }
 0x713   :  { %v15869_v5 = vpop.f32.mrb[33].mxu0  ;;  %13492 = vmatpush1.bf16.msra.mxu1 %v17538_v51  ;;  %v17592_v51 = vld [vmem:[%s23583_s5 + $0x10e8] ss:$28 sps:$4 sm:$0xff]  }
 0x714   :  { %v15870_v8 = vadd.f32 %v15869_v5, %v15868_v53  ;;  %v15871_v10 = vpop.f32.mrb[34].mxu0  ;;  %16017 = vmatpush3.bf16.msra.mxu0 %v17542_v57  ;;  %13493 = vmatprep.subr.bf16.mxu1 %v17545_v63  ;;  %v17597_v57 = vld [vmem:[%s23583_s5 + $0x1124] ss:$28 sps:$4 sm:$0xff]  }
 0x715   :  { %v15872_v31 = vpop.f32.mrb[35].mxu0  ;;  %16018 = vmatprep.subr.bf16.mxu0 %v17546_v4  ;;  %v17595_v53 = vld [vmem:[%s23583_s5 + $0x1120] ss:$28 sps:$4 sm:$0xff]  }
 0x716   :  { %v15873_v0 = vadd.f32 %v15872_v31, %v15871_v10  ;;  %v13715_v33 = vadd.f32 %v15870_v8, %v8032_v35  ;;  %v17600_v8 = vld [vmem:[%s23583_s5 + $0x115c] ss:$28 sps:$4 sm:$0xff]  }
 0x717   :  { %13494 = vmatpush1.bf16.msra.mxu1 %v17543_v7  ;;  %v17598_v31 = vld [vmem:[%s23583_s5 + $0x1158] ss:$28 sps:$4 sm:$0xff]  }
 0x718   :  { %16019 = vmatpush3.bf16.msra.mxu0 %v17547_v60  ;;  %13495 = vmatprep.subr.bf16.mxu1 %v17550_v30  ;;  %v13718_v21 = vadd.f32 %v15873_v0, %v8032_v35  ;;  %v17603_v0 = vld [vmem:[%s23583_s5 + $0x1194] ss:$28 sps:$4 sm:$0xff]  }
 0x719   :  { %16020 = vmatprep.subr.bf16.mxu0 %v17551_v23 }
 0x71b   :  { %13496 = vmatpush1.bf16.msra.mxu1 %v17548_v19  ;;  %v17601_v19 = vld [vmem:[%s23583_s5 + $0x1190] ss:$28 sps:$4 sm:$0xff]  }
 0x71c   :  { %16021 = vmatpush3.bf16.msra.mxu0 %v17552_v13  ;;  %13508 = vmatprep.subr.bf16.mxu1 %v17555_v12  ;;  %v17606_v13 = vld [vmem:[%s23583_s5 + $0x11cc] ss:$28 sps:$4 sm:$0xff]  }
 0x71d   :  { %v17604_v12 = vld [vmem:[%s23583_s5 + $0x11c8] ss:$28 sps:$4 sm:$0xff]  }
 0x71e   :  { %13498 = vmatmul.mubr.bf16.vlgmr.msra.gmra.mrb[24].mxu1 %v20250_v1  ;;  %v17564_v1 = vld [vmem:[%s23583_s5 + $0xebc] ss:$28 sps:$4 sm:$0xff]  }
 0x71f   :  { %14000 = vmatmul.mubr.bf16.vlgmr.msra.gmra.mrb[60].mxu0 %v21448_v2  ;;  %13509 = vmatpush1.bf16.msra.mxu1 %v17553_v26  ;;  %v17609_v26 = vld [vmem:[%s23583_s5 + $0x1204] ss:$28 sps:$4 sm:$0xff]  }
 0x720   :  { %13540 = vmatprep.mubr.bf16.mxu1 %v20846_v48  ;;  %13510 = vmatprep.subr.bf16.mxu1 %v17558_v15  ;;  %v17562_v48 = vld [vmem:[%s23583_s5 + $0xeb8] ss:$28 sps:$4 sm:$0xff]   ;;  %v17607_v15 = vld [vmem:[%s23583_s5 + $0x1200] ss:$28 sps:$4 sm:$0xff]  }
 0x723   :  { %13511 = vmatpush1.bf16.msra.mxu1 %v17556_v11  ;;  %v17615_v11 = vld [vmem:[%s23583_s5 + $0x1274] ss:$28 sps:$4 sm:$0xff]  }
 0x724   :  { %13512 = vmatprep.subr.bf16.mxu1 %v17561_v16  ;;  %v17613_v16 = vld [vmem:[%s23583_s5 + $0x1270] ss:$28 sps:$4 sm:$0xff]  }
 0x727   :  { %13513 = vmatpush1.bf16.msra.mxu1 %v17559_v17  ;;  %v17618_v17 = vld [vmem:[%s23583_s5 + $0x12ac] ss:$28 sps:$4 sm:$0xff]  }
 0x728   :  { %13514 = vmatprep.subr.bf16.mxu1 %v17564_v1  ;;  %v17616_v1 = vld [vmem:[%s23583_s5 + $0x12a8] ss:$28 sps:$4 sm:$0xff]  }
 0x72b   :  { %13515 = vmatpush1.bf16.msra.mxu1 %v17562_v48  ;;  %v17621_v48 = vld [vmem:[%s23583_s5 + $0x12e4] ss:$28 sps:$4 sm:$0xff]  }
 0x72c   :  { %13516 = vmatprep.subr.bf16.mxu1 %v17567_v22 }
 0x72f   :  { %13517 = vmatpush1.bf16.msra.mxu1 %v17565_v55 }
 0x730   :  { %13518 = vmatprep.subr.bf16.mxu1 %v17570_v44  ;;  %v17619_v44 = vld [vmem:[%s23583_s5 + $0x12e0] ss:$28 sps:$4 sm:$0xff]  }
 0x732   :  { %v15890_v20 = vpop.f32.mrb[36].mxu0 }
 0x733   :  { %v15891_v14 = vpop.f32.mrb[37].mxu0  ;;  %13519 = vmatpush1.bf16.msra.mxu1 %v17568_v24 }
 0x734   :  { %v15892_v18 = vadd.f32 %v15891_v14, %v15890_v20  ;;  %v15893_v36 = vpop.f32.mrb[38].mxu0  ;;  %13520 = vmatprep.subr.bf16.mxu1 %v17573_v25  ;;  %v17624_v25 = vld [vmem:[%s23583_s5 + $0x131c] ss:$28 sps:$4 sm:$0xff]  }
 0x735   :  { %v15894_v37 = vpop.f32.mrb[39].mxu0 }
 0x736   :  { %v13756_v38 = vadd.f32 %v15892_v18, %v13715_v33  ;;  %v15895_v39 = vadd.f32 %v15894_v37, %v15893_v36  ;;  %v17622_v33 = vld [vmem:[%s23583_s5 + $0x1318] ss:$28 sps:$4 sm:$0xff]   ;;  %v17630_v37 = vld [vmem:[%s23583_s5 + $0x138c] ss:$28 sps:$4 sm:$0xff]  }
 0x737   :  { %13521 = vmatpush1.bf16.msra.mxu1 %v17571_v27  ;;  %v17627_v36 = vld [vmem:[%s23583_s5 + $0x1354] ss:$28 sps:$4 sm:$0xff]  }
 0x738   :  { %v13759_v34 = vadd.f32 %v15895_v39, %v13718_v21  ;;  %13522 = vmatprep.subr.bf16.mxu1 %v17576_v9  ;;  %v17625_v9 = vld [vmem:[%s23583_s5 + $0x1350] ss:$28 sps:$4 sm:$0xff]   ;;  %v17628_v21 = vld [vmem:[%s23583_s5 + $0x1388] ss:$28 sps:$4 sm:$0xff]   ;;  %v17631_v39 = vld [vmem:[%s23583_s5 + $0x13c0] ss:$28 sps:$4 sm:$0xff]  }
 0x73b   :  { %13523 = vmatpush1.bf16.msra.mxu1 %v17574_v28  ;;  %v17636_v28 = vld [vmem:[%s23583_s5 + $0x13fc] ss:$28 sps:$4 sm:$0xff]  }
 0x73c   :  { %13524 = vmatprep.subr.bf16.mxu1 %v17579_v41  ;;  %v17639_v41 = vld [vmem:[%s23583_s5 + $0x1434] ss:$28 sps:$4 sm:$0xff]  }
 0x73f   :  { %13525 = vmatpush1.bf16.msra.mxu1 %v17577_v42  ;;  %v17637_v42 = vld [vmem:[%s23583_s5 + $0x1430] ss:$28 sps:$4 sm:$0xff]  }
 0x740   :  { %13526 = vmatprep.subr.bf16.mxu1 %v17582_v59  ;;  %v17642_v59 = vld [vmem:[%s23583_s5 + $0x146c] ss:$28 sps:$4 sm:$0xff]  }
 0x743   :  { %13527 = vmatpush1.bf16.msra.mxu1 %v17580_v43  ;;  %v17640_v43 = vld [vmem:[%s23583_s5 + $0x1468] ss:$28 sps:$4 sm:$0xff]  }
 0x744   :  { %13528 = vmatprep.subr.bf16.mxu1 %v17585_v45  ;;  %v17645_v45 = vld [vmem:[%s23583_s5 + $0x14a4] ss:$28 sps:$4 sm:$0xff]  }
 0x747   :  { %13529 = vmatpush1.bf16.msra.mxu1 %v17583_v56 }
 0x748   :  { %13530 = vmatprep.subr.bf16.mxu1 %v17588_v46 }
 0x74b   :  { %13531 = vmatpush1.bf16.msra.mxu1 %v17586_v29  ;;  %v17643_v29 = vld [vmem:[%s23583_s5 + $0x14a0] ss:$28 sps:$4 sm:$0xff]  }
 0x74c   :  { %13532 = vmatprep.subr.bf16.mxu1 %v17591_v50 }
 0x74f   :  { %13533 = vmatpush1.bf16.msra.mxu1 %v17589_v49 }
 0x750   :  { %13534 = vmatprep.subr.bf16.mxu1 %v17594_v32  ;;  %v17648_v32 = vld [vmem:[%s23583_s5 + $0x14dc] ss:$28 sps:$4 sm:$0xff]  }
 0x752   :  { %v15912_v63 = vpop.f32.mrb[40].mxu0 }
 0x753   :  { %v15913_v4 = vpop.f32.mrb[41].mxu0  ;;  %13535 = vmatpush1.bf16.msra.mxu1 %v17592_v51 }
 0x754   :  { %v15914_v5 = vadd.f32 %v15913_v4, %v15912_v63  ;;  %v15915_v7 = vpop.f32.mrb[42].mxu0  ;;  %13536 = vmatprep.subr.bf16.mxu1 %v17597_v57  ;;  %v17646_v4 = vld [vmem:[%s23583_s5 + $0x14d8] ss:$28 sps:$4 sm:$0xff]  }
 0x755   :  { %v15916_v10 = vpop.f32.mrb[43].mxu0 }
 0x756   :  { %v13797_v60 = vadd.f32 %v15914_v5, %v13756_v38  ;;  %v15917_v30 = vadd.f32 %v15916_v10, %v15915_v7  ;;  %v17633_v38 = vld [vmem:[%s23583_s5 + $0x13c4] ss:$28 sps:$4 sm:$0xff]   ;;  %v17651_v5 = vld [vmem:[%s23583_s5 + $0x1514] ss:$28 sps:$4 sm:$0xff]  }
 0x757   :  { %13537 = vmatpush1.bf16.msra.mxu1 %v17595_v53  ;;  %v17649_v7 = vld [vmem:[%s23583_s5 + $0x1510] ss:$28 sps:$4 sm:$0xff]   ;;  %v17652_v10 = vld [vmem:[%s23583_s5 + $0x1548] ss:$28 sps:$4 sm:$0xff]  }
 0x758   :  { %v13800_v23 = vadd.f32 %v15917_v30, %v13759_v34  ;;  %13538 = vmatprep.subr.bf16.mxu1 %v17600_v8  ;;  %v17634_v34 = vld [vmem:[%s23583_s5 + $0x13f8] ss:$28 sps:$4 sm:$0xff]   ;;  %v17654_v8 = vld [vmem:[%s23583_s5 + $0x154c] ss:$28 sps:$4 sm:$0xff]   ;;  %v17655_v30 = vld [vmem:[%s23583_s5 + $0x1580] ss:$28 sps:$4 sm:$0xff]  }
 0x75b   :  { %13539 = vmatpush1.bf16.msra.mxu1 %v17598_v31  ;;  %v17663_v31 = vld [vmem:[%s23583_s5 + $0x15f4] ss:$28 sps:$4 sm:$0xff]  }
 0x75c   :  { %13551 = vmatprep.subr.bf16.mxu1 %v17603_v0  ;;  %v17666_v0 = vld [vmem:[%s23583_s5 + $0x162c] ss:$28 sps:$4 sm:$0xff]  }
 0x75e   :  { %13541 = vmatmul.mubr.bf16.vlgmr.msra.gmra.mrb[24].mxu1 %v20839_v61  ;;  %v17612_v61 = vld [vmem:[%s23583_s5 + $0x123c] ss:$28 sps:$4 sm:$0xff]  }
 0x75f   :  { %13552 = vmatpush1.bf16.msra.mxu1 %v17601_v19  ;;  %13583 = vmatprep.mubr.bf16.mxu1 %v20854_v52  ;;  %v17610_v52 = vld [vmem:[%s23583_s5 + $0x1238] ss:$28 sps:$4 sm:$0xff]   ;;  %v17664_v19 = vld [vmem:[%s23583_s5 + $0x1628] ss:$28 sps:$4 sm:$0xff]  }
 0x760   :  { %13553 = vmatprep.subr.bf16.mxu1 %v17606_v13  ;;  %v17669_v13 = vld [vmem:[%s23583_s5 + $0x1664] ss:$28 sps:$4 sm:$0xff]  }
 0x763   :  { %13554 = vmatpush1.bf16.msra.mxu1 %v17604_v12 }
 0x764   :  { %13555 = vmatprep.subr.bf16.mxu1 %v17609_v26 }
 0x767   :  { %13556 = vmatpush1.bf16.msra.mxu1 %v17607_v15  ;;  %v17667_v15 = vld [vmem:[%s23583_s5 + $0x1660] ss:$28 sps:$4 sm:$0xff]  }
 0x768   :  { %13557 = vmatprep.subr.bf16.mxu1 %v17612_v61 }
 0x76b   :  { %13558 = vmatpush1.bf16.msra.mxu1 %v17610_v52 }
 0x76c   :  { %13559 = vmatprep.subr.bf16.mxu1 %v17615_v11  ;;  %v17672_v11 = vld [vmem:[%s23583_s5 + $0x169c] ss:$28 sps:$4 sm:$0xff]  }
 0x76f   :  { %13560 = vmatpush1.bf16.msra.mxu1 %v17613_v16 }
 0x770   :  { %13561 = vmatprep.subr.bf16.mxu1 %v17618_v17 }
 0x772   :  { %v15934_v22 = vpop.f32.mrb[44].mxu0 }
 0x773   :  { %v15935_v55 = vpop.f32.mrb[45].mxu0  ;;  %13562 = vmatpush1.bf16.msra.mxu1 %v17616_v1 }
 0x774   :  { %v15936_v24 = vadd.f32 %v15935_v55, %v15934_v22  ;;  %v15937_v35 = vpop.f32.mrb[46].mxu0  ;;  %13563 = vmatprep.subr.bf16.mxu1 %v17621_v48  ;;  %v17670_v48 = vld [vmem:[%s23583_s5 + $0x1698] ss:$28 sps:$4 sm:$0xff]  }
 0x775   :  { %v15938_v20 = vpop.f32.mrb[47].mxu0  ;;  %v17675_v55 = vld [vmem:[%s23583_s5 + $0x16d4] ss:$28 sps:$4 sm:$0xff]  }
 0x776   :  { %v13838_v14 = vadd.f32 %v15936_v24, %v13797_v60  ;;  %v15939_v27 = vadd.f32 %v15938_v20, %v15937_v35  ;;  %v17657_v60 = vld [vmem:[%s23583_s5 + $0x1584] ss:$28 sps:$4 sm:$0xff]   ;;  %v17678_v24 = vld [vmem:[%s23583_s5 + $0x170c] ss:$28 sps:$4 sm:$0xff]  }
 0x777   :  { %13564 = vmatpush1.bf16.msra.mxu1 %v17619_v44  ;;  %v17673_v44 = vld [vmem:[%s23583_s5 + $0x16d0] ss:$28 sps:$4 sm:$0xff]   ;;  %v17676_v35 = vld [vmem:[%s23583_s5 + $0x1708] ss:$28 sps:$4 sm:$0xff]   ;;  %v17679_v20 = vld [vmem:[%s23583_s5 + $0x1740] ss:$28 sps:$4 sm:$0xff]  }
 0x778   :  { %v13841_v18 = vadd.f32 %v15939_v27, %v13800_v23  ;;  %13565 = vmatprep.subr.bf16.mxu1 %v17624_v25  ;;  %v17661_v23 = vld [vmem:[%s23583_s5 + $0x15f0] ss:$28 sps:$4 sm:$0xff]   ;;  %v17681_v25 = vld [vmem:[%s23583_s5 + $0x1744] ss:$28 sps:$4 sm:$0xff]   ;;  %v17682_v27 = vld [vmem:[%s23583_s5 + $0x1778] ss:$28 sps:$4 sm:$0xff]  }
 0x77b   :  { %13566 = vmatpush1.bf16.msra.mxu1 %v17622_v33  ;;  %v17687_v33 = vld [vmem:[%s23583_s5 + $0x17b4] ss:$28 sps:$4 sm:$0xff]  }
 0x77c   :  { %13567 = vmatprep.subr.bf16.mxu1 %v17627_v36  ;;  %v17690_v36 = vld [vmem:[%s23583_s5 + $0x17ec] ss:$28 sps:$4 sm:$0xff]  }
 0x77f   :  { %13568 = vmatpush1.bf16.msra.mxu1 %v17625_v9  ;;  %v17688_v9 = vld [vmem:[%s23583_s5 + $0x17e8] ss:$28 sps:$4 sm:$0xff]  }
 0x780   :  { %13569 = vmatprep.subr.bf16.mxu1 %v17630_v37  ;;  %v17693_v37 = vld [vmem:[%s23583_s5 + $0x1824] ss:$28 sps:$4 sm:$0xff]  }
 0x783   :  { %13570 = vmatpush1.bf16.msra.mxu1 %v17628_v21 }
 0x784   :  { %13571 = vmatprep.subr.bf16.mxu1 %v17633_v38 }
 0x787   :  { %13572 = vmatpush1.bf16.msra.mxu1 %v17631_v39  ;;  %v17691_v39 = vld [vmem:[%s23583_s5 + $0x1820] ss:$28 sps:$4 sm:$0xff]  }
 0x788   :  { %13573 = vmatprep.subr.bf16.mxu1 %v17636_v28 }
 0x78b   :  { %13574 = vmatpush1.bf16.msra.mxu1 %v17634_v34 }
 0x78c   :  { %13575 = vmatprep.subr.bf16.mxu1 %v17639_v41  ;;  %v17696_v41 = vld [vmem:[%s23583_s5 + $0x185c] ss:$28 sps:$4 sm:$0xff]  }
 0x78f   :  { %13576 = vmatpush1.bf16.msra.mxu1 %v17637_v42 }
 0x790   :  { %13577 = vmatprep.subr.bf16.mxu1 %v17642_v59 }
 0x792   :  { %v15956_v56 = vpop.f32.mrb[48].mxu0 }
 0x793   :  { %v15957_v46 = vpop.f32.mrb[49].mxu0  ;;  %13578 = vmatpush1.bf16.msra.mxu1 %v17640_v43 }
 0x794   :  { %v15958_v50 = vadd.f32 %v15957_v46, %v15956_v56  ;;  %v15959_v49 = vpop.f32.mrb[50].mxu0  ;;  %13579 = vmatprep.subr.bf16.mxu1 %v17645_v45  ;;  %v17694_v45 = vld [vmem:[%s23583_s5 + $0x1858] ss:$28 sps:$4 sm:$0xff]  }
 0x795   :  { %v15960_v51 = vpop.f32.mrb[51].mxu0  ;;  %v17699_v46 = vld [vmem:[%s23583_s5 + $0x1894] ss:$28 sps:$4 sm:$0xff]  }
 0x796   :  { %v13879_v57 = vadd.f32 %v15958_v50, %v13838_v14  ;;  %v15961_v63 = vadd.f32 %v15960_v51, %v15959_v49  ;;  %v17684_v14 = vld [vmem:[%s23583_s5 + $0x177c] ss:$28 sps:$4 sm:$0xff]   ;;  %v17702_v50 = vld [vmem:[%s23583_s5 + $0x18cc] ss:$28 sps:$4 sm:$0xff]  }
 0x797   :  { %13580 = vmatpush1.bf16.msra.mxu1 %v17643_v29  ;;  %v17697_v29 = vld [vmem:[%s23583_s5 + $0x1890] ss:$28 sps:$4 sm:$0xff]   ;;  %v17700_v49 = vld [vmem:[%s23583_s5 + $0x18c8] ss:$28 sps:$4 sm:$0xff]   ;;  %v17703_v51 = vld [vmem:[%s23583_s5 + $0x1900] ss:$28 sps:$4 sm:$0xff]  }
 0x798   :  { %v13882_v53 = vadd.f32 %v15961_v63, %v13841_v18  ;;  %13581 = vmatprep.subr.bf16.mxu1 %v17648_v32  ;;  %v17685_v18 = vld [vmem:[%s23583_s5 + $0x17b0] ss:$28 sps:$4 sm:$0xff]   ;;  %v17705_v32 = vld [vmem:[%s23583_s5 + $0x1904] ss:$28 sps:$4 sm:$0xff]  }
 0x799   :  { %v17709_v63 = vld [vmem:[%s23583_s5 + $0x1970] ss:$28 sps:$4 sm:$0xff]  }
 0x79b   :  { %13582 = vmatpush1.bf16.msra.mxu1 %v17646_v4  ;;  %v17714_v4 = vld [vmem:[%s23583_s5 + $0x19ac] ss:$28 sps:$4 sm:$0xff]  }
 0x79c   :  { %13594 = vmatprep.subr.bf16.mxu1 %v17651_v5  ;;  %v17717_v5 = vld [vmem:[%s23583_s5 + $0x19e4] ss:$28 sps:$4 sm:$0xff]  }
 0x79e   :  { %13584 = vmatmul.mubr.bf16.vlgmr.msra.gmra.mrb[24].mxu1 %v20844_v47  ;;  %v17660_v47 = vld [vmem:[%s23583_s5 + $0x15bc] ss:$28 sps:$4 sm:$0xff]  }
 0x79f   :  { %13595 = vmatpush1.bf16.msra.mxu1 %v17649_v7  ;;  %13626 = vmatprep.mubr.bf16.mxu1 %v21450_v3  ;;  %v17658_v3 = vld [vmem:[%s23583_s5 + $0x15b8] ss:$28 sps:$4 sm:$0xff]  }
 0x7a0   :  { %13596 = vmatprep.subr.bf16.mxu1 %v17654_v8 }
 0x7a3   :  { %13597 = vmatpush1.bf16.msra.mxu1 %v17652_v10  ;;  %v17715_v10 = vld [vmem:[%s23583_s5 + $0x19e0] ss:$28 sps:$4 sm:$0xff]  }
 0x7a4   :  { %13598 = vmatprep.subr.bf16.mxu1 %v17657_v60 }
 0x7a7   :  { %13599 = vmatpush1.bf16.msra.mxu1 %v17655_v30 }
 0x7a8   :  { %13600 = vmatprep.subr.bf16.mxu1 %v17660_v47  ;;  %v17720_v47 = vld [vmem:[%s23583_s5 + $0x1a1c] ss:$28 sps:$4 sm:$0xff]  }
 0x7ab   :  { %13601 = vmatpush1.bf16.msra.mxu1 %v17658_v3 }
 0x7ac   :  { %13602 = vmatprep.subr.bf16.mxu1 %v17663_v31 }
 0x7af   :  { %13603 = vmatpush1.bf16.msra.mxu1 %v17661_v23 }
 0x7b0   :  { %13604 = vmatprep.subr.bf16.mxu1 %v17666_v0  ;;  %v17718_v0 = vld [vmem:[%s23583_s5 + $0x1a18] ss:$28 sps:$4 sm:$0xff]  }
 0x7b2   :  { %v15978_v12 = vpop.f32.mrb[52].mxu0 }
 0x7b3   :  { %v15979_v26 = vpop.f32.mrb[53].mxu0  ;;  %13605 = vmatpush1.bf16.msra.mxu1 %v17664_v19 }
 0x7b4   :  { %v15980_v61 = vadd.f32 %v15979_v26, %v15978_v12  ;;  %v15981_v52 = vpop.f32.mrb[54].mxu0  ;;  %13606 = vmatprep.subr.bf16.mxu1 %v17669_v13  ;;  %v17723_v13 = vld [vmem:[%s23583_s5 + $0x1a54] ss:$28 sps:$4 sm:$0xff]   ;;  %v17726_v26 = vld [vmem:[%s23583_s5 + $0x1a8c] ss:$28 sps:$4 sm:$0xff]  }
 0x7b5   :  { %v15982_v16 = vpop.f32.mrb[55].mxu0  ;;  %v17721_v12 = vld [vmem:[%s23583_s5 + $0x1a50] ss:$28 sps:$4 sm:$0xff]  }
 0x7b6   :  { %v13920_v17 = vadd.f32 %v15980_v61, %v13879_v57  ;;  %v15983_v1 = vadd.f32 %v15982_v16, %v15981_v52  ;;  %v17711_v57 = vld [vmem:[%s23583_s5 + $0x1974] ss:$28 sps:$4 sm:$0xff]   ;;  %v17729_v61 = vld [vmem:[%s23583_s5 + $0x1ac4] ss:$28 sps:$4 sm:$0xff]  }
 0x7b7   :  { %13607 = vmatpush1.bf16.msra.mxu1 %v17667_v15  ;;  %v17724_v15 = vld [vmem:[%s23583_s5 + $0x1a88] ss:$28 sps:$4 sm:$0xff]  }
 0x7b8   :  { %v13923_v22 = vadd.f32 %v15983_v1, %v13882_v53  ;;  %13608 = vmatprep.subr.bf16.mxu1 %v17672_v11  ;;  %v17712_v53 = vld [vmem:[%s23583_s5 + $0x19a8] ss:$28 sps:$4 sm:$0xff]   ;;  %v17727_v11 = vld [vmem:[%s23583_s5 + $0x1ac0] ss:$28 sps:$4 sm:$0xff]   ;;  %v17730_v1 = vld [vmem:[%s23583_s5 + $0x1af8] ss:$28 sps:$4 sm:$0xff]  }
 0x7bb   :  { %13609 = vmatpush1.bf16.msra.mxu1 %v17670_v48  ;;  %v17735_v48 = vld [vmem:[%s23583_s5 + $0x1b34] ss:$28 sps:$4 sm:$0xff]  }
 0x7bc   :  { %13610 = vmatprep.subr.bf16.mxu1 %v17675_v55  ;;  %v17738_v55 = vld [vmem:[%s23583_s5 + $0x1b6c] ss:$28 sps:$4 sm:$0xff]  }
 0x7bf   :  { %13611 = vmatpush1.bf16.msra.mxu1 %v17673_v44  ;;  %v17736_v44 = vld [vmem:[%s23583_s5 + $0x1b68] ss:$28 sps:$4 sm:$0xff]  }
 0x7c0   :  { %13612 = vmatprep.subr.bf16.mxu1 %v17678_v24  ;;  %v17741_v24 = vld [vmem:[%s23583_s5 + $0x1ba4] ss:$28 sps:$4 sm:$0xff]  }
 0x7c3   :  { %13613 = vmatpush1.bf16.msra.mxu1 %v17676_v35  ;;  %v17739_v35 = vld [vmem:[%s23583_s5 + $0x1ba0] ss:$28 sps:$4 sm:$0xff]  }
 0x7c4   :  { %13614 = vmatprep.subr.bf16.mxu1 %v17681_v25  ;;  %v17744_v25 = vld [vmem:[%s23583_s5 + $0x1bdc] ss:$28 sps:$4 sm:$0xff]  }
 0x7c7   :  { %13615 = vmatpush1.bf16.msra.mxu1 %v17679_v20  ;;  %v17742_v20 = vld [vmem:[%s23583_s5 + $0x1bd8] ss:$28 sps:$4 sm:$0xff]  }
 0x7c8   :  { %13616 = vmatprep.subr.bf16.mxu1 %v17684_v14  ;;  %v8024_v14 = vrot.slane %v22989_v40, %v18930_v58 }
 0x7cb   :  { %13617 = vmatpush1.bf16.msra.mxu1 %v17682_v27  ;;  %v8028_v27 = vrot.slane %v22989_v40, %v18933_v62 }
 0x7cc   :  { %13618 = vmatprep.subr.bf16.mxu1 %v17687_v33 }
 0x7cf   :  { %13619 = vmatpush1.bf16.msra.mxu1 %v17685_v18 }
 0x7d0   :  { %13620 = vmatprep.subr.bf16.mxu1 %v17690_v36 }
 0x7d2   :  { %v16000_v21 = vpop.f32.mrb[56].mxu0 }
 0x7d3   :  { %v16001_v38 = vpop.f32.mrb[57].mxu0  ;;  %13621 = vmatpush1.bf16.msra.mxu1 %v17688_v9 }
 0x7d4   :  { %v16002_v28 = vadd.f32 %v16001_v38, %v16000_v21  ;;  %v16003_v34 = vpop.f32.mrb[58].mxu0  ;;  %13622 = vmatprep.subr.bf16.mxu1 %v17693_v37 }
 0x7d5   :  { %v16004_v42 = vpop.f32.mrb[59].mxu0 }
 0x7d6   :  { %v13961_v59 = vadd.f32 %v16002_v28, %v13920_v17  ;;  %v16005_v43 = vadd.f32 %v16004_v42, %v16003_v34  ;;  %v17732_v17 = vld [vmem:[%s23583_s5 + $0x1afc] ss:$28 sps:$4 sm:$0xff]  }
 0x7d7   :  { %13623 = vmatpush1.bf16.msra.mxu1 %v17691_v39 }
 0x7d8   :  { %v13964_v56 = vadd.f32 %v16005_v43, %v13923_v22  ;;  %13624 = vmatprep.subr.bf16.mxu1 %v17696_v41  ;;  %v17733_v22 = vld [vmem:[%s23583_s5 + $0x1b30] ss:$28 sps:$4 sm:$0xff]  }
 0x7db   :  { %13625 = vmatpush1.bf16.msra.mxu1 %v17694_v45 }
 0x7dc   :  { %13637 = vmatprep.subr.bf16.mxu1 %v17699_v46 }
 0x7de   :  { %13627 = vmatmul.mubr.bf16.vlgmr.msra.gmra.mrb[24].mxu1 %v21443_v54  ;;  %v17708_v54 = vld [vmem:[%s23583_s5 + $0x193c] ss:$28 sps:$4 sm:$0xff]  }
 0x7df   :  { %13638 = vmatpush1.bf16.msra.mxu1 %v17697_v29  ;;  %13669 = vmatprep.mubr.bf16.mxu1 %v21458_v6  ;;  %v17706_v6 = vld [vmem:[%s23583_s5 + $0x1938] ss:$28 sps:$4 sm:$0xff]  }
 0x7e0   :  { %13639 = vmatprep.subr.bf16.mxu1 %v17702_v50 }
 0x7e3   :  { %13640 = vmatpush1.bf16.msra.mxu1 %v17700_v49 }
 0x7e4   :  { %13641 = vmatprep.subr.bf16.mxu1 %v17705_v32 }
 0x7e7   :  { %13642 = vmatpush1.bf16.msra.mxu1 %v17703_v51 }
 0x7e8   :  { %13643 = vmatprep.subr.bf16.mxu1 %v17708_v54 }
 0x7eb   :  { %13644 = vmatpush1.bf16.msra.mxu1 %v17706_v6 }
 0x7ec   :  { %13645 = vmatprep.subr.bf16.mxu1 %v17711_v57 }
 0x7ef   :  { %13646 = vmatpush1.bf16.msra.mxu1 %v17709_v63 }
 0x7f0   :  { %13647 = vmatprep.subr.bf16.mxu1 %v17714_v4 }
 0x7f2   :  { %v16022_v7 = vpop.f32.mrb[60].mxu0 }
 0x7f3   :  { %v16023_v8 = vpop.f32.mrb[61].mxu0  ;;  %13648 = vmatpush1.bf16.msra.mxu1 %v17712_v53 }
 0x7f4   :  { %v16024_v60 = vadd.f32 %v16023_v8, %v16022_v7  ;;  %v16025_v30 = vpop.f32.mrb[62].mxu0  ;;  %13649 = vmatprep.subr.bf16.mxu1 %v17717_v5 }
 0x7f5   :  { %v16026_v3 = vpop.f32.mrb[63].mxu0 }
 0x7f6   :  { %v14002_v31 = vadd.f32 %v16024_v60, %v13961_v59  ;;  %v16027_v23 = vadd.f32 %v16026_v3, %v16025_v30 }
 0x7f7   :  { %13650 = vmatpush1.bf16.msra.mxu1 %v17715_v10 }
 0x7f8   :  { %17761 = vtanh.f32 %v14002_v31  ;;  %v14005_v19 = vadd.f32 %v16027_v23, %v13964_v56  ;;  %13651 = vmatprep.subr.bf16.mxu1 %v17720_v47 }
 0x7fa   :  { %17763 = vtanh.f32 %v14005_v19 }
 0x7fb   :  { %13652 = vmatpush1.bf16.msra.mxu1 %v17718_v0 }
 0x7fc   :  { %13653 = vmatprep.subr.bf16.mxu1 %v17723_v13 }
 0x7ff   :  { %13654 = vmatpush1.bf16.msra.mxu1 %v17721_v12 }
 0x800   :  { %13655 = vmatprep.subr.bf16.mxu1 %v17726_v26 }
 0x802   :  { %v17762_v52 = vpop.eup %17761 }
 0x803   :  { %14029 = vst.msk [vmem:[%s23585_s7 + $0x30] sm:$0xff] %vm14028_vm0, %v17762_v52  ;;  %13656 = vmatpush1.bf16.msra.mxu1 %v17724_v15 }
 0x804   :  { %v17764_v16 = vpop.eup %17763  ;;  %13657 = vmatprep.subr.bf16.mxu1 %v17729_v61 }
 0x805   :  { %14036 = vst.msk [vmem:[%s23585_s7 + $0x68] sm:$0xff] %vm14028_vm0, %v17764_v16 }
 0x807   :  { %13658 = vmatpush1.bf16.msra.mxu1 %v17727_v11 }
 0x808   :  { %13659 = vmatprep.subr.bf16.mxu1 %v17732_v17 }
 0x80b   :  { %13660 = vmatpush1.bf16.msra.mxu1 %v17730_v1 }
 0x80c   :  { %13661 = vmatprep.subr.bf16.mxu1 %v17735_v48 }
 0x80f   :  { %13662 = vmatpush1.bf16.msra.mxu1 %v17733_v22 }
 0x810   :  { %13663 = vmatprep.subr.bf16.mxu1 %v17738_v55 }
 0x813   :  { %13664 = vmatpush1.bf16.msra.mxu1 %v17736_v44 }
 0x814   :  { %13665 = vmatprep.subr.bf16.mxu1 %v17741_v24 }
 0x817   :  { %13666 = vmatpush1.bf16.msra.mxu1 %v17739_v35 }
 0x818   :  { %13667 = vmatprep.subr.bf16.mxu1 %v17744_v25 }
 0x81b   :  { %13668 = vmatpush1.bf16.msra.mxu1 %v17742_v20 }
 0x81e   :  { %13670 = vmatmul.mubr.bf16.vlgmr.msra.gmra.mrb[24].mxu1 %v21448_v2 }
 0x8f1   :  { %v13671_v33 = vpop.f32.mrb[24].mxu1 }
 0x8f2   :  { %v16084_v18 = vadd.f32 %v13671_v33, %v8024_v14  ;;  %v13673_v36 = vpop.f32.mrb[25].mxu1 }
 0x8f3   :  { %v16085_v9 = vadd.f32 %v13673_v36, %v8028_v27  ;;  %v13675_v37 = vpop.f32.mrb[26].mxu1 }
 0x8f4   :  { %17765 = vtanh.f32 %v16084_v18  ;;  %v16086_v21 = vadd.f32 %v13675_v37, %v8024_v14  ;;  %v13677_v38 = vpop.f32.mrb[27].mxu1 }
 0x8f5   :  { %17767 = vtanh.f32 %v16085_v9  ;;  %v16087_v39 = vadd.f32 %v13677_v38, %v8028_v27 }
 0x8f6   :  { %17769 = vtanh.f32 %v16086_v21 }
 0x8f7   :  { %17771 = vtanh.f32 %v16087_v39 }
 0x8fe   :  { %v17766_v28 = vpop.eup %17765 }
 0x8ff   :  { %v17768_v2 = vpop.eup %17767  ;;  %14026 = vst [vmem:[%s23585_s7 + $0x20] sm:$0xff] %v17766_v28 }
 0x900   :  { %v17770_v58 = vpop.eup %17769  ;;  %14027 = vst [vmem:[%s23585_s7 + $0x28] sm:$0xff] %v17768_v2 }
 0x901   :  { %v17772_v62 = vpop.eup %17771  ;;  %14034 = vst [vmem:[%s23585_s7 + $0x58] sm:$0xff] %v17770_v58 }
 0x902   :  { %14035 = vst [vmem:[%s23585_s7 + $0x60] sm:$0xff] %v17772_v62 }

</bundles_post_ra>
